<compile_context>
chip_gen: v7x
topology: tpu7x:2x2x1
jax: 0.10.0
libtpu: 0.0.40
codegen_flags: <defaults>
</compile_context>

<pallas_src>
import math
from functools import partial

import jax
import jax.numpy as jnp
from jax.experimental import pallas as pl
from jax.experimental.pallas import tpu as pltpu

EPS = 1e-5
_VMEM_LIMIT = 48 * 1024 * 1024  # explicit scoped-VMEM budget (fits v7x 64 MiB)


def _ru(x, m):
    return ((x + m - 1) // m) * m


# ---------------------------------------------------------------------------
# Kernel 1: fused matmul + bias (+ReLU)  -- used for 1x1 convs and the two
# stride-2 stem convs (via im2col on tiny channel counts).
# ---------------------------------------------------------------------------
def _mm_bn_kernel(relu, x_ref, w_ref, b_ref, o_ref):
    acc = jnp.dot(x_ref[...], w_ref[...], preferred_element_type=jnp.float32)
    y = acc + b_ref[...]
    if relu:
        y = jnp.maximum(y, 0.0)
    o_ref[...] = y.astype(o_ref.dtype)


def _pick_tm(Mp):
    """Row tile: up to 512 rows, keep >=2 grid steps when Mp allows it."""
    if Mp <= 128:
        return Mp
    tm = max(128, min(512, (Mp // 2) // 128 * 128))
    while Mp % tm:
        tm -= 128
    return tm


def pallas_matmul_bn(X, W, bias, relu):
    """X:(M,K), W:(K,N) scale-folded, bias:(N,). Returns (M,N) bf16."""
    M, K = X.shape
    _, N = W.shape
    Mp = _ru(max(M, 128), 128)
    Np = _ru(max(N, 128), 128)
    Kp = _ru(K, 16)                      # sublane-pack alignment only
    TM = _pick_tm(Mp)
    Xp = jnp.pad(X, ((0, Mp - M), (0, Kp - K))).astype(jnp.bfloat16)
    Wq = jnp.pad(W, ((0, Kp - K), (0, Np - N))).astype(jnp.bfloat16)
    bq = jnp.pad(bias, (0, Np - N)).reshape(1, Np).astype(jnp.float32)
    out = pl.pallas_call(
        partial(_mm_bn_kernel, relu),
        out_shape=jax.ShapeDtypeStruct((Mp, Np), jnp.bfloat16),
        grid_spec=pltpu.PrefetchScalarGridSpec(
            num_scalar_prefetch=0,
            grid=(Mp // TM,),
            in_specs=[
                pl.BlockSpec((TM, Kp), lambda i: (i, 0)),
                pl.BlockSpec((Kp, Np), lambda i: (0, 0)),
                pl.BlockSpec((1, Np), lambda i: (0, 0)),
            ],
            out_specs=pl.BlockSpec((TM, Np), lambda i: (i, 0)),
        ),
        compiler_params=pltpu.CompilerParams(
            dimension_semantics=("parallel",),
            vmem_limit_bytes=_VMEM_LIMIT),
    )(Xp, Wq, bq)
    return out[:M, :N]


# ---------------------------------------------------------------------------
# Kernel 2: 3x3 stride-1 pad-1 conv with in-kernel tap formation (no im2col).
# The padded image is flattened to (N*Hp*Wp, Cin); output row q = oh*Wp + ow
# (per image) reads taps at flat offsets di*Wp + dj, which are static slices
# of an aligned dynamic window load.  Garbage rows (W-pad columns / trailing
# halo) are computed and sliced away outside the kernel.
# ---------------------------------------------------------------------------
def _conv3x3_kernel(relu, Wp, TM, halo, x_ref, w_ref, b_ref, o_ref):
    base = pl.multiple_of(pl.program_id(0) * TM, 16)      # bf16 tile aligned
    win = x_ref[pl.ds(base, TM + halo), :]                 # (TM+halo, Cin) bf16
    acc = jnp.zeros(o_ref.shape, jnp.float32)
    for di in range(3):
        for dj in range(3):
            off = di * Wp + dj
            acc = acc + jnp.dot(win[off:off + TM, :], w_ref[3 * di + dj],
                                preferred_element_type=jnp.float32)
    acc = acc + b_ref[...]
    if relu:
        acc = jnp.maximum(acc, 0.0)
    o_ref[...] = acc.astype(o_ref.dtype)


def _flat_tile(Mq):
    """Row tile / padded extent for the flat conv3x3 output (multiples of 16)."""
    if Mq <= 128:
        tm = _ru(max(Mq, 16), 16)
    elif Mq <= 512:
        tm = _ru((Mq + 1) // 2, 16)     # >=2 grid steps (v7x megacore)
    else:
        tm = 256
    return tm, _ru(Mq, tm)


def pallas_conv3x3_s1(x, w9, bias, relu):
    """x:(N,H,W,Cin) NHWC, w9:(9,Cin,Cout) BN-folded, bias:(Cout,) -> (N,H,W,Cout)."""
    N, H, W, Cin = x.shape
    Cout = w9.shape[-1]
    Hp, Wp = H + 2, W + 2
    Cp = _ru(Cin, 16)
    Coutp = _ru(max(Cout, 128), 128)
    halo = 2 * Wp + 2
    rows = N * Hp * Wp
    Mq = rows - halo
    TM, Mp = _flat_tile(Mq)
    Min = Mp + halo
    xp = jnp.pad(x, ((0, 0), (1, 1), (1, 1), (0, Cp - Cin))).astype(jnp.bfloat16)
    xf = jnp.pad(xp.reshape(rows, Cp), ((0, Min - rows), (0, 0)))
    wq = jnp.pad(w9, ((0, 0), (0, Cp - Cin), (0, Coutp - Cout))).astype(jnp.bfloat16)
    bq = jnp.pad(bias, (0, Coutp - Cout)).reshape(1, Coutp).astype(jnp.float32)
    out = pl.pallas_call(
        partial(_conv3x3_kernel, relu, Wp, TM, halo),
        out_shape=jax.ShapeDtypeStruct((Mp, Coutp), jnp.bfloat16),
        grid_spec=pltpu.PrefetchScalarGridSpec(
            num_scalar_prefetch=0,
            grid=(Mp // TM,),
            in_specs=[
                # whole flat padded image stays resident (constant block index)
                pl.BlockSpec((Min, Cp), lambda i: (0, 0)),
                pl.BlockSpec((9, Cp, Coutp), lambda i: (0, 0, 0)),
                pl.BlockSpec((1, Coutp), lambda i: (0, 0)),
            ],
            out_specs=pl.BlockSpec((TM, Coutp), lambda i: (i, 0)),
        ),
        compiler_params=pltpu.CompilerParams(
            dimension_semantics=("parallel",),
            vmem_limit_bytes=_VMEM_LIMIT),
    )(xf, wq, bq)
    if Mp < rows:
        out = jnp.pad(out, ((0, rows - Mp), (0, 0)))
    return out[:rows].reshape(N, Hp, Wp, Coutp)[:, :H, :W, :Cout]


# ---------------------------------------------------------------------------
# Kernel 3: 3x3 stride-2 pad-1 depthwise conv (avd) and avg-pool.
# The padded activation is parity-decomposed once in JAX (1x traffic); the 9
# taps are then unit-stride static slices of the per-image VMEM block.
# ---------------------------------------------------------------------------
def _taps_sum(x_ref, OH, OW, weights):
    acc = None
    for di in range(3):
        for dj in range(3):
            pidx = (di % 2) * 2 + (dj % 2)
            plane = x_ref[0, pidx]                               # (OH+1, OW+1, C)
            tap = plane[di // 2:di // 2 + OH,
                        dj // 2:dj // 2 + OW, :].astype(jnp.float32)
            term = tap if weights is None else tap * weights[3 * di + dj]
            acc = term if acc is None else acc + term
    return acc


def _dw3x3_s2_kernel(relu, OH, OW, x_ref, w_ref, b_ref, o_ref):
    acc = _taps_sum(x_ref, OH, OW, w_ref) + b_ref[...]
    if relu:
        acc = jnp.maximum(acc, 0.0)
    o_ref[0] = acc.astype(o_ref.dtype)


def _pool3x3_s2_kernel(OH, OW, x_ref, o_ref):
    acc = _taps_sum(x_ref, OH, OW, None)
    o_ref[0] = (acc * (1.0 / 9.0)).astype(o_ref.dtype)


def _parity_split(x):
    """(N,H,W,C) -> padded, parity-decomposed (N, 4, H//2+1, W//2+1, C)."""
    N, H, W, C = x.shape
    assert H % 2 == 0 and W % 2 == 0
    OH, OW = H // 2, W // 2
    xp = jnp.pad(x, ((0, 0), (1, 1), (1, 1), (0, 0)))
    xs = xp.reshape(N, OH + 1, 2, OW + 1, 2, C).transpose(0, 2, 4, 1, 3, 5)
    return xs.reshape(N, 4, OH + 1, OW + 1, C), OH, OW


def _dwpool_call(kernel, xs, extra_inputs, extra_specs, N, OH, OW, C):
    return pl.pallas_call(
        kernel,
        out_shape=jax.ShapeDtypeStruct((N, OH, OW, C), jnp.bfloat16),
        grid_spec=pltpu.PrefetchScalarGridSpec(
            num_scalar_prefetch=0,
            grid=(N,),
            in_specs=[pl.BlockSpec((1, 4, OH + 1, OW + 1, C),
                                   lambda n: (n, 0, 0, 0, 0))] + extra_specs,
            out_specs=pl.BlockSpec((1, OH, OW, C), lambda n: (n, 0, 0, 0)),
        ),
        compiler_params=pltpu.CompilerParams(
            dimension_semantics=("parallel",),
            vmem_limit_bytes=_VMEM_LIMIT),
    )(xs, *extra_inputs)


def pallas_dw3x3_s2(x, w9, bias, relu=False):
    """Depthwise 3x3 stride-2 pad-1 + folded BN. x NHWC -> (N,H/2,W/2,C)."""
    N, H, W, C = x.shape
    xs, OH, OW = _parity_split(x.astype(jnp.bfloat16))
    wq = w9.reshape(9, 1, 1, C).astype(jnp.float32)
    bq = bias.reshape(1, 1, C).astype(jnp.float32)
    specs = [pl.BlockSpec((9, 1, 1, C), lambda n: (0, 0, 0, 0)),
             pl.BlockSpec((1, 1, C), lambda n: (0, 0, 0))]
    return _dwpool_call(partial(_dw3x3_s2_kernel, relu, OH, OW),
                        xs, (wq, bq), specs, N, OH, OW, C)


def pallas_avgpool3x3_s2(x):
    """nn.AvgPool2d(3, 2, 1), count_include_pad=True (divisor 9)."""
    N, H, W, C = x.shape
    xs, OH, OW = _parity_split(x.astype(jnp.bfloat16))
    return _dwpool_call(partial(_pool3x3_s2_kernel, OH, OW),
                        xs, (), [], N, OH, OW, C)


# ---------------------------------------------------------------------------
# JAX glue: im2col only for the two stride-2 stem convs (Cin = 3 / base//2).
# ---------------------------------------------------------------------------
def extract_patches(x, k, stride, pad):
    N, H, W, C = x.shape
    if pad > 0:
        x = jnp.pad(x, ((0, 0), (pad, pad), (pad, pad), (0, 0)))
    OH = (H + 2 * pad - k) // stride + 1
    OW = (W + 2 * pad - k) // stride + 1
    cols = [x[:, di:di + stride * (OH - 1) + 1:stride,
               dj:dj + stride * (OW - 1) + 1:stride, :]
            for di in range(k) for dj in range(k)]
    return jnp.stack(cols, axis=3), OH, OW


# ---------------------------------------------------------------------------
# Parameter construction (deterministic synthetic; BN folded for inference)
# ---------------------------------------------------------------------------
class ParamGen:
    def __init__(self, key):
        self.key = key
        self.count = 0

    def normal(self, shape, scale=1.0):
        self.count += 1
        k = jax.random.fold_in(self.key, self.count)
        return scale * jax.random.normal(k, shape, dtype=jnp.float32)


def _fold_bn(gen, c):
    gamma = 1.0 + 0.1 * gen.normal((c,))
    beta = 0.1 * gen.normal((c,))
    mean = 0.01 * gen.normal((c,))
    var = 1.0 + jnp.abs(0.1 * gen.normal((c,)))
    scale = gamma / jnp.sqrt(var + EPS)
    bias = beta - mean * scale
    return scale, bias


def make_cbr(gen, cin, cout, k, stride):
    """ConvBNRelu: Conv2d(k, stride, pad=k//2, bias=False) + BN + ReLU (folded)."""
    w = gen.normal((k, k, cin, cout), scale=math.sqrt(2.0 / (k * k * cin)))
    scale, bias = _fold_bn(gen, cout)
    return dict(w_hwio=w * scale[None, None, None, :], bias=bias,
                k=k, stride=stride, pad=k // 2, relu=True, cin=cin, cout=cout)


def make_dw(gen, c):
    """avd_layer: depthwise Conv2d(3, s2, p1, groups=c, bias=False) + BN (folded)."""
    w = gen.normal((3, 3, c), scale=math.sqrt(2.0 / 9.0))
    scale, bias = _fold_bn(gen, c)
    return dict(w_hwio=w * scale[None, None, :], bias=bias)


def make_cat_block(gen, in_planes, out_planes, block_num, stride):
    blk = {"stride": stride, "convs": [], "avd": None}
    s = stride
    if stride == 2:
        blk["avd"] = make_dw(gen, out_planes // 2)
        s = 1
    for idx in range(block_num):
        if idx == 0:
            blk["convs"].append(make_cbr(gen, in_planes, out_planes // 2, 1, 1))
        elif idx == 1 and block_num == 2:
            blk["convs"].append(make_cbr(gen, out_planes // 2, out_planes // 2, 3, s))
        elif idx == 1 and block_num > 2:
            blk["convs"].append(make_cbr(gen, out_planes // 2, out_planes // 4, 3, s))
        elif idx < block_num - 1:
            blk["convs"].append(make_cbr(gen, out_planes // int(math.pow(2, idx)),
                                         out_planes // int(math.pow(2, idx + 1)), 3, 1))
        else:
            blk["convs"].append(make_cbr(gen, out_planes // int(math.pow(2, idx)),
                                         out_planes // int(math.pow(2, idx)), 3, 1))
    return blk


def make_stdcnet(gen, base, layers, block_num):
    features = [("cbr", make_cbr(gen, 3, base // 2, 3, 2)),
                ("cbr", make_cbr(gen, base // 2, base, 3, 2))]
    for i, layer in enumerate(layers):
        for j in range(layer):
            if i == 0 and j == 0:
                features.append(("cat", make_cat_block(gen, base, base * 4, block_num, 2)))
            elif j == 0:
                features.append(("cat", make_cat_block(gen, base * int(math.pow(2, i + 1)),
                                                       base * int(math.pow(2, i + 2)),
                                                       block_num, 2)))
            else:
                features.append(("cat", make_cat_block(gen, base * int(math.pow(2, i + 2)),
                                                       base * int(math.pow(2, i + 2)),
                                                       block_num, 1)))
    return features


# ---------------------------------------------------------------------------
# Forward (NHWC, bf16 activations internally)
# ---------------------------------------------------------------------------
def run_cbr(x, p):
    N, H, W, Cin = x.shape
    k, stride = p["k"], p["stride"]
    if k == 1:
        y = pallas_matmul_bn(x.reshape(N * H * W, Cin),
                             p["w_hwio"].reshape(Cin, p["cout"]),
                             p["bias"], p["relu"])
        return y.reshape(N, H, W, p["cout"])
    if stride == 1:
        return pallas_conv3x3_s1(x, p["w_hwio"].reshape(9, Cin, p["cout"]),
                                 p["bias"], p["relu"])
    # stride-2 stem convs (tiny Cin) via im2col matmul
    patches, OH, OW = extract_patches(x, k, stride, p["pad"])
    X = patches.reshape(N * OH * OW, k * k * Cin)
    y = pallas_matmul_bn(X, p["w_hwio"].reshape(k * k * Cin, p["cout"]),
                         p["bias"], p["relu"])
    return y.reshape(N, OH, OW, p["cout"])


def run_dw(x, p):
    C = x.shape[-1]
    return pallas_dw3x3_s2(x, p["w_hwio"].reshape(9, C), p["bias"], relu=False)


def run_cat_block(x, blk):
    convs = blk["convs"]
    out1 = run_cbr(x, convs[0])
    if blk["stride"] == 2:
        out = run_cbr(run_dw(out1, blk["avd"]), convs[1])
    else:
        out = run_cbr(out1, convs[1])
    outs = [out]
    for c in convs[2:]:
        out = run_cbr(out, c)
        outs.append(out)
    if blk["stride"] == 2:
        out1 = pallas_avgpool3x3_s2(out1)
    return jnp.concatenate([out1] + outs, axis=-1)


def stdcnet_forward(x_nchw, features, stage_slices):
    x = jnp.transpose(x_nchw, (0, 2, 3, 1)).astype(jnp.bfloat16)   # NHWC bf16
    feats = []
    for (lo, hi) in stage_slices:
        for kind, p in features[lo:hi]:
            x = run_cbr(x, p) if kind == "cbr" else run_cat_block(x, p)
        feats.append(jnp.transpose(x, (0, 3, 1, 2)).astype(jnp.float32))  # NCHW f32
    return tuple(feats)


# ---------------------------------------------------------------------------
# XLA reference (same folded params / bf16 activations) for numerical check
# ---------------------------------------------------------------------------
def _ref_cbr(x, p):
    w = p["w_hwio"].astype(jnp.bfloat16)
    y = jax.lax.conv_general_dilated(
        x, w, (p["stride"], p["stride"]), [(p["pad"], p["pad"])] * 2,
        dimension_numbers=("NHWC", "HWIO", "NHWC"),
        preferred_element_type=jnp.float32)
    y = y + p["bias"]
    if p["relu"]:
        y = jnp.maximum(y, 0.0)
    return y.astype(jnp.bfloat16)


def _ref_dw(x, p):
    C = x.shape[-1]
    w = p["w_hwio"].reshape(3, 3, 1, C)
    y = jax.lax.conv_general_dilated(
        x.astype(jnp.float32), w, (2, 2), [(1, 1), (1, 1)],
        dimension_numbers=("NHWC", "HWIO", "NHWC"),
        feature_group_count=C, preferred_element_type=jnp.float32)
    return (y + p["bias"]).astype(jnp.bfloat16)


def _ref_pool(x):
    y = jax.lax.reduce_window(x.astype(jnp.float32), 0.0, jax.lax.add,
                              (1, 3, 3, 1), (1, 2, 2, 1),
                              [(0, 0), (1, 1), (1, 1), (0, 0)])
    return (y * (1.0 / 9.0)).astype(jnp.bfloat16)


def _ref_cat_block(x, blk):
    convs = blk["convs"]
    out1 = _ref_cbr(x, convs[0])
    if blk["stride"] == 2:
        out = _ref_cbr(_ref_dw(out1, blk["avd"]), convs[1])
    else:
        out = _ref_cbr(out1, convs[1])
    outs = [out]
    for c in convs[2:]:
        out = _ref_cbr(out, c)
        outs.append(out)
    if blk["stride"] == 2:
        out1 = _ref_pool(out1)
    return jnp.concatenate([out1] + outs, axis=-1)


def stdcnet_reference(x_nchw, features, stage_slices):
    x = jnp.transpose(x_nchw, (0, 2, 3, 1)).astype(jnp.bfloat16)
    feats = []
    for (lo, hi) in stage_slices:
        for kind, p in features[lo:hi]:
            x = _ref_cbr(x, p) if kind == "cbr" else _ref_cat_block(x, p)
        feats.append(jnp.transpose(x, (0, 3, 1, 2)).astype(jnp.float32))
    return tuple(feats)


# ---------------------------------------------------------------------------
if __name__ == "__main__":
    key = jax.random.PRNGKey(0)
    gen = ParamGen(key)

    base, layers, block_num = 16, [2, 2, 2], 4   # small STDCNet config ('cat')
    features = make_stdcnet(gen, base, layers, block_num)
    # layers == [2, 2, 2] staging from the reference module:
    stage_slices = [(0, 1), (1, 2), (2, 4), (4, 6), (6, len(features))]

    x = jax.random.normal(jax.random.fold_in(key, 999), (2, 3, 64, 64), jnp.float32)

    fwd = jax.jit(partial(stdcnet_forward, features=features,
                          stage_slices=stage_slices))
    feats = jax.block_until_ready(fwd(x))

    ref = jax.jit(partial(stdcnet_reference, features=features,
                          stage_slices=stage_slices))
    ref_feats = jax.block_until_ready(ref(x))

    expected_c = [base // 2, base, base * 4, base * 8, base * 16]
    expected_hw = [32, 16, 8, 4, 2]
    for f, r, c, hw in zip(feats, ref_feats, expected_c, expected_hw):
        assert f.shape == (2, c, hw, hw), f.shape
        assert bool(jnp.all(jnp.isfinite(f)))
        err = float(jnp.max(jnp.abs(f - r)) / (jnp.max(jnp.abs(r)) + 1e-6))
        assert err < 0.1, ("mismatch vs XLA reference", err)
    print("KERNEL_OK")
</pallas_src>

<mosaic_0001>
module attributes {stable_mosaic.version = 11 : i64} {
  func.func @_mm_bn_kernel(%arg0: i32, %arg1: memref<512x32xbf16, #tpu.memory_space<vmem>>, %arg2: memref<32x128xbf16, #tpu.memory_space<vmem>>, %arg3: memref<1x128xf32, #tpu.memory_space<vmem>>, %arg4: memref<512x128xbf16, #tpu.memory_space<vmem>>) attributes {dimension_semantics = [#tpu.dimension_semantics<parallel>], iteration_bounds = array<i64: 4>, scalar_prefetch = 0 : i64, scratch_operands = 0 : i64, tpu.core_type = #tpu.core_type<tc>, window_params = [{transform_indices = @transform_0, window_bounds = array<i64: 512, 32>}, {pipeline_mode = #tpu.pipeline_mode<synchronous>, transform_indices = @transform_1, window_bounds = array<i64: 32, 128>}, {pipeline_mode = #tpu.pipeline_mode<synchronous>, transform_indices = @transform_2, window_bounds = array<i64: 1, 128>}, {transform_indices = @transform_3, window_bounds = array<i64: 512, 128>}]} {
    %c0 = arith.constant 0 : index
    %c0_0 = arith.constant 0 : index
    %0 = vector.load %arg1[%c0, %c0_0] : memref<512x32xbf16, #tpu.memory_space<vmem>>, vector<512x32xbf16>
    %c0_1 = arith.constant 0 : index
    %c0_2 = arith.constant 0 : index
    %1 = vector.load %arg2[%c0_1, %c0_2] : memref<32x128xbf16, #tpu.memory_space<vmem>>, vector<32x128xbf16>
    %cst = arith.constant dense<0.000000e+00> : vector<512x128xf32>
    %2 = tpu.matmul %0, %1, %cst {dimension_numbers = #tpu.dot_dimension_numbers<[1], [0], [0], [1], [0, 0, 1, 1], [], []>} : vector<512x32xbf16>, vector<32x128xbf16>, vector<512x128xf32> -> vector<512x128xf32>
    %c0_3 = arith.constant 0 : index
    %c0_4 = arith.constant 0 : index
    %3 = vector.load %arg3[%c0_3, %c0_4] : memref<1x128xf32, #tpu.memory_space<vmem>>, vector<1x128xf32>
    %4 = vector.broadcast %3 : vector<1x128xf32> to vector<512x128xf32>
    %5 = arith.addf %2, %4 : vector<512x128xf32>
    %cst_5 = arith.constant 0.000000e+00 : f32
    %6 = vector.broadcast %cst_5 : f32 to vector<512x128xf32>
    %7 = arith.maximumf %5, %6 : vector<512x128xf32>
    %8 = arith.truncf %7 : vector<512x128xf32> to vector<512x128xbf16>
    %c0_6 = arith.constant 0 : index
    %c0_7 = arith.constant 0 : index
    %9 = vector.load %arg4[%c0_6, %c0_7] : memref<512x128xbf16, #tpu.memory_space<vmem>>, vector<512x128xbf16>
    tpu.vector_store %arg4[%c0_6, %c0_7], %8 {strides = array<i32>} : memref<512x128xbf16, #tpu.memory_space<vmem>>, vector<512x128xbf16>,
    return
  }
  func.func @transform_0(%arg0: i32) -> (i32, i32) {
    %c0_i32 = arith.constant 0 : i32
    %c0_i32_0 = arith.constant 0 : i32
    return %arg0, %c0_i32 : i32, i32
  }
  func.func @transform_1(%arg0: i32) -> (i32, i32) {
    %c0_i32 = arith.constant 0 : i32
    %c0_i32_0 = arith.constant 0 : i32
    %c0_i32_1 = arith.constant 0 : i32
    return %c0_i32, %c0_i32_0 : i32, i32
  }
  func.func @transform_2(%arg0: i32) -> (i32, i32) {
    %c0_i32 = arith.constant 0 : i32
    %c0_i32_0 = arith.constant 0 : i32
    %c0_i32_1 = arith.constant 0 : i32
    return %c0_i32, %c0_i32_0 : i32, i32
  }
  func.func @transform_3(%arg0: i32) -> (i32, i32) {
    %c0_i32 = arith.constant 0 : i32
    %c0_i32_0 = arith.constant 0 : i32
    return %arg0, %c0_i32 : i32, i32
  }
}

module attributes {stable_mosaic.version = 11 : i64} {
  func.func @_mm_bn_kernel(%arg0: i32, %arg1: memref<256x80xbf16, #tpu.memory_space<vmem>>, %arg2: memref<80x128xbf16, #tpu.memory_space<vmem>>, %arg3: memref<1x128xf32, #tpu.memory_space<vmem>>, %arg4: memref<256x128xbf16, #tpu.memory_space<vmem>>) attributes {dimension_semantics = [#tpu.dimension_semantics<parallel>], iteration_bounds = array<i64: 2>, scalar_prefetch = 0 : i64, scratch_operands = 0 : i64, tpu.core_type = #tpu.core_type<tc>, window_params = [{transform_indices = @transform_0, window_bounds = array<i64: 256, 80>}, {pipeline_mode = #tpu.pipeline_mode<synchronous>, transform_indices = @transform_1, window_bounds = array<i64: 80, 128>}, {pipeline_mode = #tpu.pipeline_mode<synchronous>, transform_indices = @transform_2, window_bounds = array<i64: 1, 128>}, {transform_indices = @transform_3, window_bounds = array<i64: 256, 128>}]} {
    %c0 = arith.constant 0 : index
    %c0_0 = arith.constant 0 : index
    %0 = vector.load %arg1[%c0, %c0_0] : memref<256x80xbf16, #tpu.memory_space<vmem>>, vector<256x80xbf16>
    %c0_1 = arith.constant 0 : index
    %c0_2 = arith.constant 0 : index
    %1 = vector.load %arg2[%c0_1, %c0_2] : memref<80x128xbf16, #tpu.memory_space<vmem>>, vector<80x128xbf16>
    %cst = arith.constant dense<0.000000e+00> : vector<256x128xf32>
    %2 = tpu.matmul %0, %1, %cst {dimension_numbers = #tpu.dot_dimension_numbers<[1], [0], [0], [1], [0, 0, 1, 1], [], []>} : vector<256x80xbf16>, vector<80x128xbf16>, vector<256x128xf32> -> vector<256x128xf32>
    %c0_3 = arith.constant 0 : index
    %c0_4 = arith.constant 0 : index
    %3 = vector.load %arg3[%c0_3, %c0_4] : memref<1x128xf32, #tpu.memory_space<vmem>>, vector<1x128xf32>
    %4 = vector.broadcast %3 : vector<1x128xf32> to vector<256x128xf32>
    %5 = arith.addf %2, %4 : vector<256x128xf32>
    %cst_5 = arith.constant 0.000000e+00 : f32
    %6 = vector.broadcast %cst_5 : f32 to vector<256x128xf32>
    %7 = arith.maximumf %5, %6 : vector<256x128xf32>
    %8 = arith.truncf %7 : vector<256x128xf32> to vector<256x128xbf16>
    %c0_6 = arith.constant 0 : index
    %c0_7 = arith.constant 0 : index
    %9 = vector.load %arg4[%c0_6, %c0_7] : memref<256x128xbf16, #tpu.memory_space<vmem>>, vector<256x128xbf16>
    tpu.vector_store %arg4[%c0_6, %c0_7], %8 {strides = array<i32>} : memref<256x128xbf16, #tpu.memory_space<vmem>>, vector<256x128xbf16>,
    return
  }
  func.func @transform_0(%arg0: i32) -> (i32, i32) {
    %c0_i32 = arith.constant 0 : i32
    %c0_i32_0 = arith.constant 0 : i32
    return %arg0, %c0_i32 : i32, i32
  }
  func.func @transform_1(%arg0: i32) -> (i32, i32) {
    %c0_i32 = arith.constant 0 : i32
    %c0_i32_0 = arith.constant 0 : i32
    %c0_i32_1 = arith.constant 0 : i32
    return %c0_i32, %c0_i32_0 : i32, i32
  }
  func.func @transform_2(%arg0: i32) -> (i32, i32) {
    %c0_i32 = arith.constant 0 : i32
    %c0_i32_0 = arith.constant 0 : i32
    %c0_i32_1 = arith.constant 0 : i32
    return %c0_i32, %c0_i32_0 : i32, i32
  }
  func.func @transform_3(%arg0: i32) -> (i32, i32) {
    %c0_i32 = arith.constant 0 : i32
    %c0_i32_0 = arith.constant 0 : i32
    return %arg0, %c0_i32 : i32, i32
  }
}

module attributes {stable_mosaic.version = 11 : i64} {
  func.func @_mm_bn_kernel(%arg0: i32, %arg1: memref<256x16xbf16, #tpu.memory_space<vmem>>, %arg2: memref<16x128xbf16, #tpu.memory_space<vmem>>, %arg3: memref<1x128xf32, #tpu.memory_space<vmem>>, %arg4: memref<256x128xbf16, #tpu.memory_space<vmem>>) attributes {dimension_semantics = [#tpu.dimension_semantics<parallel>], iteration_bounds = array<i64: 2>, scalar_prefetch = 0 : i64, scratch_operands = 0 : i64, tpu.core_type = #tpu.core_type<tc>, window_params = [{transform_indices = @transform_0, window_bounds = array<i64: 256, 16>}, {pipeline_mode = #tpu.pipeline_mode<synchronous>, transform_indices = @transform_1, window_bounds = array<i64: 16, 128>}, {pipeline_mode = #tpu.pipeline_mode<synchronous>, transform_indices = @transform_2, window_bounds = array<i64: 1, 128>}, {transform_indices = @transform_3, window_bounds = array<i64: 256, 128>}]} {
    %c0 = arith.constant 0 : index
    %c0_0 = arith.constant 0 : index
    %0 = vector.load %arg1[%c0, %c0_0] : memref<256x16xbf16, #tpu.memory_space<vmem>>, vector<256x16xbf16>
    %c0_1 = arith.constant 0 : index
    %c0_2 = arith.constant 0 : index
    %1 = vector.load %arg2[%c0_1, %c0_2] : memref<16x128xbf16, #tpu.memory_space<vmem>>, vector<16x128xbf16>
    %cst = arith.constant dense<0.000000e+00> : vector<256x128xf32>
    %2 = tpu.matmul %0, %1, %cst {dimension_numbers = #tpu.dot_dimension_numbers<[1], [0], [0], [1], [0, 0, 1, 1], [], []>} : vector<256x16xbf16>, vector<16x128xbf16>, vector<256x128xf32> -> vector<256x128xf32>
    %c0_3 = arith.constant 0 : index
    %c0_4 = arith.constant 0 : index
    %3 = vector.load %arg3[%c0_3, %c0_4] : memref<1x128xf32, #tpu.memory_space<vmem>>, vector<1x128xf32>
    %4 = vector.broadcast %3 : vector<1x128xf32> to vector<256x128xf32>
    %5 = arith.addf %2, %4 : vector<256x128xf32>
    %cst_5 = arith.constant 0.000000e+00 : f32
    %6 = vector.broadcast %cst_5 : f32 to vector<256x128xf32>
    %7 = arith.maximumf %5, %6 : vector<256x128xf32>
    %8 = arith.truncf %7 : vector<256x128xf32> to vector<256x128xbf16>
    %c0_6 = arith.constant 0 : index
    %c0_7 = arith.constant 0 : index
    %9 = vector.load %arg4[%c0_6, %c0_7] : memref<256x128xbf16, #tpu.memory_space<vmem>>, vector<256x128xbf16>
    tpu.vector_store %arg4[%c0_6, %c0_7], %8 {strides = array<i32>} : memref<256x128xbf16, #tpu.memory_space<vmem>>, vector<256x128xbf16>,
    return
  }
  func.func @transform_0(%arg0: i32) -> (i32, i32) {
    %c0_i32 = arith.constant 0 : i32
    %c0_i32_0 = arith.constant 0 : i32
    return %arg0, %c0_i32 : i32, i32
  }
  func.func @transform_1(%arg0: i32) -> (i32, i32) {
    %c0_i32 = arith.constant 0 : i32
    %c0_i32_0 = arith.constant 0 : i32
    %c0_i32_1 = arith.constant 0 : i32
    return %c0_i32, %c0_i32_0 : i32, i32
  }
  func.func @transform_2(%arg0: i32) -> (i32, i32) {
    %c0_i32 = arith.constant 0 : i32
    %c0_i32_0 = arith.constant 0 : i32
    %c0_i32_1 = arith.constant 0 : i32
    return %c0_i32, %c0_i32_0 : i32, i32
  }
  func.func @transform_3(%arg0: i32) -> (i32, i32) {
    %c0_i32 = arith.constant 0 : i32
    %c0_i32_0 = arith.constant 0 : i32
    return %arg0, %c0_i32 : i32, i32
  }
}

module attributes {stable_mosaic.version = 11 : i64} {
  func.func @_dw3x3_s2_kernel(%arg0: i32, %arg1: memref<1x4x9x9x32xbf16, #tpu.memory_space<vmem>>, %arg2: memref<9x1x1x32xf32, #tpu.memory_space<vmem>>, %arg3: memref<1x1x32xf32, #tpu.memory_space<vmem>>, %arg4: memref<1x8x8x32xbf16, #tpu.memory_space<vmem>>) attributes {dimension_semantics = [#tpu.dimension_semantics<parallel>], iteration_bounds = array<i64: 2>, scalar_prefetch = 0 : i64, scratch_operands = 0 : i64, tpu.core_type = #tpu.core_type<tc>, window_params = [{transform_indices = @transform_0, window_bounds = array<i64: 1, 4, 9, 9, 32>}, {pipeline_mode = #tpu.pipeline_mode<synchronous>, transform_indices = @transform_1, window_bounds = array<i64: 9, 1, 1, 32>}, {pipeline_mode = #tpu.pipeline_mode<synchronous>, transform_indices = @transform_2, window_bounds = array<i64: 1, 1, 32>}, {transform_indices = @transform_3, window_bounds = array<i64: 1, 8, 8, 32>}]} {
    %c0 = arith.constant 0 : index
    %c0_0 = arith.constant 0 : index
    %c0_1 = arith.constant 0 : index
    %c0_2 = arith.constant 0 : index
    %c0_3 = arith.constant 0 : index
    %0 = vector.load %arg1[%c0, %c0_0, %c0_1, %c0_2, %c0_3] : memref<1x4x9x9x32xbf16, #tpu.memory_space<vmem>>, vector<1x1x9x9x32xbf16>
    %1 = vector.shape_cast %0 : vector<1x1x9x9x32xbf16> to vector<9x9x32xbf16>
    %2 = vector.extract_strided_slice %1 {offsets = [0, 0, 0], sizes = [8, 8, 32], strides = [1, 1, 1]} : vector<9x9x32xbf16> to vector<8x8x32xbf16>
    %3 = arith.extf %2 : vector<8x8x32xbf16> to vector<8x8x32xf32>
    %c0_4 = arith.constant 0 : index
    %c0_5 = arith.constant 0 : index
    %c0_6 = arith.constant 0 : index
    %c0_7 = arith.constant 0 : index
    %4 = vector.load %arg2[%c0_4, %c0_5, %c0_6, %c0_7] : memref<9x1x1x32xf32, #tpu.memory_space<vmem>>, vector<1x1x1x32xf32>
    %5 = vector.shape_cast %4 : vector<1x1x1x32xf32> to vector<1x1x32xf32>
    %6 = vector.broadcast %5 : vector<1x1x32xf32> to vector<8x8x32xf32>
    %7 = arith.mulf %3, %6 : vector<8x8x32xf32>
    %c0_8 = arith.constant 0 : index
    %c1 = arith.constant 1 : index
    %c0_9 = arith.constant 0 : index
    %c0_10 = arith.constant 0 : index
    %c0_11 = arith.constant 0 : index
    %8 = vector.load %arg1[%c0_8, %c1, %c0_9, %c0_10, %c0_11] : memref<1x4x9x9x32xbf16, #tpu.memory_space<vmem>>, vector<1x1x9x9x32xbf16>
    %9 = vector.shape_cast %8 : vector<1x1x9x9x32xbf16> to vector<9x9x32xbf16>
    %10 = vector.extract_strided_slice %9 {offsets = [0, 0, 0], sizes = [8, 8, 32], strides = [1, 1, 1]} : vector<9x9x32xbf16> to vector<8x8x32xbf16>
    %11 = arith.extf %10 : vector<8x8x32xbf16> to vector<8x8x32xf32>
    %c1_12 = arith.constant 1 : index
    %c0_13 = arith.constant 0 : index
    %c0_14 = arith.constant 0 : index
    %c0_15 = arith.constant 0 : index
    %12 = vector.load %arg2[%c1_12, %c0_13, %c0_14, %c0_15] : memref<9x1x1x32xf32, #tpu.memory_space<vmem>>, vector<1x1x1x32xf32>
    %13 = vector.shape_cast %12 : vector<1x1x1x32xf32> to vector<1x1x32xf32>
    %14 = vector.broadcast %13 : vector<1x1x32xf32> to vector<8x8x32xf32>
    %15 = arith.mulf %11, %14 : vector<8x8x32xf32>
    %16 = arith.addf %7, %15 : vector<8x8x32xf32>
    %c0_16 = arith.constant 0 : index
    %c0_17 = arith.constant 0 : index
    %c0_18 = arith.constant 0 : index
    %c0_19 = arith.constant 0 : index
    %c0_20 = arith.constant 0 : index
    %17 = vector.load %arg1[%c0_16, %c0_17, %c0_18, %c0_19, %c0_20] : memref<1x4x9x9x32xbf16, #tpu.memory_space<vmem>>, vector<1x1x9x9x32xbf16>
    %18 = vector.shape_cast %17 : vector<1x1x9x9x32xbf16> to vector<9x9x32xbf16>
    %19 = vector.extract_strided_slice %18 {offsets = [0, 1, 0], sizes = [8, 8, 32], strides = [1, 1, 1]} : vector<9x9x32xbf16> to vector<8x8x32xbf16>
    %20 = arith.extf %19 : vector<8x8x32xbf16> to vector<8x8x32xf32>
    %c2 = arith.constant 2 : index
    %c0_21 = arith.constant 0 : index
    %c0_22 = arith.constant 0 : index
    %c0_23 = arith.constant 0 : index
    %21 = vector.load %arg2[%c2, %c0_21, %c0_22, %c0_23] : memref<9x1x1x32xf32, #tpu.memory_space<vmem>>, vector<1x1x1x32xf32>
    %22 = vector.shape_cast %21 : vector<1x1x1x32xf32> to vector<1x1x32xf32>
    %23 = vector.broadcast %22 : vector<1x1x32xf32> to vector<8x8x32xf32>
    %24 = arith.mulf %20, %23 : vector<8x8x32xf32>
    %25 = arith.addf %16, %24 : vector<8x8x32xf32>
    %c0_24 = arith.constant 0 : index
    %c2_25 = arith.constant 2 : index
    %c0_26 = arith.constant 0 : index
    %c0_27 = arith.constant 0 : index
    %c0_28 = arith.constant 0 : index
    %26 = vector.load %arg1[%c0_24, %c2_25, %c0_26, %c0_27, %c0_28] : memref<1x4x9x9x32xbf16, #tpu.memory_space<vmem>>, vector<1x1x9x9x32xbf16>
    %27 = vector.shape_cast %26 : vector<1x1x9x9x32xbf16> to vector<9x9x32xbf16>
    %28 = vector.extract_strided_slice %27 {offsets = [0, 0, 0], sizes = [8, 8, 32], strides = [1, 1, 1]} : vector<9x9x32xbf16> to vector<8x8x32xbf16>
    %29 = arith.extf %28 : vector<8x8x32xbf16> to vector<8x8x32xf32>
    %c3 = arith.constant 3 : index
    %c0_29 = arith.constant 0 : index
    %c0_30 = arith.constant 0 : index
    %c0_31 = arith.constant 0 : index
    %30 = vector.load %arg2[%c3, %c0_29, %c0_30, %c0_31] : memref<9x1x1x32xf32, #tpu.memory_space<vmem>>, vector<1x1x1x32xf32>
    %31 = vector.shape_cast %30 : vector<1x1x1x32xf32> to vector<1x1x32xf32>
    %32 = vector.broadcast %31 : vector<1x1x32xf32> to vector<8x8x32xf32>
    %33 = arith.mulf %29, %32 : vector<8x8x32xf32>
    %34 = arith.addf %25, %33 : vector<8x8x32xf32>
    %c0_32 = arith.constant 0 : index
    %c3_33 = arith.constant 3 : index
    %c0_34 = arith.constant 0 : index
    %c0_35 = arith.constant 0 : index
    %c0_36 = arith.constant 0 : index
    %35 = vector.load %arg1[%c0_32, %c3_33, %c0_34, %c0_35, %c0_36] : memref<1x4x9x9x32xbf16, #tpu.memory_space<vmem>>, vector<1x1x9x9x32xbf16>
    %36 = vector.shape_cast %35 : vector<1x1x9x9x32xbf16> to vector<9x9x32xbf16>
    %37 = vector.extract_strided_slice %36 {offsets = [0, 0, 0], sizes = [8, 8, 32], strides = [1, 1, 1]} : vector<9x9x32xbf16> to vector<8x8x32xbf16>
    %38 = arith.extf %37 : vector<8x8x32xbf16> to vector<8x8x32xf32>
    %c4 = arith.constant 4 : index
    %c0_37 = arith.constant 0 : index
    %c0_38 = arith.constant 0 : index
    %c0_39 = arith.constant 0 : index
    %39 = vector.load %arg2[%c4, %c0_37, %c0_38, %c0_39] : memref<9x1x1x32xf32, #tpu.memory_space<vmem>>, vector<1x1x1x32xf32>
    %40 = vector.shape_cast %39 : vector<1x1x1x32xf32> to vector<1x1x32xf32>
    %41 = vector.broadcast %40 : vector<1x1x32xf32> to vector<8x8x32xf32>
    %42 = arith.mulf %38, %41 : vector<8x8x32xf32>
    %43 = arith.addf %34, %42 : vector<8x8x32xf32>
    %c0_40 = arith.constant 0 : index
    %c2_41 = arith.constant 2 : index
    %c0_42 = arith.constant 0 : index
    %c0_43 = arith.constant 0 : index
    %c0_44 = arith.constant 0 : index
    %44 = vector.load %arg1[%c0_40, %c2_41, %c0_42, %c0_43, %c0_44] : memref<1x4x9x9x32xbf16, #tpu.memory_space<vmem>>, vector<1x1x9x9x32xbf16>
    %45 = vector.shape_cast %44 : vector<1x1x9x9x32xbf16> to vector<9x9x32xbf16>
    %46 = vector.extract_strided_slice %45 {offsets = [0, 1, 0], sizes = [8, 8, 32], strides = [1, 1, 1]} : vector<9x9x32xbf16> to vector<8x8x32xbf16>
    %47 = arith.extf %46 : vector<8x8x32xbf16> to vector<8x8x32xf32>
    %c5 = arith.constant 5 : index
    %c0_45 = arith.constant 0 : index
    %c0_46 = arith.constant 0 : index
    %c0_47 = arith.constant 0 : index
    %48 = vector.load %arg2[%c5, %c0_45, %c0_46, %c0_47] : memref<9x1x1x32xf32, #tpu.memory_space<vmem>>, vector<1x1x1x32xf32>
    %49 = vector.shape_cast %48 : vector<1x1x1x32xf32> to vector<1x1x32xf32>
    %50 = vector.broadcast %49 : vector<1x1x32xf32> to vector<8x8x32xf32>
    %51 = arith.mulf %47, %50 : vector<8x8x32xf32>
    %52 = arith.addf %43, %51 : vector<8x8x32xf32>
    %c0_48 = arith.constant 0 : index
    %c0_49 = arith.constant 0 : index
    %c0_50 = arith.constant 0 : index
    %c0_51 = arith.constant 0 : index
    %c0_52 = arith.constant 0 : index
    %53 = vector.load %arg1[%c0_48, %c0_49, %c0_50, %c0_51, %c0_52] : memref<1x4x9x9x32xbf16, #tpu.memory_space<vmem>>, vector<1x1x9x9x32xbf16>
    %54 = vector.shape_cast %53 : vector<1x1x9x9x32xbf16> to vector<9x9x32xbf16>
    %55 = vector.extract_strided_slice %54 {offsets = [1, 0, 0], sizes = [8, 8, 32], strides = [1, 1, 1]} : vector<9x9x32xbf16> to vector<8x8x32xbf16>
    %56 = arith.extf %55 : vector<8x8x32xbf16> to vector<8x8x32xf32>
    %c6 = arith.constant 6 : index
    %c0_53 = arith.constant 0 : index
    %c0_54 = arith.constant 0 : index
    %c0_55 = arith.constant 0 : index
    %57 = vector.load %arg2[%c6, %c0_53, %c0_54, %c0_55] : memref<9x1x1x32xf32, #tpu.memory_space<vmem>>, vector<1x1x1x32xf32>
    %58 = vector.shape_cast %57 : vector<1x1x1x32xf32> to vector<1x1x32xf32>
    %59 = vector.broadcast %58 : vector<1x1x32xf32> to vector<8x8x32xf32>
    %60 = arith.mulf %56, %59 : vector<8x8x32xf32>
    %61 = arith.addf %52, %60 : vector<8x8x32xf32>
    %c0_56 = arith.constant 0 : index
    %c1_57 = arith.constant 1 : index
    %c0_58 = arith.constant 0 : index
    %c0_59 = arith.constant 0 : index
    %c0_60 = arith.constant 0 : index
    %62 = vector.load %arg1[%c0_56, %c1_57, %c0_58, %c0_59, %c0_60] : memref<1x4x9x9x32xbf16, #tpu.memory_space<vmem>>, vector<1x1x9x9x32xbf16>
    %63 = vector.shape_cast %62 : vector<1x1x9x9x32xbf16> to vector<9x9x32xbf16>
    %64 = vector.extract_strided_slice %63 {offsets = [1, 0, 0], sizes = [8, 8, 32], strides = [1, 1, 1]} : vector<9x9x32xbf16> to vector<8x8x32xbf16>
    %65 = arith.extf %64 : vector<8x8x32xbf16> to vector<8x8x32xf32>
    %c7 = arith.constant 7 : index
    %c0_61 = arith.constant 0 : index
    %c0_62 = arith.constant 0 : index
    %c0_63 = arith.constant 0 : index
    %66 = vector.load %arg2[%c7, %c0_61, %c0_62, %c0_63] : memref<9x1x1x32xf32, #tpu.memory_space<vmem>>, vector<1x1x1x32xf32>
    %67 = vector.shape_cast %66 : vector<1x1x1x32xf32> to vector<1x1x32xf32>
    %68 = vector.broadcast %67 : vector<1x1x32xf32> to vector<8x8x32xf32>
    %69 = arith.mulf %65, %68 : vector<8x8x32xf32>
    %70 = arith.addf %61, %69 : vector<8x8x32xf32>
    %c0_64 = arith.constant 0 : index
    %c0_65 = arith.constant 0 : index
    %c0_66 = arith.constant 0 : index
    %c0_67 = arith.constant 0 : index
    %c0_68 = arith.constant 0 : index
    %71 = vector.load %arg1[%c0_64, %c0_65, %c0_66, %c0_67, %c0_68] : memref<1x4x9x9x32xbf16, #tpu.memory_space<vmem>>, vector<1x1x9x9x32xbf16>
    %72 = vector.shape_cast %71 : vector<1x1x9x9x32xbf16> to vector<9x9x32xbf16>
    %73 = vector.extract_strided_slice %72 {offsets = [1, 1, 0], sizes = [8, 8, 32], strides = [1, 1, 1]} : vector<9x9x32xbf16> to vector<8x8x32xbf16>
    %74 = arith.extf %73 : vector<8x8x32xbf16> to vector<8x8x32xf32>
    %c8 = arith.constant 8 : index
    %c0_69 = arith.constant 0 : index
    %c0_70 = arith.constant 0 : index
    %c0_71 = arith.constant 0 : index
    %75 = vector.load %arg2[%c8, %c0_69, %c0_70, %c0_71] : memref<9x1x1x32xf32, #tpu.memory_space<vmem>>, vector<1x1x1x32xf32>
    %76 = vector.shape_cast %75 : vector<1x1x1x32xf32> to vector<1x1x32xf32>
    %77 = vector.broadcast %76 : vector<1x1x32xf32> to vector<8x8x32xf32>
    %78 = arith.mulf %74, %77 : vector<8x8x32xf32>
    %79 = arith.addf %70, %78 : vector<8x8x32xf32>
    %c0_72 = arith.constant 0 : index
    %c0_73 = arith.constant 0 : index
    %c0_74 = arith.constant 0 : index
    %80 = vector.load %arg3[%c0_72, %c0_73, %c0_74] : memref<1x1x32xf32, #tpu.memory_space<vmem>>, vector<1x1x32xf32>
    %81 = vector.broadcast %80 : vector<1x1x32xf32> to vector<8x8x32xf32>
    %82 = arith.addf %79, %81 : vector<8x8x32xf32>
    %83 = arith.truncf %82 : vector<8x8x32xf32> to vector<8x8x32xbf16>
    %c0_75 = arith.constant 0 : index
    %c0_76 = arith.constant 0 : index
    %c0_77 = arith.constant 0 : index
    %c0_78 = arith.constant 0 : index
    %84 = vector.load %arg4[%c0_75, %c0_76, %c0_77, %c0_78] : memref<1x8x8x32xbf16, #tpu.memory_space<vmem>>, vector<1x8x8x32xbf16>
    %85 = vector.shape_cast %84 : vector<1x8x8x32xbf16> to vector<8x8x32xbf16>
    %86 = vector.shape_cast %83 : vector<8x8x32xbf16> to vector<1x8x8x32xbf16>
    tpu.vector_store %arg4[%c0_75, %c0_76, %c0_77, %c0_78], %86 {strides = array<i32>} : memref<1x8x8x32xbf16, #tpu.memory_space<vmem>>, vector<1x8x8x32xbf16>,
    return
  }
  func.func @transform_0(%arg0: i32) -> (i32, i32, i32, i32, i32) {
    %c0_i32 = arith.constant 0 : i32
    %c0_i32_0 = arith.constant 0 : i32
    %c0_i32_1 = arith.constant 0 : i32
    %c0_i32_2 = arith.constant 0 : i32
    %c0_i32_3 = arith.constant 0 : i32
    return %arg0, %c0_i32, %c0_i32_0, %c0_i32_1, %c0_i32_2 : i32, i32, i32, i32, i32
  }
  func.func @transform_1(%arg0: i32) -> (i32, i32, i32, i32) {
    %c0_i32 = arith.constant 0 : i32
    %c0_i32_0 = arith.constant 0 : i32
    %c0_i32_1 = arith.constant 0 : i32
    %c0_i32_2 = arith.constant 0 : i32
    %c0_i32_3 = arith.constant 0 : i32
    return %c0_i32, %c0_i32_0, %c0_i32_1, %c0_i32_2 : i32, i32, i32, i32
  }
  func.func @transform_2(%arg0: i32) -> (i32, i32, i32) {
    %c0_i32 = arith.constant 0 : i32
    %c0_i32_0 = arith.constant 0 : i32
    %c0_i32_1 = arith.constant 0 : i32
    %c0_i32_2 = arith.constant 0 : i32
    return %c0_i32, %c0_i32_0, %c0_i32_1 : i32, i32, i32
  }
  func.func @transform_3(%arg0: i32) -> (i32, i32, i32, i32) {
    %c0_i32 = arith.constant 0 : i32
    %c0_i32_0 = arith.constant 0 : i32
    %c0_i32_1 = arith.constant 0 : i32
    %c0_i32_2 = arith.constant 0 : i32
    return %arg0, %c0_i32, %c0_i32_0, %c0_i32_1 : i32, i32, i32, i32
  }
}

module attributes {stable_mosaic.version = 11 : i64} {
  func.func @_conv3x3_kernel(%arg0: i32, %arg1: memref<214x32xbf16, #tpu.memory_space<vmem>>, %arg2: memref<9x32x128xbf16, #tpu.memory_space<vmem>>, %arg3: memref<1x128xf32, #tpu.memory_space<vmem>>, %arg4: memref<96x128xbf16, #tpu.memory_space<vmem>>) attributes {dimension_semantics = [#tpu.dimension_semantics<parallel>], iteration_bounds = array<i64: 2>, scalar_prefetch = 0 : i64, scratch_operands = 0 : i64, tpu.core_type = #tpu.core_type<tc>, window_params = [{pipeline_mode = #tpu.pipeline_mode<synchronous>, transform_indices = @transform_0, window_bounds = array<i64: 214, 32>}, {pipeline_mode = #tpu.pipeline_mode<synchronous>, transform_indices = @transform_1, window_bounds = array<i64: 9, 32, 128>}, {pipeline_mode = #tpu.pipeline_mode<synchronous>, transform_indices = @transform_2, window_bounds = array<i64: 1, 128>}, {transform_indices = @transform_3, window_bounds = array<i64: 96, 128>}]} {
    %c96_i32 = arith.constant 96 : i32
    %0 = arith.muli %arg0, %c96_i32 : i32
    %1 = tpu.assume_multiple %0, 16 : i32
    %2 = arith.index_cast %1 : i32 to index
    %c0 = arith.constant 0 : index
    %3 = vector.load %arg1[%2, %c0] : memref<214x32xbf16, #tpu.memory_space<vmem>>, vector<118x32xbf16>
    %cst = arith.constant 0.000000e+00 : f32
    %4 = vector.broadcast %cst : f32 to vector<96x128xf32>
    %5 = vector.extract_strided_slice %3 {offsets = [0, 0], sizes = [96, 32], strides = [1, 1]} : vector<118x32xbf16> to vector<96x32xbf16>
    %c0_0 = arith.constant 0 : index
    %c0_1 = arith.constant 0 : index
    %c0_2 = arith.constant 0 : index
    %6 = vector.load %arg2[%c0_0, %c0_1, %c0_2] : memref<9x32x128xbf16, #tpu.memory_space<vmem>>, vector<1x32x128xbf16>
    %7 = vector.shape_cast %6 : vector<1x32x128xbf16> to vector<32x128xbf16>
    %cst_3 = arith.constant dense<0.000000e+00> : vector<96x128xf32>
    %8 = tpu.matmul %5, %7, %cst_3 {dimension_numbers = #tpu.dot_dimension_numbers<[1], [0], [0], [1], [0, 0, 1, 1], [], []>} : vector<96x32xbf16>, vector<32x128xbf16>, vector<96x128xf32> -> vector<96x128xf32>
    %9 = arith.addf %4, %8 : vector<96x128xf32>
    %10 = vector.extract_strided_slice %3 {offsets = [1, 0], sizes = [96, 32], strides = [1, 1]} : vector<118x32xbf16> to vector<96x32xbf16>
    %c1 = arith.constant 1 : index
    %c0_4 = arith.constant 0 : index
    %c0_5 = arith.constant 0 : index
    %11 = vector.load %arg2[%c1, %c0_4, %c0_5] : memref<9x32x128xbf16, #tpu.memory_space<vmem>>, vector<1x32x128xbf16>
    %12 = vector.shape_cast %11 : vector<1x32x128xbf16> to vector<32x128xbf16>
    %cst_6 = arith.constant dense<0.000000e+00> : vector<96x128xf32>
    %13 = tpu.matmul %10, %12, %cst_6 {dimension_numbers = #tpu.dot_dimension_numbers<[1], [0], [0], [1], [0, 0, 1, 1], [], []>} : vector<96x32xbf16>, vector<32x128xbf16>, vector<96x128xf32> -> vector<96x128xf32>
    %14 = arith.addf %9, %13 : vector<96x128xf32>
    %15 = vector.extract_strided_slice %3 {offsets = [2, 0], sizes = [96, 32], strides = [1, 1]} : vector<118x32xbf16> to vector<96x32xbf16>
    %c2 = arith.constant 2 : index
    %c0_7 = arith.constant 0 : index
    %c0_8 = arith.constant 0 : index
    %16 = vector.load %arg2[%c2, %c0_7, %c0_8] : memref<9x32x128xbf16, #tpu.memory_space<vmem>>, vector<1x32x128xbf16>
    %17 = vector.shape_cast %16 : vector<1x32x128xbf16> to vector<32x128xbf16>
    %cst_9 = arith.constant dense<0.000000e+00> : vector<96x128xf32>
    %18 = tpu.matmul %15, %17, %cst_9 {dimension_numbers = #tpu.dot_dimension_numbers<[1], [0], [0], [1], [0, 0, 1, 1], [], []>} : vector<96x32xbf16>, vector<32x128xbf16>, vector<96x128xf32> -> vector<96x128xf32>
    %19 = arith.addf %14, %18 : vector<96x128xf32>
    %20 = vector.extract_strided_slice %3 {offsets = [10, 0], sizes = [96, 32], strides = [1, 1]} : vector<118x32xbf16> to vector<96x32xbf16>
    %c3 = arith.constant 3 : index
    %c0_10 = arith.constant 0 : index
    %c0_11 = arith.constant 0 : index
    %21 = vector.load %arg2[%c3, %c0_10, %c0_11] : memref<9x32x128xbf16, #tpu.memory_space<vmem>>, vector<1x32x128xbf16>
    %22 = vector.shape_cast %21 : vector<1x32x128xbf16> to vector<32x128xbf16>
    %cst_12 = arith.constant dense<0.000000e+00> : vector<96x128xf32>
    %23 = tpu.matmul %20, %22, %cst_12 {dimension_numbers = #tpu.dot_dimension_numbers<[1], [0], [0], [1], [0, 0, 1, 1], [], []>} : vector<96x32xbf16>, vector<32x128xbf16>, vector<96x128xf32> -> vector<96x128xf32>
    %24 = arith.addf %19, %23 : vector<96x128xf32>
    %25 = vector.extract_strided_slice %3 {offsets = [11, 0], sizes = [96, 32], strides = [1, 1]} : vector<118x32xbf16> to vector<96x32xbf16>
    %c4 = arith.constant 4 : index
    %c0_13 = arith.constant 0 : index
    %c0_14 = arith.constant 0 : index
    %26 = vector.load %arg2[%c4, %c0_13, %c0_14] : memref<9x32x128xbf16, #tpu.memory_space<vmem>>, vector<1x32x128xbf16>
    %27 = vector.shape_cast %26 : vector<1x32x128xbf16> to vector<32x128xbf16>
    %cst_15 = arith.constant dense<0.000000e+00> : vector<96x128xf32>
    %28 = tpu.matmul %25, %27, %cst_15 {dimension_numbers = #tpu.dot_dimension_numbers<[1], [0], [0], [1], [0, 0, 1, 1], [], []>} : vector<96x32xbf16>, vector<32x128xbf16>, vector<96x128xf32> -> vector<96x128xf32>
    %29 = arith.addf %24, %28 : vector<96x128xf32>
    %30 = vector.extract_strided_slice %3 {offsets = [12, 0], sizes = [96, 32], strides = [1, 1]} : vector<118x32xbf16> to vector<96x32xbf16>
    %c5 = arith.constant 5 : index
    %c0_16 = arith.constant 0 : index
    %c0_17 = arith.constant 0 : index
    %31 = vector.load %arg2[%c5, %c0_16, %c0_17] : memref<9x32x128xbf16, #tpu.memory_space<vmem>>, vector<1x32x128xbf16>
    %32 = vector.shape_cast %31 : vector<1x32x128xbf16> to vector<32x128xbf16>
    %cst_18 = arith.constant dense<0.000000e+00> : vector<96x128xf32>
    %33 = tpu.matmul %30, %32, %cst_18 {dimension_numbers = #tpu.dot_dimension_numbers<[1], [0], [0], [1], [0, 0, 1, 1], [], []>} : vector<96x32xbf16>, vector<32x128xbf16>, vector<96x128xf32> -> vector<96x128xf32>
    %34 = arith.addf %29, %33 : vector<96x128xf32>
    %35 = vector.extract_strided_slice %3 {offsets = [20, 0], sizes = [96, 32], strides = [1, 1]} : vector<118x32xbf16> to vector<96x32xbf16>
    %c6 = arith.constant 6 : index
    %c0_19 = arith.constant 0 : index
    %c0_20 = arith.constant 0 : index
    %36 = vector.load %arg2[%c6, %c0_19, %c0_20] : memref<9x32x128xbf16, #tpu.memory_space<vmem>>, vector<1x32x128xbf16>
    %37 = vector.shape_cast %36 : vector<1x32x128xbf16> to vector<32x128xbf16>
    %cst_21 = arith.constant dense<0.000000e+00> : vector<96x128xf32>
    %38 = tpu.matmul %35, %37, %cst_21 {dimension_numbers = #tpu.dot_dimension_numbers<[1], [0], [0], [1], [0, 0, 1, 1], [], []>} : vector<96x32xbf16>, vector<32x128xbf16>, vector<96x128xf32> -> vector<96x128xf32>
    %39 = arith.addf %34, %38 : vector<96x128xf32>
    %40 = vector.extract_strided_slice %3 {offsets = [21, 0], sizes = [96, 32], strides = [1, 1]} : vector<118x32xbf16> to vector<96x32xbf16>
    %c7 = arith.constant 7 : index
    %c0_22 = arith.constant 0 : index
    %c0_23 = arith.constant 0 : index
    %41 = vector.load %arg2[%c7, %c0_22, %c0_23] : memref<9x32x128xbf16, #tpu.memory_space<vmem>>, vector<1x32x128xbf16>
    %42 = vector.shape_cast %41 : vector<1x32x128xbf16> to vector<32x128xbf16>
    %cst_24 = arith.constant dense<0.000000e+00> : vector<96x128xf32>
    %43 = tpu.matmul %40, %42, %cst_24 {dimension_numbers = #tpu.dot_dimension_numbers<[1], [0], [0], [1], [0, 0, 1, 1], [], []>} : vector<96x32xbf16>, vector<32x128xbf16>, vector<96x128xf32> -> vector<96x128xf32>
    %44 = arith.addf %39, %43 : vector<96x128xf32>
    %45 = vector.extract_strided_slice %3 {offsets = [22, 0], sizes = [96, 32], strides = [1, 1]} : vector<118x32xbf16> to vector<96x32xbf16>
    %c8 = arith.constant 8 : index
    %c0_25 = arith.constant 0 : index
    %c0_26 = arith.constant 0 : index
    %46 = vector.load %arg2[%c8, %c0_25, %c0_26] : memref<9x32x128xbf16, #tpu.memory_space<vmem>>, vector<1x32x128xbf16>
    %47 = vector.shape_cast %46 : vector<1x32x128xbf16> to vector<32x128xbf16>
    %cst_27 = arith.constant dense<0.000000e+00> : vector<96x128xf32>
    %48 = tpu.matmul %45, %47, %cst_27 {dimension_numbers = #tpu.dot_dimension_numbers<[1], [0], [0], [1], [0, 0, 1, 1], [], []>} : vector<96x32xbf16>, vector<32x128xbf16>, vector<96x128xf32> -> vector<96x128xf32>
    %49 = arith.addf %44, %48 : vector<96x128xf32>
    %c0_28 = arith.constant 0 : index
    %c0_29 = arith.constant 0 : index
    %50 = vector.load %arg3[%c0_28, %c0_29] : memref<1x128xf32, #tpu.memory_space<vmem>>, vector<1x128xf32>
    %51 = vector.broadcast %50 : vector<1x128xf32> to vector<96x128xf32>
    %52 = arith.addf %49, %51 : vector<96x128xf32>
    %cst_30 = arith.constant 0.000000e+00 : f32
    %53 = vector.broadcast %cst_30 : f32 to vector<96x128xf32>
    %54 = arith.maximumf %52, %53 : vector<96x128xf32>
    %55 = arith.truncf %54 : vector<96x128xf32> to vector<96x128xbf16>
    %c0_31 = arith.constant 0 : index
    %c0_32 = arith.constant 0 : index
    %56 = vector.load %arg4[%c0_31, %c0_32] : memref<96x128xbf16, #tpu.memory_space<vmem>>, vector<96x128xbf16>
    tpu.vector_store %arg4[%c0_31, %c0_32], %55 {strides = array<i32>} : memref<96x128xbf16, #tpu.memory_space<vmem>>, vector<96x128xbf16>,
    return
  }
  func.func @transform_0(%arg0: i32) -> (i32, i32) {
    %c0_i32 = arith.constant 0 : i32
    %c0_i32_0 = arith.constant 0 : i32
    %c0_i32_1 = arith.constant 0 : i32
    return %c0_i32, %c0_i32_0 : i32, i32
  }
  func.func @transform_1(%arg0: i32) -> (i32, i32, i32) {
    %c0_i32 = arith.constant 0 : i32
    %c0_i32_0 = arith.constant 0 : i32
    %c0_i32_1 = arith.constant 0 : i32
    %c0_i32_2 = arith.constant 0 : i32
    return %c0_i32, %c0_i32_0, %c0_i32_1 : i32, i32, i32
  }
  func.func @transform_2(%arg0: i32) -> (i32, i32) {
    %c0_i32 = arith.constant 0 : i32
    %c0_i32_0 = arith.constant 0 : i32
    %c0_i32_1 = arith.constant 0 : i32
    return %c0_i32, %c0_i32_0 : i32, i32
  }
  func.func @transform_3(%arg0: i32) -> (i32, i32) {
    %c0_i32 = arith.constant 0 : i32
    %c0_i32_0 = arith.constant 0 : i32
    return %arg0, %c0_i32 : i32, i32
  }
}

module attributes {stable_mosaic.version = 11 : i64} {
  func.func @_conv3x3_kernel(%arg0: i32, %arg1: memref<214x16xbf16, #tpu.memory_space<vmem>>, %arg2: memref<9x16x128xbf16, #tpu.memory_space<vmem>>, %arg3: memref<1x128xf32, #tpu.memory_space<vmem>>, %arg4: memref<96x128xbf16, #tpu.memory_space<vmem>>) attributes {dimension_semantics = [#tpu.dimension_semantics<parallel>], iteration_bounds = array<i64: 2>, scalar_prefetch = 0 : i64, scratch_operands = 0 : i64, tpu.core_type = #tpu.core_type<tc>, window_params = [{pipeline_mode = #tpu.pipeline_mode<synchronous>, transform_indices = @transform_0, window_bounds = array<i64: 214, 16>}, {pipeline_mode = #tpu.pipeline_mode<synchronous>, transform_indices = @transform_1, window_bounds = array<i64: 9, 16, 128>}, {pipeline_mode = #tpu.pipeline_mode<synchronous>, transform_indices = @transform_2, window_bounds = array<i64: 1, 128>}, {transform_indices = @transform_3, window_bounds = array<i64: 96, 128>}]} {
    %c96_i32 = arith.constant 96 : i32
    %0 = arith.muli %arg0, %c96_i32 : i32
    %1 = tpu.assume_multiple %0, 16 : i32
    %2 = arith.index_cast %1 : i32 to index
    %c0 = arith.constant 0 : index
    %3 = vector.load %arg1[%2, %c0] : memref<214x16xbf16, #tpu.memory_space<vmem>>, vector<118x16xbf16>
    %cst = arith.constant 0.000000e+00 : f32
    %4 = vector.broadcast %cst : f32 to vector<96x128xf32>
    %5 = vector.extract_strided_slice %3 {offsets = [0, 0], sizes = [96, 16], strides = [1, 1]} : vector<118x16xbf16> to vector<96x16xbf16>
    %c0_0 = arith.constant 0 : index
    %c0_1 = arith.constant 0 : index
    %c0_2 = arith.constant 0 : index
    %6 = vector.load %arg2[%c0_0, %c0_1, %c0_2] : memref<9x16x128xbf16, #tpu.memory_space<vmem>>, vector<1x16x128xbf16>
    %7 = vector.shape_cast %6 : vector<1x16x128xbf16> to vector<16x128xbf16>
    %cst_3 = arith.constant dense<0.000000e+00> : vector<96x128xf32>
    %8 = tpu.matmul %5, %7, %cst_3 {dimension_numbers = #tpu.dot_dimension_numbers<[1], [0], [0], [1], [0, 0, 1, 1], [], []>} : vector<96x16xbf16>, vector<16x128xbf16>, vector<96x128xf32> -> vector<96x128xf32>
    %9 = arith.addf %4, %8 : vector<96x128xf32>
    %10 = vector.extract_strided_slice %3 {offsets = [1, 0], sizes = [96, 16], strides = [1, 1]} : vector<118x16xbf16> to vector<96x16xbf16>
    %c1 = arith.constant 1 : index
    %c0_4 = arith.constant 0 : index
    %c0_5 = arith.constant 0 : index
    %11 = vector.load %arg2[%c1, %c0_4, %c0_5] : memref<9x16x128xbf16, #tpu.memory_space<vmem>>, vector<1x16x128xbf16>
    %12 = vector.shape_cast %11 : vector<1x16x128xbf16> to vector<16x128xbf16>
    %cst_6 = arith.constant dense<0.000000e+00> : vector<96x128xf32>
    %13 = tpu.matmul %10, %12, %cst_6 {dimension_numbers = #tpu.dot_dimension_numbers<[1], [0], [0], [1], [0, 0, 1, 1], [], []>} : vector<96x16xbf16>, vector<16x128xbf16>, vector<96x128xf32> -> vector<96x128xf32>
    %14 = arith.addf %9, %13 : vector<96x128xf32>
    %15 = vector.extract_strided_slice %3 {offsets = [2, 0], sizes = [96, 16], strides = [1, 1]} : vector<118x16xbf16> to vector<96x16xbf16>
    %c2 = arith.constant 2 : index
    %c0_7 = arith.constant 0 : index
    %c0_8 = arith.constant 0 : index
    %16 = vector.load %arg2[%c2, %c0_7, %c0_8] : memref<9x16x128xbf16, #tpu.memory_space<vmem>>, vector<1x16x128xbf16>
    %17 = vector.shape_cast %16 : vector<1x16x128xbf16> to vector<16x128xbf16>
    %cst_9 = arith.constant dense<0.000000e+00> : vector<96x128xf32>
    %18 = tpu.matmul %15, %17, %cst_9 {dimension_numbers = #tpu.dot_dimension_numbers<[1], [0], [0], [1], [0, 0, 1, 1], [], []>} : vector<96x16xbf16>, vector<16x128xbf16>, vector<96x128xf32> -> vector<96x128xf32>
    %19 = arith.addf %14, %18 : vector<96x128xf32>
    %20 = vector.extract_strided_slice %3 {offsets = [10, 0], sizes = [96, 16], strides = [1, 1]} : vector<118x16xbf16> to vector<96x16xbf16>
    %c3 = arith.constant 3 : index
    %c0_10 = arith.constant 0 : index
    %c0_11 = arith.constant 0 : index
    %21 = vector.load %arg2[%c3, %c0_10, %c0_11] : memref<9x16x128xbf16, #tpu.memory_space<vmem>>, vector<1x16x128xbf16>
    %22 = vector.shape_cast %21 : vector<1x16x128xbf16> to vector<16x128xbf16>
    %cst_12 = arith.constant dense<0.000000e+00> : vector<96x128xf32>
    %23 = tpu.matmul %20, %22, %cst_12 {dimension_numbers = #tpu.dot_dimension_numbers<[1], [0], [0], [1], [0, 0, 1, 1], [], []>} : vector<96x16xbf16>, vector<16x128xbf16>, vector<96x128xf32> -> vector<96x128xf32>
    %24 = arith.addf %19, %23 : vector<96x128xf32>
    %25 = vector.extract_strided_slice %3 {offsets = [11, 0], sizes = [96, 16], strides = [1, 1]} : vector<118x16xbf16> to vector<96x16xbf16>
    %c4 = arith.constant 4 : index
    %c0_13 = arith.constant 0 : index
    %c0_14 = arith.constant 0 : index
    %26 = vector.load %arg2[%c4, %c0_13, %c0_14] : memref<9x16x128xbf16, #tpu.memory_space<vmem>>, vector<1x16x128xbf16>
    %27 = vector.shape_cast %26 : vector<1x16x128xbf16> to vector<16x128xbf16>
    %cst_15 = arith.constant dense<0.000000e+00> : vector<96x128xf32>
    %28 = tpu.matmul %25, %27, %cst_15 {dimension_numbers = #tpu.dot_dimension_numbers<[1], [0], [0], [1], [0, 0, 1, 1], [], []>} : vector<96x16xbf16>, vector<16x128xbf16>, vector<96x128xf32> -> vector<96x128xf32>
    %29 = arith.addf %24, %28 : vector<96x128xf32>
    %30 = vector.extract_strided_slice %3 {offsets = [12, 0], sizes = [96, 16], strides = [1, 1]} : vector<118x16xbf16> to vector<96x16xbf16>
    %c5 = arith.constant 5 : index
    %c0_16 = arith.constant 0 : index
    %c0_17 = arith.constant 0 : index
    %31 = vector.load %arg2[%c5, %c0_16, %c0_17] : memref<9x16x128xbf16, #tpu.memory_space<vmem>>, vector<1x16x128xbf16>
    %32 = vector.shape_cast %31 : vector<1x16x128xbf16> to vector<16x128xbf16>
    %cst_18 = arith.constant dense<0.000000e+00> : vector<96x128xf32>
    %33 = tpu.matmul %30, %32, %cst_18 {dimension_numbers = #tpu.dot_dimension_numbers<[1], [0], [0], [1], [0, 0, 1, 1], [], []>} : vector<96x16xbf16>, vector<16x128xbf16>, vector<96x128xf32> -> vector<96x128xf32>
    %34 = arith.addf %29, %33 : vector<96x128xf32>
    %35 = vector.extract_strided_slice %3 {offsets = [20, 0], sizes = [96, 16], strides = [1, 1]} : vector<118x16xbf16> to vector<96x16xbf16>
    %c6 = arith.constant 6 : index
    %c0_19 = arith.constant 0 : index
    %c0_20 = arith.constant 0 : index
    %36 = vector.load %arg2[%c6, %c0_19, %c0_20] : memref<9x16x128xbf16, #tpu.memory_space<vmem>>, vector<1x16x128xbf16>
    %37 = vector.shape_cast %36 : vector<1x16x128xbf16> to vector<16x128xbf16>
    %cst_21 = arith.constant dense<0.000000e+00> : vector<96x128xf32>
    %38 = tpu.matmul %35, %37, %cst_21 {dimension_numbers = #tpu.dot_dimension_numbers<[1], [0], [0], [1], [0, 0, 1, 1], [], []>} : vector<96x16xbf16>, vector<16x128xbf16>, vector<96x128xf32> -> vector<96x128xf32>
    %39 = arith.addf %34, %38 : vector<96x128xf32>
    %40 = vector.extract_strided_slice %3 {offsets = [21, 0], sizes = [96, 16], strides = [1, 1]} : vector<118x16xbf16> to vector<96x16xbf16>
    %c7 = arith.constant 7 : index
    %c0_22 = arith.constant 0 : index
    %c0_23 = arith.constant 0 : index
    %41 = vector.load %arg2[%c7, %c0_22, %c0_23] : memref<9x16x128xbf16, #tpu.memory_space<vmem>>, vector<1x16x128xbf16>
    %42 = vector.shape_cast %41 : vector<1x16x128xbf16> to vector<16x128xbf16>
    %cst_24 = arith.constant dense<0.000000e+00> : vector<96x128xf32>
    %43 = tpu.matmul %40, %42, %cst_24 {dimension_numbers = #tpu.dot_dimension_numbers<[1], [0], [0], [1], [0, 0, 1, 1], [], []>} : vector<96x16xbf16>, vector<16x128xbf16>, vector<96x128xf32> -> vector<96x128xf32>
    %44 = arith.addf %39, %43 : vector<96x128xf32>
    %45 = vector.extract_strided_slice %3 {offsets = [22, 0], sizes = [96, 16], strides = [1, 1]} : vector<118x16xbf16> to vector<96x16xbf16>
    %c8 = arith.constant 8 : index
    %c0_25 = arith.constant 0 : index
    %c0_26 = arith.constant 0 : index
    %46 = vector.load %arg2[%c8, %c0_25, %c0_26] : memref<9x16x128xbf16, #tpu.memory_space<vmem>>, vector<1x16x128xbf16>
    %47 = vector.shape_cast %46 : vector<1x16x128xbf16> to vector<16x128xbf16>
    %cst_27 = arith.constant dense<0.000000e+00> : vector<96x128xf32>
    %48 = tpu.matmul %45, %47, %cst_27 {dimension_numbers = #tpu.dot_dimension_numbers<[1], [0], [0], [1], [0, 0, 1, 1], [], []>} : vector<96x16xbf16>, vector<16x128xbf16>, vector<96x128xf32> -> vector<96x128xf32>
    %49 = arith.addf %44, %48 : vector<96x128xf32>
    %c0_28 = arith.constant 0 : index
    %c0_29 = arith.constant 0 : index
    %50 = vector.load %arg3[%c0_28, %c0_29] : memref<1x128xf32, #tpu.memory_space<vmem>>, vector<1x128xf32>
    %51 = vector.broadcast %50 : vector<1x128xf32> to vector<96x128xf32>
    %52 = arith.addf %49, %51 : vector<96x128xf32>
    %cst_30 = arith.constant 0.000000e+00 : f32
    %53 = vector.broadcast %cst_30 : f32 to vector<96x128xf32>
    %54 = arith.maximumf %52, %53 : vector<96x128xf32>
    %55 = arith.truncf %54 : vector<96x128xf32> to vector<96x128xbf16>
    %c0_31 = arith.constant 0 : index
    %c0_32 = arith.constant 0 : index
    %56 = vector.load %arg4[%c0_31, %c0_32] : memref<96x128xbf16, #tpu.memory_space<vmem>>, vector<96x128xbf16>
    tpu.vector_store %arg4[%c0_31, %c0_32], %55 {strides = array<i32>} : memref<96x128xbf16, #tpu.memory_space<vmem>>, vector<96x128xbf16>,
    return
  }
  func.func @transform_0(%arg0: i32) -> (i32, i32) {
    %c0_i32 = arith.constant 0 : i32
    %c0_i32_0 = arith.constant 0 : i32
    %c0_i32_1 = arith.constant 0 : i32
    return %c0_i32, %c0_i32_0 : i32, i32
  }
  func.func @transform_1(%arg0: i32) -> (i32, i32, i32) {
    %c0_i32 = arith.constant 0 : i32
    %c0_i32_0 = arith.constant 0 : i32
    %c0_i32_1 = arith.constant 0 : i32
    %c0_i32_2 = arith.constant 0 : i32
    return %c0_i32, %c0_i32_0, %c0_i32_1 : i32, i32, i32
  }
  func.func @transform_2(%arg0: i32) -> (i32, i32) {
    %c0_i32 = arith.constant 0 : i32
    %c0_i32_0 = arith.constant 0 : i32
    %c0_i32_1 = arith.constant 0 : i32
    return %c0_i32, %c0_i32_0 : i32, i32
  }
  func.func @transform_3(%arg0: i32) -> (i32, i32) {
    %c0_i32 = arith.constant 0 : i32
    %c0_i32_0 = arith.constant 0 : i32
    return %arg0, %c0_i32 : i32, i32
  }
}

module attributes {stable_mosaic.version = 11 : i64} {
  func.func @_pool3x3_s2_kernel(%arg0: i32, %arg1: memref<1x4x9x9x32xbf16, #tpu.memory_space<vmem>>, %arg2: memref<1x8x8x32xbf16, #tpu.memory_space<vmem>>) attributes {dimension_semantics = [#tpu.dimension_semantics<parallel>], iteration_bounds = array<i64: 2>, scalar_prefetch = 0 : i64, scratch_operands = 0 : i64, tpu.core_type = #tpu.core_type<tc>, window_params = [{transform_indices = @transform_0, window_bounds = array<i64: 1, 4, 9, 9, 32>}, {transform_indices = @transform_1, window_bounds = array<i64: 1, 8, 8, 32>}]} {
    %c0 = arith.constant 0 : index
    %c0_0 = arith.constant 0 : index
    %c0_1 = arith.constant 0 : index
    %c0_2 = arith.constant 0 : index
    %c0_3 = arith.constant 0 : index
    %0 = vector.load %arg1[%c0, %c0_0, %c0_1, %c0_2, %c0_3] : memref<1x4x9x9x32xbf16, #tpu.memory_space<vmem>>, vector<1x1x9x9x32xbf16>
    %1 = vector.shape_cast %0 : vector<1x1x9x9x32xbf16> to vector<9x9x32xbf16>
    %2 = vector.extract_strided_slice %1 {offsets = [0, 0, 0], sizes = [8, 8, 32], strides = [1, 1, 1]} : vector<9x9x32xbf16> to vector<8x8x32xbf16>
    %3 = arith.extf %2 : vector<8x8x32xbf16> to vector<8x8x32xf32>
    %c0_4 = arith.constant 0 : index
    %c1 = arith.constant 1 : index
    %c0_5 = arith.constant 0 : index
    %c0_6 = arith.constant 0 : index
    %c0_7 = arith.constant 0 : index
    %4 = vector.load %arg1[%c0_4, %c1, %c0_5, %c0_6, %c0_7] : memref<1x4x9x9x32xbf16, #tpu.memory_space<vmem>>, vector<1x1x9x9x32xbf16>
    %5 = vector.shape_cast %4 : vector<1x1x9x9x32xbf16> to vector<9x9x32xbf16>
    %6 = vector.extract_strided_slice %5 {offsets = [0, 0, 0], sizes = [8, 8, 32], strides = [1, 1, 1]} : vector<9x9x32xbf16> to vector<8x8x32xbf16>
    %7 = arith.extf %6 : vector<8x8x32xbf16> to vector<8x8x32xf32>
    %8 = arith.addf %3, %7 : vector<8x8x32xf32>
    %c0_8 = arith.constant 0 : index
    %c0_9 = arith.constant 0 : index
    %c0_10 = arith.constant 0 : index
    %c0_11 = arith.constant 0 : index
    %c0_12 = arith.constant 0 : index
    %9 = vector.load %arg1[%c0_8, %c0_9, %c0_10, %c0_11, %c0_12] : memref<1x4x9x9x32xbf16, #tpu.memory_space<vmem>>, vector<1x1x9x9x32xbf16>
    %10 = vector.shape_cast %9 : vector<1x1x9x9x32xbf16> to vector<9x9x32xbf16>
    %11 = vector.extract_strided_slice %10 {offsets = [0, 1, 0], sizes = [8, 8, 32], strides = [1, 1, 1]} : vector<9x9x32xbf16> to vector<8x8x32xbf16>
    %12 = arith.extf %11 : vector<8x8x32xbf16> to vector<8x8x32xf32>
    %13 = arith.addf %8, %12 : vector<8x8x32xf32>
    %c0_13 = arith.constant 0 : index
    %c2 = arith.constant 2 : index
    %c0_14 = arith.constant 0 : index
    %c0_15 = arith.constant 0 : index
    %c0_16 = arith.constant 0 : index
    %14 = vector.load %arg1[%c0_13, %c2, %c0_14, %c0_15, %c0_16] : memref<1x4x9x9x32xbf16, #tpu.memory_space<vmem>>, vector<1x1x9x9x32xbf16>
    %15 = vector.shape_cast %14 : vector<1x1x9x9x32xbf16> to vector<9x9x32xbf16>
    %16 = vector.extract_strided_slice %15 {offsets = [0, 0, 0], sizes = [8, 8, 32], strides = [1, 1, 1]} : vector<9x9x32xbf16> to vector<8x8x32xbf16>
    %17 = arith.extf %16 : vector<8x8x32xbf16> to vector<8x8x32xf32>
    %18 = arith.addf %13, %17 : vector<8x8x32xf32>
    %c0_17 = arith.constant 0 : index
    %c3 = arith.constant 3 : index
    %c0_18 = arith.constant 0 : index
    %c0_19 = arith.constant 0 : index
    %c0_20 = arith.constant 0 : index
    %19 = vector.load %arg1[%c0_17, %c3, %c0_18, %c0_19, %c0_20] : memref<1x4x9x9x32xbf16, #tpu.memory_space<vmem>>, vector<1x1x9x9x32xbf16>
    %20 = vector.shape_cast %19 : vector<1x1x9x9x32xbf16> to vector<9x9x32xbf16>
    %21 = vector.extract_strided_slice %20 {offsets = [0, 0, 0], sizes = [8, 8, 32], strides = [1, 1, 1]} : vector<9x9x32xbf16> to vector<8x8x32xbf16>
    %22 = arith.extf %21 : vector<8x8x32xbf16> to vector<8x8x32xf32>
    %23 = arith.addf %18, %22 : vector<8x8x32xf32>
    %c0_21 = arith.constant 0 : index
    %c2_22 = arith.constant 2 : index
    %c0_23 = arith.constant 0 : index
    %c0_24 = arith.constant 0 : index
    %c0_25 = arith.constant 0 : index
    %24 = vector.load %arg1[%c0_21, %c2_22, %c0_23, %c0_24, %c0_25] : memref<1x4x9x9x32xbf16, #tpu.memory_space<vmem>>, vector<1x1x9x9x32xbf16>
    %25 = vector.shape_cast %24 : vector<1x1x9x9x32xbf16> to vector<9x9x32xbf16>
    %26 = vector.extract_strided_slice %25 {offsets = [0, 1, 0], sizes = [8, 8, 32], strides = [1, 1, 1]} : vector<9x9x32xbf16> to vector<8x8x32xbf16>
    %27 = arith.extf %26 : vector<8x8x32xbf16> to vector<8x8x32xf32>
    %28 = arith.addf %23, %27 : vector<8x8x32xf32>
    %c0_26 = arith.constant 0 : index
    %c0_27 = arith.constant 0 : index
    %c0_28 = arith.constant 0 : index
    %c0_29 = arith.constant 0 : index
    %c0_30 = arith.constant 0 : index
    %29 = vector.load %arg1[%c0_26, %c0_27, %c0_28, %c0_29, %c0_30] : memref<1x4x9x9x32xbf16, #tpu.memory_space<vmem>>, vector<1x1x9x9x32xbf16>
    %30 = vector.shape_cast %29 : vector<1x1x9x9x32xbf16> to vector<9x9x32xbf16>
    %31 = vector.extract_strided_slice %30 {offsets = [1, 0, 0], sizes = [8, 8, 32], strides = [1, 1, 1]} : vector<9x9x32xbf16> to vector<8x8x32xbf16>
    %32 = arith.extf %31 : vector<8x8x32xbf16> to vector<8x8x32xf32>
    %33 = arith.addf %28, %32 : vector<8x8x32xf32>
    %c0_31 = arith.constant 0 : index
    %c1_32 = arith.constant 1 : index
    %c0_33 = arith.constant 0 : index
    %c0_34 = arith.constant 0 : index
    %c0_35 = arith.constant 0 : index
    %34 = vector.load %arg1[%c0_31, %c1_32, %c0_33, %c0_34, %c0_35] : memref<1x4x9x9x32xbf16, #tpu.memory_space<vmem>>, vector<1x1x9x9x32xbf16>
    %35 = vector.shape_cast %34 : vector<1x1x9x9x32xbf16> to vector<9x9x32xbf16>
    %36 = vector.extract_strided_slice %35 {offsets = [1, 0, 0], sizes = [8, 8, 32], strides = [1, 1, 1]} : vector<9x9x32xbf16> to vector<8x8x32xbf16>
    %37 = arith.extf %36 : vector<8x8x32xbf16> to vector<8x8x32xf32>
    %38 = arith.addf %33, %37 : vector<8x8x32xf32>
    %c0_36 = arith.constant 0 : index
    %c0_37 = arith.constant 0 : index
    %c0_38 = arith.constant 0 : index
    %c0_39 = arith.constant 0 : index
    %c0_40 = arith.constant 0 : index
    %39 = vector.load %arg1[%c0_36, %c0_37, %c0_38, %c0_39, %c0_40] : memref<1x4x9x9x32xbf16, #tpu.memory_space<vmem>>, vector<1x1x9x9x32xbf16>
    %40 = vector.shape_cast %39 : vector<1x1x9x9x32xbf16> to vector<9x9x32xbf16>
    %41 = vector.extract_strided_slice %40 {offsets = [1, 1, 0], sizes = [8, 8, 32], strides = [1, 1, 1]} : vector<9x9x32xbf16> to vector<8x8x32xbf16>
    %42 = arith.extf %41 : vector<8x8x32xbf16> to vector<8x8x32xf32>
    %43 = arith.addf %38, %42 : vector<8x8x32xf32>
    %cst = arith.constant 0.111111112 : f32
    %44 = vector.broadcast %cst : f32 to vector<8x8x32xf32>
    %45 = arith.mulf %43, %44 : vector<8x8x32xf32>
    %46 = arith.truncf %45 : vector<8x8x32xf32> to vector<8x8x32xbf16>
    %c0_41 = arith.constant 0 : index
    %c0_42 = arith.constant 0 : index
    %c0_43 = arith.constant 0 : index
    %c0_44 = arith.constant 0 : index
    %47 = vector.load %arg2[%c0_41, %c0_42, %c0_43, %c0_44] : memref<1x8x8x32xbf16, #tpu.memory_space<vmem>>, vector<1x8x8x32xbf16>
    %48 = vector.shape_cast %47 : vector<1x8x8x32xbf16> to vector<8x8x32xbf16>
    %49 = vector.shape_cast %46 : vector<8x8x32xbf16> to vector<1x8x8x32xbf16>
    tpu.vector_store %arg2[%c0_41, %c0_42, %c0_43, %c0_44], %49 {strides = array<i32>} : memref<1x8x8x32xbf16, #tpu.memory_space<vmem>>, vector<1x8x8x32xbf16>,
    return
  }
  func.func @transform_0(%arg0: i32) -> (i32, i32, i32, i32, i32) {
    %c0_i32 = arith.constant 0 : i32
    %c0_i32_0 = arith.constant 0 : i32
    %c0_i32_1 = arith.constant 0 : i32
    %c0_i32_2 = arith.constant 0 : i32
    %c0_i32_3 = arith.constant 0 : i32
    return %arg0, %c0_i32, %c0_i32_0, %c0_i32_1, %c0_i32_2 : i32, i32, i32, i32, i32
  }
  func.func @transform_1(%arg0: i32) -> (i32, i32, i32, i32) {
    %c0_i32 = arith.constant 0 : i32
    %c0_i32_0 = arith.constant 0 : i32
    %c0_i32_1 = arith.constant 0 : i32
    %c0_i32_2 = arith.constant 0 : i32
    return %arg0, %c0_i32, %c0_i32_0, %c0_i32_1 : i32, i32, i32, i32
  }
}

module attributes {stable_mosaic.version = 11 : i64} {
  func.func @_mm_bn_kernel(%arg0: i32, %arg1: memref<128x64xbf16, #tpu.memory_space<vmem>>, %arg2: memref<64x128xbf16, #tpu.memory_space<vmem>>, %arg3: memref<1x128xf32, #tpu.memory_space<vmem>>, %arg4: memref<128x128xbf16, #tpu.memory_space<vmem>>) attributes {dimension_semantics = [#tpu.dimension_semantics<parallel>], iteration_bounds = array<i64: 1>, scalar_prefetch = 0 : i64, scratch_operands = 0 : i64, tpu.core_type = #tpu.core_type<tc>, window_params = [{transform_indices = @transform_0, window_bounds = array<i64: 128, 64>}, {pipeline_mode = #tpu.pipeline_mode<synchronous>, transform_indices = @transform_1, window_bounds = array<i64: 64, 128>}, {pipeline_mode = #tpu.pipeline_mode<synchronous>, transform_indices = @transform_2, window_bounds = array<i64: 1, 128>}, {transform_indices = @transform_3, window_bounds = array<i64: 128, 128>}]} {
    %c0 = arith.constant 0 : index
    %c0_0 = arith.constant 0 : index
    %0 = vector.load %arg1[%c0, %c0_0] : memref<128x64xbf16, #tpu.memory_space<vmem>>, vector<128x64xbf16>
    %c0_1 = arith.constant 0 : index
    %c0_2 = arith.constant 0 : index
    %1 = vector.load %arg2[%c0_1, %c0_2] : memref<64x128xbf16, #tpu.memory_space<vmem>>, vector<64x128xbf16>
    %cst = arith.constant dense<0.000000e+00> : vector<128x128xf32>
    %2 = tpu.matmul %0, %1, %cst {dimension_numbers = #tpu.dot_dimension_numbers<[1], [0], [0], [1], [0, 0, 1, 1], [], []>} : vector<128x64xbf16>, vector<64x128xbf16>, vector<128x128xf32> -> vector<128x128xf32>
    %c0_3 = arith.constant 0 : index
    %c0_4 = arith.constant 0 : index
    %3 = vector.load %arg3[%c0_3, %c0_4] : memref<1x128xf32, #tpu.memory_space<vmem>>, vector<1x128xf32>
    %4 = vector.broadcast %3 : vector<1x128xf32> to vector<128x128xf32>
    %5 = arith.addf %2, %4 : vector<128x128xf32>
    %cst_5 = arith.constant 0.000000e+00 : f32
    %6 = vector.broadcast %cst_5 : f32 to vector<128x128xf32>
    %7 = arith.maximumf %5, %6 : vector<128x128xf32>
    %8 = arith.truncf %7 : vector<128x128xf32> to vector<128x128xbf16>
    %c0_6 = arith.constant 0 : index
    %c0_7 = arith.constant 0 : index
    %9 = vector.load %arg4[%c0_6, %c0_7] : memref<128x128xbf16, #tpu.memory_space<vmem>>, vector<128x128xbf16>
    tpu.vector_store %arg4[%c0_6, %c0_7], %8 {strides = array<i32>} : memref<128x128xbf16, #tpu.memory_space<vmem>>, vector<128x128xbf16>,
    return
  }
  func.func @transform_0(%arg0: i32) -> (i32, i32) {
    %c0_i32 = arith.constant 0 : i32
    %c0_i32_0 = arith.constant 0 : i32
    return %arg0, %c0_i32 : i32, i32
  }
  func.func @transform_1(%arg0: i32) -> (i32, i32) {
    %c0_i32 = arith.constant 0 : i32
    %c0_i32_0 = arith.constant 0 : i32
    %c0_i32_1 = arith.constant 0 : i32
    return %c0_i32, %c0_i32_0 : i32, i32
  }
  func.func @transform_2(%arg0: i32) -> (i32, i32) {
    %c0_i32 = arith.constant 0 : i32
    %c0_i32_0 = arith.constant 0 : i32
    %c0_i32_1 = arith.constant 0 : i32
    return %c0_i32, %c0_i32_0 : i32, i32
  }
  func.func @transform_3(%arg0: i32) -> (i32, i32) {
    %c0_i32 = arith.constant 0 : i32
    %c0_i32_0 = arith.constant 0 : i32
    return %arg0, %c0_i32 : i32, i32
  }
}

module attributes {stable_mosaic.version = 11 : i64} {
  func.func @_dw3x3_s2_kernel(%arg0: i32, %arg1: memref<1x4x5x5x64xbf16, #tpu.memory_space<vmem>>, %arg2: memref<9x1x1x64xf32, #tpu.memory_space<vmem>>, %arg3: memref<1x1x64xf32, #tpu.memory_space<vmem>>, %arg4: memref<1x4x4x64xbf16, #tpu.memory_space<vmem>>) attributes {dimension_semantics = [#tpu.dimension_semantics<parallel>], iteration_bounds = array<i64: 2>, scalar_prefetch = 0 : i64, scratch_operands = 0 : i64, tpu.core_type = #tpu.core_type<tc>, window_params = [{transform_indices = @transform_0, window_bounds = array<i64: 1, 4, 5, 5, 64>}, {pipeline_mode = #tpu.pipeline_mode<synchronous>, transform_indices = @transform_1, window_bounds = array<i64: 9, 1, 1, 64>}, {pipeline_mode = #tpu.pipeline_mode<synchronous>, transform_indices = @transform_2, window_bounds = array<i64: 1, 1, 64>}, {transform_indices = @transform_3, window_bounds = array<i64: 1, 4, 4, 64>}]} {
    %c0 = arith.constant 0 : index
    %c0_0 = arith.constant 0 : index
    %c0_1 = arith.constant 0 : index
    %c0_2 = arith.constant 0 : index
    %c0_3 = arith.constant 0 : index
    %0 = vector.load %arg1[%c0, %c0_0, %c0_1, %c0_2, %c0_3] : memref<1x4x5x5x64xbf16, #tpu.memory_space<vmem>>, vector<1x1x5x5x64xbf16>
    %1 = vector.shape_cast %0 : vector<1x1x5x5x64xbf16> to vector<5x5x64xbf16>
    %2 = vector.extract_strided_slice %1 {offsets = [0, 0, 0], sizes = [4, 4, 64], strides = [1, 1, 1]} : vector<5x5x64xbf16> to vector<4x4x64xbf16>
    %3 = arith.extf %2 : vector<4x4x64xbf16> to vector<4x4x64xf32>
    %c0_4 = arith.constant 0 : index
    %c0_5 = arith.constant 0 : index
    %c0_6 = arith.constant 0 : index
    %c0_7 = arith.constant 0 : index
    %4 = vector.load %arg2[%c0_4, %c0_5, %c0_6, %c0_7] : memref<9x1x1x64xf32, #tpu.memory_space<vmem>>, vector<1x1x1x64xf32>
    %5 = vector.shape_cast %4 : vector<1x1x1x64xf32> to vector<1x1x64xf32>
    %6 = vector.broadcast %5 : vector<1x1x64xf32> to vector<4x4x64xf32>
    %7 = arith.mulf %3, %6 : vector<4x4x64xf32>
    %c0_8 = arith.constant 0 : index
    %c1 = arith.constant 1 : index
    %c0_9 = arith.constant 0 : index
    %c0_10 = arith.constant 0 : index
    %c0_11 = arith.constant 0 : index
    %8 = vector.load %arg1[%c0_8, %c1, %c0_9, %c0_10, %c0_11] : memref<1x4x5x5x64xbf16, #tpu.memory_space<vmem>>, vector<1x1x5x5x64xbf16>
    %9 = vector.shape_cast %8 : vector<1x1x5x5x64xbf16> to vector<5x5x64xbf16>
    %10 = vector.extract_strided_slice %9 {offsets = [0, 0, 0], sizes = [4, 4, 64], strides = [1, 1, 1]} : vector<5x5x64xbf16> to vector<4x4x64xbf16>
    %11 = arith.extf %10 : vector<4x4x64xbf16> to vector<4x4x64xf32>
    %c1_12 = arith.constant 1 : index
    %c0_13 = arith.constant 0 : index
    %c0_14 = arith.constant 0 : index
    %c0_15 = arith.constant 0 : index
    %12 = vector.load %arg2[%c1_12, %c0_13, %c0_14, %c0_15] : memref<9x1x1x64xf32, #tpu.memory_space<vmem>>, vector<1x1x1x64xf32>
    %13 = vector.shape_cast %12 : vector<1x1x1x64xf32> to vector<1x1x64xf32>
    %14 = vector.broadcast %13 : vector<1x1x64xf32> to vector<4x4x64xf32>
    %15 = arith.mulf %11, %14 : vector<4x4x64xf32>
    %16 = arith.addf %7, %15 : vector<4x4x64xf32>
    %c0_16 = arith.constant 0 : index
    %c0_17 = arith.constant 0 : index
    %c0_18 = arith.constant 0 : index
    %c0_19 = arith.constant 0 : index
    %c0_20 = arith.constant 0 : index
    %17 = vector.load %arg1[%c0_16, %c0_17, %c0_18, %c0_19, %c0_20] : memref<1x4x5x5x64xbf16, #tpu.memory_space<vmem>>, vector<1x1x5x5x64xbf16>
    %18 = vector.shape_cast %17 : vector<1x1x5x5x64xbf16> to vector<5x5x64xbf16>
    %19 = vector.extract_strided_slice %18 {offsets = [0, 1, 0], sizes = [4, 4, 64], strides = [1, 1, 1]} : vector<5x5x64xbf16> to vector<4x4x64xbf16>
    %20 = arith.extf %19 : vector<4x4x64xbf16> to vector<4x4x64xf32>
    %c2 = arith.constant 2 : index
    %c0_21 = arith.constant 0 : index
    %c0_22 = arith.constant 0 : index
    %c0_23 = arith.constant 0 : index
    %21 = vector.load %arg2[%c2, %c0_21, %c0_22, %c0_23] : memref<9x1x1x64xf32, #tpu.memory_space<vmem>>, vector<1x1x1x64xf32>
    %22 = vector.shape_cast %21 : vector<1x1x1x64xf32> to vector<1x1x64xf32>
    %23 = vector.broadcast %22 : vector<1x1x64xf32> to vector<4x4x64xf32>
    %24 = arith.mulf %20, %23 : vector<4x4x64xf32>
    %25 = arith.addf %16, %24 : vector<4x4x64xf32>
    %c0_24 = arith.constant 0 : index
    %c2_25 = arith.constant 2 : index
    %c0_26 = arith.constant 0 : index
    %c0_27 = arith.constant 0 : index
    %c0_28 = arith.constant 0 : index
    %26 = vector.load %arg1[%c0_24, %c2_25, %c0_26, %c0_27, %c0_28] : memref<1x4x5x5x64xbf16, #tpu.memory_space<vmem>>, vector<1x1x5x5x64xbf16>
    %27 = vector.shape_cast %26 : vector<1x1x5x5x64xbf16> to vector<5x5x64xbf16>
    %28 = vector.extract_strided_slice %27 {offsets = [0, 0, 0], sizes = [4, 4, 64], strides = [1, 1, 1]} : vector<5x5x64xbf16> to vector<4x4x64xbf16>
    %29 = arith.extf %28 : vector<4x4x64xbf16> to vector<4x4x64xf32>
    %c3 = arith.constant 3 : index
    %c0_29 = arith.constant 0 : index
    %c0_30 = arith.constant 0 : index
    %c0_31 = arith.constant 0 : index
    %30 = vector.load %arg2[%c3, %c0_29, %c0_30, %c0_31] : memref<9x1x1x64xf32, #tpu.memory_space<vmem>>, vector<1x1x1x64xf32>
    %31 = vector.shape_cast %30 : vector<1x1x1x64xf32> to vector<1x1x64xf32>
    %32 = vector.broadcast %31 : vector<1x1x64xf32> to vector<4x4x64xf32>
    %33 = arith.mulf %29, %32 : vector<4x4x64xf32>
    %34 = arith.addf %25, %33 : vector<4x4x64xf32>
    %c0_32 = arith.constant 0 : index
    %c3_33 = arith.constant 3 : index
    %c0_34 = arith.constant 0 : index
    %c0_35 = arith.constant 0 : index
    %c0_36 = arith.constant 0 : index
    %35 = vector.load %arg1[%c0_32, %c3_33, %c0_34, %c0_35, %c0_36] : memref<1x4x5x5x64xbf16, #tpu.memory_space<vmem>>, vector<1x1x5x5x64xbf16>
    %36 = vector.shape_cast %35 : vector<1x1x5x5x64xbf16> to vector<5x5x64xbf16>
    %37 = vector.extract_strided_slice %36 {offsets = [0, 0, 0], sizes = [4, 4, 64], strides = [1, 1, 1]} : vector<5x5x64xbf16> to vector<4x4x64xbf16>
    %38 = arith.extf %37 : vector<4x4x64xbf16> to vector<4x4x64xf32>
    %c4 = arith.constant 4 : index
    %c0_37 = arith.constant 0 : index
    %c0_38 = arith.constant 0 : index
    %c0_39 = arith.constant 0 : index
    %39 = vector.load %arg2[%c4, %c0_37, %c0_38, %c0_39] : memref<9x1x1x64xf32, #tpu.memory_space<vmem>>, vector<1x1x1x64xf32>
    %40 = vector.shape_cast %39 : vector<1x1x1x64xf32> to vector<1x1x64xf32>
    %41 = vector.broadcast %40 : vector<1x1x64xf32> to vector<4x4x64xf32>
    %42 = arith.mulf %38, %41 : vector<4x4x64xf32>
    %43 = arith.addf %34, %42 : vector<4x4x64xf32>
    %c0_40 = arith.constant 0 : index
    %c2_41 = arith.constant 2 : index
    %c0_42 = arith.constant 0 : index
    %c0_43 = arith.constant 0 : index
    %c0_44 = arith.constant 0 : index
    %44 = vector.load %arg1[%c0_40, %c2_41, %c0_42, %c0_43, %c0_44] : memref<1x4x5x5x64xbf16, #tpu.memory_space<vmem>>, vector<1x1x5x5x64xbf16>
    %45 = vector.shape_cast %44 : vector<1x1x5x5x64xbf16> to vector<5x5x64xbf16>
    %46 = vector.extract_strided_slice %45 {offsets = [0, 1, 0], sizes = [4, 4, 64], strides = [1, 1, 1]} : vector<5x5x64xbf16> to vector<4x4x64xbf16>
    %47 = arith.extf %46 : vector<4x4x64xbf16> to vector<4x4x64xf32>
    %c5 = arith.constant 5 : index
    %c0_45 = arith.constant 0 : index
    %c0_46 = arith.constant 0 : index
    %c0_47 = arith.constant 0 : index
    %48 = vector.load %arg2[%c5, %c0_45, %c0_46, %c0_47] : memref<9x1x1x64xf32, #tpu.memory_space<vmem>>, vector<1x1x1x64xf32>
    %49 = vector.shape_cast %48 : vector<1x1x1x64xf32> to vector<1x1x64xf32>
    %50 = vector.broadcast %49 : vector<1x1x64xf32> to vector<4x4x64xf32>
    %51 = arith.mulf %47, %50 : vector<4x4x64xf32>
    %52 = arith.addf %43, %51 : vector<4x4x64xf32>
    %c0_48 = arith.constant 0 : index
    %c0_49 = arith.constant 0 : index
    %c0_50 = arith.constant 0 : index
    %c0_51 = arith.constant 0 : index
    %c0_52 = arith.constant 0 : index
    %53 = vector.load %arg1[%c0_48, %c0_49, %c0_50, %c0_51, %c0_52] : memref<1x4x5x5x64xbf16, #tpu.memory_space<vmem>>, vector<1x1x5x5x64xbf16>
    %54 = vector.shape_cast %53 : vector<1x1x5x5x64xbf16> to vector<5x5x64xbf16>
    %55 = vector.extract_strided_slice %54 {offsets = [1, 0, 0], sizes = [4, 4, 64], strides = [1, 1, 1]} : vector<5x5x64xbf16> to vector<4x4x64xbf16>
    %56 = arith.extf %55 : vector<4x4x64xbf16> to vector<4x4x64xf32>
    %c6 = arith.constant 6 : index
    %c0_53 = arith.constant 0 : index
    %c0_54 = arith.constant 0 : index
    %c0_55 = arith.constant 0 : index
    %57 = vector.load %arg2[%c6, %c0_53, %c0_54, %c0_55] : memref<9x1x1x64xf32, #tpu.memory_space<vmem>>, vector<1x1x1x64xf32>
    %58 = vector.shape_cast %57 : vector<1x1x1x64xf32> to vector<1x1x64xf32>
    %59 = vector.broadcast %58 : vector<1x1x64xf32> to vector<4x4x64xf32>
    %60 = arith.mulf %56, %59 : vector<4x4x64xf32>
    %61 = arith.addf %52, %60 : vector<4x4x64xf32>
    %c0_56 = arith.constant 0 : index
    %c1_57 = arith.constant 1 : index
    %c0_58 = arith.constant 0 : index
    %c0_59 = arith.constant 0 : index
    %c0_60 = arith.constant 0 : index
    %62 = vector.load %arg1[%c0_56, %c1_57, %c0_58, %c0_59, %c0_60] : memref<1x4x5x5x64xbf16, #tpu.memory_space<vmem>>, vector<1x1x5x5x64xbf16>
    %63 = vector.shape_cast %62 : vector<1x1x5x5x64xbf16> to vector<5x5x64xbf16>
    %64 = vector.extract_strided_slice %63 {offsets = [1, 0, 0], sizes = [4, 4, 64], strides = [1, 1, 1]} : vector<5x5x64xbf16> to vector<4x4x64xbf16>
    %65 = arith.extf %64 : vector<4x4x64xbf16> to vector<4x4x64xf32>
    %c7 = arith.constant 7 : index
    %c0_61 = arith.constant 0 : index
    %c0_62 = arith.constant 0 : index
    %c0_63 = arith.constant 0 : index
    %66 = vector.load %arg2[%c7, %c0_61, %c0_62, %c0_63] : memref<9x1x1x64xf32, #tpu.memory_space<vmem>>, vector<1x1x1x64xf32>
    %67 = vector.shape_cast %66 : vector<1x1x1x64xf32> to vector<1x1x64xf32>
    %68 = vector.broadcast %67 : vector<1x1x64xf32> to vector<4x4x64xf32>
    %69 = arith.mulf %65, %68 : vector<4x4x64xf32>
    %70 = arith.addf %61, %69 : vector<4x4x64xf32>
    %c0_64 = arith.constant 0 : index
    %c0_65 = arith.constant 0 : index
    %c0_66 = arith.constant 0 : index
    %c0_67 = arith.constant 0 : index
    %c0_68 = arith.constant 0 : index
    %71 = vector.load %arg1[%c0_64, %c0_65, %c0_66, %c0_67, %c0_68] : memref<1x4x5x5x64xbf16, #tpu.memory_space<vmem>>, vector<1x1x5x5x64xbf16>
    %72 = vector.shape_cast %71 : vector<1x1x5x5x64xbf16> to vector<5x5x64xbf16>
    %73 = vector.extract_strided_slice %72 {offsets = [1, 1, 0], sizes = [4, 4, 64], strides = [1, 1, 1]} : vector<5x5x64xbf16> to vector<4x4x64xbf16>
    %74 = arith.extf %73 : vector<4x4x64xbf16> to vector<4x4x64xf32>
    %c8 = arith.constant 8 : index
    %c0_69 = arith.constant 0 : index
    %c0_70 = arith.constant 0 : index
    %c0_71 = arith.constant 0 : index
    %75 = vector.load %arg2[%c8, %c0_69, %c0_70, %c0_71] : memref<9x1x1x64xf32, #tpu.memory_space<vmem>>, vector<1x1x1x64xf32>
    %76 = vector.shape_cast %75 : vector<1x1x1x64xf32> to vector<1x1x64xf32>
    %77 = vector.broadcast %76 : vector<1x1x64xf32> to vector<4x4x64xf32>
    %78 = arith.mulf %74, %77 : vector<4x4x64xf32>
    %79 = arith.addf %70, %78 : vector<4x4x64xf32>
    %c0_72 = arith.constant 0 : index
    %c0_73 = arith.constant 0 : index
    %c0_74 = arith.constant 0 : index
    %80 = vector.load %arg3[%c0_72, %c0_73, %c0_74] : memref<1x1x64xf32, #tpu.memory_space<vmem>>, vector<1x1x64xf32>
    %81 = vector.broadcast %80 : vector<1x1x64xf32> to vector<4x4x64xf32>
    %82 = arith.addf %79, %81 : vector<4x4x64xf32>
    %83 = arith.truncf %82 : vector<4x4x64xf32> to vector<4x4x64xbf16>
    %c0_75 = arith.constant 0 : index
    %c0_76 = arith.constant 0 : index
    %c0_77 = arith.constant 0 : index
    %c0_78 = arith.constant 0 : index
    %84 = vector.load %arg4[%c0_75, %c0_76, %c0_77, %c0_78] : memref<1x4x4x64xbf16, #tpu.memory_space<vmem>>, vector<1x4x4x64xbf16>
    %85 = vector.shape_cast %84 : vector<1x4x4x64xbf16> to vector<4x4x64xbf16>
    %86 = vector.shape_cast %83 : vector<4x4x64xbf16> to vector<1x4x4x64xbf16>
    tpu.vector_store %arg4[%c0_75, %c0_76, %c0_77, %c0_78], %86 {strides = array<i32>} : memref<1x4x4x64xbf16, #tpu.memory_space<vmem>>, vector<1x4x4x64xbf16>,
    return
  }
  func.func @transform_0(%arg0: i32) -> (i32, i32, i32, i32, i32) {
    %c0_i32 = arith.constant 0 : i32
    %c0_i32_0 = arith.constant 0 : i32
    %c0_i32_1 = arith.constant 0 : i32
    %c0_i32_2 = arith.constant 0 : i32
    %c0_i32_3 = arith.constant 0 : i32
    return %arg0, %c0_i32, %c0_i32_0, %c0_i32_1, %c0_i32_2 : i32, i32, i32, i32, i32
  }
  func.func @transform_1(%arg0: i32) -> (i32, i32, i32, i32) {
    %c0_i32 = arith.constant 0 : i32
    %c0_i32_0 = arith.constant 0 : i32
    %c0_i32_1 = arith.constant 0 : i32
    %c0_i32_2 = arith.constant 0 : i32
    %c0_i32_3 = arith.constant 0 : i32
    return %c0_i32, %c0_i32_0, %c0_i32_1, %c0_i32_2 : i32, i32, i32, i32
  }
  func.func @transform_2(%arg0: i32) -> (i32, i32, i32) {
    %c0_i32 = arith.constant 0 : i32
    %c0_i32_0 = arith.constant 0 : i32
    %c0_i32_1 = arith.constant 0 : i32
    %c0_i32_2 = arith.constant 0 : i32
    return %c0_i32, %c0_i32_0, %c0_i32_1 : i32, i32, i32
  }
  func.func @transform_3(%arg0: i32) -> (i32, i32, i32, i32) {
    %c0_i32 = arith.constant 0 : i32
    %c0_i32_0 = arith.constant 0 : i32
    %c0_i32_1 = arith.constant 0 : i32
    %c0_i32_2 = arith.constant 0 : i32
    return %arg0, %c0_i32, %c0_i32_0, %c0_i32_1 : i32, i32, i32, i32
  }
}

module attributes {stable_mosaic.version = 11 : i64} {
  func.func @_conv3x3_kernel(%arg0: i32, %arg1: memref<78x64xbf16, #tpu.memory_space<vmem>>, %arg2: memref<9x64x128xbf16, #tpu.memory_space<vmem>>, %arg3: memref<1x128xf32, #tpu.memory_space<vmem>>, %arg4: memref<64x128xbf16, #tpu.memory_space<vmem>>) attributes {dimension_semantics = [#tpu.dimension_semantics<parallel>], iteration_bounds = array<i64: 1>, scalar_prefetch = 0 : i64, scratch_operands = 0 : i64, tpu.core_type = #tpu.core_type<tc>, window_params = [{pipeline_mode = #tpu.pipeline_mode<synchronous>, transform_indices = @transform_0, window_bounds = array<i64: 78, 64>}, {pipeline_mode = #tpu.pipeline_mode<synchronous>, transform_indices = @transform_1, window_bounds = array<i64: 9, 64, 128>}, {pipeline_mode = #tpu.pipeline_mode<synchronous>, transform_indices = @transform_2, window_bounds = array<i64: 1, 128>}, {transform_indices = @transform_3, window_bounds = array<i64: 64, 128>}]} {
    %c64_i32 = arith.constant 64 : i32
    %0 = arith.muli %arg0, %c64_i32 : i32
    %1 = tpu.assume_multiple %0, 16 : i32
    %2 = arith.index_cast %1 : i32 to index
    %c0 = arith.constant 0 : index
    %3 = vector.load %arg1[%2, %c0] : memref<78x64xbf16, #tpu.memory_space<vmem>>, vector<78x64xbf16>
    %cst = arith.constant 0.000000e+00 : f32
    %4 = vector.broadcast %cst : f32 to vector<64x128xf32>
    %5 = vector.extract_strided_slice %3 {offsets = [0, 0], sizes = [64, 64], strides = [1, 1]} : vector<78x64xbf16> to vector<64x64xbf16>
    %c0_0 = arith.constant 0 : index
    %c0_1 = arith.constant 0 : index
    %c0_2 = arith.constant 0 : index
    %6 = vector.load %arg2[%c0_0, %c0_1, %c0_2] : memref<9x64x128xbf16, #tpu.memory_space<vmem>>, vector<1x64x128xbf16>
    %7 = vector.shape_cast %6 : vector<1x64x128xbf16> to vector<64x128xbf16>
    %cst_3 = arith.constant dense<0.000000e+00> : vector<64x128xf32>
    %8 = tpu.matmul %5, %7, %cst_3 {dimension_numbers = #tpu.dot_dimension_numbers<[1], [0], [0], [1], [0, 0, 1, 1], [], []>} : vector<64x64xbf16>, vector<64x128xbf16>, vector<64x128xf32> -> vector<64x128xf32>
    %9 = arith.addf %4, %8 : vector<64x128xf32>
    %10 = vector.extract_strided_slice %3 {offsets = [1, 0], sizes = [64, 64], strides = [1, 1]} : vector<78x64xbf16> to vector<64x64xbf16>
    %c1 = arith.constant 1 : index
    %c0_4 = arith.constant 0 : index
    %c0_5 = arith.constant 0 : index
    %11 = vector.load %arg2[%c1, %c0_4, %c0_5] : memref<9x64x128xbf16, #tpu.memory_space<vmem>>, vector<1x64x128xbf16>
    %12 = vector.shape_cast %11 : vector<1x64x128xbf16> to vector<64x128xbf16>
    %cst_6 = arith.constant dense<0.000000e+00> : vector<64x128xf32>
    %13 = tpu.matmul %10, %12, %cst_6 {dimension_numbers = #tpu.dot_dimension_numbers<[1], [0], [0], [1], [0, 0, 1, 1], [], []>} : vector<64x64xbf16>, vector<64x128xbf16>, vector<64x128xf32> -> vector<64x128xf32>
    %14 = arith.addf %9, %13 : vector<64x128xf32>
    %15 = vector.extract_strided_slice %3 {offsets = [2, 0], sizes = [64, 64], strides = [1, 1]} : vector<78x64xbf16> to vector<64x64xbf16>
    %c2 = arith.constant 2 : index
    %c0_7 = arith.constant 0 : index
    %c0_8 = arith.constant 0 : index
    %16 = vector.load %arg2[%c2, %c0_7, %c0_8] : memref<9x64x128xbf16, #tpu.memory_space<vmem>>, vector<1x64x128xbf16>
    %17 = vector.shape_cast %16 : vector<1x64x128xbf16> to vector<64x128xbf16>
    %cst_9 = arith.constant dense<0.000000e+00> : vector<64x128xf32>
    %18 = tpu.matmul %15, %17, %cst_9 {dimension_numbers = #tpu.dot_dimension_numbers<[1], [0], [0], [1], [0, 0, 1, 1], [], []>} : vector<64x64xbf16>, vector<64x128xbf16>, vector<64x128xf32> -> vector<64x128xf32>
    %19 = arith.addf %14, %18 : vector<64x128xf32>
    %20 = vector.extract_strided_slice %3 {offsets = [6, 0], sizes = [64, 64], strides = [1, 1]} : vector<78x64xbf16> to vector<64x64xbf16>
    %c3 = arith.constant 3 : index
    %c0_10 = arith.constant 0 : index
    %c0_11 = arith.constant 0 : index
    %21 = vector.load %arg2[%c3, %c0_10, %c0_11] : memref<9x64x128xbf16, #tpu.memory_space<vmem>>, vector<1x64x128xbf16>
    %22 = vector.shape_cast %21 : vector<1x64x128xbf16> to vector<64x128xbf16>
    %cst_12 = arith.constant dense<0.000000e+00> : vector<64x128xf32>
    %23 = tpu.matmul %20, %22, %cst_12 {dimension_numbers = #tpu.dot_dimension_numbers<[1], [0], [0], [1], [0, 0, 1, 1], [], []>} : vector<64x64xbf16>, vector<64x128xbf16>, vector<64x128xf32> -> vector<64x128xf32>
    %24 = arith.addf %19, %23 : vector<64x128xf32>
    %25 = vector.extract_strided_slice %3 {offsets = [7, 0], sizes = [64, 64], strides = [1, 1]} : vector<78x64xbf16> to vector<64x64xbf16>
    %c4 = arith.constant 4 : index
    %c0_13 = arith.constant 0 : index
    %c0_14 = arith.constant 0 : index
    %26 = vector.load %arg2[%c4, %c0_13, %c0_14] : memref<9x64x128xbf16, #tpu.memory_space<vmem>>, vector<1x64x128xbf16>
    %27 = vector.shape_cast %26 : vector<1x64x128xbf16> to vector<64x128xbf16>
    %cst_15 = arith.constant dense<0.000000e+00> : vector<64x128xf32>
    %28 = tpu.matmul %25, %27, %cst_15 {dimension_numbers = #tpu.dot_dimension_numbers<[1], [0], [0], [1], [0, 0, 1, 1], [], []>} : vector<64x64xbf16>, vector<64x128xbf16>, vector<64x128xf32> -> vector<64x128xf32>
    %29 = arith.addf %24, %28 : vector<64x128xf32>
    %30 = vector.extract_strided_slice %3 {offsets = [8, 0], sizes = [64, 64], strides = [1, 1]} : vector<78x64xbf16> to vector<64x64xbf16>
    %c5 = arith.constant 5 : index
    %c0_16 = arith.constant 0 : index
    %c0_17 = arith.constant 0 : index
    %31 = vector.load %arg2[%c5, %c0_16, %c0_17] : memref<9x64x128xbf16, #tpu.memory_space<vmem>>, vector<1x64x128xbf16>
    %32 = vector.shape_cast %31 : vector<1x64x128xbf16> to vector<64x128xbf16>
    %cst_18 = arith.constant dense<0.000000e+00> : vector<64x128xf32>
    %33 = tpu.matmul %30, %32, %cst_18 {dimension_numbers = #tpu.dot_dimension_numbers<[1], [0], [0], [1], [0, 0, 1, 1], [], []>} : vector<64x64xbf16>, vector<64x128xbf16>, vector<64x128xf32> -> vector<64x128xf32>
    %34 = arith.addf %29, %33 : vector<64x128xf32>
    %35 = vector.extract_strided_slice %3 {offsets = [12, 0], sizes = [64, 64], strides = [1, 1]} : vector<78x64xbf16> to vector<64x64xbf16>
    %c6 = arith.constant 6 : index
    %c0_19 = arith.constant 0 : index
    %c0_20 = arith.constant 0 : index
    %36 = vector.load %arg2[%c6, %c0_19, %c0_20] : memref<9x64x128xbf16, #tpu.memory_space<vmem>>, vector<1x64x128xbf16>
    %37 = vector.shape_cast %36 : vector<1x64x128xbf16> to vector<64x128xbf16>
    %cst_21 = arith.constant dense<0.000000e+00> : vector<64x128xf32>
    %38 = tpu.matmul %35, %37, %cst_21 {dimension_numbers = #tpu.dot_dimension_numbers<[1], [0], [0], [1], [0, 0, 1, 1], [], []>} : vector<64x64xbf16>, vector<64x128xbf16>, vector<64x128xf32> -> vector<64x128xf32>
    %39 = arith.addf %34, %38 : vector<64x128xf32>
    %40 = vector.extract_strided_slice %3 {offsets = [13, 0], sizes = [64, 64], strides = [1, 1]} : vector<78x64xbf16> to vector<64x64xbf16>
    %c7 = arith.constant 7 : index
    %c0_22 = arith.constant 0 : index
    %c0_23 = arith.constant 0 : index
    %41 = vector.load %arg2[%c7, %c0_22, %c0_23] : memref<9x64x128xbf16, #tpu.memory_space<vmem>>, vector<1x64x128xbf16>
    %42 = vector.shape_cast %41 : vector<1x64x128xbf16> to vector<64x128xbf16>
    %cst_24 = arith.constant dense<0.000000e+00> : vector<64x128xf32>
    %43 = tpu.matmul %40, %42, %cst_24 {dimension_numbers = #tpu.dot_dimension_numbers<[1], [0], [0], [1], [0, 0, 1, 1], [], []>} : vector<64x64xbf16>, vector<64x128xbf16>, vector<64x128xf32> -> vector<64x128xf32>
    %44 = arith.addf %39, %43 : vector<64x128xf32>
    %45 = vector.extract_strided_slice %3 {offsets = [14, 0], sizes = [64, 64], strides = [1, 1]} : vector<78x64xbf16> to vector<64x64xbf16>
    %c8 = arith.constant 8 : index
    %c0_25 = arith.constant 0 : index
    %c0_26 = arith.constant 0 : index
    %46 = vector.load %arg2[%c8, %c0_25, %c0_26] : memref<9x64x128xbf16, #tpu.memory_space<vmem>>, vector<1x64x128xbf16>
    %47 = vector.shape_cast %46 : vector<1x64x128xbf16> to vector<64x128xbf16>
    %cst_27 = arith.constant dense<0.000000e+00> : vector<64x128xf32>
    %48 = tpu.matmul %45, %47, %cst_27 {dimension_numbers = #tpu.dot_dimension_numbers<[1], [0], [0], [1], [0, 0, 1, 1], [], []>} : vector<64x64xbf16>, vector<64x128xbf16>, vector<64x128xf32> -> vector<64x128xf32>
    %49 = arith.addf %44, %48 : vector<64x128xf32>
    %c0_28 = arith.constant 0 : index
    %c0_29 = arith.constant 0 : index
    %50 = vector.load %arg3[%c0_28, %c0_29] : memref<1x128xf32, #tpu.memory_space<vmem>>, vector<1x128xf32>
    %51 = vector.broadcast %50 : vector<1x128xf32> to vector<64x128xf32>
    %52 = arith.addf %49, %51 : vector<64x128xf32>
    %cst_30 = arith.constant 0.000000e+00 : f32
    %53 = vector.broadcast %cst_30 : f32 to vector<64x128xf32>
    %54 = arith.maximumf %52, %53 : vector<64x128xf32>
    %55 = arith.truncf %54 : vector<64x128xf32> to vector<64x128xbf16>
    %c0_31 = arith.constant 0 : index
    %c0_32 = arith.constant 0 : index
    %56 = vector.load %arg4[%c0_31, %c0_32] : memref<64x128xbf16, #tpu.memory_space<vmem>>, vector<64x128xbf16>
    tpu.vector_store %arg4[%c0_31, %c0_32], %55 {strides = array<i32>} : memref<64x128xbf16, #tpu.memory_space<vmem>>, vector<64x128xbf16>,
    return
  }
  func.func @transform_0(%arg0: i32) -> (i32, i32) {
    %c0_i32 = arith.constant 0 : i32
    %c0_i32_0 = arith.constant 0 : i32
    %c0_i32_1 = arith.constant 0 : i32
    return %c0_i32, %c0_i32_0 : i32, i32
  }
  func.func @transform_1(%arg0: i32) -> (i32, i32, i32) {
    %c0_i32 = arith.constant 0 : i32
    %c0_i32_0 = arith.constant 0 : i32
    %c0_i32_1 = arith.constant 0 : i32
    %c0_i32_2 = arith.constant 0 : i32
    return %c0_i32, %c0_i32_0, %c0_i32_1 : i32, i32, i32
  }
  func.func @transform_2(%arg0: i32) -> (i32, i32) {
    %c0_i32 = arith.constant 0 : i32
    %c0_i32_0 = arith.constant 0 : i32
    %c0_i32_1 = arith.constant 0 : i32
    return %c0_i32, %c0_i32_0 : i32, i32
  }
  func.func @transform_3(%arg0: i32) -> (i32, i32) {
    %c0_i32 = arith.constant 0 : i32
    %c0_i32_0 = arith.constant 0 : i32
    return %arg0, %c0_i32 : i32, i32
  }
}

module attributes {stable_mosaic.version = 11 : i64} {
  func.func @_conv3x3_kernel(%arg0: i32, %arg1: memref<78x32xbf16, #tpu.memory_space<vmem>>, %arg2: memref<9x32x128xbf16, #tpu.memory_space<vmem>>, %arg3: memref<1x128xf32, #tpu.memory_space<vmem>>, %arg4: memref<64x128xbf16, #tpu.memory_space<vmem>>) attributes {dimension_semantics = [#tpu.dimension_semantics<parallel>], iteration_bounds = array<i64: 1>, scalar_prefetch = 0 : i64, scratch_operands = 0 : i64, tpu.core_type = #tpu.core_type<tc>, window_params = [{pipeline_mode = #tpu.pipeline_mode<synchronous>, transform_indices = @transform_0, window_bounds = array<i64: 78, 32>}, {pipeline_mode = #tpu.pipeline_mode<synchronous>, transform_indices = @transform_1, window_bounds = array<i64: 9, 32, 128>}, {pipeline_mode = #tpu.pipeline_mode<synchronous>, transform_indices = @transform_2, window_bounds = array<i64: 1, 128>}, {transform_indices = @transform_3, window_bounds = array<i64: 64, 128>}]} {
    %c64_i32 = arith.constant 64 : i32
    %0 = arith.muli %arg0, %c64_i32 : i32
    %1 = tpu.assume_multiple %0, 16 : i32
    %2 = arith.index_cast %1 : i32 to index
    %c0 = arith.constant 0 : index
    %3 = vector.load %arg1[%2, %c0] : memref<78x32xbf16, #tpu.memory_space<vmem>>, vector<78x32xbf16>
    %cst = arith.constant 0.000000e+00 : f32
    %4 = vector.broadcast %cst : f32 to vector<64x128xf32>
    %5 = vector.extract_strided_slice %3 {offsets = [0, 0], sizes = [64, 32], strides = [1, 1]} : vector<78x32xbf16> to vector<64x32xbf16>
    %c0_0 = arith.constant 0 : index
    %c0_1 = arith.constant 0 : index
    %c0_2 = arith.constant 0 : index
    %6 = vector.load %arg2[%c0_0, %c0_1, %c0_2] : memref<9x32x128xbf16, #tpu.memory_space<vmem>>, vector<1x32x128xbf16>
    %7 = vector.shape_cast %6 : vector<1x32x128xbf16> to vector<32x128xbf16>
    %cst_3 = arith.constant dense<0.000000e+00> : vector<64x128xf32>
    %8 = tpu.matmul %5, %7, %cst_3 {dimension_numbers = #tpu.dot_dimension_numbers<[1], [0], [0], [1], [0, 0, 1, 1], [], []>} : vector<64x32xbf16>, vector<32x128xbf16>, vector<64x128xf32> -> vector<64x128xf32>
    %9 = arith.addf %4, %8 : vector<64x128xf32>
    %10 = vector.extract_strided_slice %3 {offsets = [1, 0], sizes = [64, 32], strides = [1, 1]} : vector<78x32xbf16> to vector<64x32xbf16>
    %c1 = arith.constant 1 : index
    %c0_4 = arith.constant 0 : index
    %c0_5 = arith.constant 0 : index
    %11 = vector.load %arg2[%c1, %c0_4, %c0_5] : memref<9x32x128xbf16, #tpu.memory_space<vmem>>, vector<1x32x128xbf16>
    %12 = vector.shape_cast %11 : vector<1x32x128xbf16> to vector<32x128xbf16>
    %cst_6 = arith.constant dense<0.000000e+00> : vector<64x128xf32>
    %13 = tpu.matmul %10, %12, %cst_6 {dimension_numbers = #tpu.dot_dimension_numbers<[1], [0], [0], [1], [0, 0, 1, 1], [], []>} : vector<64x32xbf16>, vector<32x128xbf16>, vector<64x128xf32> -> vector<64x128xf32>
    %14 = arith.addf %9, %13 : vector<64x128xf32>
    %15 = vector.extract_strided_slice %3 {offsets = [2, 0], sizes = [64, 32], strides = [1, 1]} : vector<78x32xbf16> to vector<64x32xbf16>
    %c2 = arith.constant 2 : index
    %c0_7 = arith.constant 0 : index
    %c0_8 = arith.constant 0 : index
    %16 = vector.load %arg2[%c2, %c0_7, %c0_8] : memref<9x32x128xbf16, #tpu.memory_space<vmem>>, vector<1x32x128xbf16>
    %17 = vector.shape_cast %16 : vector<1x32x128xbf16> to vector<32x128xbf16>
    %cst_9 = arith.constant dense<0.000000e+00> : vector<64x128xf32>
    %18 = tpu.matmul %15, %17, %cst_9 {dimension_numbers = #tpu.dot_dimension_numbers<[1], [0], [0], [1], [0, 0, 1, 1], [], []>} : vector<64x32xbf16>, vector<32x128xbf16>, vector<64x128xf32> -> vector<64x128xf32>
    %19 = arith.addf %14, %18 : vector<64x128xf32>
    %20 = vector.extract_strided_slice %3 {offsets = [6, 0], sizes = [64, 32], strides = [1, 1]} : vector<78x32xbf16> to vector<64x32xbf16>
    %c3 = arith.constant 3 : index
    %c0_10 = arith.constant 0 : index
    %c0_11 = arith.constant 0 : index
    %21 = vector.load %arg2[%c3, %c0_10, %c0_11] : memref<9x32x128xbf16, #tpu.memory_space<vmem>>, vector<1x32x128xbf16>
    %22 = vector.shape_cast %21 : vector<1x32x128xbf16> to vector<32x128xbf16>
    %cst_12 = arith.constant dense<0.000000e+00> : vector<64x128xf32>
    %23 = tpu.matmul %20, %22, %cst_12 {dimension_numbers = #tpu.dot_dimension_numbers<[1], [0], [0], [1], [0, 0, 1, 1], [], []>} : vector<64x32xbf16>, vector<32x128xbf16>, vector<64x128xf32> -> vector<64x128xf32>
    %24 = arith.addf %19, %23 : vector<64x128xf32>
    %25 = vector.extract_strided_slice %3 {offsets = [7, 0], sizes = [64, 32], strides = [1, 1]} : vector<78x32xbf16> to vector<64x32xbf16>
    %c4 = arith.constant 4 : index
    %c0_13 = arith.constant 0 : index
    %c0_14 = arith.constant 0 : index
    %26 = vector.load %arg2[%c4, %c0_13, %c0_14] : memref<9x32x128xbf16, #tpu.memory_space<vmem>>, vector<1x32x128xbf16>
    %27 = vector.shape_cast %26 : vector<1x32x128xbf16> to vector<32x128xbf16>
    %cst_15 = arith.constant dense<0.000000e+00> : vector<64x128xf32>
    %28 = tpu.matmul %25, %27, %cst_15 {dimension_numbers = #tpu.dot_dimension_numbers<[1], [0], [0], [1], [0, 0, 1, 1], [], []>} : vector<64x32xbf16>, vector<32x128xbf16>, vector<64x128xf32> -> vector<64x128xf32>
    %29 = arith.addf %24, %28 : vector<64x128xf32>
    %30 = vector.extract_strided_slice %3 {offsets = [8, 0], sizes = [64, 32], strides = [1, 1]} : vector<78x32xbf16> to vector<64x32xbf16>
    %c5 = arith.constant 5 : index
    %c0_16 = arith.constant 0 : index
    %c0_17 = arith.constant 0 : index
    %31 = vector.load %arg2[%c5, %c0_16, %c0_17] : memref<9x32x128xbf16, #tpu.memory_space<vmem>>, vector<1x32x128xbf16>
    %32 = vector.shape_cast %31 : vector<1x32x128xbf16> to vector<32x128xbf16>
    %cst_18 = arith.constant dense<0.000000e+00> : vector<64x128xf32>
    %33 = tpu.matmul %30, %32, %cst_18 {dimension_numbers = #tpu.dot_dimension_numbers<[1], [0], [0], [1], [0, 0, 1, 1], [], []>} : vector<64x32xbf16>, vector<32x128xbf16>, vector<64x128xf32> -> vector<64x128xf32>
    %34 = arith.addf %29, %33 : vector<64x128xf32>
    %35 = vector.extract_strided_slice %3 {offsets = [12, 0], sizes = [64, 32], strides = [1, 1]} : vector<78x32xbf16> to vector<64x32xbf16>
    %c6 = arith.constant 6 : index
    %c0_19 = arith.constant 0 : index
    %c0_20 = arith.constant 0 : index
    %36 = vector.load %arg2[%c6, %c0_19, %c0_20] : memref<9x32x128xbf16, #tpu.memory_space<vmem>>, vector<1x32x128xbf16>
    %37 = vector.shape_cast %36 : vector<1x32x128xbf16> to vector<32x128xbf16>
    %cst_21 = arith.constant dense<0.000000e+00> : vector<64x128xf32>
    %38 = tpu.matmul %35, %37, %cst_21 {dimension_numbers = #tpu.dot_dimension_numbers<[1], [0], [0], [1], [0, 0, 1, 1], [], []>} : vector<64x32xbf16>, vector<32x128xbf16>, vector<64x128xf32> -> vector<64x128xf32>
    %39 = arith.addf %34, %38 : vector<64x128xf32>
    %40 = vector.extract_strided_slice %3 {offsets = [13, 0], sizes = [64, 32], strides = [1, 1]} : vector<78x32xbf16> to vector<64x32xbf16>
    %c7 = arith.constant 7 : index
    %c0_22 = arith.constant 0 : index
    %c0_23 = arith.constant 0 : index
    %41 = vector.load %arg2[%c7, %c0_22, %c0_23] : memref<9x32x128xbf16, #tpu.memory_space<vmem>>, vector<1x32x128xbf16>
    %42 = vector.shape_cast %41 : vector<1x32x128xbf16> to vector<32x128xbf16>
    %cst_24 = arith.constant dense<0.000000e+00> : vector<64x128xf32>
    %43 = tpu.matmul %40, %42, %cst_24 {dimension_numbers = #tpu.dot_dimension_numbers<[1], [0], [0], [1], [0, 0, 1, 1], [], []>} : vector<64x32xbf16>, vector<32x128xbf16>, vector<64x128xf32> -> vector<64x128xf32>
    %44 = arith.addf %39, %43 : vector<64x128xf32>
    %45 = vector.extract_strided_slice %3 {offsets = [14, 0], sizes = [64, 32], strides = [1, 1]} : vector<78x32xbf16> to vector<64x32xbf16>
    %c8 = arith.constant 8 : index
    %c0_25 = arith.constant 0 : index
    %c0_26 = arith.constant 0 : index
    %46 = vector.load %arg2[%c8, %c0_25, %c0_26] : memref<9x32x128xbf16, #tpu.memory_space<vmem>>, vector<1x32x128xbf16>
    %47 = vector.shape_cast %46 : vector<1x32x128xbf16> to vector<32x128xbf16>
    %cst_27 = arith.constant dense<0.000000e+00> : vector<64x128xf32>
    %48 = tpu.matmul %45, %47, %cst_27 {dimension_numbers = #tpu.dot_dimension_numbers<[1], [0], [0], [1], [0, 0, 1, 1], [], []>} : vector<64x32xbf16>, vector<32x128xbf16>, vector<64x128xf32> -> vector<64x128xf32>
    %49 = arith.addf %44, %48 : vector<64x128xf32>
    %c0_28 = arith.constant 0 : index
    %c0_29 = arith.constant 0 : index
    %50 = vector.load %arg3[%c0_28, %c0_29] : memref<1x128xf32, #tpu.memory_space<vmem>>, vector<1x128xf32>
    %51 = vector.broadcast %50 : vector<1x128xf32> to vector<64x128xf32>
    %52 = arith.addf %49, %51 : vector<64x128xf32>
    %cst_30 = arith.constant 0.000000e+00 : f32
    %53 = vector.broadcast %cst_30 : f32 to vector<64x128xf32>
    %54 = arith.maximumf %52, %53 : vector<64x128xf32>
    %55 = arith.truncf %54 : vector<64x128xf32> to vector<64x128xbf16>
    %c0_31 = arith.constant 0 : index
    %c0_32 = arith.constant 0 : index
    %56 = vector.load %arg4[%c0_31, %c0_32] : memref<64x128xbf16, #tpu.memory_space<vmem>>, vector<64x128xbf16>
    tpu.vector_store %arg4[%c0_31, %c0_32], %55 {strides = array<i32>} : memref<64x128xbf16, #tpu.memory_space<vmem>>, vector<64x128xbf16>,
    return
  }
  func.func @transform_0(%arg0: i32) -> (i32, i32) {
    %c0_i32 = arith.constant 0 : i32
    %c0_i32_0 = arith.constant 0 : i32
    %c0_i32_1 = arith.constant 0 : i32
    return %c0_i32, %c0_i32_0 : i32, i32
  }
  func.func @transform_1(%arg0: i32) -> (i32, i32, i32) {
    %c0_i32 = arith.constant 0 : i32
    %c0_i32_0 = arith.constant 0 : i32
    %c0_i32_1 = arith.constant 0 : i32
    %c0_i32_2 = arith.constant 0 : i32
    return %c0_i32, %c0_i32_0, %c0_i32_1 : i32, i32, i32
  }
  func.func @transform_2(%arg0: i32) -> (i32, i32) {
    %c0_i32 = arith.constant 0 : i32
    %c0_i32_0 = arith.constant 0 : i32
    %c0_i32_1 = arith.constant 0 : i32
    return %c0_i32, %c0_i32_0 : i32, i32
  }
  func.func @transform_3(%arg0: i32) -> (i32, i32) {
    %c0_i32 = arith.constant 0 : i32
    %c0_i32_0 = arith.constant 0 : i32
    return %arg0, %c0_i32 : i32, i32
  }
}

module attributes {stable_mosaic.version = 11 : i64} {
  func.func @_conv3x3_kernel(%arg0: i32, %arg1: memref<78x16xbf16, #tpu.memory_space<vmem>>, %arg2: memref<9x16x128xbf16, #tpu.memory_space<vmem>>, %arg3: memref<1x128xf32, #tpu.memory_space<vmem>>, %arg4: memref<64x128xbf16, #tpu.memory_space<vmem>>) attributes {dimension_semantics = [#tpu.dimension_semantics<parallel>], iteration_bounds = array<i64: 1>, scalar_prefetch = 0 : i64, scratch_operands = 0 : i64, tpu.core_type = #tpu.core_type<tc>, window_params = [{pipeline_mode = #tpu.pipeline_mode<synchronous>, transform_indices = @transform_0, window_bounds = array<i64: 78, 16>}, {pipeline_mode = #tpu.pipeline_mode<synchronous>, transform_indices = @transform_1, window_bounds = array<i64: 9, 16, 128>}, {pipeline_mode = #tpu.pipeline_mode<synchronous>, transform_indices = @transform_2, window_bounds = array<i64: 1, 128>}, {transform_indices = @transform_3, window_bounds = array<i64: 64, 128>}]} {
    %c64_i32 = arith.constant 64 : i32
    %0 = arith.muli %arg0, %c64_i32 : i32
    %1 = tpu.assume_multiple %0, 16 : i32
    %2 = arith.index_cast %1 : i32 to index
    %c0 = arith.constant 0 : index
    %3 = vector.load %arg1[%2, %c0] : memref<78x16xbf16, #tpu.memory_space<vmem>>, vector<78x16xbf16>
    %cst = arith.constant 0.000000e+00 : f32
    %4 = vector.broadcast %cst : f32 to vector<64x128xf32>
    %5 = vector.extract_strided_slice %3 {offsets = [0, 0], sizes = [64, 16], strides = [1, 1]} : vector<78x16xbf16> to vector<64x16xbf16>
    %c0_0 = arith.constant 0 : index
    %c0_1 = arith.constant 0 : index
    %c0_2 = arith.constant 0 : index
    %6 = vector.load %arg2[%c0_0, %c0_1, %c0_2] : memref<9x16x128xbf16, #tpu.memory_space<vmem>>, vector<1x16x128xbf16>
    %7 = vector.shape_cast %6 : vector<1x16x128xbf16> to vector<16x128xbf16>
    %cst_3 = arith.constant dense<0.000000e+00> : vector<64x128xf32>
    %8 = tpu.matmul %5, %7, %cst_3 {dimension_numbers = #tpu.dot_dimension_numbers<[1], [0], [0], [1], [0, 0, 1, 1], [], []>} : vector<64x16xbf16>, vector<16x128xbf16>, vector<64x128xf32> -> vector<64x128xf32>
    %9 = arith.addf %4, %8 : vector<64x128xf32>
    %10 = vector.extract_strided_slice %3 {offsets = [1, 0], sizes = [64, 16], strides = [1, 1]} : vector<78x16xbf16> to vector<64x16xbf16>
    %c1 = arith.constant 1 : index
    %c0_4 = arith.constant 0 : index
    %c0_5 = arith.constant 0 : index
    %11 = vector.load %arg2[%c1, %c0_4, %c0_5] : memref<9x16x128xbf16, #tpu.memory_space<vmem>>, vector<1x16x128xbf16>
    %12 = vector.shape_cast %11 : vector<1x16x128xbf16> to vector<16x128xbf16>
    %cst_6 = arith.constant dense<0.000000e+00> : vector<64x128xf32>
    %13 = tpu.matmul %10, %12, %cst_6 {dimension_numbers = #tpu.dot_dimension_numbers<[1], [0], [0], [1], [0, 0, 1, 1], [], []>} : vector<64x16xbf16>, vector<16x128xbf16>, vector<64x128xf32> -> vector<64x128xf32>
    %14 = arith.addf %9, %13 : vector<64x128xf32>
    %15 = vector.extract_strided_slice %3 {offsets = [2, 0], sizes = [64, 16], strides = [1, 1]} : vector<78x16xbf16> to vector<64x16xbf16>
    %c2 = arith.constant 2 : index
    %c0_7 = arith.constant 0 : index
    %c0_8 = arith.constant 0 : index
    %16 = vector.load %arg2[%c2, %c0_7, %c0_8] : memref<9x16x128xbf16, #tpu.memory_space<vmem>>, vector<1x16x128xbf16>
    %17 = vector.shape_cast %16 : vector<1x16x128xbf16> to vector<16x128xbf16>
    %cst_9 = arith.constant dense<0.000000e+00> : vector<64x128xf32>
    %18 = tpu.matmul %15, %17, %cst_9 {dimension_numbers = #tpu.dot_dimension_numbers<[1], [0], [0], [1], [0, 0, 1, 1], [], []>} : vector<64x16xbf16>, vector<16x128xbf16>, vector<64x128xf32> -> vector<64x128xf32>
    %19 = arith.addf %14, %18 : vector<64x128xf32>
    %20 = vector.extract_strided_slice %3 {offsets = [6, 0], sizes = [64, 16], strides = [1, 1]} : vector<78x16xbf16> to vector<64x16xbf16>
    %c3 = arith.constant 3 : index
    %c0_10 = arith.constant 0 : index
    %c0_11 = arith.constant 0 : index
    %21 = vector.load %arg2[%c3, %c0_10, %c0_11] : memref<9x16x128xbf16, #tpu.memory_space<vmem>>, vector<1x16x128xbf16>
    %22 = vector.shape_cast %21 : vector<1x16x128xbf16> to vector<16x128xbf16>
    %cst_12 = arith.constant dense<0.000000e+00> : vector<64x128xf32>
    %23 = tpu.matmul %20, %22, %cst_12 {dimension_numbers = #tpu.dot_dimension_numbers<[1], [0], [0], [1], [0, 0, 1, 1], [], []>} : vector<64x16xbf16>, vector<16x128xbf16>, vector<64x128xf32> -> vector<64x128xf32>
    %24 = arith.addf %19, %23 : vector<64x128xf32>
    %25 = vector.extract_strided_slice %3 {offsets = [7, 0], sizes = [64, 16], strides = [1, 1]} : vector<78x16xbf16> to vector<64x16xbf16>
    %c4 = arith.constant 4 : index
    %c0_13 = arith.constant 0 : index
    %c0_14 = arith.constant 0 : index
    %26 = vector.load %arg2[%c4, %c0_13, %c0_14] : memref<9x16x128xbf16, #tpu.memory_space<vmem>>, vector<1x16x128xbf16>
    %27 = vector.shape_cast %26 : vector<1x16x128xbf16> to vector<16x128xbf16>
    %cst_15 = arith.constant dense<0.000000e+00> : vector<64x128xf32>
    %28 = tpu.matmul %25, %27, %cst_15 {dimension_numbers = #tpu.dot_dimension_numbers<[1], [0], [0], [1], [0, 0, 1, 1], [], []>} : vector<64x16xbf16>, vector<16x128xbf16>, vector<64x128xf32> -> vector<64x128xf32>
    %29 = arith.addf %24, %28 : vector<64x128xf32>
    %30 = vector.extract_strided_slice %3 {offsets = [8, 0], sizes = [64, 16], strides = [1, 1]} : vector<78x16xbf16> to vector<64x16xbf16>
    %c5 = arith.constant 5 : index
    %c0_16 = arith.constant 0 : index
    %c0_17 = arith.constant 0 : index
    %31 = vector.load %arg2[%c5, %c0_16, %c0_17] : memref<9x16x128xbf16, #tpu.memory_space<vmem>>, vector<1x16x128xbf16>
    %32 = vector.shape_cast %31 : vector<1x16x128xbf16> to vector<16x128xbf16>
    %cst_18 = arith.constant dense<0.000000e+00> : vector<64x128xf32>
    %33 = tpu.matmul %30, %32, %cst_18 {dimension_numbers = #tpu.dot_dimension_numbers<[1], [0], [0], [1], [0, 0, 1, 1], [], []>} : vector<64x16xbf16>, vector<16x128xbf16>, vector<64x128xf32> -> vector<64x128xf32>
    %34 = arith.addf %29, %33 : vector<64x128xf32>
    %35 = vector.extract_strided_slice %3 {offsets = [12, 0], sizes = [64, 16], strides = [1, 1]} : vector<78x16xbf16> to vector<64x16xbf16>
    %c6 = arith.constant 6 : index
    %c0_19 = arith.constant 0 : index
    %c0_20 = arith.constant 0 : index
    %36 = vector.load %arg2[%c6, %c0_19, %c0_20] : memref<9x16x128xbf16, #tpu.memory_space<vmem>>, vector<1x16x128xbf16>
    %37 = vector.shape_cast %36 : vector<1x16x128xbf16> to vector<16x128xbf16>
    %cst_21 = arith.constant dense<0.000000e+00> : vector<64x128xf32>
    %38 = tpu.matmul %35, %37, %cst_21 {dimension_numbers = #tpu.dot_dimension_numbers<[1], [0], [0], [1], [0, 0, 1, 1], [], []>} : vector<64x16xbf16>, vector<16x128xbf16>, vector<64x128xf32> -> vector<64x128xf32>
    %39 = arith.addf %34, %38 : vector<64x128xf32>
    %40 = vector.extract_strided_slice %3 {offsets = [13, 0], sizes = [64, 16], strides = [1, 1]} : vector<78x16xbf16> to vector<64x16xbf16>
    %c7 = arith.constant 7 : index
    %c0_22 = arith.constant 0 : index
    %c0_23 = arith.constant 0 : index
    %41 = vector.load %arg2[%c7, %c0_22, %c0_23] : memref<9x16x128xbf16, #tpu.memory_space<vmem>>, vector<1x16x128xbf16>
    %42 = vector.shape_cast %41 : vector<1x16x128xbf16> to vector<16x128xbf16>
    %cst_24 = arith.constant dense<0.000000e+00> : vector<64x128xf32>
    %43 = tpu.matmul %40, %42, %cst_24 {dimension_numbers = #tpu.dot_dimension_numbers<[1], [0], [0], [1], [0, 0, 1, 1], [], []>} : vector<64x16xbf16>, vector<16x128xbf16>, vector<64x128xf32> -> vector<64x128xf32>
    %44 = arith.addf %39, %43 : vector<64x128xf32>
    %45 = vector.extract_strided_slice %3 {offsets = [14, 0], sizes = [64, 16], strides = [1, 1]} : vector<78x16xbf16> to vector<64x16xbf16>
    %c8 = arith.constant 8 : index
    %c0_25 = arith.constant 0 : index
    %c0_26 = arith.constant 0 : index
    %46 = vector.load %arg2[%c8, %c0_25, %c0_26] : memref<9x16x128xbf16, #tpu.memory_space<vmem>>, vector<1x16x128xbf16>
    %47 = vector.shape_cast %46 : vector<1x16x128xbf16> to vector<16x128xbf16>
    %cst_27 = arith.constant dense<0.000000e+00> : vector<64x128xf32>
    %48 = tpu.matmul %45, %47, %cst_27 {dimension_numbers = #tpu.dot_dimension_numbers<[1], [0], [0], [1], [0, 0, 1, 1], [], []>} : vector<64x16xbf16>, vector<16x128xbf16>, vector<64x128xf32> -> vector<64x128xf32>
    %49 = arith.addf %44, %48 : vector<64x128xf32>
    %c0_28 = arith.constant 0 : index
    %c0_29 = arith.constant 0 : index
    %50 = vector.load %arg3[%c0_28, %c0_29] : memref<1x128xf32, #tpu.memory_space<vmem>>, vector<1x128xf32>
    %51 = vector.broadcast %50 : vector<1x128xf32> to vector<64x128xf32>
    %52 = arith.addf %49, %51 : vector<64x128xf32>
    %cst_30 = arith.constant 0.000000e+00 : f32
    %53 = vector.broadcast %cst_30 : f32 to vector<64x128xf32>
    %54 = arith.maximumf %52, %53 : vector<64x128xf32>
    %55 = arith.truncf %54 : vector<64x128xf32> to vector<64x128xbf16>
    %c0_31 = arith.constant 0 : index
    %c0_32 = arith.constant 0 : index
    %56 = vector.load %arg4[%c0_31, %c0_32] : memref<64x128xbf16, #tpu.memory_space<vmem>>, vector<64x128xbf16>
    tpu.vector_store %arg4[%c0_31, %c0_32], %55 {strides = array<i32>} : memref<64x128xbf16, #tpu.memory_space<vmem>>, vector<64x128xbf16>,
    return
  }
  func.func @transform_0(%arg0: i32) -> (i32, i32) {
    %c0_i32 = arith.constant 0 : i32
    %c0_i32_0 = arith.constant 0 : i32
    %c0_i32_1 = arith.constant 0 : i32
    return %c0_i32, %c0_i32_0 : i32, i32
  }
  func.func @transform_1(%arg0: i32) -> (i32, i32, i32) {
    %c0_i32 = arith.constant 0 : i32
    %c0_i32_0 = arith.constant 0 : i32
    %c0_i32_1 = arith.constant 0 : i32
    %c0_i32_2 = arith.constant 0 : i32
    return %c0_i32, %c0_i32_0, %c0_i32_1 : i32, i32, i32
  }
  func.func @transform_2(%arg0: i32) -> (i32, i32) {
    %c0_i32 = arith.constant 0 : i32
    %c0_i32_0 = arith.constant 0 : i32
    %c0_i32_1 = arith.constant 0 : i32
    return %c0_i32, %c0_i32_0 : i32, i32
  }
  func.func @transform_3(%arg0: i32) -> (i32, i32) {
    %c0_i32 = arith.constant 0 : i32
    %c0_i32_0 = arith.constant 0 : i32
    return %arg0, %c0_i32 : i32, i32
  }
}

module attributes {stable_mosaic.version = 11 : i64} {
  func.func @_pool3x3_s2_kernel(%arg0: i32, %arg1: memref<1x4x5x5x64xbf16, #tpu.memory_space<vmem>>, %arg2: memref<1x4x4x64xbf16, #tpu.memory_space<vmem>>) attributes {dimension_semantics = [#tpu.dimension_semantics<parallel>], iteration_bounds = array<i64: 2>, scalar_prefetch = 0 : i64, scratch_operands = 0 : i64, tpu.core_type = #tpu.core_type<tc>, window_params = [{transform_indices = @transform_0, window_bounds = array<i64: 1, 4, 5, 5, 64>}, {transform_indices = @transform_1, window_bounds = array<i64: 1, 4, 4, 64>}]} {
    %c0 = arith.constant 0 : index
    %c0_0 = arith.constant 0 : index
    %c0_1 = arith.constant 0 : index
    %c0_2 = arith.constant 0 : index
    %c0_3 = arith.constant 0 : index
    %0 = vector.load %arg1[%c0, %c0_0, %c0_1, %c0_2, %c0_3] : memref<1x4x5x5x64xbf16, #tpu.memory_space<vmem>>, vector<1x1x5x5x64xbf16>
    %1 = vector.shape_cast %0 : vector<1x1x5x5x64xbf16> to vector<5x5x64xbf16>
    %2 = vector.extract_strided_slice %1 {offsets = [0, 0, 0], sizes = [4, 4, 64], strides = [1, 1, 1]} : vector<5x5x64xbf16> to vector<4x4x64xbf16>
    %3 = arith.extf %2 : vector<4x4x64xbf16> to vector<4x4x64xf32>
    %c0_4 = arith.constant 0 : index
    %c1 = arith.constant 1 : index
    %c0_5 = arith.constant 0 : index
    %c0_6 = arith.constant 0 : index
    %c0_7 = arith.constant 0 : index
    %4 = vector.load %arg1[%c0_4, %c1, %c0_5, %c0_6, %c0_7] : memref<1x4x5x5x64xbf16, #tpu.memory_space<vmem>>, vector<1x1x5x5x64xbf16>
    %5 = vector.shape_cast %4 : vector<1x1x5x5x64xbf16> to vector<5x5x64xbf16>
    %6 = vector.extract_strided_slice %5 {offsets = [0, 0, 0], sizes = [4, 4, 64], strides = [1, 1, 1]} : vector<5x5x64xbf16> to vector<4x4x64xbf16>
    %7 = arith.extf %6 : vector<4x4x64xbf16> to vector<4x4x64xf32>
    %8 = arith.addf %3, %7 : vector<4x4x64xf32>
    %c0_8 = arith.constant 0 : index
    %c0_9 = arith.constant 0 : index
    %c0_10 = arith.constant 0 : index
    %c0_11 = arith.constant 0 : index
    %c0_12 = arith.constant 0 : index
    %9 = vector.load %arg1[%c0_8, %c0_9, %c0_10, %c0_11, %c0_12] : memref<1x4x5x5x64xbf16, #tpu.memory_space<vmem>>, vector<1x1x5x5x64xbf16>
    %10 = vector.shape_cast %9 : vector<1x1x5x5x64xbf16> to vector<5x5x64xbf16>
    %11 = vector.extract_strided_slice %10 {offsets = [0, 1, 0], sizes = [4, 4, 64], strides = [1, 1, 1]} : vector<5x5x64xbf16> to vector<4x4x64xbf16>
    %12 = arith.extf %11 : vector<4x4x64xbf16> to vector<4x4x64xf32>
    %13 = arith.addf %8, %12 : vector<4x4x64xf32>
    %c0_13 = arith.constant 0 : index
    %c2 = arith.constant 2 : index
    %c0_14 = arith.constant 0 : index
    %c0_15 = arith.constant 0 : index
    %c0_16 = arith.constant 0 : index
    %14 = vector.load %arg1[%c0_13, %c2, %c0_14, %c0_15, %c0_16] : memref<1x4x5x5x64xbf16, #tpu.memory_space<vmem>>, vector<1x1x5x5x64xbf16>
    %15 = vector.shape_cast %14 : vector<1x1x5x5x64xbf16> to vector<5x5x64xbf16>
    %16 = vector.extract_strided_slice %15 {offsets = [0, 0, 0], sizes = [4, 4, 64], strides = [1, 1, 1]} : vector<5x5x64xbf16> to vector<4x4x64xbf16>
    %17 = arith.extf %16 : vector<4x4x64xbf16> to vector<4x4x64xf32>
    %18 = arith.addf %13, %17 : vector<4x4x64xf32>
    %c0_17 = arith.constant 0 : index
    %c3 = arith.constant 3 : index
    %c0_18 = arith.constant 0 : index
    %c0_19 = arith.constant 0 : index
    %c0_20 = arith.constant 0 : index
    %19 = vector.load %arg1[%c0_17, %c3, %c0_18, %c0_19, %c0_20] : memref<1x4x5x5x64xbf16, #tpu.memory_space<vmem>>, vector<1x1x5x5x64xbf16>
    %20 = vector.shape_cast %19 : vector<1x1x5x5x64xbf16> to vector<5x5x64xbf16>
    %21 = vector.extract_strided_slice %20 {offsets = [0, 0, 0], sizes = [4, 4, 64], strides = [1, 1, 1]} : vector<5x5x64xbf16> to vector<4x4x64xbf16>
    %22 = arith.extf %21 : vector<4x4x64xbf16> to vector<4x4x64xf32>
    %23 = arith.addf %18, %22 : vector<4x4x64xf32>
    %c0_21 = arith.constant 0 : index
    %c2_22 = arith.constant 2 : index
    %c0_23 = arith.constant 0 : index
    %c0_24 = arith.constant 0 : index
    %c0_25 = arith.constant 0 : index
    %24 = vector.load %arg1[%c0_21, %c2_22, %c0_23, %c0_24, %c0_25] : memref<1x4x5x5x64xbf16, #tpu.memory_space<vmem>>, vector<1x1x5x5x64xbf16>
    %25 = vector.shape_cast %24 : vector<1x1x5x5x64xbf16> to vector<5x5x64xbf16>
    %26 = vector.extract_strided_slice %25 {offsets = [0, 1, 0], sizes = [4, 4, 64], strides = [1, 1, 1]} : vector<5x5x64xbf16> to vector<4x4x64xbf16>
    %27 = arith.extf %26 : vector<4x4x64xbf16> to vector<4x4x64xf32>
    %28 = arith.addf %23, %27 : vector<4x4x64xf32>
    %c0_26 = arith.constant 0 : index
    %c0_27 = arith.constant 0 : index
    %c0_28 = arith.constant 0 : index
    %c0_29 = arith.constant 0 : index
    %c0_30 = arith.constant 0 : index
    %29 = vector.load %arg1[%c0_26, %c0_27, %c0_28, %c0_29, %c0_30] : memref<1x4x5x5x64xbf16, #tpu.memory_space<vmem>>, vector<1x1x5x5x64xbf16>
    %30 = vector.shape_cast %29 : vector<1x1x5x5x64xbf16> to vector<5x5x64xbf16>
    %31 = vector.extract_strided_slice %30 {offsets = [1, 0, 0], sizes = [4, 4, 64], strides = [1, 1, 1]} : vector<5x5x64xbf16> to vector<4x4x64xbf16>
    %32 = arith.extf %31 : vector<4x4x64xbf16> to vector<4x4x64xf32>
    %33 = arith.addf %28, %32 : vector<4x4x64xf32>
    %c0_31 = arith.constant 0 : index
    %c1_32 = arith.constant 1 : index
    %c0_33 = arith.constant 0 : index
    %c0_34 = arith.constant 0 : index
    %c0_35 = arith.constant 0 : index
    %34 = vector.load %arg1[%c0_31, %c1_32, %c0_33, %c0_34, %c0_35] : memref<1x4x5x5x64xbf16, #tpu.memory_space<vmem>>, vector<1x1x5x5x64xbf16>
    %35 = vector.shape_cast %34 : vector<1x1x5x5x64xbf16> to vector<5x5x64xbf16>
    %36 = vector.extract_strided_slice %35 {offsets = [1, 0, 0], sizes = [4, 4, 64], strides = [1, 1, 1]} : vector<5x5x64xbf16> to vector<4x4x64xbf16>
    %37 = arith.extf %36 : vector<4x4x64xbf16> to vector<4x4x64xf32>
    %38 = arith.addf %33, %37 : vector<4x4x64xf32>
    %c0_36 = arith.constant 0 : index
    %c0_37 = arith.constant 0 : index
    %c0_38 = arith.constant 0 : index
    %c0_39 = arith.constant 0 : index
    %c0_40 = arith.constant 0 : index
    %39 = vector.load %arg1[%c0_36, %c0_37, %c0_38, %c0_39, %c0_40] : memref<1x4x5x5x64xbf16, #tpu.memory_space<vmem>>, vector<1x1x5x5x64xbf16>
    %40 = vector.shape_cast %39 : vector<1x1x5x5x64xbf16> to vector<5x5x64xbf16>
    %41 = vector.extract_strided_slice %40 {offsets = [1, 1, 0], sizes = [4, 4, 64], strides = [1, 1, 1]} : vector<5x5x64xbf16> to vector<4x4x64xbf16>
    %42 = arith.extf %41 : vector<4x4x64xbf16> to vector<4x4x64xf32>
    %43 = arith.addf %38, %42 : vector<4x4x64xf32>
    %cst = arith.constant 0.111111112 : f32
    %44 = vector.broadcast %cst : f32 to vector<4x4x64xf32>
    %45 = arith.mulf %43, %44 : vector<4x4x64xf32>
    %46 = arith.truncf %45 : vector<4x4x64xf32> to vector<4x4x64xbf16>
    %c0_41 = arith.constant 0 : index
    %c0_42 = arith.constant 0 : index
    %c0_43 = arith.constant 0 : index
    %c0_44 = arith.constant 0 : index
    %47 = vector.load %arg2[%c0_41, %c0_42, %c0_43, %c0_44] : memref<1x4x4x64xbf16, #tpu.memory_space<vmem>>, vector<1x4x4x64xbf16>
    %48 = vector.shape_cast %47 : vector<1x4x4x64xbf16> to vector<4x4x64xbf16>
    %49 = vector.shape_cast %46 : vector<4x4x64xbf16> to vector<1x4x4x64xbf16>
    tpu.vector_store %arg2[%c0_41, %c0_42, %c0_43, %c0_44], %49 {strides = array<i32>} : memref<1x4x4x64xbf16, #tpu.memory_space<vmem>>, vector<1x4x4x64xbf16>,
    return
  }
  func.func @transform_0(%arg0: i32) -> (i32, i32, i32, i32, i32) {
    %c0_i32 = arith.constant 0 : i32
    %c0_i32_0 = arith.constant 0 : i32
    %c0_i32_1 = arith.constant 0 : i32
    %c0_i32_2 = arith.constant 0 : i32
    %c0_i32_3 = arith.constant 0 : i32
    return %arg0, %c0_i32, %c0_i32_0, %c0_i32_1, %c0_i32_2 : i32, i32, i32, i32, i32
  }
  func.func @transform_1(%arg0: i32) -> (i32, i32, i32, i32) {
    %c0_i32 = arith.constant 0 : i32
    %c0_i32_0 = arith.constant 0 : i32
    %c0_i32_1 = arith.constant 0 : i32
    %c0_i32_2 = arith.constant 0 : i32
    return %arg0, %c0_i32, %c0_i32_0, %c0_i32_1 : i32, i32, i32, i32
  }
}

module attributes {stable_mosaic.version = 11 : i64} {
  func.func @_mm_bn_kernel(%arg0: i32, %arg1: memref<128x128xbf16, #tpu.memory_space<vmem>>, %arg2: memref<128x128xbf16, #tpu.memory_space<vmem>>, %arg3: memref<1x128xf32, #tpu.memory_space<vmem>>, %arg4: memref<128x128xbf16, #tpu.memory_space<vmem>>) attributes {dimension_semantics = [#tpu.dimension_semantics<parallel>], iteration_bounds = array<i64: 1>, scalar_prefetch = 0 : i64, scratch_operands = 0 : i64, tpu.core_type = #tpu.core_type<tc>, window_params = [{transform_indices = @transform_0, window_bounds = array<i64: 128, 128>}, {pipeline_mode = #tpu.pipeline_mode<synchronous>, transform_indices = @transform_1, window_bounds = array<i64: 128, 128>}, {pipeline_mode = #tpu.pipeline_mode<synchronous>, transform_indices = @transform_2, window_bounds = array<i64: 1, 128>}, {transform_indices = @transform_3, window_bounds = array<i64: 128, 128>}]} {
    %c0 = arith.constant 0 : index
    %c0_0 = arith.constant 0 : index
    %0 = vector.load %arg1[%c0, %c0_0] : memref<128x128xbf16, #tpu.memory_space<vmem>>, vector<128x128xbf16>
    %c0_1 = arith.constant 0 : index
    %c0_2 = arith.constant 0 : index
    %1 = vector.load %arg2[%c0_1, %c0_2] : memref<128x128xbf16, #tpu.memory_space<vmem>>, vector<128x128xbf16>
    %cst = arith.constant dense<0.000000e+00> : vector<128x128xf32>
    %2 = tpu.matmul %0, %1, %cst {dimension_numbers = #tpu.dot_dimension_numbers<[1], [0], [0], [1], [0, 0, 1, 1], [], []>} : vector<128x128xbf16>, vector<128x128xbf16>, vector<128x128xf32> -> vector<128x128xf32>
    %c0_3 = arith.constant 0 : index
    %c0_4 = arith.constant 0 : index
    %3 = vector.load %arg3[%c0_3, %c0_4] : memref<1x128xf32, #tpu.memory_space<vmem>>, vector<1x128xf32>
    %4 = vector.broadcast %3 : vector<1x128xf32> to vector<128x128xf32>
    %5 = arith.addf %2, %4 : vector<128x128xf32>
    %cst_5 = arith.constant 0.000000e+00 : f32
    %6 = vector.broadcast %cst_5 : f32 to vector<128x128xf32>
    %7 = arith.maximumf %5, %6 : vector<128x128xf32>
    %8 = arith.truncf %7 : vector<128x128xf32> to vector<128x128xbf16>
    %c0_6 = arith.constant 0 : index
    %c0_7 = arith.constant 0 : index
    %9 = vector.load %arg4[%c0_6, %c0_7] : memref<128x128xbf16, #tpu.memory_space<vmem>>, vector<128x128xbf16>
    tpu.vector_store %arg4[%c0_6, %c0_7], %8 {strides = array<i32>} : memref<128x128xbf16, #tpu.memory_space<vmem>>, vector<128x128xbf16>,
    return
  }
  func.func @transform_0(%arg0: i32) -> (i32, i32) {
    %c0_i32 = arith.constant 0 : i32
    %c0_i32_0 = arith.constant 0 : i32
    return %arg0, %c0_i32 : i32, i32
  }
  func.func @transform_1(%arg0: i32) -> (i32, i32) {
    %c0_i32 = arith.constant 0 : i32
    %c0_i32_0 = arith.constant 0 : i32
    %c0_i32_1 = arith.constant 0 : i32
    return %c0_i32, %c0_i32_0 : i32, i32
  }
  func.func @transform_2(%arg0: i32) -> (i32, i32) {
    %c0_i32 = arith.constant 0 : i32
    %c0_i32_0 = arith.constant 0 : i32
    %c0_i32_1 = arith.constant 0 : i32
    return %c0_i32, %c0_i32_0 : i32, i32
  }
  func.func @transform_3(%arg0: i32) -> (i32, i32) {
    %c0_i32 = arith.constant 0 : i32
    %c0_i32_0 = arith.constant 0 : i32
    return %arg0, %c0_i32 : i32, i32
  }
}

module attributes {stable_mosaic.version = 11 : i64} {
  func.func @_conv3x3_kernel(%arg0: i32, %arg1: memref<42x128xbf16, #tpu.memory_space<vmem>>, %arg2: memref<9x128x128xbf16, #tpu.memory_space<vmem>>, %arg3: memref<1x128xf32, #tpu.memory_space<vmem>>, %arg4: memref<32x128xbf16, #tpu.memory_space<vmem>>) attributes {dimension_semantics = [#tpu.dimension_semantics<parallel>], iteration_bounds = array<i64: 1>, scalar_prefetch = 0 : i64, scratch_operands = 0 : i64, tpu.core_type = #tpu.core_type<tc>, window_params = [{pipeline_mode = #tpu.pipeline_mode<synchronous>, transform_indices = @transform_0, window_bounds = array<i64: 42, 128>}, {pipeline_mode = #tpu.pipeline_mode<synchronous>, transform_indices = @transform_1, window_bounds = array<i64: 9, 128, 128>}, {pipeline_mode = #tpu.pipeline_mode<synchronous>, transform_indices = @transform_2, window_bounds = array<i64: 1, 128>}, {transform_indices = @transform_3, window_bounds = array<i64: 32, 128>}]} {
    %c32_i32 = arith.constant 32 : i32
    %0 = arith.muli %arg0, %c32_i32 : i32
    %1 = tpu.assume_multiple %0, 16 : i32
    %2 = arith.index_cast %1 : i32 to index
    %c0 = arith.constant 0 : index
    %3 = vector.load %arg1[%2, %c0] : memref<42x128xbf16, #tpu.memory_space<vmem>>, vector<42x128xbf16>
    %cst = arith.constant 0.000000e+00 : f32
    %4 = vector.broadcast %cst : f32 to vector<32x128xf32>
    %5 = vector.extract_strided_slice %3 {offsets = [0, 0], sizes = [32, 128], strides = [1, 1]} : vector<42x128xbf16> to vector<32x128xbf16>
    %c0_0 = arith.constant 0 : index
    %c0_1 = arith.constant 0 : index
    %c0_2 = arith.constant 0 : index
    %6 = vector.load %arg2[%c0_0, %c0_1, %c0_2] : memref<9x128x128xbf16, #tpu.memory_space<vmem>>, vector<1x128x128xbf16>
    %7 = vector.shape_cast %6 : vector<1x128x128xbf16> to vector<128x128xbf16>
    %cst_3 = arith.constant dense<0.000000e+00> : vector<32x128xf32>
    %8 = tpu.matmul %5, %7, %cst_3 {dimension_numbers = #tpu.dot_dimension_numbers<[1], [0], [0], [1], [0, 0, 1, 1], [], []>} : vector<32x128xbf16>, vector<128x128xbf16>, vector<32x128xf32> -> vector<32x128xf32>
    %9 = arith.addf %4, %8 : vector<32x128xf32>
    %10 = vector.extract_strided_slice %3 {offsets = [1, 0], sizes = [32, 128], strides = [1, 1]} : vector<42x128xbf16> to vector<32x128xbf16>
    %c1 = arith.constant 1 : index
    %c0_4 = arith.constant 0 : index
    %c0_5 = arith.constant 0 : index
    %11 = vector.load %arg2[%c1, %c0_4, %c0_5] : memref<9x128x128xbf16, #tpu.memory_space<vmem>>, vector<1x128x128xbf16>
    %12 = vector.shape_cast %11 : vector<1x128x128xbf16> to vector<128x128xbf16>
    %cst_6 = arith.constant dense<0.000000e+00> : vector<32x128xf32>
    %13 = tpu.matmul %10, %12, %cst_6 {dimension_numbers = #tpu.dot_dimension_numbers<[1], [0], [0], [1], [0, 0, 1, 1], [], []>} : vector<32x128xbf16>, vector<128x128xbf16>, vector<32x128xf32> -> vector<32x128xf32>
    %14 = arith.addf %9, %13 : vector<32x128xf32>
    %15 = vector.extract_strided_slice %3 {offsets = [2, 0], sizes = [32, 128], strides = [1, 1]} : vector<42x128xbf16> to vector<32x128xbf16>
    %c2 = arith.constant 2 : index
    %c0_7 = arith.constant 0 : index
    %c0_8 = arith.constant 0 : index
    %16 = vector.load %arg2[%c2, %c0_7, %c0_8] : memref<9x128x128xbf16, #tpu.memory_space<vmem>>, vector<1x128x128xbf16>
    %17 = vector.shape_cast %16 : vector<1x128x128xbf16> to vector<128x128xbf16>
    %cst_9 = arith.constant dense<0.000000e+00> : vector<32x128xf32>
    %18 = tpu.matmul %15, %17, %cst_9 {dimension_numbers = #tpu.dot_dimension_numbers<[1], [0], [0], [1], [0, 0, 1, 1], [], []>} : vector<32x128xbf16>, vector<128x128xbf16>, vector<32x128xf32> -> vector<32x128xf32>
    %19 = arith.addf %14, %18 : vector<32x128xf32>
    %20 = vector.extract_strided_slice %3 {offsets = [4, 0], sizes = [32, 128], strides = [1, 1]} : vector<42x128xbf16> to vector<32x128xbf16>
    %c3 = arith.constant 3 : index
    %c0_10 = arith.constant 0 : index
    %c0_11 = arith.constant 0 : index
    %21 = vector.load %arg2[%c3, %c0_10, %c0_11] : memref<9x128x128xbf16, #tpu.memory_space<vmem>>, vector<1x128x128xbf16>
    %22 = vector.shape_cast %21 : vector<1x128x128xbf16> to vector<128x128xbf16>
    %cst_12 = arith.constant dense<0.000000e+00> : vector<32x128xf32>
    %23 = tpu.matmul %20, %22, %cst_12 {dimension_numbers = #tpu.dot_dimension_numbers<[1], [0], [0], [1], [0, 0, 1, 1], [], []>} : vector<32x128xbf16>, vector<128x128xbf16>, vector<32x128xf32> -> vector<32x128xf32>
    %24 = arith.addf %19, %23 : vector<32x128xf32>
    %25 = vector.extract_strided_slice %3 {offsets = [5, 0], sizes = [32, 128], strides = [1, 1]} : vector<42x128xbf16> to vector<32x128xbf16>
    %c4 = arith.constant 4 : index
    %c0_13 = arith.constant 0 : index
    %c0_14 = arith.constant 0 : index
    %26 = vector.load %arg2[%c4, %c0_13, %c0_14] : memref<9x128x128xbf16, #tpu.memory_space<vmem>>, vector<1x128x128xbf16>
    %27 = vector.shape_cast %26 : vector<1x128x128xbf16> to vector<128x128xbf16>
    %cst_15 = arith.constant dense<0.000000e+00> : vector<32x128xf32>
    %28 = tpu.matmul %25, %27, %cst_15 {dimension_numbers = #tpu.dot_dimension_numbers<[1], [0], [0], [1], [0, 0, 1, 1], [], []>} : vector<32x128xbf16>, vector<128x128xbf16>, vector<32x128xf32> -> vector<32x128xf32>
    %29 = arith.addf %24, %28 : vector<32x128xf32>
    %30 = vector.extract_strided_slice %3 {offsets = [6, 0], sizes = [32, 128], strides = [1, 1]} : vector<42x128xbf16> to vector<32x128xbf16>
    %c5 = arith.constant 5 : index
    %c0_16 = arith.constant 0 : index
    %c0_17 = arith.constant 0 : index
    %31 = vector.load %arg2[%c5, %c0_16, %c0_17] : memref<9x128x128xbf16, #tpu.memory_space<vmem>>, vector<1x128x128xbf16>
    %32 = vector.shape_cast %31 : vector<1x128x128xbf16> to vector<128x128xbf16>
    %cst_18 = arith.constant dense<0.000000e+00> : vector<32x128xf32>
    %33 = tpu.matmul %30, %32, %cst_18 {dimension_numbers = #tpu.dot_dimension_numbers<[1], [0], [0], [1], [0, 0, 1, 1], [], []>} : vector<32x128xbf16>, vector<128x128xbf16>, vector<32x128xf32> -> vector<32x128xf32>
    %34 = arith.addf %29, %33 : vector<32x128xf32>
    %35 = vector.extract_strided_slice %3 {offsets = [8, 0], sizes = [32, 128], strides = [1, 1]} : vector<42x128xbf16> to vector<32x128xbf16>
    %c6 = arith.constant 6 : index
    %c0_19 = arith.constant 0 : index
    %c0_20 = arith.constant 0 : index
    %36 = vector.load %arg2[%c6, %c0_19, %c0_20] : memref<9x128x128xbf16, #tpu.memory_space<vmem>>, vector<1x128x128xbf16>
    %37 = vector.shape_cast %36 : vector<1x128x128xbf16> to vector<128x128xbf16>
    %cst_21 = arith.constant dense<0.000000e+00> : vector<32x128xf32>
    %38 = tpu.matmul %35, %37, %cst_21 {dimension_numbers = #tpu.dot_dimension_numbers<[1], [0], [0], [1], [0, 0, 1, 1], [], []>} : vector<32x128xbf16>, vector<128x128xbf16>, vector<32x128xf32> -> vector<32x128xf32>
    %39 = arith.addf %34, %38 : vector<32x128xf32>
    %40 = vector.extract_strided_slice %3 {offsets = [9, 0], sizes = [32, 128], strides = [1, 1]} : vector<42x128xbf16> to vector<32x128xbf16>
    %c7 = arith.constant 7 : index
    %c0_22 = arith.constant 0 : index
    %c0_23 = arith.constant 0 : index
    %41 = vector.load %arg2[%c7, %c0_22, %c0_23] : memref<9x128x128xbf16, #tpu.memory_space<vmem>>, vector<1x128x128xbf16>
    %42 = vector.shape_cast %41 : vector<1x128x128xbf16> to vector<128x128xbf16>
    %cst_24 = arith.constant dense<0.000000e+00> : vector<32x128xf32>
    %43 = tpu.matmul %40, %42, %cst_24 {dimension_numbers = #tpu.dot_dimension_numbers<[1], [0], [0], [1], [0, 0, 1, 1], [], []>} : vector<32x128xbf16>, vector<128x128xbf16>, vector<32x128xf32> -> vector<32x128xf32>
    %44 = arith.addf %39, %43 : vector<32x128xf32>
    %45 = vector.extract_strided_slice %3 {offsets = [10, 0], sizes = [32, 128], strides = [1, 1]} : vector<42x128xbf16> to vector<32x128xbf16>
    %c8 = arith.constant 8 : index
    %c0_25 = arith.constant 0 : index
    %c0_26 = arith.constant 0 : index
    %46 = vector.load %arg2[%c8, %c0_25, %c0_26] : memref<9x128x128xbf16, #tpu.memory_space<vmem>>, vector<1x128x128xbf16>
    %47 = vector.shape_cast %46 : vector<1x128x128xbf16> to vector<128x128xbf16>
    %cst_27 = arith.constant dense<0.000000e+00> : vector<32x128xf32>
    %48 = tpu.matmul %45, %47, %cst_27 {dimension_numbers = #tpu.dot_dimension_numbers<[1], [0], [0], [1], [0, 0, 1, 1], [], []>} : vector<32x128xbf16>, vector<128x128xbf16>, vector<32x128xf32> -> vector<32x128xf32>
    %49 = arith.addf %44, %48 : vector<32x128xf32>
    %c0_28 = arith.constant 0 : index
    %c0_29 = arith.constant 0 : index
    %50 = vector.load %arg3[%c0_28, %c0_29] : memref<1x128xf32, #tpu.memory_space<vmem>>, vector<1x128xf32>
    %51 = vector.broadcast %50 : vector<1x128xf32> to vector<32x128xf32>
    %52 = arith.addf %49, %51 : vector<32x128xf32>
    %cst_30 = arith.constant 0.000000e+00 : f32
    %53 = vector.broadcast %cst_30 : f32 to vector<32x128xf32>
    %54 = arith.maximumf %52, %53 : vector<32x128xf32>
    %55 = arith.truncf %54 : vector<32x128xf32> to vector<32x128xbf16>
    %c0_31 = arith.constant 0 : index
    %c0_32 = arith.constant 0 : index
    %56 = vector.load %arg4[%c0_31, %c0_32] : memref<32x128xbf16, #tpu.memory_space<vmem>>, vector<32x128xbf16>
    tpu.vector_store %arg4[%c0_31, %c0_32], %55 {strides = array<i32>} : memref<32x128xbf16, #tpu.memory_space<vmem>>, vector<32x128xbf16>,
    return
  }
  func.func @transform_0(%arg0: i32) -> (i32, i32) {
    %c0_i32 = arith.constant 0 : i32
    %c0_i32_0 = arith.constant 0 : i32
    %c0_i32_1 = arith.constant 0 : i32
    return %c0_i32, %c0_i32_0 : i32, i32
  }
  func.func @transform_1(%arg0: i32) -> (i32, i32, i32) {
    %c0_i32 = arith.constant 0 : i32
    %c0_i32_0 = arith.constant 0 : i32
    %c0_i32_1 = arith.constant 0 : i32
    %c0_i32_2 = arith.constant 0 : i32
    return %c0_i32, %c0_i32_0, %c0_i32_1 : i32, i32, i32
  }
  func.func @transform_2(%arg0: i32) -> (i32, i32) {
    %c0_i32 = arith.constant 0 : i32
    %c0_i32_0 = arith.constant 0 : i32
    %c0_i32_1 = arith.constant 0 : i32
    return %c0_i32, %c0_i32_0 : i32, i32
  }
  func.func @transform_3(%arg0: i32) -> (i32, i32) {
    %c0_i32 = arith.constant 0 : i32
    %c0_i32_0 = arith.constant 0 : i32
    return %arg0, %c0_i32 : i32, i32
  }
}

module attributes {stable_mosaic.version = 11 : i64} {
  func.func @_dw3x3_s2_kernel(%arg0: i32, %arg1: memref<1x4x3x3x128xbf16, #tpu.memory_space<vmem>>, %arg2: memref<9x1x1x128xf32, #tpu.memory_space<vmem>>, %arg3: memref<1x1x128xf32, #tpu.memory_space<vmem>>, %arg4: memref<1x2x2x128xbf16, #tpu.memory_space<vmem>>) attributes {dimension_semantics = [#tpu.dimension_semantics<parallel>], iteration_bounds = array<i64: 2>, scalar_prefetch = 0 : i64, scratch_operands = 0 : i64, tpu.core_type = #tpu.core_type<tc>, window_params = [{transform_indices = @transform_0, window_bounds = array<i64: 1, 4, 3, 3, 128>}, {pipeline_mode = #tpu.pipeline_mode<synchronous>, transform_indices = @transform_1, window_bounds = array<i64: 9, 1, 1, 128>}, {pipeline_mode = #tpu.pipeline_mode<synchronous>, transform_indices = @transform_2, window_bounds = array<i64: 1, 1, 128>}, {transform_indices = @transform_3, window_bounds = array<i64: 1, 2, 2, 128>}]} {
    %c0 = arith.constant 0 : index
    %c0_0 = arith.constant 0 : index
    %c0_1 = arith.constant 0 : index
    %c0_2 = arith.constant 0 : index
    %c0_3 = arith.constant 0 : index
    %0 = vector.load %arg1[%c0, %c0_0, %c0_1, %c0_2, %c0_3] : memref<1x4x3x3x128xbf16, #tpu.memory_space<vmem>>, vector<1x1x3x3x128xbf16>
    %1 = vector.shape_cast %0 : vector<1x1x3x3x128xbf16> to vector<3x3x128xbf16>
    %2 = vector.extract_strided_slice %1 {offsets = [0, 0, 0], sizes = [2, 2, 128], strides = [1, 1, 1]} : vector<3x3x128xbf16> to vector<2x2x128xbf16>
    %3 = arith.extf %2 : vector<2x2x128xbf16> to vector<2x2x128xf32>
    %c0_4 = arith.constant 0 : index
    %c0_5 = arith.constant 0 : index
    %c0_6 = arith.constant 0 : index
    %c0_7 = arith.constant 0 : index
    %4 = vector.load %arg2[%c0_4, %c0_5, %c0_6, %c0_7] : memref<9x1x1x128xf32, #tpu.memory_space<vmem>>, vector<1x1x1x128xf32>
    %5 = vector.shape_cast %4 : vector<1x1x1x128xf32> to vector<1x1x128xf32>
    %6 = vector.broadcast %5 : vector<1x1x128xf32> to vector<2x2x128xf32>
    %7 = arith.mulf %3, %6 : vector<2x2x128xf32>
    %c0_8 = arith.constant 0 : index
    %c1 = arith.constant 1 : index
    %c0_9 = arith.constant 0 : index
    %c0_10 = arith.constant 0 : index
    %c0_11 = arith.constant 0 : index
    %8 = vector.load %arg1[%c0_8, %c1, %c0_9, %c0_10, %c0_11] : memref<1x4x3x3x128xbf16, #tpu.memory_space<vmem>>, vector<1x1x3x3x128xbf16>
    %9 = vector.shape_cast %8 : vector<1x1x3x3x128xbf16> to vector<3x3x128xbf16>
    %10 = vector.extract_strided_slice %9 {offsets = [0, 0, 0], sizes = [2, 2, 128], strides = [1, 1, 1]} : vector<3x3x128xbf16> to vector<2x2x128xbf16>
    %11 = arith.extf %10 : vector<2x2x128xbf16> to vector<2x2x128xf32>
    %c1_12 = arith.constant 1 : index
    %c0_13 = arith.constant 0 : index
    %c0_14 = arith.constant 0 : index
    %c0_15 = arith.constant 0 : index
    %12 = vector.load %arg2[%c1_12, %c0_13, %c0_14, %c0_15] : memref<9x1x1x128xf32, #tpu.memory_space<vmem>>, vector<1x1x1x128xf32>
    %13 = vector.shape_cast %12 : vector<1x1x1x128xf32> to vector<1x1x128xf32>
    %14 = vector.broadcast %13 : vector<1x1x128xf32> to vector<2x2x128xf32>
    %15 = arith.mulf %11, %14 : vector<2x2x128xf32>
    %16 = arith.addf %7, %15 : vector<2x2x128xf32>
    %c0_16 = arith.constant 0 : index
    %c0_17 = arith.constant 0 : index
    %c0_18 = arith.constant 0 : index
    %c0_19 = arith.constant 0 : index
    %c0_20 = arith.constant 0 : index
    %17 = vector.load %arg1[%c0_16, %c0_17, %c0_18, %c0_19, %c0_20] : memref<1x4x3x3x128xbf16, #tpu.memory_space<vmem>>, vector<1x1x3x3x128xbf16>
    %18 = vector.shape_cast %17 : vector<1x1x3x3x128xbf16> to vector<3x3x128xbf16>
    %19 = vector.extract_strided_slice %18 {offsets = [0, 1, 0], sizes = [2, 2, 128], strides = [1, 1, 1]} : vector<3x3x128xbf16> to vector<2x2x128xbf16>
    %20 = arith.extf %19 : vector<2x2x128xbf16> to vector<2x2x128xf32>
    %c2 = arith.constant 2 : index
    %c0_21 = arith.constant 0 : index
    %c0_22 = arith.constant 0 : index
    %c0_23 = arith.constant 0 : index
    %21 = vector.load %arg2[%c2, %c0_21, %c0_22, %c0_23] : memref<9x1x1x128xf32, #tpu.memory_space<vmem>>, vector<1x1x1x128xf32>
    %22 = vector.shape_cast %21 : vector<1x1x1x128xf32> to vector<1x1x128xf32>
    %23 = vector.broadcast %22 : vector<1x1x128xf32> to vector<2x2x128xf32>
    %24 = arith.mulf %20, %23 : vector<2x2x128xf32>
    %25 = arith.addf %16, %24 : vector<2x2x128xf32>
    %c0_24 = arith.constant 0 : index
    %c2_25 = arith.constant 2 : index
    %c0_26 = arith.constant 0 : index
    %c0_27 = arith.constant 0 : index
    %c0_28 = arith.constant 0 : index
    %26 = vector.load %arg1[%c0_24, %c2_25, %c0_26, %c0_27, %c0_28] : memref<1x4x3x3x128xbf16, #tpu.memory_space<vmem>>, vector<1x1x3x3x128xbf16>
    %27 = vector.shape_cast %26 : vector<1x1x3x3x128xbf16> to vector<3x3x128xbf16>
    %28 = vector.extract_strided_slice %27 {offsets = [0, 0, 0], sizes = [2, 2, 128], strides = [1, 1, 1]} : vector<3x3x128xbf16> to vector<2x2x128xbf16>
    %29 = arith.extf %28 : vector<2x2x128xbf16> to vector<2x2x128xf32>
    %c3 = arith.constant 3 : index
    %c0_29 = arith.constant 0 : index
    %c0_30 = arith.constant 0 : index
    %c0_31 = arith.constant 0 : index
    %30 = vector.load %arg2[%c3, %c0_29, %c0_30, %c0_31] : memref<9x1x1x128xf32, #tpu.memory_space<vmem>>, vector<1x1x1x128xf32>
    %31 = vector.shape_cast %30 : vector<1x1x1x128xf32> to vector<1x1x128xf32>
    %32 = vector.broadcast %31 : vector<1x1x128xf32> to vector<2x2x128xf32>
    %33 = arith.mulf %29, %32 : vector<2x2x128xf32>
    %34 = arith.addf %25, %33 : vector<2x2x128xf32>
    %c0_32 = arith.constant 0 : index
    %c3_33 = arith.constant 3 : index
    %c0_34 = arith.constant 0 : index
    %c0_35 = arith.constant 0 : index
    %c0_36 = arith.constant 0 : index
    %35 = vector.load %arg1[%c0_32, %c3_33, %c0_34, %c0_35, %c0_36] : memref<1x4x3x3x128xbf16, #tpu.memory_space<vmem>>, vector<1x1x3x3x128xbf16>
    %36 = vector.shape_cast %35 : vector<1x1x3x3x128xbf16> to vector<3x3x128xbf16>
    %37 = vector.extract_strided_slice %36 {offsets = [0, 0, 0], sizes = [2, 2, 128], strides = [1, 1, 1]} : vector<3x3x128xbf16> to vector<2x2x128xbf16>
    %38 = arith.extf %37 : vector<2x2x128xbf16> to vector<2x2x128xf32>
    %c4 = arith.constant 4 : index
    %c0_37 = arith.constant 0 : index
    %c0_38 = arith.constant 0 : index
    %c0_39 = arith.constant 0 : index
    %39 = vector.load %arg2[%c4, %c0_37, %c0_38, %c0_39] : memref<9x1x1x128xf32, #tpu.memory_space<vmem>>, vector<1x1x1x128xf32>
    %40 = vector.shape_cast %39 : vector<1x1x1x128xf32> to vector<1x1x128xf32>
    %41 = vector.broadcast %40 : vector<1x1x128xf32> to vector<2x2x128xf32>
    %42 = arith.mulf %38, %41 : vector<2x2x128xf32>
    %43 = arith.addf %34, %42 : vector<2x2x128xf32>
    %c0_40 = arith.constant 0 : index
    %c2_41 = arith.constant 2 : index
    %c0_42 = arith.constant 0 : index
    %c0_43 = arith.constant 0 : index
    %c0_44 = arith.constant 0 : index
    %44 = vector.load %arg1[%c0_40, %c2_41, %c0_42, %c0_43, %c0_44] : memref<1x4x3x3x128xbf16, #tpu.memory_space<vmem>>, vector<1x1x3x3x128xbf16>
    %45 = vector.shape_cast %44 : vector<1x1x3x3x128xbf16> to vector<3x3x128xbf16>
    %46 = vector.extract_strided_slice %45 {offsets = [0, 1, 0], sizes = [2, 2, 128], strides = [1, 1, 1]} : vector<3x3x128xbf16> to vector<2x2x128xbf16>
    %47 = arith.extf %46 : vector<2x2x128xbf16> to vector<2x2x128xf32>
    %c5 = arith.constant 5 : index
    %c0_45 = arith.constant 0 : index
    %c0_46 = arith.constant 0 : index
    %c0_47 = arith.constant 0 : index
    %48 = vector.load %arg2[%c5, %c0_45, %c0_46, %c0_47] : memref<9x1x1x128xf32, #tpu.memory_space<vmem>>, vector<1x1x1x128xf32>
    %49 = vector.shape_cast %48 : vector<1x1x1x128xf32> to vector<1x1x128xf32>
    %50 = vector.broadcast %49 : vector<1x1x128xf32> to vector<2x2x128xf32>
    %51 = arith.mulf %47, %50 : vector<2x2x128xf32>
    %52 = arith.addf %43, %51 : vector<2x2x128xf32>
    %c0_48 = arith.constant 0 : index
    %c0_49 = arith.constant 0 : index
    %c0_50 = arith.constant 0 : index
    %c0_51 = arith.constant 0 : index
    %c0_52 = arith.constant 0 : index
    %53 = vector.load %arg1[%c0_48, %c0_49, %c0_50, %c0_51, %c0_52] : memref<1x4x3x3x128xbf16, #tpu.memory_space<vmem>>, vector<1x1x3x3x128xbf16>
    %54 = vector.shape_cast %53 : vector<1x1x3x3x128xbf16> to vector<3x3x128xbf16>
    %55 = vector.extract_strided_slice %54 {offsets = [1, 0, 0], sizes = [2, 2, 128], strides = [1, 1, 1]} : vector<3x3x128xbf16> to vector<2x2x128xbf16>
    %56 = arith.extf %55 : vector<2x2x128xbf16> to vector<2x2x128xf32>
    %c6 = arith.constant 6 : index
    %c0_53 = arith.constant 0 : index
    %c0_54 = arith.constant 0 : index
    %c0_55 = arith.constant 0 : index
    %57 = vector.load %arg2[%c6, %c0_53, %c0_54, %c0_55] : memref<9x1x1x128xf32, #tpu.memory_space<vmem>>, vector<1x1x1x128xf32>
    %58 = vector.shape_cast %57 : vector<1x1x1x128xf32> to vector<1x1x128xf32>
    %59 = vector.broadcast %58 : vector<1x1x128xf32> to vector<2x2x128xf32>
    %60 = arith.mulf %56, %59 : vector<2x2x128xf32>
    %61 = arith.addf %52, %60 : vector<2x2x128xf32>
    %c0_56 = arith.constant 0 : index
    %c1_57 = arith.constant 1 : index
    %c0_58 = arith.constant 0 : index
    %c0_59 = arith.constant 0 : index
    %c0_60 = arith.constant 0 : index
    %62 = vector.load %arg1[%c0_56, %c1_57, %c0_58, %c0_59, %c0_60] : memref<1x4x3x3x128xbf16, #tpu.memory_space<vmem>>, vector<1x1x3x3x128xbf16>
    %63 = vector.shape_cast %62 : vector<1x1x3x3x128xbf16> to vector<3x3x128xbf16>
    %64 = vector.extract_strided_slice %63 {offsets = [1, 0, 0], sizes = [2, 2, 128], strides = [1, 1, 1]} : vector<3x3x128xbf16> to vector<2x2x128xbf16>
    %65 = arith.extf %64 : vector<2x2x128xbf16> to vector<2x2x128xf32>
    %c7 = arith.constant 7 : index
    %c0_61 = arith.constant 0 : index
    %c0_62 = arith.constant 0 : index
    %c0_63 = arith.constant 0 : index
    %66 = vector.load %arg2[%c7, %c0_61, %c0_62, %c0_63] : memref<9x1x1x128xf32, #tpu.memory_space<vmem>>, vector<1x1x1x128xf32>
    %67 = vector.shape_cast %66 : vector<1x1x1x128xf32> to vector<1x1x128xf32>
    %68 = vector.broadcast %67 : vector<1x1x128xf32> to vector<2x2x128xf32>
    %69 = arith.mulf %65, %68 : vector<2x2x128xf32>
    %70 = arith.addf %61, %69 : vector<2x2x128xf32>
    %c0_64 = arith.constant 0 : index
    %c0_65 = arith.constant 0 : index
    %c0_66 = arith.constant 0 : index
    %c0_67 = arith.constant 0 : index
    %c0_68 = arith.constant 0 : index
    %71 = vector.load %arg1[%c0_64, %c0_65, %c0_66, %c0_67, %c0_68] : memref<1x4x3x3x128xbf16, #tpu.memory_space<vmem>>, vector<1x1x3x3x128xbf16>
    %72 = vector.shape_cast %71 : vector<1x1x3x3x128xbf16> to vector<3x3x128xbf16>
    %73 = vector.extract_strided_slice %72 {offsets = [1, 1, 0], sizes = [2, 2, 128], strides = [1, 1, 1]} : vector<3x3x128xbf16> to vector<2x2x128xbf16>
    %74 = arith.extf %73 : vector<2x2x128xbf16> to vector<2x2x128xf32>
    %c8 = arith.constant 8 : index
    %c0_69 = arith.constant 0 : index
    %c0_70 = arith.constant 0 : index
    %c0_71 = arith.constant 0 : index
    %75 = vector.load %arg2[%c8, %c0_69, %c0_70, %c0_71] : memref<9x1x1x128xf32, #tpu.memory_space<vmem>>, vector<1x1x1x128xf32>
    %76 = vector.shape_cast %75 : vector<1x1x1x128xf32> to vector<1x1x128xf32>
    %77 = vector.broadcast %76 : vector<1x1x128xf32> to vector<2x2x128xf32>
    %78 = arith.mulf %74, %77 : vector<2x2x128xf32>
    %79 = arith.addf %70, %78 : vector<2x2x128xf32>
    %c0_72 = arith.constant 0 : index
    %c0_73 = arith.constant 0 : index
    %c0_74 = arith.constant 0 : index
    %80 = vector.load %arg3[%c0_72, %c0_73, %c0_74] : memref<1x1x128xf32, #tpu.memory_space<vmem>>, vector<1x1x128xf32>
    %81 = vector.broadcast %80 : vector<1x1x128xf32> to vector<2x2x128xf32>
    %82 = arith.addf %79, %81 : vector<2x2x128xf32>
    %83 = arith.truncf %82 : vector<2x2x128xf32> to vector<2x2x128xbf16>
    %c0_75 = arith.constant 0 : index
    %c0_76 = arith.constant 0 : index
    %c0_77 = arith.constant 0 : index
    %c0_78 = arith.constant 0 : index
    %84 = vector.load %arg4[%c0_75, %c0_76, %c0_77, %c0_78] : memref<1x2x2x128xbf16, #tpu.memory_space<vmem>>, vector<1x2x2x128xbf16>
    %85 = vector.shape_cast %84 : vector<1x2x2x128xbf16> to vector<2x2x128xbf16>
    %86 = vector.shape_cast %83 : vector<2x2x128xbf16> to vector<1x2x2x128xbf16>
    tpu.vector_store %arg4[%c0_75, %c0_76, %c0_77, %c0_78], %86 {strides = array<i32>} : memref<1x2x2x128xbf16, #tpu.memory_space<vmem>>, vector<1x2x2x128xbf16>,
    return
  }
  func.func @transform_0(%arg0: i32) -> (i32, i32, i32, i32, i32) {
    %c0_i32 = arith.constant 0 : i32
    %c0_i32_0 = arith.constant 0 : i32
    %c0_i32_1 = arith.constant 0 : i32
    %c0_i32_2 = arith.constant 0 : i32
    %c0_i32_3 = arith.constant 0 : i32
    return %arg0, %c0_i32, %c0_i32_0, %c0_i32_1, %c0_i32_2 : i32, i32, i32, i32, i32
  }
  func.func @transform_1(%arg0: i32) -> (i32, i32, i32, i32) {
    %c0_i32 = arith.constant 0 : i32
    %c0_i32_0 = arith.constant 0 : i32
    %c0_i32_1 = arith.constant 0 : i32
    %c0_i32_2 = arith.constant 0 : i32
    %c0_i32_3 = arith.constant 0 : i32
    return %c0_i32, %c0_i32_0, %c0_i32_1, %c0_i32_2 : i32, i32, i32, i32
  }
  func.func @transform_2(%arg0: i32) -> (i32, i32, i32) {
    %c0_i32 = arith.constant 0 : i32
    %c0_i32_0 = arith.constant 0 : i32
    %c0_i32_1 = arith.constant 0 : i32
    %c0_i32_2 = arith.constant 0 : i32
    return %c0_i32, %c0_i32_0, %c0_i32_1 : i32, i32, i32
  }
  func.func @transform_3(%arg0: i32) -> (i32, i32, i32, i32) {
    %c0_i32 = arith.constant 0 : i32
    %c0_i32_0 = arith.constant 0 : i32
    %c0_i32_1 = arith.constant 0 : i32
    %c0_i32_2 = arith.constant 0 : i32
    return %arg0, %c0_i32, %c0_i32_0, %c0_i32_1 : i32, i32, i32, i32
  }
}

module attributes {stable_mosaic.version = 11 : i64} {
  func.func @_conv3x3_kernel(%arg0: i32, %arg1: memref<42x64xbf16, #tpu.memory_space<vmem>>, %arg2: memref<9x64x128xbf16, #tpu.memory_space<vmem>>, %arg3: memref<1x128xf32, #tpu.memory_space<vmem>>, %arg4: memref<32x128xbf16, #tpu.memory_space<vmem>>) attributes {dimension_semantics = [#tpu.dimension_semantics<parallel>], iteration_bounds = array<i64: 1>, scalar_prefetch = 0 : i64, scratch_operands = 0 : i64, tpu.core_type = #tpu.core_type<tc>, window_params = [{pipeline_mode = #tpu.pipeline_mode<synchronous>, transform_indices = @transform_0, window_bounds = array<i64: 42, 64>}, {pipeline_mode = #tpu.pipeline_mode<synchronous>, transform_indices = @transform_1, window_bounds = array<i64: 9, 64, 128>}, {pipeline_mode = #tpu.pipeline_mode<synchronous>, transform_indices = @transform_2, window_bounds = array<i64: 1, 128>}, {transform_indices = @transform_3, window_bounds = array<i64: 32, 128>}]} {
    %c32_i32 = arith.constant 32 : i32
    %0 = arith.muli %arg0, %c32_i32 : i32
    %1 = tpu.assume_multiple %0, 16 : i32
    %2 = arith.index_cast %1 : i32 to index
    %c0 = arith.constant 0 : index
    %3 = vector.load %arg1[%2, %c0] : memref<42x64xbf16, #tpu.memory_space<vmem>>, vector<42x64xbf16>
    %cst = arith.constant 0.000000e+00 : f32
    %4 = vector.broadcast %cst : f32 to vector<32x128xf32>
    %5 = vector.extract_strided_slice %3 {offsets = [0, 0], sizes = [32, 64], strides = [1, 1]} : vector<42x64xbf16> to vector<32x64xbf16>
    %c0_0 = arith.constant 0 : index
    %c0_1 = arith.constant 0 : index
    %c0_2 = arith.constant 0 : index
    %6 = vector.load %arg2[%c0_0, %c0_1, %c0_2] : memref<9x64x128xbf16, #tpu.memory_space<vmem>>, vector<1x64x128xbf16>
    %7 = vector.shape_cast %6 : vector<1x64x128xbf16> to vector<64x128xbf16>
    %cst_3 = arith.constant dense<0.000000e+00> : vector<32x128xf32>
    %8 = tpu.matmul %5, %7, %cst_3 {dimension_numbers = #tpu.dot_dimension_numbers<[1], [0], [0], [1], [0, 0, 1, 1], [], []>} : vector<32x64xbf16>, vector<64x128xbf16>, vector<32x128xf32> -> vector<32x128xf32>
    %9 = arith.addf %4, %8 : vector<32x128xf32>
    %10 = vector.extract_strided_slice %3 {offsets = [1, 0], sizes = [32, 64], strides = [1, 1]} : vector<42x64xbf16> to vector<32x64xbf16>
    %c1 = arith.constant 1 : index
    %c0_4 = arith.constant 0 : index
    %c0_5 = arith.constant 0 : index
    %11 = vector.load %arg2[%c1, %c0_4, %c0_5] : memref<9x64x128xbf16, #tpu.memory_space<vmem>>, vector<1x64x128xbf16>
    %12 = vector.shape_cast %11 : vector<1x64x128xbf16> to vector<64x128xbf16>
    %cst_6 = arith.constant dense<0.000000e+00> : vector<32x128xf32>
    %13 = tpu.matmul %10, %12, %cst_6 {dimension_numbers = #tpu.dot_dimension_numbers<[1], [0], [0], [1], [0, 0, 1, 1], [], []>} : vector<32x64xbf16>, vector<64x128xbf16>, vector<32x128xf32> -> vector<32x128xf32>
    %14 = arith.addf %9, %13 : vector<32x128xf32>
    %15 = vector.extract_strided_slice %3 {offsets = [2, 0], sizes = [32, 64], strides = [1, 1]} : vector<42x64xbf16> to vector<32x64xbf16>
    %c2 = arith.constant 2 : index
    %c0_7 = arith.constant 0 : index
    %c0_8 = arith.constant 0 : index
    %16 = vector.load %arg2[%c2, %c0_7, %c0_8] : memref<9x64x128xbf16, #tpu.memory_space<vmem>>, vector<1x64x128xbf16>
    %17 = vector.shape_cast %16 : vector<1x64x128xbf16> to vector<64x128xbf16>
    %cst_9 = arith.constant dense<0.000000e+00> : vector<32x128xf32>
    %18 = tpu.matmul %15, %17, %cst_9 {dimension_numbers = #tpu.dot_dimension_numbers<[1], [0], [0], [1], [0, 0, 1, 1], [], []>} : vector<32x64xbf16>, vector<64x128xbf16>, vector<32x128xf32> -> vector<32x128xf32>
    %19 = arith.addf %14, %18 : vector<32x128xf32>
    %20 = vector.extract_strided_slice %3 {offsets = [4, 0], sizes = [32, 64], strides = [1, 1]} : vector<42x64xbf16> to vector<32x64xbf16>
    %c3 = arith.constant 3 : index
    %c0_10 = arith.constant 0 : index
    %c0_11 = arith.constant 0 : index
    %21 = vector.load %arg2[%c3, %c0_10, %c0_11] : memref<9x64x128xbf16, #tpu.memory_space<vmem>>, vector<1x64x128xbf16>
    %22 = vector.shape_cast %21 : vector<1x64x128xbf16> to vector<64x128xbf16>
    %cst_12 = arith.constant dense<0.000000e+00> : vector<32x128xf32>
    %23 = tpu.matmul %20, %22, %cst_12 {dimension_numbers = #tpu.dot_dimension_numbers<[1], [0], [0], [1], [0, 0, 1, 1], [], []>} : vector<32x64xbf16>, vector<64x128xbf16>, vector<32x128xf32> -> vector<32x128xf32>
    %24 = arith.addf %19, %23 : vector<32x128xf32>
    %25 = vector.extract_strided_slice %3 {offsets = [5, 0], sizes = [32, 64], strides = [1, 1]} : vector<42x64xbf16> to vector<32x64xbf16>
    %c4 = arith.constant 4 : index
    %c0_13 = arith.constant 0 : index
    %c0_14 = arith.constant 0 : index
    %26 = vector.load %arg2[%c4, %c0_13, %c0_14] : memref<9x64x128xbf16, #tpu.memory_space<vmem>>, vector<1x64x128xbf16>
    %27 = vector.shape_cast %26 : vector<1x64x128xbf16> to vector<64x128xbf16>
    %cst_15 = arith.constant dense<0.000000e+00> : vector<32x128xf32>
    %28 = tpu.matmul %25, %27, %cst_15 {dimension_numbers = #tpu.dot_dimension_numbers<[1], [0], [0], [1], [0, 0, 1, 1], [], []>} : vector<32x64xbf16>, vector<64x128xbf16>, vector<32x128xf32> -> vector<32x128xf32>
    %29 = arith.addf %24, %28 : vector<32x128xf32>
    %30 = vector.extract_strided_slice %3 {offsets = [6, 0], sizes = [32, 64], strides = [1, 1]} : vector<42x64xbf16> to vector<32x64xbf16>
    %c5 = arith.constant 5 : index
    %c0_16 = arith.constant 0 : index
    %c0_17 = arith.constant 0 : index
    %31 = vector.load %arg2[%c5, %c0_16, %c0_17] : memref<9x64x128xbf16, #tpu.memory_space<vmem>>, vector<1x64x128xbf16>
    %32 = vector.shape_cast %31 : vector<1x64x128xbf16> to vector<64x128xbf16>
    %cst_18 = arith.constant dense<0.000000e+00> : vector<32x128xf32>
    %33 = tpu.matmul %30, %32, %cst_18 {dimension_numbers = #tpu.dot_dimension_numbers<[1], [0], [0], [1], [0, 0, 1, 1], [], []>} : vector<32x64xbf16>, vector<64x128xbf16>, vector<32x128xf32> -> vector<32x128xf32>
    %34 = arith.addf %29, %33 : vector<32x128xf32>
    %35 = vector.extract_strided_slice %3 {offsets = [8, 0], sizes = [32, 64], strides = [1, 1]} : vector<42x64xbf16> to vector<32x64xbf16>
    %c6 = arith.constant 6 : index
    %c0_19 = arith.constant 0 : index
    %c0_20 = arith.constant 0 : index
    %36 = vector.load %arg2[%c6, %c0_19, %c0_20] : memref<9x64x128xbf16, #tpu.memory_space<vmem>>, vector<1x64x128xbf16>
    %37 = vector.shape_cast %36 : vector<1x64x128xbf16> to vector<64x128xbf16>
    %cst_21 = arith.constant dense<0.000000e+00> : vector<32x128xf32>
    %38 = tpu.matmul %35, %37, %cst_21 {dimension_numbers = #tpu.dot_dimension_numbers<[1], [0], [0], [1], [0, 0, 1, 1], [], []>} : vector<32x64xbf16>, vector<64x128xbf16>, vector<32x128xf32> -> vector<32x128xf32>
    %39 = arith.addf %34, %38 : vector<32x128xf32>
    %40 = vector.extract_strided_slice %3 {offsets = [9, 0], sizes = [32, 64], strides = [1, 1]} : vector<42x64xbf16> to vector<32x64xbf16>
    %c7 = arith.constant 7 : index
    %c0_22 = arith.constant 0 : index
    %c0_23 = arith.constant 0 : index
    %41 = vector.load %arg2[%c7, %c0_22, %c0_23] : memref<9x64x128xbf16, #tpu.memory_space<vmem>>, vector<1x64x128xbf16>
    %42 = vector.shape_cast %41 : vector<1x64x128xbf16> to vector<64x128xbf16>
    %cst_24 = arith.constant dense<0.000000e+00> : vector<32x128xf32>
    %43 = tpu.matmul %40, %42, %cst_24 {dimension_numbers = #tpu.dot_dimension_numbers<[1], [0], [0], [1], [0, 0, 1, 1], [], []>} : vector<32x64xbf16>, vector<64x128xbf16>, vector<32x128xf32> -> vector<32x128xf32>
    %44 = arith.addf %39, %43 : vector<32x128xf32>
    %45 = vector.extract_strided_slice %3 {offsets = [10, 0], sizes = [32, 64], strides = [1, 1]} : vector<42x64xbf16> to vector<32x64xbf16>
    %c8 = arith.constant 8 : index
    %c0_25 = arith.constant 0 : index
    %c0_26 = arith.constant 0 : index
    %46 = vector.load %arg2[%c8, %c0_25, %c0_26] : memref<9x64x128xbf16, #tpu.memory_space<vmem>>, vector<1x64x128xbf16>
    %47 = vector.shape_cast %46 : vector<1x64x128xbf16> to vector<64x128xbf16>
    %cst_27 = arith.constant dense<0.000000e+00> : vector<32x128xf32>
    %48 = tpu.matmul %45, %47, %cst_27 {dimension_numbers = #tpu.dot_dimension_numbers<[1], [0], [0], [1], [0, 0, 1, 1], [], []>} : vector<32x64xbf16>, vector<64x128xbf16>, vector<32x128xf32> -> vector<32x128xf32>
    %49 = arith.addf %44, %48 : vector<32x128xf32>
    %c0_28 = arith.constant 0 : index
    %c0_29 = arith.constant 0 : index
    %50 = vector.load %arg3[%c0_28, %c0_29] : memref<1x128xf32, #tpu.memory_space<vmem>>, vector<1x128xf32>
    %51 = vector.broadcast %50 : vector<1x128xf32> to vector<32x128xf32>
    %52 = arith.addf %49, %51 : vector<32x128xf32>
    %cst_30 = arith.constant 0.000000e+00 : f32
    %53 = vector.broadcast %cst_30 : f32 to vector<32x128xf32>
    %54 = arith.maximumf %52, %53 : vector<32x128xf32>
    %55 = arith.truncf %54 : vector<32x128xf32> to vector<32x128xbf16>
    %c0_31 = arith.constant 0 : index
    %c0_32 = arith.constant 0 : index
    %56 = vector.load %arg4[%c0_31, %c0_32] : memref<32x128xbf16, #tpu.memory_space<vmem>>, vector<32x128xbf16>
    tpu.vector_store %arg4[%c0_31, %c0_32], %55 {strides = array<i32>} : memref<32x128xbf16, #tpu.memory_space<vmem>>, vector<32x128xbf16>,
    return
  }
  func.func @transform_0(%arg0: i32) -> (i32, i32) {
    %c0_i32 = arith.constant 0 : i32
    %c0_i32_0 = arith.constant 0 : i32
    %c0_i32_1 = arith.constant 0 : i32
    return %c0_i32, %c0_i32_0 : i32, i32
  }
  func.func @transform_1(%arg0: i32) -> (i32, i32, i32) {
    %c0_i32 = arith.constant 0 : i32
    %c0_i32_0 = arith.constant 0 : i32
    %c0_i32_1 = arith.constant 0 : i32
    %c0_i32_2 = arith.constant 0 : i32
    return %c0_i32, %c0_i32_0, %c0_i32_1 : i32, i32, i32
  }
  func.func @transform_2(%arg0: i32) -> (i32, i32) {
    %c0_i32 = arith.constant 0 : i32
    %c0_i32_0 = arith.constant 0 : i32
    %c0_i32_1 = arith.constant 0 : i32
    return %c0_i32, %c0_i32_0 : i32, i32
  }
  func.func @transform_3(%arg0: i32) -> (i32, i32) {
    %c0_i32 = arith.constant 0 : i32
    %c0_i32_0 = arith.constant 0 : i32
    return %arg0, %c0_i32 : i32, i32
  }
}

module attributes {stable_mosaic.version = 11 : i64} {
  func.func @_conv3x3_kernel(%arg0: i32, %arg1: memref<42x32xbf16, #tpu.memory_space<vmem>>, %arg2: memref<9x32x128xbf16, #tpu.memory_space<vmem>>, %arg3: memref<1x128xf32, #tpu.memory_space<vmem>>, %arg4: memref<32x128xbf16, #tpu.memory_space<vmem>>) attributes {dimension_semantics = [#tpu.dimension_semantics<parallel>], iteration_bounds = array<i64: 1>, scalar_prefetch = 0 : i64, scratch_operands = 0 : i64, tpu.core_type = #tpu.core_type<tc>, window_params = [{pipeline_mode = #tpu.pipeline_mode<synchronous>, transform_indices = @transform_0, window_bounds = array<i64: 42, 32>}, {pipeline_mode = #tpu.pipeline_mode<synchronous>, transform_indices = @transform_1, window_bounds = array<i64: 9, 32, 128>}, {pipeline_mode = #tpu.pipeline_mode<synchronous>, transform_indices = @transform_2, window_bounds = array<i64: 1, 128>}, {transform_indices = @transform_3, window_bounds = array<i64: 32, 128>}]} {
    %c32_i32 = arith.constant 32 : i32
    %0 = arith.muli %arg0, %c32_i32 : i32
    %1 = tpu.assume_multiple %0, 16 : i32
    %2 = arith.index_cast %1 : i32 to index
    %c0 = arith.constant 0 : index
    %3 = vector.load %arg1[%2, %c0] : memref<42x32xbf16, #tpu.memory_space<vmem>>, vector<42x32xbf16>
    %cst = arith.constant 0.000000e+00 : f32
    %4 = vector.broadcast %cst : f32 to vector<32x128xf32>
    %5 = vector.extract_strided_slice %3 {offsets = [0, 0], sizes = [32, 32], strides = [1, 1]} : vector<42x32xbf16> to vector<32x32xbf16>
    %c0_0 = arith.constant 0 : index
    %c0_1 = arith.constant 0 : index
    %c0_2 = arith.constant 0 : index
    %6 = vector.load %arg2[%c0_0, %c0_1, %c0_2] : memref<9x32x128xbf16, #tpu.memory_space<vmem>>, vector<1x32x128xbf16>
    %7 = vector.shape_cast %6 : vector<1x32x128xbf16> to vector<32x128xbf16>
    %cst_3 = arith.constant dense<0.000000e+00> : vector<32x128xf32>
    %8 = tpu.matmul %5, %7, %cst_3 {dimension_numbers = #tpu.dot_dimension_numbers<[1], [0], [0], [1], [0, 0, 1, 1], [], []>} : vector<32x32xbf16>, vector<32x128xbf16>, vector<32x128xf32> -> vector<32x128xf32>
    %9 = arith.addf %4, %8 : vector<32x128xf32>
    %10 = vector.extract_strided_slice %3 {offsets = [1, 0], sizes = [32, 32], strides = [1, 1]} : vector<42x32xbf16> to vector<32x32xbf16>
    %c1 = arith.constant 1 : index
    %c0_4 = arith.constant 0 : index
    %c0_5 = arith.constant 0 : index
    %11 = vector.load %arg2[%c1, %c0_4, %c0_5] : memref<9x32x128xbf16, #tpu.memory_space<vmem>>, vector<1x32x128xbf16>
    %12 = vector.shape_cast %11 : vector<1x32x128xbf16> to vector<32x128xbf16>
    %cst_6 = arith.constant dense<0.000000e+00> : vector<32x128xf32>
    %13 = tpu.matmul %10, %12, %cst_6 {dimension_numbers = #tpu.dot_dimension_numbers<[1], [0], [0], [1], [0, 0, 1, 1], [], []>} : vector<32x32xbf16>, vector<32x128xbf16>, vector<32x128xf32> -> vector<32x128xf32>
    %14 = arith.addf %9, %13 : vector<32x128xf32>
    %15 = vector.extract_strided_slice %3 {offsets = [2, 0], sizes = [32, 32], strides = [1, 1]} : vector<42x32xbf16> to vector<32x32xbf16>
    %c2 = arith.constant 2 : index
    %c0_7 = arith.constant 0 : index
    %c0_8 = arith.constant 0 : index
    %16 = vector.load %arg2[%c2, %c0_7, %c0_8] : memref<9x32x128xbf16, #tpu.memory_space<vmem>>, vector<1x32x128xbf16>
    %17 = vector.shape_cast %16 : vector<1x32x128xbf16> to vector<32x128xbf16>
    %cst_9 = arith.constant dense<0.000000e+00> : vector<32x128xf32>
    %18 = tpu.matmul %15, %17, %cst_9 {dimension_numbers = #tpu.dot_dimension_numbers<[1], [0], [0], [1], [0, 0, 1, 1], [], []>} : vector<32x32xbf16>, vector<32x128xbf16>, vector<32x128xf32> -> vector<32x128xf32>
    %19 = arith.addf %14, %18 : vector<32x128xf32>
    %20 = vector.extract_strided_slice %3 {offsets = [4, 0], sizes = [32, 32], strides = [1, 1]} : vector<42x32xbf16> to vector<32x32xbf16>
    %c3 = arith.constant 3 : index
    %c0_10 = arith.constant 0 : index
    %c0_11 = arith.constant 0 : index
    %21 = vector.load %arg2[%c3, %c0_10, %c0_11] : memref<9x32x128xbf16, #tpu.memory_space<vmem>>, vector<1x32x128xbf16>
    %22 = vector.shape_cast %21 : vector<1x32x128xbf16> to vector<32x128xbf16>
    %cst_12 = arith.constant dense<0.000000e+00> : vector<32x128xf32>
    %23 = tpu.matmul %20, %22, %cst_12 {dimension_numbers = #tpu.dot_dimension_numbers<[1], [0], [0], [1], [0, 0, 1, 1], [], []>} : vector<32x32xbf16>, vector<32x128xbf16>, vector<32x128xf32> -> vector<32x128xf32>
    %24 = arith.addf %19, %23 : vector<32x128xf32>
    %25 = vector.extract_strided_slice %3 {offsets = [5, 0], sizes = [32, 32], strides = [1, 1]} : vector<42x32xbf16> to vector<32x32xbf16>
    %c4 = arith.constant 4 : index
    %c0_13 = arith.constant 0 : index
    %c0_14 = arith.constant 0 : index
    %26 = vector.load %arg2[%c4, %c0_13, %c0_14] : memref<9x32x128xbf16, #tpu.memory_space<vmem>>, vector<1x32x128xbf16>
    %27 = vector.shape_cast %26 : vector<1x32x128xbf16> to vector<32x128xbf16>
    %cst_15 = arith.constant dense<0.000000e+00> : vector<32x128xf32>
    %28 = tpu.matmul %25, %27, %cst_15 {dimension_numbers = #tpu.dot_dimension_numbers<[1], [0], [0], [1], [0, 0, 1, 1], [], []>} : vector<32x32xbf16>, vector<32x128xbf16>, vector<32x128xf32> -> vector<32x128xf32>
    %29 = arith.addf %24, %28 : vector<32x128xf32>
    %30 = vector.extract_strided_slice %3 {offsets = [6, 0], sizes = [32, 32], strides = [1, 1]} : vector<42x32xbf16> to vector<32x32xbf16>
    %c5 = arith.constant 5 : index
    %c0_16 = arith.constant 0 : index
    %c0_17 = arith.constant 0 : index
    %31 = vector.load %arg2[%c5, %c0_16, %c0_17] : memref<9x32x128xbf16, #tpu.memory_space<vmem>>, vector<1x32x128xbf16>
    %32 = vector.shape_cast %31 : vector<1x32x128xbf16> to vector<32x128xbf16>
    %cst_18 = arith.constant dense<0.000000e+00> : vector<32x128xf32>
    %33 = tpu.matmul %30, %32, %cst_18 {dimension_numbers = #tpu.dot_dimension_numbers<[1], [0], [0], [1], [0, 0, 1, 1], [], []>} : vector<32x32xbf16>, vector<32x128xbf16>, vector<32x128xf32> -> vector<32x128xf32>
    %34 = arith.addf %29, %33 : vector<32x128xf32>
    %35 = vector.extract_strided_slice %3 {offsets = [8, 0], sizes = [32, 32], strides = [1, 1]} : vector<42x32xbf16> to vector<32x32xbf16>
    %c6 = arith.constant 6 : index
    %c0_19 = arith.constant 0 : index
    %c0_20 = arith.constant 0 : index
    %36 = vector.load %arg2[%c6, %c0_19, %c0_20] : memref<9x32x128xbf16, #tpu.memory_space<vmem>>, vector<1x32x128xbf16>
    %37 = vector.shape_cast %36 : vector<1x32x128xbf16> to vector<32x128xbf16>
    %cst_21 = arith.constant dense<0.000000e+00> : vector<32x128xf32>
    %38 = tpu.matmul %35, %37, %cst_21 {dimension_numbers = #tpu.dot_dimension_numbers<[1], [0], [0], [1], [0, 0, 1, 1], [], []>} : vector<32x32xbf16>, vector<32x128xbf16>, vector<32x128xf32> -> vector<32x128xf32>
    %39 = arith.addf %34, %38 : vector<32x128xf32>
    %40 = vector.extract_strided_slice %3 {offsets = [9, 0], sizes = [32, 32], strides = [1, 1]} : vector<42x32xbf16> to vector<32x32xbf16>
    %c7 = arith.constant 7 : index
    %c0_22 = arith.constant 0 : index
    %c0_23 = arith.constant 0 : index
    %41 = vector.load %arg2[%c7, %c0_22, %c0_23] : memref<9x32x128xbf16, #tpu.memory_space<vmem>>, vector<1x32x128xbf16>
    %42 = vector.shape_cast %41 : vector<1x32x128xbf16> to vector<32x128xbf16>
    %cst_24 = arith.constant dense<0.000000e+00> : vector<32x128xf32>
    %43 = tpu.matmul %40, %42, %cst_24 {dimension_numbers = #tpu.dot_dimension_numbers<[1], [0], [0], [1], [0, 0, 1, 1], [], []>} : vector<32x32xbf16>, vector<32x128xbf16>, vector<32x128xf32> -> vector<32x128xf32>
    %44 = arith.addf %39, %43 : vector<32x128xf32>
    %45 = vector.extract_strided_slice %3 {offsets = [10, 0], sizes = [32, 32], strides = [1, 1]} : vector<42x32xbf16> to vector<32x32xbf16>
    %c8 = arith.constant 8 : index
    %c0_25 = arith.constant 0 : index
    %c0_26 = arith.constant 0 : index
    %46 = vector.load %arg2[%c8, %c0_25, %c0_26] : memref<9x32x128xbf16, #tpu.memory_space<vmem>>, vector<1x32x128xbf16>
    %47 = vector.shape_cast %46 : vector<1x32x128xbf16> to vector<32x128xbf16>
    %cst_27 = arith.constant dense<0.000000e+00> : vector<32x128xf32>
    %48 = tpu.matmul %45, %47, %cst_27 {dimension_numbers = #tpu.dot_dimension_numbers<[1], [0], [0], [1], [0, 0, 1, 1], [], []>} : vector<32x32xbf16>, vector<32x128xbf16>, vector<32x128xf32> -> vector<32x128xf32>
    %49 = arith.addf %44, %48 : vector<32x128xf32>
    %c0_28 = arith.constant 0 : index
    %c0_29 = arith.constant 0 : index
    %50 = vector.load %arg3[%c0_28, %c0_29] : memref<1x128xf32, #tpu.memory_space<vmem>>, vector<1x128xf32>
    %51 = vector.broadcast %50 : vector<1x128xf32> to vector<32x128xf32>
    %52 = arith.addf %49, %51 : vector<32x128xf32>
    %cst_30 = arith.constant 0.000000e+00 : f32
    %53 = vector.broadcast %cst_30 : f32 to vector<32x128xf32>
    %54 = arith.maximumf %52, %53 : vector<32x128xf32>
    %55 = arith.truncf %54 : vector<32x128xf32> to vector<32x128xbf16>
    %c0_31 = arith.constant 0 : index
    %c0_32 = arith.constant 0 : index
    %56 = vector.load %arg4[%c0_31, %c0_32] : memref<32x128xbf16, #tpu.memory_space<vmem>>, vector<32x128xbf16>
    tpu.vector_store %arg4[%c0_31, %c0_32], %55 {strides = array<i32>} : memref<32x128xbf16, #tpu.memory_space<vmem>>, vector<32x128xbf16>,
    return
  }
  func.func @transform_0(%arg0: i32) -> (i32, i32) {
    %c0_i32 = arith.constant 0 : i32
    %c0_i32_0 = arith.constant 0 : i32
    %c0_i32_1 = arith.constant 0 : i32
    return %c0_i32, %c0_i32_0 : i32, i32
  }
  func.func @transform_1(%arg0: i32) -> (i32, i32, i32) {
    %c0_i32 = arith.constant 0 : i32
    %c0_i32_0 = arith.constant 0 : i32
    %c0_i32_1 = arith.constant 0 : i32
    %c0_i32_2 = arith.constant 0 : i32
    return %c0_i32, %c0_i32_0, %c0_i32_1 : i32, i32, i32
  }
  func.func @transform_2(%arg0: i32) -> (i32, i32) {
    %c0_i32 = arith.constant 0 : i32
    %c0_i32_0 = arith.constant 0 : i32
    %c0_i32_1 = arith.constant 0 : i32
    return %c0_i32, %c0_i32_0 : i32, i32
  }
  func.func @transform_3(%arg0: i32) -> (i32, i32) {
    %c0_i32 = arith.constant 0 : i32
    %c0_i32_0 = arith.constant 0 : i32
    return %arg0, %c0_i32 : i32, i32
  }
}

module attributes {stable_mosaic.version = 11 : i64} {
  func.func @_pool3x3_s2_kernel(%arg0: i32, %arg1: memref<1x4x3x3x128xbf16, #tpu.memory_space<vmem>>, %arg2: memref<1x2x2x128xbf16, #tpu.memory_space<vmem>>) attributes {dimension_semantics = [#tpu.dimension_semantics<parallel>], iteration_bounds = array<i64: 2>, scalar_prefetch = 0 : i64, scratch_operands = 0 : i64, tpu.core_type = #tpu.core_type<tc>, window_params = [{transform_indices = @transform_0, window_bounds = array<i64: 1, 4, 3, 3, 128>}, {transform_indices = @transform_1, window_bounds = array<i64: 1, 2, 2, 128>}]} {
    %c0 = arith.constant 0 : index
    %c0_0 = arith.constant 0 : index
    %c0_1 = arith.constant 0 : index
    %c0_2 = arith.constant 0 : index
    %c0_3 = arith.constant 0 : index
    %0 = vector.load %arg1[%c0, %c0_0, %c0_1, %c0_2, %c0_3] : memref<1x4x3x3x128xbf16, #tpu.memory_space<vmem>>, vector<1x1x3x3x128xbf16>
    %1 = vector.shape_cast %0 : vector<1x1x3x3x128xbf16> to vector<3x3x128xbf16>
    %2 = vector.extract_strided_slice %1 {offsets = [0, 0, 0], sizes = [2, 2, 128], strides = [1, 1, 1]} : vector<3x3x128xbf16> to vector<2x2x128xbf16>
    %3 = arith.extf %2 : vector<2x2x128xbf16> to vector<2x2x128xf32>
    %c0_4 = arith.constant 0 : index
    %c1 = arith.constant 1 : index
    %c0_5 = arith.constant 0 : index
    %c0_6 = arith.constant 0 : index
    %c0_7 = arith.constant 0 : index
    %4 = vector.load %arg1[%c0_4, %c1, %c0_5, %c0_6, %c0_7] : memref<1x4x3x3x128xbf16, #tpu.memory_space<vmem>>, vector<1x1x3x3x128xbf16>
    %5 = vector.shape_cast %4 : vector<1x1x3x3x128xbf16> to vector<3x3x128xbf16>
    %6 = vector.extract_strided_slice %5 {offsets = [0, 0, 0], sizes = [2, 2, 128], strides = [1, 1, 1]} : vector<3x3x128xbf16> to vector<2x2x128xbf16>
    %7 = arith.extf %6 : vector<2x2x128xbf16> to vector<2x2x128xf32>
    %8 = arith.addf %3, %7 : vector<2x2x128xf32>
    %c0_8 = arith.constant 0 : index
    %c0_9 = arith.constant 0 : index
    %c0_10 = arith.constant 0 : index
    %c0_11 = arith.constant 0 : index
    %c0_12 = arith.constant 0 : index
    %9 = vector.load %arg1[%c0_8, %c0_9, %c0_10, %c0_11, %c0_12] : memref<1x4x3x3x128xbf16, #tpu.memory_space<vmem>>, vector<1x1x3x3x128xbf16>
    %10 = vector.shape_cast %9 : vector<1x1x3x3x128xbf16> to vector<3x3x128xbf16>
    %11 = vector.extract_strided_slice %10 {offsets = [0, 1, 0], sizes = [2, 2, 128], strides = [1, 1, 1]} : vector<3x3x128xbf16> to vector<2x2x128xbf16>
    %12 = arith.extf %11 : vector<2x2x128xbf16> to vector<2x2x128xf32>
    %13 = arith.addf %8, %12 : vector<2x2x128xf32>
    %c0_13 = arith.constant 0 : index
    %c2 = arith.constant 2 : index
    %c0_14 = arith.constant 0 : index
    %c0_15 = arith.constant 0 : index
    %c0_16 = arith.constant 0 : index
    %14 = vector.load %arg1[%c0_13, %c2, %c0_14, %c0_15, %c0_16] : memref<1x4x3x3x128xbf16, #tpu.memory_space<vmem>>, vector<1x1x3x3x128xbf16>
    %15 = vector.shape_cast %14 : vector<1x1x3x3x128xbf16> to vector<3x3x128xbf16>
    %16 = vector.extract_strided_slice %15 {offsets = [0, 0, 0], sizes = [2, 2, 128], strides = [1, 1, 1]} : vector<3x3x128xbf16> to vector<2x2x128xbf16>
    %17 = arith.extf %16 : vector<2x2x128xbf16> to vector<2x2x128xf32>
    %18 = arith.addf %13, %17 : vector<2x2x128xf32>
    %c0_17 = arith.constant 0 : index
    %c3 = arith.constant 3 : index
    %c0_18 = arith.constant 0 : index
    %c0_19 = arith.constant 0 : index
    %c0_20 = arith.constant 0 : index
    %19 = vector.load %arg1[%c0_17, %c3, %c0_18, %c0_19, %c0_20] : memref<1x4x3x3x128xbf16, #tpu.memory_space<vmem>>, vector<1x1x3x3x128xbf16>
    %20 = vector.shape_cast %19 : vector<1x1x3x3x128xbf16> to vector<3x3x128xbf16>
    %21 = vector.extract_strided_slice %20 {offsets = [0, 0, 0], sizes = [2, 2, 128], strides = [1, 1, 1]} : vector<3x3x128xbf16> to vector<2x2x128xbf16>
    %22 = arith.extf %21 : vector<2x2x128xbf16> to vector<2x2x128xf32>
    %23 = arith.addf %18, %22 : vector<2x2x128xf32>
    %c0_21 = arith.constant 0 : index
    %c2_22 = arith.constant 2 : index
    %c0_23 = arith.constant 0 : index
    %c0_24 = arith.constant 0 : index
    %c0_25 = arith.constant 0 : index
    %24 = vector.load %arg1[%c0_21, %c2_22, %c0_23, %c0_24, %c0_25] : memref<1x4x3x3x128xbf16, #tpu.memory_space<vmem>>, vector<1x1x3x3x128xbf16>
    %25 = vector.shape_cast %24 : vector<1x1x3x3x128xbf16> to vector<3x3x128xbf16>
    %26 = vector.extract_strided_slice %25 {offsets = [0, 1, 0], sizes = [2, 2, 128], strides = [1, 1, 1]} : vector<3x3x128xbf16> to vector<2x2x128xbf16>
    %27 = arith.extf %26 : vector<2x2x128xbf16> to vector<2x2x128xf32>
    %28 = arith.addf %23, %27 : vector<2x2x128xf32>
    %c0_26 = arith.constant 0 : index
    %c0_27 = arith.constant 0 : index
    %c0_28 = arith.constant 0 : index
    %c0_29 = arith.constant 0 : index
    %c0_30 = arith.constant 0 : index
    %29 = vector.load %arg1[%c0_26, %c0_27, %c0_28, %c0_29, %c0_30] : memref<1x4x3x3x128xbf16, #tpu.memory_space<vmem>>, vector<1x1x3x3x128xbf16>
    %30 = vector.shape_cast %29 : vector<1x1x3x3x128xbf16> to vector<3x3x128xbf16>
    %31 = vector.extract_strided_slice %30 {offsets = [1, 0, 0], sizes = [2, 2, 128], strides = [1, 1, 1]} : vector<3x3x128xbf16> to vector<2x2x128xbf16>
    %32 = arith.extf %31 : vector<2x2x128xbf16> to vector<2x2x128xf32>
    %33 = arith.addf %28, %32 : vector<2x2x128xf32>
    %c0_31 = arith.constant 0 : index
    %c1_32 = arith.constant 1 : index
    %c0_33 = arith.constant 0 : index
    %c0_34 = arith.constant 0 : index
    %c0_35 = arith.constant 0 : index
    %34 = vector.load %arg1[%c0_31, %c1_32, %c0_33, %c0_34, %c0_35] : memref<1x4x3x3x128xbf16, #tpu.memory_space<vmem>>, vector<1x1x3x3x128xbf16>
    %35 = vector.shape_cast %34 : vector<1x1x3x3x128xbf16> to vector<3x3x128xbf16>
    %36 = vector.extract_strided_slice %35 {offsets = [1, 0, 0], sizes = [2, 2, 128], strides = [1, 1, 1]} : vector<3x3x128xbf16> to vector<2x2x128xbf16>
    %37 = arith.extf %36 : vector<2x2x128xbf16> to vector<2x2x128xf32>
    %38 = arith.addf %33, %37 : vector<2x2x128xf32>
    %c0_36 = arith.constant 0 : index
    %c0_37 = arith.constant 0 : index
    %c0_38 = arith.constant 0 : index
    %c0_39 = arith.constant 0 : index
    %c0_40 = arith.constant 0 : index
    %39 = vector.load %arg1[%c0_36, %c0_37, %c0_38, %c0_39, %c0_40] : memref<1x4x3x3x128xbf16, #tpu.memory_space<vmem>>, vector<1x1x3x3x128xbf16>
    %40 = vector.shape_cast %39 : vector<1x1x3x3x128xbf16> to vector<3x3x128xbf16>
    %41 = vector.extract_strided_slice %40 {offsets = [1, 1, 0], sizes = [2, 2, 128], strides = [1, 1, 1]} : vector<3x3x128xbf16> to vector<2x2x128xbf16>
    %42 = arith.extf %41 : vector<2x2x128xbf16> to vector<2x2x128xf32>
    %43 = arith.addf %38, %42 : vector<2x2x128xf32>
    %cst = arith.constant 0.111111112 : f32
    %44 = vector.broadcast %cst : f32 to vector<2x2x128xf32>
    %45 = arith.mulf %43, %44 : vector<2x2x128xf32>
    %46 = arith.truncf %45 : vector<2x2x128xf32> to vector<2x2x128xbf16>
    %c0_41 = arith.constant 0 : index
    %c0_42 = arith.constant 0 : index
    %c0_43 = arith.constant 0 : index
    %c0_44 = arith.constant 0 : index
    %47 = vector.load %arg2[%c0_41, %c0_42, %c0_43, %c0_44] : memref<1x2x2x128xbf16, #tpu.memory_space<vmem>>, vector<1x2x2x128xbf16>
    %48 = vector.shape_cast %47 : vector<1x2x2x128xbf16> to vector<2x2x128xbf16>
    %49 = vector.shape_cast %46 : vector<2x2x128xbf16> to vector<1x2x2x128xbf16>
    tpu.vector_store %arg2[%c0_41, %c0_42, %c0_43, %c0_44], %49 {strides = array<i32>} : memref<1x2x2x128xbf16, #tpu.memory_space<vmem>>, vector<1x2x2x128xbf16>,
    return
  }
  func.func @transform_0(%arg0: i32) -> (i32, i32, i32, i32, i32) {
    %c0_i32 = arith.constant 0 : i32
    %c0_i32_0 = arith.constant 0 : i32
    %c0_i32_1 = arith.constant 0 : i32
    %c0_i32_2 = arith.constant 0 : i32
    %c0_i32_3 = arith.constant 0 : i32
    return %arg0, %c0_i32, %c0_i32_0, %c0_i32_1, %c0_i32_2 : i32, i32, i32, i32, i32
  }
  func.func @transform_1(%arg0: i32) -> (i32, i32, i32, i32) {
    %c0_i32 = arith.constant 0 : i32
    %c0_i32_0 = arith.constant 0 : i32
    %c0_i32_1 = arith.constant 0 : i32
    %c0_i32_2 = arith.constant 0 : i32
    return %arg0, %c0_i32, %c0_i32_0, %c0_i32_1 : i32, i32, i32, i32
  }
}

module attributes {stable_mosaic.version = 11 : i64} {
  func.func @_mm_bn_kernel(%arg0: i32, %arg1: memref<128x256xbf16, #tpu.memory_space<vmem>>, %arg2: memref<256x128xbf16, #tpu.memory_space<vmem>>, %arg3: memref<1x128xf32, #tpu.memory_space<vmem>>, %arg4: memref<128x128xbf16, #tpu.memory_space<vmem>>) attributes {dimension_semantics = [#tpu.dimension_semantics<parallel>], iteration_bounds = array<i64: 1>, scalar_prefetch = 0 : i64, scratch_operands = 0 : i64, tpu.core_type = #tpu.core_type<tc>, window_params = [{transform_indices = @transform_0, window_bounds = array<i64: 128, 256>}, {pipeline_mode = #tpu.pipeline_mode<synchronous>, transform_indices = @transform_1, window_bounds = array<i64: 256, 128>}, {pipeline_mode = #tpu.pipeline_mode<synchronous>, transform_indices = @transform_2, window_bounds = array<i64: 1, 128>}, {transform_indices = @transform_3, window_bounds = array<i64: 128, 128>}]} {
    %c0 = arith.constant 0 : index
    %c0_0 = arith.constant 0 : index
    %0 = vector.load %arg1[%c0, %c0_0] : memref<128x256xbf16, #tpu.memory_space<vmem>>, vector<128x256xbf16>
    %c0_1 = arith.constant 0 : index
    %c0_2 = arith.constant 0 : index
    %1 = vector.load %arg2[%c0_1, %c0_2] : memref<256x128xbf16, #tpu.memory_space<vmem>>, vector<256x128xbf16>
    %cst = arith.constant dense<0.000000e+00> : vector<128x128xf32>
    %2 = tpu.matmul %0, %1, %cst {dimension_numbers = #tpu.dot_dimension_numbers<[1], [0], [0], [1], [0, 0, 1, 1], [], []>} : vector<128x256xbf16>, vector<256x128xbf16>, vector<128x128xf32> -> vector<128x128xf32>
    %c0_3 = arith.constant 0 : index
    %c0_4 = arith.constant 0 : index
    %3 = vector.load %arg3[%c0_3, %c0_4] : memref<1x128xf32, #tpu.memory_space<vmem>>, vector<1x128xf32>
    %4 = vector.broadcast %3 : vector<1x128xf32> to vector<128x128xf32>
    %5 = arith.addf %2, %4 : vector<128x128xf32>
    %cst_5 = arith.constant 0.000000e+00 : f32
    %6 = vector.broadcast %cst_5 : f32 to vector<128x128xf32>
    %7 = arith.maximumf %5, %6 : vector<128x128xf32>
    %8 = arith.truncf %7 : vector<128x128xf32> to vector<128x128xbf16>
    %c0_6 = arith.constant 0 : index
    %c0_7 = arith.constant 0 : index
    %9 = vector.load %arg4[%c0_6, %c0_7] : memref<128x128xbf16, #tpu.memory_space<vmem>>, vector<128x128xbf16>
    tpu.vector_store %arg4[%c0_6, %c0_7], %8 {strides = array<i32>} : memref<128x128xbf16, #tpu.memory_space<vmem>>, vector<128x128xbf16>,
    return
  }
  func.func @transform_0(%arg0: i32) -> (i32, i32) {
    %c0_i32 = arith.constant 0 : i32
    %c0_i32_0 = arith.constant 0 : i32
    return %arg0, %c0_i32 : i32, i32
  }
  func.func @transform_1(%arg0: i32) -> (i32, i32) {
    %c0_i32 = arith.constant 0 : i32
    %c0_i32_0 = arith.constant 0 : i32
    %c0_i32_1 = arith.constant 0 : i32
    return %c0_i32, %c0_i32_0 : i32, i32
  }
  func.func @transform_2(%arg0: i32) -> (i32, i32) {
    %c0_i32 = arith.constant 0 : i32
    %c0_i32_0 = arith.constant 0 : i32
    %c0_i32_1 = arith.constant 0 : i32
    return %c0_i32, %c0_i32_0 : i32, i32
  }
  func.func @transform_3(%arg0: i32) -> (i32, i32) {
    %c0_i32 = arith.constant 0 : i32
    %c0_i32_0 = arith.constant 0 : i32
    return %arg0, %c0_i32 : i32, i32
  }
}

</mosaic_0001>

<bundles_post_ra>
// kernel: stdcnet_forward.32
= control target key start
LH: loop header
LB: loop body
LE: loop exit
PB: predicated region body
PF: predicated region fallthrough
CT: control target
= control target key end

     0   :  { %s1821_s12 = smov 0   ;;  %s2020_s0 = inlined_call_operand.vmem [shape: bf16[2048,32], index: 0, kind: input, shape index: {}]   ;;  %s2021_s1 = inlined_call_operand.vmem [shape: bf16[32,128], index: 1, kind: input, shape index: {}]   ;;  %s2022_s2 = inlined_call_operand.vmem [shape: f32[1,128], index: 2, kind: input, shape index: {}]   ;;  %s2023_s3 = inlined_call_operand.vmem [shape: bf16[2048,128], index: 3, kind: output, shape index: {}]  }
   0x1 LB: > { %s1248_s13 = sadd.s32 4294967295, %s1799_s12   ;;  %p1252_p0 = scmp.ge.s32.totalorder %s1799_s12, 1  ;;  %s1799_s12 = sphi %s1821_s12, %s13_s12  }
   0x2   : > { %p138_p1 = scmp.lt.s32.totalorder %s1799_s12, 5 }
   0x4   : > { %p139_p2 = pnand %p1252_p0, %p138_p1 }
   0x5   : > { %v1759_v0 = vld [vmem:[%s2021_s1] sm:$0xff] (!%p139_p2)   ;;  %s1253_s16 = sshll.u32 (!%p139_p2), %s1248_s13, 6  ;;  %v1760_v1 = vld [vmem:[%s2021_s1 + $0x8] sm:$0xff] (!%p139_p2)   ;;  %vm422_vm0 = vcmask (!%p139_p2), 261120  }
   0x6   : > { %142 = sbr.rel (%p139_p2) target bundleno = 297 (0x129), region = 32  ;;  %p163_p3 = scmp.lt.s32.totalorder (!%p139_p2), %s1253_s16, 255  ;;  %1679 = vmatprep.subr.bf16.mxu0 (!%p139_p2), %v1759_v0  ;;  %1747 = vmatprep.subr.bf16.mxu1 (!%p139_p2), %v1759_v0  ;;  %v1912_v34 = vld [vmem:[%s2022_s2] ss:$0 sm:$0xff] (!%p139_p2) }
   0x7   : > { %1680 = vmatpush3.bf16.msra.mxu0 (!%p139_p2), %v1759_v0  ;;  %1749 = vmatpush3.bf16.msra.mxu1 (!%p139_p2), %v1759_v0 }
   0x8   : > { %1681 = vmatprep.subr.bf16.mxu0 (!%p139_p2), %v1760_v1  ;;  %1748 = vmatprep.subr.bf16.mxu1 (!%p139_p2), %v1760_v1 }
   0xb   : > { %1682 = vmatpush3.bf16.msra.mxu0 (!%p139_p2), %v1760_v1  ;;  %1750 = vmatpush3.bf16.msra.mxu1 (!%p139_p2), %v1760_v1 }
   0xd   : > { %s2025_s16 = smov (!%p163_p3, %s1253_s16), 255 }
   0xe   : > { %s1254_s19 = sshll.u32 %s2025_s16, 2 }
   0xf   : > { %s1843_s22 = scalar_lea.vmem %s2020_s0, %s1254_s19  ;;  %s1927_s27 = scalar_lea.vmem %s2023_s3, %s1254_s19 }
  0x10   : > { %v1761_v2 = vld [vmem:[%s1843_s22] sm:$0xff]   ;;  %v1763_v4 = vld [vmem:[%s1843_s22 + $0x8] sm:$0xff]   ;;  %v1765_v6 = vld [vmem:[%s1843_s22 + $0x10] sm:$0xff]  }
  0x11   : > { %v1762_v3 = vld [vmem:[%s1843_s22 + $0x80] sm:$0xff]   ;;  %1683 = vmatprep.mubr.msk.bf16.mxu0 %vm422_vm0, %v1761_v2  ;;  %v1764_v5 = vld [vmem:[%s1843_s22 + $0x88] sm:$0xff]   ;;  %v1766_v7 = vld [vmem:[%s1843_s22 + $0x90] sm:$0xff]  }
  0x12   : > { %1715 = vmatprep.mubr.msk.bf16.mxu1 %vm422_vm0, %v1762_v3  ;;  %1684 = vmatmul.mubr.msk.bf16.vlgmr.msra.gmra.mrb[0].mxu0 %vm422_vm0, %v1763_v4  ;;  %v1767_v8 = vld [vmem:[%s1843_s22 + $0x18] sm:$0xff]   ;;  %v1769_v10 = vld [vmem:[%s1843_s22 + $0x20] sm:$0xff]   ;;  %v1771_v12 = vld [vmem:[%s1843_s22 + $0x28] sm:$0xff]  }
  0x13   : > { %1716 = vmatmul.mubr.msk.bf16.vlgmr.msra.gmra.mrb[0].mxu1 %vm422_vm0, %v1764_v5  ;;  %1687 = vmatprep.mubr.msk.bf16.mxu0 %vm422_vm0, %v1765_v6  ;;  %v1768_v9 = vld [vmem:[%s1843_s22 + $0x98] sm:$0xff]   ;;  %v1770_v11 = vld [vmem:[%s1843_s22 + $0xa0] sm:$0xff]   ;;  %v1772_v13 = vld [vmem:[%s1843_s22 + $0xa8] sm:$0xff]  }
  0x14   : > { %1719 = vmatprep.mubr.msk.bf16.mxu1 %vm422_vm0, %v1766_v7  ;;  %v1773_v14 = vld [vmem:[%s1843_s22 + $0x30] sm:$0xff]   ;;  %v1775_v16 = vld [vmem:[%s1843_s22 + $0x38] sm:$0xff]   ;;  %v1777_v18 = vld [vmem:[%s1843_s22 + $0x40] sm:$0xff]  }
  0x15   : > { %v1774_v15 = vld [vmem:[%s1843_s22 + $0xb0] sm:$0xff]   ;;  %v1776_v17 = vld [vmem:[%s1843_s22 + $0xb8] sm:$0xff]   ;;  %v1778_v19 = vld [vmem:[%s1843_s22 + $0xc0] sm:$0xff]  }
  0x16   : > { %v1779_v20 = vld [vmem:[%s1843_s22 + $0x48] sm:$0xff]   ;;  %v1781_v22 = vld [vmem:[%s1843_s22 + $0x50] sm:$0xff]   ;;  %v1783_v24 = vld [vmem:[%s1843_s22 + $0x58] sm:$0xff]  }
  0x17   : > { %v1780_v21 = vld [vmem:[%s1843_s22 + $0xc8] sm:$0xff]   ;;  %v1782_v23 = vld [vmem:[%s1843_s22 + $0xd0] sm:$0xff]   ;;  %v1784_v25 = vld [vmem:[%s1843_s22 + $0xd8] sm:$0xff]  }
  0x18   : > { %v1785_v26 = vld [vmem:[%s1843_s22 + $0x60] sm:$0xff]   ;;  %v1787_v28 = vld [vmem:[%s1843_s22 + $0x68] sm:$0xff]   ;;  %v1789_v30 = vld [vmem:[%s1843_s22 + $0x70] sm:$0xff]  }
  0x19   : > { %v1786_v27 = vld [vmem:[%s1843_s22 + $0xe0] sm:$0xff]   ;;  %v1788_v29 = vld [vmem:[%s1843_s22 + $0xe8] sm:$0xff]   ;;  %v1790_v31 = vld [vmem:[%s1843_s22 + $0xf0] sm:$0xff]  }
  0x1a   : > { %1688 = vmatmul.mubr.msk.bf16.gmra.mrb[4].mxu0 %vm422_vm0, %v1767_v8  ;;  %v1791_v32 = vld [vmem:[%s1843_s22 + $0x78] sm:$0xff]  }
  0x1b   : > { %1720 = vmatmul.mubr.msk.bf16.gmra.mrb[4].mxu1 %vm422_vm0, %v1768_v9  ;;  %1691 = vmatprep.mubr.msk.bf16.mxu0 %vm422_vm0, %v1769_v10  ;;  %v1792_v33 = vld [vmem:[%s1843_s22 + $0xf8] sm:$0xff]  }
  0x1c   : > { %1723 = vmatprep.mubr.msk.bf16.mxu1 %vm422_vm0, %v1770_v11 }
  0x22   : > { %1692 = vmatmul.mubr.msk.bf16.gmra.mrb[8].mxu0 %vm422_vm0, %v1771_v12 }
  0x23   : > { %1724 = vmatmul.mubr.msk.bf16.gmra.mrb[8].mxu1 %vm422_vm0, %v1772_v13  ;;  %1695 = vmatprep.mubr.msk.bf16.mxu0 %vm422_vm0, %v1773_v14 }
  0x24   : > { %1727 = vmatprep.mubr.msk.bf16.mxu1 %vm422_vm0, %v1774_v15 }
  0x2a   : > { %1696 = vmatmul.mubr.msk.bf16.gmra.mrb[12].mxu0 %vm422_vm0, %v1775_v16 }
  0x2b   : > { %1728 = vmatmul.mubr.msk.bf16.gmra.mrb[12].mxu1 %vm422_vm0, %v1776_v17  ;;  %1699 = vmatprep.mubr.msk.bf16.mxu0 %vm422_vm0, %v1777_v18 }
  0x2c   : > { %1731 = vmatprep.mubr.msk.bf16.mxu1 %vm422_vm0, %v1778_v19 }
  0x32   : > { %1700 = vmatmul.mubr.msk.bf16.gmra.mrb[16].mxu0 %vm422_vm0, %v1779_v20 }
  0x33   : > { %1732 = vmatmul.mubr.msk.bf16.gmra.mrb[16].mxu1 %vm422_vm0, %v1780_v21  ;;  %1703 = vmatprep.mubr.msk.bf16.mxu0 %vm422_vm0, %v1781_v22 }
  0x34   : > { %1735 = vmatprep.mubr.msk.bf16.mxu1 %vm422_vm0, %v1782_v23 }
  0x3a   : > { %1704 = vmatmul.mubr.msk.bf16.gmra.mrb[20].mxu0 %vm422_vm0, %v1783_v24 }
  0x3b   : > { %1736 = vmatmul.mubr.msk.bf16.gmra.mrb[20].mxu1 %vm422_vm0, %v1784_v25  ;;  %1707 = vmatprep.mubr.msk.bf16.mxu0 %vm422_vm0, %v1785_v26 }
  0x3c   : > { %1739 = vmatprep.mubr.msk.bf16.mxu1 %vm422_vm0, %v1786_v27 }
  0x42   : > { %1708 = vmatmul.mubr.msk.bf16.gmra.mrb[24].mxu0 %vm422_vm0, %v1787_v28 }
  0x43   : > { %1740 = vmatmul.mubr.msk.bf16.gmra.mrb[24].mxu1 %vm422_vm0, %v1788_v29  ;;  %1711 = vmatprep.mubr.msk.bf16.mxu0 %vm422_vm0, %v1789_v30 }
  0x44   : > { %1743 = vmatprep.mubr.msk.bf16.mxu1 %vm422_vm0, %v1790_v31 }
  0x4a   : > { %1712 = vmatmul.mubr.msk.bf16.gmra.mrb[28].mxu0 %vm422_vm0, %v1791_v32 }
  0x4b   : > { %1744 = vmatmul.mubr.msk.bf16.gmra.mrb[28].mxu1 %vm422_vm0, %v1792_v33 }
  0xe5   : > { %v1685_v35 = vpop.f32.mrb[0].mxu0 }
  0xe6   : > { %v562_v36 = vadd.f32 %v1685_v35, %v1912_v34  ;;  %v1717_v37 = vpop.f32.mrb[0].mxu1  ;;  %v553_v38 = vpop.f32.mrb[1].mxu0 }
  0xe7   : > { %v690_v39 = vadd.f32 %v1717_v37, %v1912_v34  ;;  %v554_v40 = vadd.f32 %v1912_v34, %v553_v38  ;;  %v681_v41 = vpop.f32.mrb[1].mxu1  ;;  %v1686_v42 = vpop.f32.mrb[2].mxu0 }
  0xe8   : > { %v682_v43 = vadd.f32 %v1912_v34, %v681_v41  ;;  %v565_v44 = vadd.f32 %v1686_v42, %v1912_v34  ;;  %v1718_v45 = vpop.f32.mrb[2].mxu1  ;;  %v556_v46 = vpop.f32.mrb[3].mxu0  ;;  %v810_v50 = vmax.f32 %v562_v36, 0.0 }
  0xe9   : > { %v693_v47 = vadd.f32 %v1718_v45, %v1912_v34  ;;  %v557_v48 = vadd.f32 %v1912_v34, %v556_v46  ;;  %v684_v49 = vpop.f32.mrb[3].mxu1  ;;  %v842_v53 = vmax.f32 %v690_v39, 0.0  ;;  %v808_v54 = vmax.f32 %v554_v40, 0.0 }
  0xea   : > { %v811_v51 = vmax.f32 %v565_v44, 0.0  ;;  %v685_v52 = vadd.f32 %v1912_v34, %v684_v49  ;;  %v840_v57 = vmax.f32 %v682_v43, 0.0 }
  0xeb   : > { %v843_v55 = vmax.f32 %v693_v47, 0.0  ;;  %v809_v56 = vmax.f32 %v557_v48, 0.0 }
  0xec   : > { %v1462_v58 = vpack.c.bf16 %v811_v51, %v810_v50  ;;  %v841_v59 = vmax.f32 %v685_v52, 0.0 }
  0xed   : > { %v1542_v60 = vpack.c.bf16 %v843_v55, %v842_v53  ;;  %v1457_v61 = vpack.c.bf16 %v809_v56, %v808_v54  ;;  %v1689_v62 = vpop.f32.mrb[4].mxu0 }
  0xee   : > { %1614 = vst [vmem:[%s1927_s27 + $0x8] sm:$0xff] %v1462_v58   ;;  %v1537_v63 = vpack.c.bf16 %v841_v59, %v840_v57  ;;  %v578_v0 = vadd.f32 %v1689_v62, %v1912_v34  ;;  %v1721_v1 = vpop.f32.mrb[4].mxu1  ;;  %v569_v2 = vpop.f32.mrb[5].mxu0 }
  0xef   : > { %1630 = vst [vmem:[%s1927_s27 + $0x88] sm:$0xff] %v1542_v60   ;;  %1458 = vst [vmem:[%s1927_s27] sm:$0xff] %v1457_v61   ;;  %v706_v3 = vadd.f32 %v1721_v1, %v1912_v34  ;;  %v570_v4 = vadd.f32 %v1912_v34, %v569_v2  ;;  %v697_v5 = vpop.f32.mrb[5].mxu1  ;;  %v1690_v6 = vpop.f32.mrb[6].mxu0 }
  0xf0   : > { %1629 = vst [vmem:[%s1927_s27 + $0x80] sm:$0xff] %v1537_v63   ;;  %v698_v7 = vadd.f32 %v1912_v34, %v697_v5  ;;  %v581_v8 = vadd.f32 %v1690_v6, %v1912_v34  ;;  %v1722_v9 = vpop.f32.mrb[6].mxu1  ;;  %v572_v10 = vpop.f32.mrb[7].mxu0  ;;  %v814_v14 = vmax.f32 %v578_v0, 0.0 }
  0xf1   : > { %v709_v11 = vadd.f32 %v1722_v9, %v1912_v34  ;;  %v573_v12 = vadd.f32 %v1912_v34, %v572_v10  ;;  %v700_v13 = vpop.f32.mrb[7].mxu1  ;;  %v846_v17 = vmax.f32 %v706_v3, 0.0  ;;  %v812_v18 = vmax.f32 %v570_v4, 0.0 }
  0xf2   : > { %v815_v15 = vmax.f32 %v581_v8, 0.0  ;;  %v701_v16 = vadd.f32 %v1912_v34, %v700_v13  ;;  %v844_v21 = vmax.f32 %v698_v7, 0.0 }
  0xf3   : > { %v847_v19 = vmax.f32 %v709_v11, 0.0  ;;  %v813_v20 = vmax.f32 %v573_v12, 0.0 }
  0xf4   : > { %v1472_v22 = vpack.c.bf16 %v815_v15, %v814_v14  ;;  %v845_v23 = vmax.f32 %v701_v16, 0.0 }
  0xf5   : > { %v1552_v24 = vpack.c.bf16 %v847_v19, %v846_v17  ;;  %v1467_v25 = vpack.c.bf16 %v813_v20, %v812_v18  ;;  %v1693_v26 = vpop.f32.mrb[8].mxu0 }
  0xf6   : > { %1616 = vst [vmem:[%s1927_s27 + $0x18] sm:$0xff] %v1472_v22   ;;  %v1547_v27 = vpack.c.bf16 %v845_v23, %v844_v21  ;;  %v594_v28 = vadd.f32 %v1693_v26, %v1912_v34  ;;  %v1725_v29 = vpop.f32.mrb[8].mxu1  ;;  %v585_v30 = vpop.f32.mrb[9].mxu0 }
  0xf7   : > { %1632 = vst [vmem:[%s1927_s27 + $0x98] sm:$0xff] %v1552_v24   ;;  %1615 = vst [vmem:[%s1927_s27 + $0x10] sm:$0xff] %v1467_v25   ;;  %v722_v31 = vadd.f32 %v1725_v29, %v1912_v34  ;;  %v586_v32 = vadd.f32 %v1912_v34, %v585_v30  ;;  %v713_v33 = vpop.f32.mrb[9].mxu1  ;;  %v1694_v35 = vpop.f32.mrb[10].mxu0 }
  0xf8   : > { %1631 = vst [vmem:[%s1927_s27 + $0x90] sm:$0xff] %v1547_v27   ;;  %v714_v36 = vadd.f32 %v1912_v34, %v713_v33  ;;  %v597_v37 = vadd.f32 %v1694_v35, %v1912_v34  ;;  %v1726_v38 = vpop.f32.mrb[10].mxu1  ;;  %v588_v39 = vpop.f32.mrb[11].mxu0  ;;  %v818_v43 = vmax.f32 %v594_v28, 0.0 }
  0xf9   : > { %v725_v40 = vadd.f32 %v1726_v38, %v1912_v34  ;;  %v589_v41 = vadd.f32 %v1912_v34, %v588_v39  ;;  %v716_v42 = vpop.f32.mrb[11].mxu1  ;;  %v850_v46 = vmax.f32 %v722_v31, 0.0  ;;  %v816_v47 = vmax.f32 %v586_v32, 0.0 }
  0xfa   : > { %v819_v44 = vmax.f32 %v597_v37, 0.0  ;;  %v717_v45 = vadd.f32 %v1912_v34, %v716_v42  ;;  %v848_v50 = vmax.f32 %v714_v36, 0.0 }
  0xfb   : > { %v851_v48 = vmax.f32 %v725_v40, 0.0  ;;  %v817_v49 = vmax.f32 %v589_v41, 0.0 }
  0xfc   : > { %v1482_v51 = vpack.c.bf16 %v819_v44, %v818_v43  ;;  %v849_v52 = vmax.f32 %v717_v45, 0.0 }
  0xfd   : > { %v1562_v53 = vpack.c.bf16 %v851_v48, %v850_v46  ;;  %v1477_v54 = vpack.c.bf16 %v817_v49, %v816_v47  ;;  %v1697_v55 = vpop.f32.mrb[12].mxu0 }
  0xfe   : > { %1618 = vst [vmem:[%s1927_s27 + $0x28] sm:$0xff] %v1482_v51   ;;  %v1557_v56 = vpack.c.bf16 %v849_v52, %v848_v50  ;;  %v610_v57 = vadd.f32 %v1697_v55, %v1912_v34  ;;  %v1729_v58 = vpop.f32.mrb[12].mxu1  ;;  %v601_v59 = vpop.f32.mrb[13].mxu0 }
  0xff   : > { %1634 = vst [vmem:[%s1927_s27 + $0xa8] sm:$0xff] %v1562_v53   ;;  %1617 = vst [vmem:[%s1927_s27 + $0x20] sm:$0xff] %v1477_v54   ;;  %v738_v60 = vadd.f32 %v1729_v58, %v1912_v34  ;;  %v602_v61 = vadd.f32 %v1912_v34, %v601_v59  ;;  %v729_v62 = vpop.f32.mrb[13].mxu1  ;;  %v1698_v63 = vpop.f32.mrb[14].mxu0 }
 0x100   : > { %1633 = vst [vmem:[%s1927_s27 + $0xa0] sm:$0xff] %v1557_v56   ;;  %v730_v0 = vadd.f32 %v1912_v34, %v729_v62  ;;  %v613_v1 = vadd.f32 %v1698_v63, %v1912_v34  ;;  %v1730_v2 = vpop.f32.mrb[14].mxu1  ;;  %v604_v3 = vpop.f32.mrb[15].mxu0  ;;  %v822_v7 = vmax.f32 %v610_v57, 0.0 }
 0x101   : > { %v741_v4 = vadd.f32 %v1730_v2, %v1912_v34  ;;  %v605_v5 = vadd.f32 %v1912_v34, %v604_v3  ;;  %v732_v6 = vpop.f32.mrb[15].mxu1  ;;  %v854_v10 = vmax.f32 %v738_v60, 0.0  ;;  %v820_v11 = vmax.f32 %v602_v61, 0.0 }
 0x102   : > { %v823_v8 = vmax.f32 %v613_v1, 0.0  ;;  %v733_v9 = vadd.f32 %v1912_v34, %v732_v6  ;;  %v852_v14 = vmax.f32 %v730_v0, 0.0 }
 0x103   : > { %v855_v12 = vmax.f32 %v741_v4, 0.0  ;;  %v821_v13 = vmax.f32 %v605_v5, 0.0 }
 0x104   : > { %v1492_v15 = vpack.c.bf16 %v823_v8, %v822_v7  ;;  %v853_v16 = vmax.f32 %v733_v9, 0.0 }
 0x105   : > { %v1572_v17 = vpack.c.bf16 %v855_v12, %v854_v10  ;;  %v1487_v18 = vpack.c.bf16 %v821_v13, %v820_v11  ;;  %v1701_v19 = vpop.f32.mrb[16].mxu0 }
 0x106   : > { %1620 = vst [vmem:[%s1927_s27 + $0x38] sm:$0xff] %v1492_v15   ;;  %v1567_v20 = vpack.c.bf16 %v853_v16, %v852_v14  ;;  %v626_v21 = vadd.f32 %v1701_v19, %v1912_v34  ;;  %v1733_v22 = vpop.f32.mrb[16].mxu1  ;;  %v617_v23 = vpop.f32.mrb[17].mxu0 }
 0x107   : > { %1636 = vst [vmem:[%s1927_s27 + $0xb8] sm:$0xff] %v1572_v17   ;;  %1619 = vst [vmem:[%s1927_s27 + $0x30] sm:$0xff] %v1487_v18   ;;  %v754_v24 = vadd.f32 %v1733_v22, %v1912_v34  ;;  %v618_v25 = vadd.f32 %v1912_v34, %v617_v23  ;;  %v745_v26 = vpop.f32.mrb[17].mxu1  ;;  %v1702_v27 = vpop.f32.mrb[18].mxu0 }
 0x108   : > { %1635 = vst [vmem:[%s1927_s27 + $0xb0] sm:$0xff] %v1567_v20   ;;  %v746_v28 = vadd.f32 %v1912_v34, %v745_v26  ;;  %v629_v29 = vadd.f32 %v1702_v27, %v1912_v34  ;;  %v1734_v30 = vpop.f32.mrb[18].mxu1  ;;  %v620_v31 = vpop.f32.mrb[19].mxu0  ;;  %v826_v36 = vmax.f32 %v626_v21, 0.0 }
 0x109   : > { %v757_v32 = vadd.f32 %v1734_v30, %v1912_v34  ;;  %v621_v33 = vadd.f32 %v1912_v34, %v620_v31  ;;  %v748_v35 = vpop.f32.mrb[19].mxu1  ;;  %v858_v39 = vmax.f32 %v754_v24, 0.0  ;;  %v824_v40 = vmax.f32 %v618_v25, 0.0 }
 0x10a   : > { %v827_v37 = vmax.f32 %v629_v29, 0.0  ;;  %v749_v38 = vadd.f32 %v1912_v34, %v748_v35  ;;  %v856_v43 = vmax.f32 %v746_v28, 0.0 }
 0x10b   : > { %v859_v41 = vmax.f32 %v757_v32, 0.0  ;;  %v825_v42 = vmax.f32 %v621_v33, 0.0 }
 0x10c   : > { %v1502_v44 = vpack.c.bf16 %v827_v37, %v826_v36  ;;  %v857_v45 = vmax.f32 %v749_v38, 0.0 }
 0x10d   : > { %v1582_v46 = vpack.c.bf16 %v859_v41, %v858_v39  ;;  %v1497_v47 = vpack.c.bf16 %v825_v42, %v824_v40  ;;  %v1705_v48 = vpop.f32.mrb[20].mxu0 }
 0x10e   : > { %1622 = vst [vmem:[%s1927_s27 + $0x48] sm:$0xff] %v1502_v44   ;;  %v1577_v49 = vpack.c.bf16 %v857_v45, %v856_v43  ;;  %v642_v50 = vadd.f32 %v1705_v48, %v1912_v34  ;;  %v1737_v51 = vpop.f32.mrb[20].mxu1  ;;  %v633_v52 = vpop.f32.mrb[21].mxu0 }
 0x10f   : > { %1638 = vst [vmem:[%s1927_s27 + $0xc8] sm:$0xff] %v1582_v46   ;;  %1621 = vst [vmem:[%s1927_s27 + $0x40] sm:$0xff] %v1497_v47   ;;  %v770_v53 = vadd.f32 %v1737_v51, %v1912_v34  ;;  %v634_v54 = vadd.f32 %v1912_v34, %v633_v52  ;;  %v761_v55 = vpop.f32.mrb[21].mxu1  ;;  %v1706_v56 = vpop.f32.mrb[22].mxu0 }
 0x110   : > { %1637 = vst [vmem:[%s1927_s27 + $0xc0] sm:$0xff] %v1577_v49   ;;  %v762_v57 = vadd.f32 %v1912_v34, %v761_v55  ;;  %v645_v58 = vadd.f32 %v1706_v56, %v1912_v34  ;;  %v1738_v59 = vpop.f32.mrb[22].mxu1  ;;  %v636_v60 = vpop.f32.mrb[23].mxu0  ;;  %v830_v0 = vmax.f32 %v642_v50, 0.0 }
 0x111   : > { %v773_v61 = vadd.f32 %v1738_v59, %v1912_v34  ;;  %v637_v62 = vadd.f32 %v1912_v34, %v636_v60  ;;  %v764_v63 = vpop.f32.mrb[23].mxu1  ;;  %v862_v3 = vmax.f32 %v770_v53, 0.0  ;;  %v828_v4 = vmax.f32 %v634_v54, 0.0 }
 0x112   : > { %v831_v1 = vmax.f32 %v645_v58, 0.0  ;;  %v765_v2 = vadd.f32 %v1912_v34, %v764_v63  ;;  %v860_v7 = vmax.f32 %v762_v57, 0.0 }
 0x113   : > { %v863_v5 = vmax.f32 %v773_v61, 0.0  ;;  %v829_v6 = vmax.f32 %v637_v62, 0.0 }
 0x114   : > { %v1512_v8 = vpack.c.bf16 %v831_v1, %v830_v0  ;;  %v861_v9 = vmax.f32 %v765_v2, 0.0 }
 0x115   : > { %v1592_v10 = vpack.c.bf16 %v863_v5, %v862_v3  ;;  %v1507_v11 = vpack.c.bf16 %v829_v6, %v828_v4  ;;  %v1709_v12 = vpop.f32.mrb[24].mxu0 }
 0x116   : > { %1624 = vst [vmem:[%s1927_s27 + $0x58] sm:$0xff] %v1512_v8   ;;  %v1587_v13 = vpack.c.bf16 %v861_v9, %v860_v7  ;;  %v658_v14 = vadd.f32 %v1709_v12, %v1912_v34  ;;  %v1741_v15 = vpop.f32.mrb[24].mxu1  ;;  %v649_v16 = vpop.f32.mrb[25].mxu0 }
 0x117   : > { %1640 = vst [vmem:[%s1927_s27 + $0xd8] sm:$0xff] %v1592_v10   ;;  %1623 = vst [vmem:[%s1927_s27 + $0x50] sm:$0xff] %v1507_v11   ;;  %v786_v17 = vadd.f32 %v1741_v15, %v1912_v34  ;;  %v650_v18 = vadd.f32 %v1912_v34, %v649_v16  ;;  %v777_v19 = vpop.f32.mrb[25].mxu1  ;;  %v1710_v20 = vpop.f32.mrb[26].mxu0 }
 0x118   : > { %1639 = vst [vmem:[%s1927_s27 + $0xd0] sm:$0xff] %v1587_v13   ;;  %v778_v21 = vadd.f32 %v1912_v34, %v777_v19  ;;  %v661_v22 = vadd.f32 %v1710_v20, %v1912_v34  ;;  %v1742_v23 = vpop.f32.mrb[26].mxu1  ;;  %v652_v24 = vpop.f32.mrb[27].mxu0  ;;  %v834_v28 = vmax.f32 %v658_v14, 0.0 }
 0x119   : > { %v789_v25 = vadd.f32 %v1742_v23, %v1912_v34  ;;  %v653_v26 = vadd.f32 %v1912_v34, %v652_v24  ;;  %v780_v27 = vpop.f32.mrb[27].mxu1  ;;  %v866_v31 = vmax.f32 %v786_v17, 0.0  ;;  %v832_v32 = vmax.f32 %v650_v18, 0.0 }
 0x11a   : > { %v835_v29 = vmax.f32 %v661_v22, 0.0  ;;  %v781_v30 = vadd.f32 %v1912_v34, %v780_v27  ;;  %v864_v36 = vmax.f32 %v778_v21, 0.0 }
 0x11b   : > { %v867_v33 = vmax.f32 %v789_v25, 0.0  ;;  %v833_v35 = vmax.f32 %v653_v26, 0.0 }
 0x11c   : > { %v1522_v37 = vpack.c.bf16 %v835_v29, %v834_v28  ;;  %v865_v38 = vmax.f32 %v781_v30, 0.0 }
 0x11d   : > { %v1602_v39 = vpack.c.bf16 %v867_v33, %v866_v31  ;;  %v1517_v40 = vpack.c.bf16 %v833_v35, %v832_v32  ;;  %v1713_v41 = vpop.f32.mrb[28].mxu0 }
 0x11e   : > { %1626 = vst [vmem:[%s1927_s27 + $0x68] sm:$0xff] %v1522_v37   ;;  %v1597_v42 = vpack.c.bf16 %v865_v38, %v864_v36  ;;  %v674_v43 = vadd.f32 %v1713_v41, %v1912_v34  ;;  %v1745_v44 = vpop.f32.mrb[28].mxu1  ;;  %v665_v45 = vpop.f32.mrb[29].mxu0 }
 0x11f   : > { %1642 = vst [vmem:[%s1927_s27 + $0xe8] sm:$0xff] %v1602_v39   ;;  %1625 = vst [vmem:[%s1927_s27 + $0x60] sm:$0xff] %v1517_v40   ;;  %v802_v46 = vadd.f32 %v1745_v44, %v1912_v34  ;;  %v666_v47 = vadd.f32 %v1912_v34, %v665_v45  ;;  %v793_v48 = vpop.f32.mrb[29].mxu1  ;;  %v1714_v49 = vpop.f32.mrb[30].mxu0 }
 0x120   : > { %1641 = vst [vmem:[%s1927_s27 + $0xe0] sm:$0xff] %v1597_v42   ;;  %v794_v50 = vadd.f32 %v1912_v34, %v793_v48  ;;  %v677_v51 = vadd.f32 %v1714_v49, %v1912_v34  ;;  %v1746_v52 = vpop.f32.mrb[30].mxu1  ;;  %v668_v53 = vpop.f32.mrb[31].mxu0  ;;  %v838_v57 = vmax.f32 %v674_v43, 0.0 }
 0x121   : > { %v805_v54 = vadd.f32 %v1746_v52, %v1912_v34  ;;  %v669_v55 = vadd.f32 %v1912_v34, %v668_v53  ;;  %v796_v56 = vpop.f32.mrb[31].mxu1  ;;  %v870_v60 = vmax.f32 %v802_v46, 0.0  ;;  %v836_v61 = vmax.f32 %v666_v47, 0.0 }
 0x122   : > { %v839_v58 = vmax.f32 %v677_v51, 0.0  ;;  %v797_v59 = vadd.f32 %v1912_v34, %v796_v56  ;;  %v868_v0 = vmax.f32 %v794_v50, 0.0 }
 0x123   : > { %v871_v62 = vmax.f32 %v805_v54, 0.0  ;;  %v837_v63 = vmax.f32 %v669_v55, 0.0 }
 0x124   : > { %v1532_v1 = vpack.c.bf16 %v839_v58, %v838_v57  ;;  %v869_v2 = vmax.f32 %v797_v59, 0.0 }
 0x125   : > { %v1612_v3 = vpack.c.bf16 %v871_v62, %v870_v60  ;;  %v1527_v4 = vpack.c.bf16 %v837_v63, %v836_v61 }
 0x126   : > { %1628 = vst [vmem:[%s1927_s27 + $0x78] sm:$0xff] %v1532_v1   ;;  %v1607_v5 = vpack.c.bf16 %v869_v2, %v868_v0 }
 0x127   : > { %1644 = vst [vmem:[%s1927_s27 + $0xf8] sm:$0xff] %v1612_v3   ;;  %1627 = vst [vmem:[%s1927_s27 + $0x70] sm:$0xff] %v1527_v4  }
 0x128   : > { %1643 = vst [vmem:[%s1927_s27 + $0xf0] sm:$0xff] %v1607_v5  }
 0x129 PF: > { %s13_s12 = sadd.s32 1, %s1799_s12  }
 0x12a   : > { %p10_p4 = scmp.ge.s32.totalorder %s13_s12, 6  }
 0x12c   :  { %12 = sbr.rel (!%p10_p4) target bundleno = 1 (0x1), region = 62 }

// kernel: stdcnet_forward.33
= control target key start
LH: loop header
LB: loop body
LE: loop exit
PB: predicated region body
PF: predicated region fallthrough
CT: control target
= control target key end

     0   :  { %s1130_s12 = smov 0   ;;  %s1258_s0 = inlined_call_operand.vmem [shape: bf16[512,80], index: 0, kind: input, shape index: {}]   ;;  %s1259_s1 = inlined_call_operand.vmem [shape: bf16[80,128], index: 1, kind: input, shape index: {}]   ;;  %s1260_s2 = inlined_call_operand.vmem [shape: f32[1,128], index: 2, kind: input, shape index: {}]   ;;  %s1261_s3 = inlined_call_operand.vmem [shape: bf16[512,128], index: 3, kind: output, shape index: {}]  }
   0x1 LB: > { %s792_s13 = sadd.s32 4294967295, %s1108_s12   ;;  %p796_p0 = scmp.ge.s32.totalorder %s1108_s12, 1  ;;  %s1108_s12 = sphi %s1130_s12, %s13_s12  }
   0x2   : > { %p138_p1 = scmp.lt.s32.totalorder %s1108_s12, 3 }
   0x4   : > { %p139_p2 = pnand %p796_p0, %p138_p1 }
   0x5   : > { %v1081_v0 = vld [vmem:[%s1259_s1] sm:$0xff] (!%p139_p2)   ;;  %s797_s16 = sshll.u32 (!%p139_p2), %s792_s13, 5  ;;  %v1082_v1 = vld [vmem:[%s1259_s1 + $0x8] sm:$0xff] (!%p139_p2)   ;;  %v1083_v2 = vld [vmem:[%s1259_s1 + $0x10] sm:$0xff] (!%p139_p2)   ;;  %vm334_vm0 = vcmask (!%p139_p2), 654336  }
   0x6   : > { %142 = sbr.rel (%p139_p2) target bundleno = 272 (0x110), region = 32  ;;  %p163_p3 = scmp.lt.s32.totalorder (!%p139_p2), %s797_s16, 63  ;;  %1021 = vmatprep.subr.bf16.mxu0 (!%p139_p2), %v1081_v0  ;;  %1063 = vmatprep.subr.bf16.mxu1 (!%p139_p2), %v1081_v0  ;;  %v1084_v3 = vld [vmem:[%s1259_s1 + $0x18] sm:$0xff] (!%p139_p2)   ;;  %v1085_v6 = vld [vmem:[%s1259_s1 + $0x20] sm:$0xff] (!%p139_p2)  }
   0x7   : > { %1022 = vmatpush3.bf16.msra.mxu0 (!%p139_p2), %v1081_v0  ;;  %1068 = vmatpush3.bf16.msra.mxu1 (!%p139_p2), %v1081_v0  ;;  %v1198_v21 = vld [vmem:[%s1260_s2] ss:$0 sm:$0xff] (!%p139_p2) }
   0x8   : > { %1023 = vmatprep.subr.bf16.mxu0 (!%p139_p2), %v1082_v1  ;;  %1064 = vmatprep.subr.bf16.mxu1 (!%p139_p2), %v1082_v1 }
   0xb   : > { %1024 = vmatpush3.bf16.msra.mxu0 (!%p139_p2), %v1082_v1  ;;  %1069 = vmatpush3.bf16.msra.mxu1 (!%p139_p2), %v1082_v1 }
   0xc   : > { %1025 = vmatprep.subr.bf16.mxu0 (!%p139_p2), %v1083_v2  ;;  %1065 = vmatprep.subr.bf16.mxu1 (!%p139_p2), %v1083_v2 }
   0xd   : > { %s1263_s16 = smov (!%p163_p3, %s797_s16), 63 }
   0xe   : > { %s798_s21 = sshll.u32 %s1263_s16, 2 }
   0xf   : > { %s1158_s26 = scalar_lea.vmem %s1258_s0, %s798_s21  ;;  %1026 = vmatpush3.bf16.msra.mxu0 %v1083_v2  ;;  %1070 = vmatpush3.bf16.msra.mxu1 %v1083_v2  ;;  %s1213_s6 = scalar_lea.vmem %s1261_s3, %s798_s21 }
  0x10   : > { %v1086_v4 = vld [vmem:[%s1158_s26] sm:$0xff]   ;;  %1027 = vmatprep.subr.bf16.mxu0 %v1084_v3  ;;  %1066 = vmatprep.subr.bf16.mxu1 %v1084_v3  ;;  %v1088_v7 = vld [vmem:[%s1158_s26 + $0x8] sm:$0xff]   ;;  %v1090_v9 = vld [vmem:[%s1158_s26 + $0x10] sm:$0xff]  }
  0x11   : > { %v1087_v5 = vld [vmem:[%s1158_s26 + $0x40] sm:$0xff]   ;;  %1031 = vmatprep.mubr.msk.bf16.mxu0 %vm334_vm0, %v1086_v4  ;;  %v1089_v8 = vld [vmem:[%s1158_s26 + $0x48] sm:$0xff]   ;;  %v1091_v10 = vld [vmem:[%s1158_s26 + $0x50] sm:$0xff]  }
  0x12   : > { %1047 = vmatprep.mubr.msk.bf16.mxu1 %vm334_vm0, %v1087_v5  ;;  %v1092_v11 = vld [vmem:[%s1158_s26 + $0x18] sm:$0xff]   ;;  %v1094_v13 = vld [vmem:[%s1158_s26 + $0x20] sm:$0xff]   ;;  %v1096_v15 = vld [vmem:[%s1158_s26 + $0x28] sm:$0xff]  }
  0x13   : > { %1028 = vmatpush3.bf16.msra.mxu0 %v1084_v3  ;;  %1071 = vmatpush3.bf16.msra.mxu1 %v1084_v3  ;;  %v1093_v12 = vld [vmem:[%s1158_s26 + $0x58] sm:$0xff]   ;;  %v1095_v14 = vld [vmem:[%s1158_s26 + $0x60] sm:$0xff]   ;;  %v1097_v16 = vld [vmem:[%s1158_s26 + $0x68] sm:$0xff]  }
  0x14   : > { %1029 = vmatprep.subr.bf16.mxu0 %v1085_v6  ;;  %1067 = vmatprep.subr.bf16.mxu1 %v1085_v6  ;;  %v1098_v17 = vld [vmem:[%s1158_s26 + $0x30] sm:$0xff]   ;;  %v1100_v19 = vld [vmem:[%s1158_s26 + $0x38] sm:$0xff]  }
  0x15   : > { %v1099_v18 = vld [vmem:[%s1158_s26 + $0x70] sm:$0xff]   ;;  %v1101_v20 = vld [vmem:[%s1158_s26 + $0x78] sm:$0xff]  }
  0x17   : > { %1030 = vmatpush3.bf16.msra.mxu0 %v1085_v6  ;;  %1072 = vmatpush3.bf16.msra.mxu1 %v1085_v6 }
  0x1a   : > { %1032 = vmatmul.mubr.msk.bf16.vlgmr.msra.gmra.mrb[0].mxu0 %vm334_vm0, %v1088_v7  ;;  %1048 = vmatmul.mubr.msk.bf16.vlgmr.msra.gmra.mrb[0].mxu1 %vm334_vm0, %v1089_v8 }
  0x1b   : > { %1035 = vmatprep.mubr.msk.bf16.mxu0 %vm334_vm0, %v1090_v9  ;;  %1051 = vmatprep.mubr.msk.bf16.mxu1 %vm334_vm0, %v1091_v10 }
  0x22   : > { %1036 = vmatmul.mubr.msk.bf16.gmra.mrb[4].mxu0 %vm334_vm0, %v1092_v11  ;;  %1052 = vmatmul.mubr.msk.bf16.gmra.mrb[4].mxu1 %vm334_vm0, %v1093_v12 }
  0x23   : > { %1039 = vmatprep.mubr.msk.bf16.mxu0 %vm334_vm0, %v1094_v13  ;;  %1055 = vmatprep.mubr.msk.bf16.mxu1 %vm334_vm0, %v1095_v14 }
  0x2a   : > { %1040 = vmatmul.mubr.msk.bf16.gmra.mrb[8].mxu0 %vm334_vm0, %v1096_v15  ;;  %1056 = vmatmul.mubr.msk.bf16.gmra.mrb[8].mxu1 %vm334_vm0, %v1097_v16 }
  0x2b   : > { %1043 = vmatprep.mubr.msk.bf16.mxu0 %vm334_vm0, %v1098_v17  ;;  %1059 = vmatprep.mubr.msk.bf16.mxu1 %vm334_vm0, %v1099_v18 }
  0x32   : > { %1044 = vmatmul.mubr.msk.bf16.gmra.mrb[12].mxu0 %vm334_vm0, %v1100_v19  ;;  %1060 = vmatmul.mubr.msk.bf16.gmra.mrb[12].mxu1 %vm334_vm0, %v1101_v20 }
  0xed   : > { %v1033_v22 = vpop.f32.mrb[0].mxu0  ;;  %v1049_v23 = vpop.f32.mrb[0].mxu1 }
  0xee   : > { %v426_v24 = vadd.f32 %v1033_v22, %v1198_v21  ;;  %v490_v25 = vadd.f32 %v1049_v23, %v1198_v21  ;;  %v417_v26 = vpop.f32.mrb[1].mxu0  ;;  %v481_v27 = vpop.f32.mrb[1].mxu1 }
  0xef   : > { %v418_v28 = vadd.f32 %v1198_v21, %v417_v26  ;;  %v482_v29 = vadd.f32 %v1198_v21, %v481_v27  ;;  %v1034_v30 = vpop.f32.mrb[2].mxu0  ;;  %v1050_v31 = vpop.f32.mrb[2].mxu1 }
  0xf0   : > { %v429_v32 = vadd.f32 %v1034_v30, %v1198_v21  ;;  %v493_v33 = vadd.f32 %v1050_v31, %v1198_v21  ;;  %v420_v34 = vpop.f32.mrb[3].mxu0  ;;  %v484_v35 = vpop.f32.mrb[3].mxu1  ;;  %v546_v38 = vmax.f32 %v426_v24, 0.0  ;;  %v562_v39 = vmax.f32 %v490_v25, 0.0 }
  0xf1   : > { %v421_v36 = vadd.f32 %v1198_v21, %v420_v34  ;;  %v485_v37 = vadd.f32 %v1198_v21, %v484_v35  ;;  %v544_v42 = vmax.f32 %v418_v28, 0.0  ;;  %v560_v43 = vmax.f32 %v482_v29, 0.0 }
  0xf2   : > { %v547_v40 = vmax.f32 %v429_v32, 0.0  ;;  %v563_v41 = vmax.f32 %v493_v33, 0.0 }
  0xf3   : > { %v545_v44 = vmax.f32 %v421_v36, 0.0  ;;  %v561_v45 = vmax.f32 %v485_v37, 0.0 }
  0xf4   : > { %v913_v46 = vpack.c.bf16 %v547_v40, %v546_v38  ;;  %v953_v47 = vpack.c.bf16 %v563_v41, %v562_v39 }
  0xf5   : > { %v908_v48 = vpack.c.bf16 %v545_v44, %v544_v42  ;;  %v948_v49 = vpack.c.bf16 %v561_v45, %v560_v43  ;;  %v1037_v50 = vpop.f32.mrb[4].mxu0  ;;  %v1053_v51 = vpop.f32.mrb[4].mxu1 }
  0xf6   : > { %985 = vst [vmem:[%s1213_s6 + $0x8] sm:$0xff] %v913_v46   ;;  %993 = vst [vmem:[%s1213_s6 + $0x48] sm:$0xff] %v953_v47   ;;  %v442_v52 = vadd.f32 %v1037_v50, %v1198_v21  ;;  %v506_v53 = vadd.f32 %v1053_v51, %v1198_v21  ;;  %v433_v54 = vpop.f32.mrb[5].mxu0  ;;  %v497_v55 = vpop.f32.mrb[5].mxu1 }
  0xf7   : > { %909 = vst [vmem:[%s1213_s6] sm:$0xff] %v908_v48   ;;  %992 = vst [vmem:[%s1213_s6 + $0x40] sm:$0xff] %v948_v49   ;;  %v434_v56 = vadd.f32 %v1198_v21, %v433_v54  ;;  %v498_v57 = vadd.f32 %v1198_v21, %v497_v55  ;;  %v1038_v58 = vpop.f32.mrb[6].mxu0  ;;  %v1054_v59 = vpop.f32.mrb[6].mxu1 }
  0xf8   : > { %v445_v60 = vadd.f32 %v1038_v58, %v1198_v21  ;;  %v509_v61 = vadd.f32 %v1054_v59, %v1198_v21  ;;  %v436_v62 = vpop.f32.mrb[7].mxu0  ;;  %v500_v63 = vpop.f32.mrb[7].mxu1  ;;  %v550_v2 = vmax.f32 %v442_v52, 0.0  ;;  %v566_v3 = vmax.f32 %v506_v53, 0.0 }
  0xf9   : > { %v437_v0 = vadd.f32 %v1198_v21, %v436_v62  ;;  %v501_v1 = vadd.f32 %v1198_v21, %v500_v63  ;;  %v548_v6 = vmax.f32 %v434_v56, 0.0  ;;  %v564_v7 = vmax.f32 %v498_v57, 0.0 }
  0xfa   : > { %v551_v4 = vmax.f32 %v445_v60, 0.0  ;;  %v567_v5 = vmax.f32 %v509_v61, 0.0 }
  0xfb   : > { %v549_v8 = vmax.f32 %v437_v0, 0.0  ;;  %v565_v9 = vmax.f32 %v501_v1, 0.0 }
  0xfc   : > { %v923_v10 = vpack.c.bf16 %v551_v4, %v550_v2  ;;  %v963_v11 = vpack.c.bf16 %v567_v5, %v566_v3 }
  0xfd   : > { %v918_v12 = vpack.c.bf16 %v549_v8, %v548_v6  ;;  %v958_v13 = vpack.c.bf16 %v565_v9, %v564_v7  ;;  %v1041_v14 = vpop.f32.mrb[8].mxu0  ;;  %v1057_v15 = vpop.f32.mrb[8].mxu1 }
  0xfe   : > { %987 = vst [vmem:[%s1213_s6 + $0x18] sm:$0xff] %v923_v10   ;;  %995 = vst [vmem:[%s1213_s6 + $0x58] sm:$0xff] %v963_v11   ;;  %v458_v16 = vadd.f32 %v1041_v14, %v1198_v21  ;;  %v522_v17 = vadd.f32 %v1057_v15, %v1198_v21  ;;  %v449_v18 = vpop.f32.mrb[9].mxu0  ;;  %v513_v19 = vpop.f32.mrb[9].mxu1 }
  0xff   : > { %986 = vst [vmem:[%s1213_s6 + $0x10] sm:$0xff] %v918_v12   ;;  %994 = vst [vmem:[%s1213_s6 + $0x50] sm:$0xff] %v958_v13   ;;  %v450_v20 = vadd.f32 %v1198_v21, %v449_v18  ;;  %v514_v22 = vadd.f32 %v1198_v21, %v513_v19  ;;  %v1042_v23 = vpop.f32.mrb[10].mxu0  ;;  %v1058_v24 = vpop.f32.mrb[10].mxu1 }
 0x100   : > { %v461_v25 = vadd.f32 %v1042_v23, %v1198_v21  ;;  %v525_v26 = vadd.f32 %v1058_v24, %v1198_v21  ;;  %v452_v27 = vpop.f32.mrb[11].mxu0  ;;  %v516_v28 = vpop.f32.mrb[11].mxu1  ;;  %v554_v31 = vmax.f32 %v458_v16, 0.0  ;;  %v570_v32 = vmax.f32 %v522_v17, 0.0 }
 0x101   : > { %v453_v29 = vadd.f32 %v1198_v21, %v452_v27  ;;  %v517_v30 = vadd.f32 %v1198_v21, %v516_v28  ;;  %v552_v35 = vmax.f32 %v450_v20, 0.0  ;;  %v568_v36 = vmax.f32 %v514_v22, 0.0 }
 0x102   : > { %v555_v33 = vmax.f32 %v461_v25, 0.0  ;;  %v571_v34 = vmax.f32 %v525_v26, 0.0 }
 0x103   : > { %v553_v37 = vmax.f32 %v453_v29, 0.0  ;;  %v569_v38 = vmax.f32 %v517_v30, 0.0 }
 0x104   : > { %v933_v39 = vpack.c.bf16 %v555_v33, %v554_v31  ;;  %v973_v40 = vpack.c.bf16 %v571_v34, %v570_v32 }
 0x105   : > { %v928_v41 = vpack.c.bf16 %v553_v37, %v552_v35  ;;  %v968_v42 = vpack.c.bf16 %v569_v38, %v568_v36  ;;  %v1045_v43 = vpop.f32.mrb[12].mxu0  ;;  %v1061_v44 = vpop.f32.mrb[12].mxu1 }
 0x106   : > { %989 = vst [vmem:[%s1213_s6 + $0x28] sm:$0xff] %v933_v39   ;;  %997 = vst [vmem:[%s1213_s6 + $0x68] sm:$0xff] %v973_v40   ;;  %v474_v45 = vadd.f32 %v1045_v43, %v1198_v21  ;;  %v538_v46 = vadd.f32 %v1061_v44, %v1198_v21  ;;  %v465_v47 = vpop.f32.mrb[13].mxu0  ;;  %v529_v48 = vpop.f32.mrb[13].mxu1 }
 0x107   : > { %988 = vst [vmem:[%s1213_s6 + $0x20] sm:$0xff] %v928_v41   ;;  %996 = vst [vmem:[%s1213_s6 + $0x60] sm:$0xff] %v968_v42   ;;  %v466_v49 = vadd.f32 %v1198_v21, %v465_v47  ;;  %v530_v50 = vadd.f32 %v1198_v21, %v529_v48  ;;  %v1046_v51 = vpop.f32.mrb[14].mxu0  ;;  %v1062_v52 = vpop.f32.mrb[14].mxu1 }
 0x108   : > { %v477_v53 = vadd.f32 %v1046_v51, %v1198_v21  ;;  %v541_v54 = vadd.f32 %v1062_v52, %v1198_v21  ;;  %v468_v55 = vpop.f32.mrb[15].mxu0  ;;  %v532_v56 = vpop.f32.mrb[15].mxu1  ;;  %v558_v59 = vmax.f32 %v474_v45, 0.0  ;;  %v574_v60 = vmax.f32 %v538_v46, 0.0 }
 0x109   : > { %v469_v57 = vadd.f32 %v1198_v21, %v468_v55  ;;  %v533_v58 = vadd.f32 %v1198_v21, %v532_v56  ;;  %v556_v63 = vmax.f32 %v466_v49, 0.0  ;;  %v572_v0 = vmax.f32 %v530_v50, 0.0 }
 0x10a   : > { %v559_v61 = vmax.f32 %v477_v53, 0.0  ;;  %v575_v62 = vmax.f32 %v541_v54, 0.0 }
 0x10b   : > { %v557_v1 = vmax.f32 %v469_v57, 0.0  ;;  %v573_v2 = vmax.f32 %v533_v58, 0.0 }
 0x10c   : > { %v943_v3 = vpack.c.bf16 %v559_v61, %v558_v59  ;;  %v983_v4 = vpack.c.bf16 %v575_v62, %v574_v60 }
 0x10d   : > { %v938_v5 = vpack.c.bf16 %v557_v1, %v556_v63  ;;  %v978_v6 = vpack.c.bf16 %v573_v2, %v572_v0 }
 0x10e   : > { %991 = vst [vmem:[%s1213_s6 + $0x38] sm:$0xff] %v943_v3   ;;  %999 = vst [vmem:[%s1213_s6 + $0x78] sm:$0xff] %v983_v4  }
 0x10f   : > { %990 = vst [vmem:[%s1213_s6 + $0x30] sm:$0xff] %v938_v5   ;;  %998 = vst [vmem:[%s1213_s6 + $0x70] sm:$0xff] %v978_v6  }
 0x110 PF: > { %s13_s12 = sadd.s32 1, %s1108_s12  }
 0x111   : > { %p10_p4 = scmp.ge.s32.totalorder %s13_s12, 4  }
 0x113   :  { %12 = sbr.rel (!%p10_p4) target bundleno = 1 (0x1), region = 62 }

// kernel: stdcnet_forward.34
= control target key start
LH: loop header
LB: loop body
LE: loop exit
PB: predicated region body
PF: predicated region fallthrough
CT: control target
= control target key end

     0   :  { %s1070_s12 = smov 0   ;;  %s1186_s0 = inlined_call_operand.vmem [shape: bf16[512,16], index: 0, kind: input, shape index: {}]   ;;  %s1187_s1 = inlined_call_operand.vmem [shape: bf16[16,128], index: 1, kind: input, shape index: {}]   ;;  %s1188_s2 = inlined_call_operand.vmem [shape: f32[1,128], index: 2, kind: input, shape index: {}]   ;;  %s1189_s3 = inlined_call_operand.vmem [shape: bf16[512,128], index: 3, kind: output, shape index: {}]  }
   0x1 LB: > { %s760_s13 = sadd.s32 4294967295, %s1048_s12   ;;  %p764_p0 = scmp.ge.s32.totalorder %s1048_s12, 1  ;;  %s1048_s12 = sphi %s1070_s12, %s13_s12  }
   0x2   : > { %p138_p1 = scmp.lt.s32.totalorder %s1048_s12, 3 }
   0x4   : > { %p139_p2 = pnand %p764_p0, %p138_p1 }
   0x5   : > { %v1025_v0 = vld [vmem:[%s1187_s1] sm:$0xff] (!%p139_p2)   ;;  %s765_s16 = sshll.u32 (!%p139_p2), %s760_s13, 5  ;;  %vm302_vm0 = vcmask (!%p139_p2), 130048  }
   0x6   : > { %142 = sbr.rel (%p139_p2) target bundleno = 265 (0x109), region = 32  ;;  %p163_p3 = scmp.lt.s32.totalorder (!%p139_p2), %s765_s16, 63  ;;  %981 = vmatprep.subr.bf16.mxu0 (!%p139_p2), %v1025_v0  ;;  %1015 = vmatprep.subr.bf16.mxu1 (!%p139_p2), %v1025_v0  ;;  %v1126_v17 = vld [vmem:[%s1188_s2] ss:$0 sm:$0xff] (!%p139_p2) }
   0x7   : > { %982 = vmatpush3.bf16.msra.mxu0 (!%p139_p2), %v1025_v0  ;;  %1016 = vmatpush3.bf16.msra.mxu1 (!%p139_p2), %v1025_v0 }
   0xd   : > { %s1191_s16 = smov (!%p163_p3, %s765_s16), 63 }
   0xe   : > { %s766_s17 = sshll.u32 %s1191_s16, 2 }
   0xf   : > { %s1089_s20 = scalar_lea.vmem %s1186_s0, %s766_s17  ;;  %s1141_s25 = scalar_lea.vmem %s1189_s3, %s766_s17 }
  0x10   : > { %v1026_v1 = vld [vmem:[%s1089_s20] sm:$0xff]   ;;  %v1028_v3 = vld [vmem:[%s1089_s20 + $0x8] sm:$0xff]   ;;  %v1030_v5 = vld [vmem:[%s1089_s20 + $0x10] sm:$0xff]  }
  0x11   : > { %v1027_v2 = vld [vmem:[%s1089_s20 + $0x40] sm:$0xff]   ;;  %983 = vmatprep.mubr.msk.bf16.mxu0 %vm302_vm0, %v1026_v1  ;;  %v1029_v4 = vld [vmem:[%s1089_s20 + $0x48] sm:$0xff]   ;;  %v1031_v6 = vld [vmem:[%s1089_s20 + $0x50] sm:$0xff]  }
  0x12   : > { %999 = vmatprep.mubr.msk.bf16.mxu1 %vm302_vm0, %v1027_v2  ;;  %984 = vmatmul.mubr.msk.bf16.vlgmr.msra.gmra.mrb[0].mxu0 %vm302_vm0, %v1028_v3  ;;  %v1032_v7 = vld [vmem:[%s1089_s20 + $0x18] sm:$0xff]   ;;  %v1034_v9 = vld [vmem:[%s1089_s20 + $0x20] sm:$0xff]   ;;  %v1036_v11 = vld [vmem:[%s1089_s20 + $0x28] sm:$0xff]  }
  0x13   : > { %1000 = vmatmul.mubr.msk.bf16.vlgmr.msra.gmra.mrb[0].mxu1 %vm302_vm0, %v1029_v4  ;;  %987 = vmatprep.mubr.msk.bf16.mxu0 %vm302_vm0, %v1030_v5  ;;  %v1033_v8 = vld [vmem:[%s1089_s20 + $0x58] sm:$0xff]   ;;  %v1035_v10 = vld [vmem:[%s1089_s20 + $0x60] sm:$0xff]   ;;  %v1037_v12 = vld [vmem:[%s1089_s20 + $0x68] sm:$0xff]  }
  0x14   : > { %1003 = vmatprep.mubr.msk.bf16.mxu1 %vm302_vm0, %v1031_v6  ;;  %v1038_v13 = vld [vmem:[%s1089_s20 + $0x30] sm:$0xff]   ;;  %v1040_v15 = vld [vmem:[%s1089_s20 + $0x38] sm:$0xff]  }
  0x15   : > { %v1039_v14 = vld [vmem:[%s1089_s20 + $0x70] sm:$0xff]   ;;  %v1041_v16 = vld [vmem:[%s1089_s20 + $0x78] sm:$0xff]  }
  0x1a   : > { %988 = vmatmul.mubr.msk.bf16.gmra.mrb[4].mxu0 %vm302_vm0, %v1032_v7 }
  0x1b   : > { %1004 = vmatmul.mubr.msk.bf16.gmra.mrb[4].mxu1 %vm302_vm0, %v1033_v8  ;;  %991 = vmatprep.mubr.msk.bf16.mxu0 %vm302_vm0, %v1034_v9 }
  0x1c   : > { %1007 = vmatprep.mubr.msk.bf16.mxu1 %vm302_vm0, %v1035_v10 }
  0x22   : > { %992 = vmatmul.mubr.msk.bf16.gmra.mrb[8].mxu0 %vm302_vm0, %v1036_v11 }
  0x23   : > { %1008 = vmatmul.mubr.msk.bf16.gmra.mrb[8].mxu1 %vm302_vm0, %v1037_v12  ;;  %995 = vmatprep.mubr.msk.bf16.mxu0 %vm302_vm0, %v1038_v13 }
  0x24   : > { %1011 = vmatprep.mubr.msk.bf16.mxu1 %vm302_vm0, %v1039_v14 }
  0x2a   : > { %996 = vmatmul.mubr.msk.bf16.gmra.mrb[12].mxu0 %vm302_vm0, %v1040_v15 }
  0x2b   : > { %1012 = vmatmul.mubr.msk.bf16.gmra.mrb[12].mxu1 %vm302_vm0, %v1041_v16 }
  0xe5   : > { %v985_v18 = vpop.f32.mrb[0].mxu0 }
  0xe6   : > { %v394_v19 = vadd.f32 %v985_v18, %v1126_v17  ;;  %v1001_v20 = vpop.f32.mrb[0].mxu1  ;;  %v385_v21 = vpop.f32.mrb[1].mxu0 }
  0xe7   : > { %v458_v22 = vadd.f32 %v1001_v20, %v1126_v17  ;;  %v386_v23 = vadd.f32 %v1126_v17, %v385_v21  ;;  %v449_v24 = vpop.f32.mrb[1].mxu1  ;;  %v986_v25 = vpop.f32.mrb[2].mxu0 }
  0xe8   : > { %v450_v26 = vadd.f32 %v1126_v17, %v449_v24  ;;  %v397_v27 = vadd.f32 %v986_v25, %v1126_v17  ;;  %v1002_v28 = vpop.f32.mrb[2].mxu1  ;;  %v388_v29 = vpop.f32.mrb[3].mxu0  ;;  %v514_v33 = vmax.f32 %v394_v19, 0.0 }
  0xe9   : > { %v461_v30 = vadd.f32 %v1002_v28, %v1126_v17  ;;  %v389_v31 = vadd.f32 %v1126_v17, %v388_v29  ;;  %v452_v32 = vpop.f32.mrb[3].mxu1  ;;  %v530_v36 = vmax.f32 %v458_v22, 0.0  ;;  %v512_v37 = vmax.f32 %v386_v23, 0.0 }
  0xea   : > { %v515_v34 = vmax.f32 %v397_v27, 0.0  ;;  %v453_v35 = vadd.f32 %v1126_v17, %v452_v32  ;;  %v528_v40 = vmax.f32 %v450_v26, 0.0 }
  0xeb   : > { %v531_v38 = vmax.f32 %v461_v30, 0.0  ;;  %v513_v39 = vmax.f32 %v389_v31, 0.0 }
  0xec   : > { %v877_v41 = vpack.c.bf16 %v515_v34, %v514_v33  ;;  %v529_v42 = vmax.f32 %v453_v35, 0.0 }
  0xed   : > { %v917_v43 = vpack.c.bf16 %v531_v38, %v530_v36  ;;  %v872_v44 = vpack.c.bf16 %v513_v39, %v512_v37  ;;  %v989_v45 = vpop.f32.mrb[4].mxu0 }
  0xee   : > { %949 = vst [vmem:[%s1141_s25 + $0x8] sm:$0xff] %v877_v41   ;;  %v912_v46 = vpack.c.bf16 %v529_v42, %v528_v40  ;;  %v410_v47 = vadd.f32 %v989_v45, %v1126_v17  ;;  %v1005_v48 = vpop.f32.mrb[4].mxu1  ;;  %v401_v49 = vpop.f32.mrb[5].mxu0 }
  0xef   : > { %957 = vst [vmem:[%s1141_s25 + $0x48] sm:$0xff] %v917_v43   ;;  %873 = vst [vmem:[%s1141_s25] sm:$0xff] %v872_v44   ;;  %v474_v50 = vadd.f32 %v1005_v48, %v1126_v17  ;;  %v402_v51 = vadd.f32 %v1126_v17, %v401_v49  ;;  %v465_v52 = vpop.f32.mrb[5].mxu1  ;;  %v990_v53 = vpop.f32.mrb[6].mxu0 }
  0xf0   : > { %956 = vst [vmem:[%s1141_s25 + $0x40] sm:$0xff] %v912_v46   ;;  %v466_v54 = vadd.f32 %v1126_v17, %v465_v52  ;;  %v413_v55 = vadd.f32 %v990_v53, %v1126_v17  ;;  %v1006_v56 = vpop.f32.mrb[6].mxu1  ;;  %v404_v57 = vpop.f32.mrb[7].mxu0  ;;  %v518_v61 = vmax.f32 %v410_v47, 0.0 }
  0xf1   : > { %v477_v58 = vadd.f32 %v1006_v56, %v1126_v17  ;;  %v405_v59 = vadd.f32 %v1126_v17, %v404_v57  ;;  %v468_v60 = vpop.f32.mrb[7].mxu1  ;;  %v534_v0 = vmax.f32 %v474_v50, 0.0  ;;  %v516_v1 = vmax.f32 %v402_v51, 0.0 }
  0xf2   : > { %v519_v62 = vmax.f32 %v413_v55, 0.0  ;;  %v469_v63 = vadd.f32 %v1126_v17, %v468_v60  ;;  %v532_v4 = vmax.f32 %v466_v54, 0.0 }
  0xf3   : > { %v535_v2 = vmax.f32 %v477_v58, 0.0  ;;  %v517_v3 = vmax.f32 %v405_v59, 0.0 }
  0xf4   : > { %v887_v5 = vpack.c.bf16 %v519_v62, %v518_v61  ;;  %v533_v6 = vmax.f32 %v469_v63, 0.0 }
  0xf5   : > { %v927_v7 = vpack.c.bf16 %v535_v2, %v534_v0  ;;  %v882_v8 = vpack.c.bf16 %v517_v3, %v516_v1  ;;  %v993_v9 = vpop.f32.mrb[8].mxu0 }
  0xf6   : > { %951 = vst [vmem:[%s1141_s25 + $0x18] sm:$0xff] %v887_v5   ;;  %v922_v10 = vpack.c.bf16 %v533_v6, %v532_v4  ;;  %v426_v11 = vadd.f32 %v993_v9, %v1126_v17  ;;  %v1009_v12 = vpop.f32.mrb[8].mxu1  ;;  %v417_v13 = vpop.f32.mrb[9].mxu0 }
  0xf7   : > { %959 = vst [vmem:[%s1141_s25 + $0x58] sm:$0xff] %v927_v7   ;;  %950 = vst [vmem:[%s1141_s25 + $0x10] sm:$0xff] %v882_v8   ;;  %v490_v14 = vadd.f32 %v1009_v12, %v1126_v17  ;;  %v418_v15 = vadd.f32 %v1126_v17, %v417_v13  ;;  %v481_v16 = vpop.f32.mrb[9].mxu1  ;;  %v994_v18 = vpop.f32.mrb[10].mxu0 }
  0xf8   : > { %958 = vst [vmem:[%s1141_s25 + $0x50] sm:$0xff] %v922_v10   ;;  %v482_v19 = vadd.f32 %v1126_v17, %v481_v16  ;;  %v429_v20 = vadd.f32 %v994_v18, %v1126_v17  ;;  %v1010_v21 = vpop.f32.mrb[10].mxu1  ;;  %v420_v22 = vpop.f32.mrb[11].mxu0  ;;  %v522_v26 = vmax.f32 %v426_v11, 0.0 }
  0xf9   : > { %v493_v23 = vadd.f32 %v1010_v21, %v1126_v17  ;;  %v421_v24 = vadd.f32 %v1126_v17, %v420_v22  ;;  %v484_v25 = vpop.f32.mrb[11].mxu1  ;;  %v538_v29 = vmax.f32 %v490_v14, 0.0  ;;  %v520_v30 = vmax.f32 %v418_v15, 0.0 }
  0xfa   : > { %v523_v27 = vmax.f32 %v429_v20, 0.0  ;;  %v485_v28 = vadd.f32 %v1126_v17, %v484_v25  ;;  %v536_v33 = vmax.f32 %v482_v19, 0.0 }
  0xfb   : > { %v539_v31 = vmax.f32 %v493_v23, 0.0  ;;  %v521_v32 = vmax.f32 %v421_v24, 0.0 }
  0xfc   : > { %v897_v34 = vpack.c.bf16 %v523_v27, %v522_v26  ;;  %v537_v35 = vmax.f32 %v485_v28, 0.0 }
  0xfd   : > { %v937_v36 = vpack.c.bf16 %v539_v31, %v538_v29  ;;  %v892_v37 = vpack.c.bf16 %v521_v32, %v520_v30  ;;  %v997_v38 = vpop.f32.mrb[12].mxu0 }
  0xfe   : > { %953 = vst [vmem:[%s1141_s25 + $0x28] sm:$0xff] %v897_v34   ;;  %v932_v39 = vpack.c.bf16 %v537_v35, %v536_v33  ;;  %v442_v40 = vadd.f32 %v997_v38, %v1126_v17  ;;  %v1013_v41 = vpop.f32.mrb[12].mxu1  ;;  %v433_v42 = vpop.f32.mrb[13].mxu0 }
  0xff   : > { %961 = vst [vmem:[%s1141_s25 + $0x68] sm:$0xff] %v937_v36   ;;  %952 = vst [vmem:[%s1141_s25 + $0x20] sm:$0xff] %v892_v37   ;;  %v506_v43 = vadd.f32 %v1013_v41, %v1126_v17  ;;  %v434_v44 = vadd.f32 %v1126_v17, %v433_v42  ;;  %v497_v45 = vpop.f32.mrb[13].mxu1  ;;  %v998_v46 = vpop.f32.mrb[14].mxu0 }
 0x100   : > { %960 = vst [vmem:[%s1141_s25 + $0x60] sm:$0xff] %v932_v39   ;;  %v498_v47 = vadd.f32 %v1126_v17, %v497_v45  ;;  %v445_v48 = vadd.f32 %v998_v46, %v1126_v17  ;;  %v1014_v49 = vpop.f32.mrb[14].mxu1  ;;  %v436_v50 = vpop.f32.mrb[15].mxu0  ;;  %v526_v54 = vmax.f32 %v442_v40, 0.0 }
 0x101   : > { %v509_v51 = vadd.f32 %v1014_v49, %v1126_v17  ;;  %v437_v52 = vadd.f32 %v1126_v17, %v436_v50  ;;  %v500_v53 = vpop.f32.mrb[15].mxu1  ;;  %v542_v57 = vmax.f32 %v506_v43, 0.0  ;;  %v524_v58 = vmax.f32 %v434_v44, 0.0 }
 0x102   : > { %v527_v55 = vmax.f32 %v445_v48, 0.0  ;;  %v501_v56 = vadd.f32 %v1126_v17, %v500_v53  ;;  %v540_v61 = vmax.f32 %v498_v47, 0.0 }
 0x103   : > { %v543_v59 = vmax.f32 %v509_v51, 0.0  ;;  %v525_v60 = vmax.f32 %v437_v52, 0.0 }
 0x104   : > { %v907_v62 = vpack.c.bf16 %v527_v55, %v526_v54  ;;  %v541_v63 = vmax.f32 %v501_v56, 0.0 }
 0x105   : > { %v947_v0 = vpack.c.bf16 %v543_v59, %v542_v57  ;;  %v902_v1 = vpack.c.bf16 %v525_v60, %v524_v58 }
 0x106   : > { %955 = vst [vmem:[%s1141_s25 + $0x38] sm:$0xff] %v907_v62   ;;  %v942_v2 = vpack.c.bf16 %v541_v63, %v540_v61 }
 0x107   : > { %963 = vst [vmem:[%s1141_s25 + $0x78] sm:$0xff] %v947_v0   ;;  %954 = vst [vmem:[%s1141_s25 + $0x30] sm:$0xff] %v902_v1  }
 0x108   : > { %962 = vst [vmem:[%s1141_s25 + $0x70] sm:$0xff] %v942_v2  }
 0x109 PF: > { %s13_s12 = sadd.s32 1, %s1048_s12  }
 0x10a   : > { %p10_p4 = scmp.ge.s32.totalorder %s13_s12, 4  }
 0x10c   :  { %12 = sbr.rel (!%p10_p4) target bundleno = 1 (0x1), region = 62 }

// kernel: stdcnet_forward.35
= control target key start
LH: loop header
LB: loop body
LE: loop exit
PB: predicated region body
PF: predicated region fallthrough
CT: control target
= control target key end

     0   :  { %s838_s12 = smov 0   ;;  %s1114_s0 = inlined_call_operand.vmem [shape: bf16[2,4,9,9,32], index: 0, kind: input, shape index: {}]   ;;  %s1115_s1 = inlined_call_operand.vmem [shape: f32[9,1,1,32], index: 1, kind: input, shape index: {}]   ;;  %s1116_s2 = inlined_call_operand.vmem [shape: f32[1,1,32], index: 2, kind: input, shape index: {}]   ;;  %s1117_s3 = inlined_call_operand.vmem [shape: bf16[2,8,8,32], index: 3, kind: output, shape index: {}]  }
   0x1 LB: > { %s739_s13 = sadd.s32 4294967295, %s816_s12   ;;  %p743_p0 = scmp.ge.s32.totalorder %s816_s12, 1  ;;  %s816_s12 = sphi %s838_s12, %s13_s12  }
   0x2   : > { %p137_p1 = scmp.lt.s32.totalorder %s816_s12, 3 }
   0x4   : > { %p138_p2 = pnand %p743_p0, %p137_p1 }
   0x5   : > { %p161_p3 = scmp.lt.s32.totalorder (!%p138_p2), %s739_s13, 1  ;;  %v857_v0 = vld [vmem:[%s1115_s1] ss:$0 sm:$0xff] (!%p138_p2)  ;;  %v862_v1 = vld [vmem:[%s1115_s1 + $0x2] ss:$0 sm:$0xff] (!%p138_p2)  ;;  %vm302_vm0 = vcmask (!%p138_p2), 1046528  }
   0x6   : > { %141 = sbr.rel (%p138_p2) target bundleno = 104 (0x68), region = 32  ;;  %v871_v8 = vld [vmem:[%s1115_s1 + $0x1] ss:$0 sm:$0xff] (!%p138_p2)  ;;  %v878_v16 = vld [vmem:[%s1115_s1 + $0x3] ss:$0 sm:$0xff] (!%p138_p2)  ;;  %vm675_vm1 = vcmask (!%p138_p2), 257024  }
   0x7   : > { %v887_v22 = vld [vmem:[%s1115_s1 + $0x4] ss:$0 sm:$0xff] (!%p138_p2)  ;;  %v892_v23 = vld [vmem:[%s1115_s1 + $0x5] ss:$0 sm:$0xff] (!%p138_p2)  ;;  %v900_v27 = vld [vmem:[%s1115_s1 + $0x6] ss:$0 sm:$0xff] (!%p138_p2) }
   0x8   : > { %v906_v32 = vld [vmem:[%s1115_s1 + $0x8] ss:$0 sm:$0xff] (!%p138_p2)  ;;  %v922_v48 = vld [vmem:[%s1115_s1 + $0x7] ss:$0 sm:$0xff] (!%p138_p2) }
   0xd   : > { %s1119_s13 = smov (!%p161_p3, %s739_s13), 1 }
   0xe   : > { %s801_s14 = smul.u32 288, %s1119_s13  ;;  %s800_s11 = sshll.u32 %s1119_s13, 5 }
   0xf   : > { %s970_s15 = scalar_lea.vmem %s1117_s3, %s800_s11 }
  0x10   : > { %s852_s17 = scalar_lea.vmem %s1114_s0, %s801_s14 }
  0x11   : > { %v171_v2 = vld [vmem:[%s852_s17] ss:$8 sps:$4 sm:$0xff]   ;;  %v172_v3 = vld [vmem:[%s852_s17 + $0x4] sm:$0x1]  ;;  %v174_v4 = vld [vmem:[%s852_s17 + $0xc] sm:$0x1] }
  0x12   : > { %v189_v5 = vunpack.c.l.bf16 %v171_v2  ;;  %v190_v6 = vunpack.c.h.bf16 %v171_v2  ;;  %v748_v7 = vld [vmem:[%s852_s17 + $0x48] ss:$8 sps:$4 sm:$0xff]   ;;  %v254_v9 = vunpack.c.l.bf16 %v172_v3  ;;  %v255_v10 = vunpack.c.l.bf16 %v174_v4  ;;  %v762_v14 = vld [vmem:[%s852_s17 + $0x94] sm:$0x1]  ;;  %v763_v52 = vld [vmem:[%s852_s17 + $0x98] ss:$72 sps:$4 sm:$0xff]  }
  0x13   : > { %v761_v11 = vld [vmem:[%s852_s17 + $0x90] ss:$72 sps:$4 sm:$0xff]   ;;  %v222_v12 = vunpack.c.l.bf16 %v748_v7  ;;  %v223_v13 = vunpack.c.h.bf16 %v748_v7  ;;  %v433_v31 = vunpack.c.l.bf16 %v762_v14  ;;  %v176_v38 = vld [vmem:[%s852_s17 + $0x14] sm:$0x1]  ;;  %v764_v57 = vld [vmem:[%s852_s17 + $0x9c] sm:$0x1]  ;;  %v361_v3 = vunpack.c.l.bf16 %v763_v52 }
  0x14   : > { %v360_v15 = vunpack.c.l.bf16 %v761_v11  ;;  %v401_v17 = vunpack.c.h.bf16 %v761_v11  ;;  %v204_v18 = vmul.f32 %v857_v0, %v189_v5  ;;  %v205_v19 = vmul.f32 %v857_v0, %v190_v6  ;;  %v911_v37 = vld [vmem:[%s852_s17 + $0x10] ss:$72 sps:$4 sm:$0xff]  }
  0x15   : > { %v270_v20 = vmul.f32 %v862_v1, %v189_v5  ;;  %v271_v21 = vmul.f32 %v862_v1, %v254_v9  ;;  %v238_v24 = vmul.f32 %v871_v8, %v222_v12  ;;  %v239_v25 = vmul.f32 %v871_v8, %v223_v13  ;;  %v939_v14 = vld [vmem:[%s852_s17 + $0x18] ss:$72 sps:$4 sm:$0xff]  }
  0x16   : > { %v273_v26 = vmul.f32 %v862_v1, %v255_v10  ;;  %v376_v30 = vmul.f32 %v878_v16, %v360_v15  ;;  %v417_v35 = vmul.f32 %v887_v22, %v401_v17  ;;  %v449_v36 = vmul.f32 %v892_v23, %v360_v15 }
  0x17   : > { %v303_v28 = vrot.slane %v270_v20, 1  ;;  %v304_v29 = vrot.slane %v271_v21, 1  ;;  %v246_v33 = vadd.f32 %v238_v24, %v204_v18  ;;  %v247_v34 = vadd.f32 %v239_v25, %v205_v19  ;;  %v178_v19 = vld [vmem:[%s852_s17 + $0x1c] sm:$0x1] }
  0x18   : > { %v307_v40 = vrot.slane %v273_v26, 1  ;;  %v450_v41 = vmul.f32 %v892_v23, %v433_v31  ;;  %v530_v42 = vmul.f32 %v900_v27, %v190_v6  ;;  %v481_v44 = vrot.slane %v449_v36, 1  ;;  %v765_v36 = vld [vmem:[%s852_s17 + $0xa0] ss:$72 sps:$4 sm:$0xff]  }
  0x19   : > { %v305_v39 = vsel %vm302_vm0, %v303_v28, %v304_v29  ;;  %v580_v45 = vmul.f32 %v906_v32, %v190_v6  ;;  %v581_v46 = vmul.f32 %v906_v32, %v255_v10  ;;  %v191_v49 = vunpack.c.l.bf16 %v911_v37 }
  0x1a   : > { %v335_v43 = vadd.f32 %v305_v39, %v246_v33  ;;  %v482_v47 = vrot.slane %v450_v41, 1  ;;  %v224_v50 = vunpack.c.h.bf16 %v911_v37  ;;  %v256_v51 = vunpack.c.l.bf16 %v176_v38  ;;  %v953_v37 = vld [vmem:[%s1116_s2] ss:$0 sm:$0xff] }
  0x1b   : > { %v612_v54 = vrot.slane %v580_v45, 1  ;;  %v613_v55 = vrot.slane %v581_v46, 1  ;;  %v272_v56 = vmul.f32 %v862_v1, %v190_v6  ;;  %v206_v59 = vmul.f32 %v857_v0, %v191_v49  ;;  %v766_v46 = vld [vmem:[%s852_s17 + $0xa4] sm:$0x1] }
  0x1c   : > { %v384_v53 = vadd.f32 %v376_v30, %v335_v43  ;;  %v483_v58 = vsel %vm302_vm0, %v481_v44, %v482_v47  ;;  %v240_v60 = vmul.f32 %v871_v8, %v224_v50  ;;  %v275_v61 = vmul.f32 %v862_v1, %v256_v51 }
  0x1d   : > { %v555_v63 = vmul.f32 %v922_v48, %v223_v13  ;;  %v306_v2 = vrot.slane %v272_v56, 1  ;;  %v614_v4 = vsel %vm302_vm0, %v612_v54, %v613_v55  ;;  %v402_v6 = vunpack.c.h.bf16 %v763_v52 }
  0x1e   : > { %v425_v62 = vadd.f32 %v417_v35, %v384_v53  ;;  %v248_v5 = vadd.f32 %v240_v60, %v206_v59  ;;  %v434_v7 = vunpack.c.l.bf16 %v764_v57  ;;  %v377_v11 = vmul.f32 %v878_v16, %v361_v3  ;;  %v975_v60 = vld [vmem:[%s852_s17 + $0x20] ss:$72 sps:$4 sm:$0xff]  }
  0x1f   : > { %v308_v10 = vsel %vm302_vm0, %v306_v2, %v307_v40  ;;  %v451_v12 = vmul.f32 %v892_v23, %v361_v3  ;;  %v310_v15 = vrot.slane %v275_v61, 1  ;;  %v418_v17 = vmul.f32 %v887_v22, %v402_v6 }
  0x20   : > { %v513_v9 = vadd.f32 %v483_v58, %v425_v62  ;;  %v336_v13 = vadd.f32 %v308_v10, %v247_v34  ;;  %v452_v18 = vmul.f32 %v892_v23, %v434_v7  ;;  %v531_v24 = vmul.f32 %v900_v27, %v191_v49 }
  0x21   : > { %v484_v21 = vrot.slane %v451_v12, 1  ;;  %v582_v25 = vmul.f32 %v906_v32, %v191_v49  ;;  %v583_v29 = vmul.f32 %v906_v32, %v256_v51  ;;  %v192_v30 = vunpack.c.l.bf16 %v939_v14 }
  0x22   : > { %v538_v20 = vadd.f32 %v530_v42, %v513_v9  ;;  %v385_v26 = vadd.f32 %v377_v11, %v336_v13  ;;  %v485_v28 = vrot.slane %v452_v18, 1  ;;  %v225_v34 = vunpack.c.h.bf16 %v939_v14  ;;  %v180_v9 = vld [vmem:[%s852_s17 + $0x24] sm:$0x1]  ;;  %v767_v18 = vld [vmem:[%s852_s17 + $0xa8] ss:$72 sps:$4 sm:$0xff]  }
  0x23   : > { %v615_v33 = vrot.slane %v582_v25, 1  ;;  %v257_v35 = vunpack.c.l.bf16 %v178_v19  ;;  %v616_v40 = vrot.slane %v583_v29, 1  ;;  %v207_v41 = vmul.f32 %v857_v0, %v192_v30 }
  0x24   : > { %v563_v31 = vadd.f32 %v555_v63, %v538_v20  ;;  %v426_v38 = vadd.f32 %v418_v17, %v385_v26  ;;  %v486_v39 = vsel %vm302_vm0, %v484_v21, %v485_v28  ;;  %v241_v43 = vmul.f32 %v871_v8, %v225_v34 }
  0x25   : > { %v274_v44 = vmul.f32 %v862_v1, %v191_v49  ;;  %v961_v45 = vmul.f32 %v862_v1, %v257_v35  ;;  %v556_v51 = vmul.f32 %v922_v48, %v224_v50  ;;  %v362_v52 = vunpack.c.l.bf16 %v765_v36 }
  0x26   : > { %v644_v42 = vadd.f32 %v614_v4, %v563_v31  ;;  %v514_v47 = vadd.f32 %v486_v39, %v426_v38  ;;  %v403_v53 = vunpack.c.h.bf16 %v765_v36  ;;  %v617_v55 = vsel %vm302_vm0, %v615_v33, %v616_v40  ;;  %v768_v31 = vld [vmem:[%s852_s17 + $0xac] sm:$0x1] }
  0x27   : > { %v249_v56 = vadd.f32 %v241_v43, %v207_v41  ;;  %v309_v57 = vrot.slane %v274_v44, 1  ;;  %v313_v58 = vrot.slane %v961_v45, 1  ;;  %v378_v50 = vmul.f32 %v878_v16, %v362_v52 }
  0x28   : > { %v659_v54 = vadd.f32 %v953_v37, %v644_v42  ;;  %v539_v49 = vadd.f32 %v531_v24, %v514_v47  ;;  %v435_v59 = vunpack.c.l.bf16 %v766_v46  ;;  %v419_v63 = vmul.f32 %v887_v22, %v403_v53 }
  0x29   : > { %v311_v62 = vsel %vm302_vm0, %v309_v57, %v310_v15  ;;  %v453_v2 = vmul.f32 %v892_v23, %v362_v52  ;;  %v532_v7 = vmul.f32 %v900_v27, %v192_v30  ;;  %v584_v11 = vmul.f32 %v906_v32, %v192_v30  ;;  %v1005_v52 = vld [vmem:[%s852_s17 + $0x28] ss:$72 sps:$4 sm:$0xff]  }
  0x2a   : > { %v667_v61 = vpack.c.bf16 %v659_v54, %v659_v54  ;;  %v564_v3 = vadd.f32 %v556_v51, %v539_v49  ;;  %v337_v4 = vadd.f32 %v311_v62, %v248_v5  ;;  %v454_v6 = vmul.f32 %v892_v23, %v435_v59  ;;  %v182_v49 = vld [vmem:[%s852_s17 + $0x2c] sm:$0x1] }
  0x2b   : > { %v487_v10 = vrot.slane %v453_v2, 1  ;;  %v585_v12 = vmul.f32 %v906_v32, %v257_v35  ;;  %v193_v14 = vunpack.c.l.bf16 %v975_v60  ;;  %v226_v5 = vunpack.c.h.bf16 %v975_v60 }
  0x2c   : > { %676 = vst.msk [vmem:[%s970_s15] sm:$0xf] %vm675_vm1, %v667_v61  ;;  %v645_v15 = vadd.f32 %v617_v55, %v564_v3  ;;  %v386_v13 = vadd.f32 %v378_v50, %v337_v4  ;;  %v488_v17 = vrot.slane %v454_v6, 1  ;;  %v618_v19 = vrot.slane %v584_v11, 1 }
  0x2d   : > { %v619_v20 = vrot.slane %v585_v12, 1  ;;  %v208_v21 = vmul.f32 %v857_v0, %v193_v14  ;;  %v258_v24 = vunpack.c.l.bf16 %v180_v9  ;;  %v242_v29 = vmul.f32 %v871_v8, %v226_v5  ;;  %v769_v9 = vld [vmem:[%s852_s17 + $0xb0] ss:$72 sps:$4 sm:$0xff]  }
  0x2e   : > { %v660_v25 = vadd.f32 %v953_v37, %v645_v15  ;;  %v427_v26 = vadd.f32 %v419_v63, %v386_v13  ;;  %v489_v28 = vsel %vm302_vm0, %v487_v10, %v488_v17  ;;  %v557_v33 = vmul.f32 %v922_v48, %v225_v34  ;;  %v770_v15 = vld [vmem:[%s852_s17 + $0xb4] sm:$0x1] }
  0x2f   : > { %v276_v35 = vmul.f32 %v862_v1, %v192_v30  ;;  %v279_v36 = vmul.f32 %v862_v1, %v258_v24  ;;  %v363_v38 = vunpack.c.l.bf16 %v767_v18  ;;  %v620_v41 = vsel %vm302_vm0, %v618_v19, %v619_v20 }
  0x30   : > { %v668_v39 = vpack.c.bf16 %v660_v25, %v660_v25  ;;  %v515_v40 = vadd.f32 %v489_v28, %v427_v26  ;;  %v404_v42 = vunpack.c.h.bf16 %v767_v18  ;;  %v250_v43 = vadd.f32 %v242_v29, %v208_v21 }
  0x31   : > { %v312_v44 = vrot.slane %v276_v35, 1  ;;  %v316_v45 = vrot.slane %v279_v36, 1  ;;  %v436_v46 = vunpack.c.l.bf16 %v768_v31  ;;  %v379_v34 = vmul.f32 %v878_v16, %v363_v38 }
  0x32   : > { %677 = vst.msk [vmem:[%s970_s15 + $0x4] sm:$0xf] %vm675_vm1, %v668_v39  ;;  %v540_v47 = vadd.f32 %v532_v7, %v515_v40  ;;  %v420_v30 = vmul.f32 %v887_v22, %v404_v42  ;;  %v455_v51 = vmul.f32 %v892_v23, %v363_v38  ;;  %v533_v55 = vmul.f32 %v900_v27, %v193_v14  ;;  %v184_v42 = vld [vmem:[%s852_s17 + $0x34] sm:$0x1] }
  0x33   : > { %v314_v53 = vsel %vm302_vm0, %v312_v44, %v313_v58  ;;  %v456_v54 = vmul.f32 %v892_v23, %v436_v46  ;;  %v586_v57 = vmul.f32 %v906_v32, %v193_v14  ;;  %v587_v61 = vmul.f32 %v906_v32, %v258_v24 }
  0x34   : > { %v565_v50 = vadd.f32 %v557_v33, %v540_v47  ;;  %v338_v59 = vadd.f32 %v314_v53, %v249_v56  ;;  %v490_v60 = vrot.slane %v455_v51, 1  ;;  %v194_v2 = vunpack.c.l.bf16 %v1005_v52 }
  0x35   : > { %v491_v62 = vrot.slane %v456_v54, 1  ;;  %v621_v63 = vrot.slane %v586_v57, 1  ;;  %v227_v58 = vunpack.c.h.bf16 %v1005_v52  ;;  %v622_v6 = vrot.slane %v587_v61, 1  ;;  %v771_v57 = vld [vmem:[%s852_s17 + $0xb8] ss:$72 sps:$4 sm:$0xff]  }
  0x36   : > { %v646_v3 = vadd.f32 %v620_v41, %v565_v50  ;;  %v387_v4 = vadd.f32 %v379_v34, %v338_v59  ;;  %v259_v7 = vunpack.c.l.bf16 %v182_v49  ;;  %v209_v11 = vmul.f32 %v857_v0, %v194_v2  ;;  %v772_v61 = vld [vmem:[%s852_s17 + $0xbc] sm:$0x1] }
  0x37   : > { %v492_v10 = vsel %vm302_vm0, %v490_v60, %v491_v62  ;;  %v243_v56 = vmul.f32 %v871_v8, %v227_v58  ;;  %v278_v12 = vmul.f32 %v862_v1, %v193_v14  ;;  %v558_v18 = vmul.f32 %v922_v48, %v226_v5  ;;  %v1029_v5 = vld [vmem:[%s852_s17 + $0x30] ss:$72 sps:$4 sm:$0xff]  }
  0x38   : > { %v661_v13 = vadd.f32 %v953_v37, %v646_v3  ;;  %v428_v17 = vadd.f32 %v420_v30, %v387_v4  ;;  %v281_v19 = vmul.f32 %v862_v1, %v259_v7  ;;  %v623_v20 = vsel %vm302_vm0, %v621_v63, %v622_v6 }
  0x39   : > { %v315_v21 = vrot.slane %v278_v12, 1  ;;  %v364_v24 = vunpack.c.l.bf16 %v769_v9  ;;  %v405_v25 = vunpack.c.h.bf16 %v769_v9  ;;  %v251_v29 = vadd.f32 %v243_v56, %v209_v11 }
  0x3a   : > { %v669_v26 = vpack.c.bf16 %v661_v13, %v661_v13  ;;  %v516_v28 = vadd.f32 %v492_v10, %v428_v17  ;;  %v437_v14 = vunpack.c.l.bf16 %v770_v15  ;;  %v319_v33 = vrot.slane %v281_v19, 1 }
  0x3b   : > { %v317_v31 = vsel %vm302_vm0, %v315_v21, %v316_v45  ;;  %v380_v35 = vmul.f32 %v878_v16, %v364_v24  ;;  %v457_v36 = vmul.f32 %v892_v23, %v364_v24  ;;  %v421_v40 = vmul.f32 %v887_v22, %v405_v25 }
  0x3c   : > { %678 = vst.msk [vmem:[%s970_s15 + $0x8] sm:$0xf] %vm675_vm1, %v669_v26  ;;  %v541_v38 = vadd.f32 %v533_v55, %v516_v28  ;;  %v339_v39 = vadd.f32 %v317_v31, %v250_v43  ;;  %v458_v41 = vmul.f32 %v892_v23, %v437_v14  ;;  %v534_v45 = vmul.f32 %v900_v27, %v194_v2  ;;  %v186_v31 = vld [vmem:[%s852_s17 + $0x3c] sm:$0x1] }
  0x3d   : > { %v493_v44 = vrot.slane %v457_v36, 1  ;;  %v588_v46 = vmul.f32 %v906_v32, %v194_v2  ;;  %v589_v47 = vmul.f32 %v906_v32, %v259_v7  ;;  %v195_v52 = vunpack.c.l.bf16 %v1029_v5 }
  0x3e   : > { %v566_v34 = vadd.f32 %v558_v18, %v541_v38  ;;  %v388_v30 = vadd.f32 %v380_v35, %v339_v39  ;;  %v494_v51 = vrot.slane %v458_v41, 1  ;;  %v228_v54 = vunpack.c.h.bf16 %v1029_v5 }
  0x3f   : > { %v624_v43 = vrot.slane %v588_v46, 1  ;;  %v625_v53 = vrot.slane %v589_v47, 1  ;;  %v260_v55 = vunpack.c.l.bf16 %v184_v42  ;;  %v210_v60 = vmul.f32 %v857_v0, %v195_v52  ;;  %v773_v42 = vld [vmem:[%s852_s17 + $0xc0] ss:$72 sps:$4 sm:$0xff]  }
  0x40   : > { %v647_v49 = vadd.f32 %v623_v20, %v566_v34  ;;  %v429_v50 = vadd.f32 %v421_v40, %v388_v30  ;;  %v495_v59 = vsel %vm302_vm0, %v493_v44, %v494_v51  ;;  %v559_v62 = vmul.f32 %v922_v48, %v227_v58 }
  0x41   : > { %v244_v63 = vmul.f32 %v871_v8, %v228_v54  ;;  %v280_v3 = vmul.f32 %v862_v1, %v194_v2  ;;  %v283_v4 = vmul.f32 %v862_v1, %v260_v55  ;;  %v365_v9 = vunpack.c.l.bf16 %v771_v57  ;;  %v185_v2 = vld [vmem:[%s852_s17 + $0x38] ss:$72 sps:$4 sm:$0xff]  }
  0x42   : > { %v662_v6 = vadd.f32 %v953_v37, %v647_v49  ;;  %v517_v7 = vadd.f32 %v495_v59, %v429_v50  ;;  %v406_v10 = vunpack.c.h.bf16 %v771_v57  ;;  %v626_v11 = vsel %vm302_vm0, %v624_v43, %v625_v53  ;;  %v774_v43 = vld [vmem:[%s852_s17 + $0xc4] sm:$0x1] }
  0x43   : > { %v252_v56 = vadd.f32 %v244_v63, %v210_v60  ;;  %v318_v12 = vrot.slane %v280_v3, 1  ;;  %v438_v15 = vunpack.c.l.bf16 %v772_v61  ;;  %v322_v17 = vrot.slane %v283_v4, 1 }
  0x44   : > { %v670_v58 = vpack.c.bf16 %v662_v6, %v662_v6  ;;  %v542_v13 = vadd.f32 %v534_v45, %v517_v7  ;;  %v381_v18 = vmul.f32 %v878_v16, %v365_v9  ;;  %v422_v20 = vmul.f32 %v887_v22, %v406_v10  ;;  %v775_v6 = vld [vmem:[%s852_s17 + $0xc8] ss:$72 sps:$4 sm:$0xff]  }
  0x45   : > { %v320_v19 = vsel %vm302_vm0, %v318_v12, %v319_v33  ;;  %v459_v21 = vmul.f32 %v892_v23, %v365_v9  ;;  %v460_v24 = vmul.f32 %v892_v23, %v438_v15  ;;  %v535_v28 = vmul.f32 %v900_v27, %v195_v52 }
  0x46   : > { %679 = vst.msk [vmem:[%s970_s15 + $0xc] sm:$0xf] %vm675_vm1, %v670_v58  ;;  %v567_v25 = vadd.f32 %v559_v62, %v542_v13  ;;  %v340_v26 = vadd.f32 %v320_v19, %v251_v29  ;;  %v590_v14 = vmul.f32 %v906_v32, %v195_v52  ;;  %v591_v33 = vmul.f32 %v906_v32, %v260_v55 }
  0x47   : > { %v496_v35 = vrot.slane %v459_v21, 1  ;;  %v497_v36 = vrot.slane %v460_v24, 1  ;;  %v196_v5 = vunpack.c.l.bf16 %v185_v2  ;;  %v229_v41 = vunpack.c.h.bf16 %v185_v2 }
  0x48   : > { %v648_v38 = vadd.f32 %v626_v11, %v567_v25  ;;  %v389_v39 = vadd.f32 %v381_v18, %v340_v26  ;;  %v627_v40 = vrot.slane %v590_v14, 1  ;;  %v628_v45 = vrot.slane %v591_v33, 1  ;;  %v187_v14 = vld [vmem:[%s852_s17 + $0x40] ss:$72 sps:$4 sm:$0xff]  }
  0x49   : > { %v498_v44 = vsel %vm302_vm0, %v496_v35, %v497_v36  ;;  %v211_v29 = vmul.f32 %v857_v0, %v196_v5  ;;  %v261_v46 = vunpack.c.l.bf16 %v186_v31  ;;  %v245_v30 = vmul.f32 %v871_v8, %v229_v41  ;;  %v188_v31 = vld [vmem:[%s852_s17 + $0x44] sm:$0x1] }
  0x4a   : > { %v663_v47 = vadd.f32 %v953_v37, %v648_v38  ;;  %v430_v34 = vadd.f32 %v422_v20, %v389_v39  ;;  %v282_v51 = vmul.f32 %v862_v1, %v195_v52  ;;  %v560_v53 = vmul.f32 %v922_v48, %v228_v54 }
  0x4b   : > { %v285_v55 = vmul.f32 %v862_v1, %v261_v46  ;;  %v366_v57 = vunpack.c.l.bf16 %v773_v42  ;;  %v407_v49 = vunpack.c.h.bf16 %v773_v42  ;;  %v629_v0 = vsel %vm302_vm0, %v627_v40, %v628_v45 }
  0x4c   : > { %v671_v50 = vpack.c.bf16 %v663_v47, %v663_v47  ;;  %v518_v59 = vadd.f32 %v498_v44, %v430_v34  ;;  %v321_v60 = vrot.slane %v282_v51, 1  ;;  %v253_v61 = vadd.f32 %v245_v30, %v211_v29 }
  0x4d   : > { %v325_v62 = vrot.slane %v285_v55, 1  ;;  %v382_v63 = vmul.f32 %v878_v16, %v366_v57  ;;  %v439_v8 = vunpack.c.l.bf16 %v774_v43  ;;  %v423_v3 = vmul.f32 %v887_v22, %v407_v49 }
  0x4e   : > { %680 = vst.msk [vmem:[%s970_s15 + $0x10] sm:$0xf] %vm675_vm1, %v671_v50  ;;  %v543_v52 = vadd.f32 %v535_v28, %v518_v59  ;;  %v323_v54 = vsel %vm302_vm0, %v321_v60, %v322_v17  ;;  %v461_v4 = vmul.f32 %v892_v23, %v366_v57  ;;  %v536_v10 = vmul.f32 %v900_v27, %v196_v5  ;;  %v776_v17 = vld [vmem:[%s852_s17 + $0xcc] sm:$0x1] }
  0x4f   : > { %v341_v7 = vadd.f32 %v323_v54, %v252_v56  ;;  %v462_v9 = vmul.f32 %v892_v23, %v439_v8  ;;  %v592_v11 = vmul.f32 %v906_v32, %v196_v5  ;;  %v593_v58 = vmul.f32 %v906_v32, %v261_v46 }
  0x50   : > { %v568_v12 = vadd.f32 %v560_v53, %v543_v52  ;;  %v499_v15 = vrot.slane %v461_v4, 1  ;;  %v284_v13 = vmul.f32 %v862_v1, %v196_v5  ;;  %v561_v19 = vmul.f32 %v922_v48, %v229_v41 }
  0x51   : > { %v390_v18 = vadd.f32 %v382_v63, %v341_v7  ;;  %v500_v2 = vrot.slane %v462_v9, 1  ;;  %v367_v56 = vunpack.c.l.bf16 %v775_v6  ;;  %v630_v21 = vrot.slane %v592_v11, 1 }
  0x52   : > { %v649_v20 = vadd.f32 %v629_v0, %v568_v12  ;;  %v324_v24 = vrot.slane %v284_v13, 1  ;;  %v408_v25 = vunpack.c.h.bf16 %v775_v6  ;;  %v440_v36 = vunpack.c.l.bf16 %v776_v17 }
  0x53   : > { %v431_v26 = vadd.f32 %v423_v3, %v390_v18  ;;  %v501_v28 = vsel %vm302_vm0, %v499_v15, %v500_v2  ;;  %v383_v35 = vmul.f32 %v878_v16, %v367_v56  ;;  %v631_v33 = vrot.slane %v593_v58, 1 }
  0x54   : > { %v664_v1 = vadd.f32 %v953_v37, %v649_v20  ;;  %v326_v5 = vsel %vm302_vm0, %v324_v24, %v325_v62  ;;  %v424_v38 = vmul.f32 %v887_v22, %v408_v25  ;;  %v463_v41 = vmul.f32 %v892_v23, %v367_v56 }
  0x55   : > { %v519_v39 = vadd.f32 %v501_v28, %v431_v26  ;;  %v342_v40 = vadd.f32 %v326_v5, %v253_v61  ;;  %v464_v42 = vmul.f32 %v892_v23, %v440_v36  ;;  %v521_v45 = vunpack.c.l.bf16 %v187_v14 }
  0x56   : > { %v672_v44 = vpack.c.bf16 %v664_v1, %v664_v1  ;;  %v546_v29 = vunpack.c.h.bf16 %v187_v14  ;;  %v571_v46 = vunpack.c.l.bf16 %v188_v31  ;;  %v502_v34 = vrot.slane %v463_v41, 1 }
  0x57   : > { %v544_v16 = vadd.f32 %v536_v10, %v519_v39  ;;  %v391_v47 = vadd.f32 %v383_v35, %v342_v40  ;;  %v503_v30 = vrot.slane %v464_v42, 1  ;;  %v632_v51 = vsel %vm302_vm0, %v630_v21, %v631_v33 }
  0x58   : > { %681 = vst.msk [vmem:[%s970_s15 + $0x14] sm:$0xf] %vm675_vm1, %v672_v44  ;;  %v594_v22 = vmul.f32 %v906_v32, %v521_v45  ;;  %v595_v43 = vmul.f32 %v906_v32, %v571_v46  ;;  %v537_v57 = vmul.f32 %v900_v27, %v521_v45  ;;  %v562_v60 = vmul.f32 %v922_v48, %v546_v29 }
  0x59   : > { %v569_v53 = vadd.f32 %v561_v19, %v544_v16  ;;  %v432_v55 = vadd.f32 %v424_v38, %v391_v47  ;;  %v504_v23 = vsel %vm302_vm0, %v502_v34, %v503_v30 }
  0x5a   : > { %v633_v49 = vrot.slane %v594_v22, 1  ;;  %v634_v50 = vrot.slane %v595_v43, 1 }
  0x5b   : > { %v650_v59 = vadd.f32 %v632_v51, %v569_v53  ;;  %v520_v0 = vadd.f32 %v504_v23, %v432_v55 }
  0x5c   : > { %v635_v63 = vsel %vm302_vm0, %v633_v49, %v634_v50 }
  0x5d   : > { %v665_v61 = vadd.f32 %v953_v37, %v650_v59  ;;  %v545_v62 = vadd.f32 %v537_v57, %v520_v0 }
  0x5f   : > { %v673_v8 = vpack.c.bf16 %v665_v61, %v665_v61  ;;  %v570_v32 = vadd.f32 %v562_v60, %v545_v62 }
  0x61   : > { %682 = vst.msk [vmem:[%s970_s15 + $0x18] sm:$0xf] %vm675_vm1, %v673_v8  ;;  %v651_v52 = vadd.f32 %v635_v63, %v570_v32 }
  0x63   : > { %v666_v54 = vadd.f32 %v953_v37, %v651_v52 }
  0x65   : > { %v674_v3 = vpack.c.bf16 %v666_v54, %v666_v54 }
  0x67   : > { %683 = vst.msk [vmem:[%s970_s15 + $0x1c] sm:$0xf] %vm675_vm1, %v674_v3 }
  0x68 PF: > { %s13_s12 = sadd.s32 1, %s816_s12  }
  0x69   : > { %p10_p4 = scmp.ge.s32.totalorder %s13_s12, 4  }
  0x6b   :  { %12 = sbr.rel (!%p10_p4) target bundleno = 1 (0x1), region = 73 }

// kernel: stdcnet_forward.36
= control target key start
LH: loop header
LB: loop body
LE: loop exit
PB: predicated region body
PF: predicated region fallthrough
CT: control target
= control target key end

     0   :  { %s2274_s12 = smov 0   ;;  %s2708_s0 = inlined_call_operand.vmem [shape: bf16[214,32], index: 0, kind: input, shape index: {}]   ;;  %s2709_s1 = inlined_call_operand.vmem [shape: bf16[9,32,128], index: 1, kind: input, shape index: {}]   ;;  %s2710_s2 = inlined_call_operand.vmem [shape: f32[1,128], index: 2, kind: input, shape index: {}]   ;;  %s2711_s3 = inlined_call_operand.vmem [shape: bf16[192,128], index: 3, kind: output, shape index: {}]  }
   0x1 LB: > { %s1700_s13 = sadd.s32 4294967295, %s2252_s12   ;;  %p1703_p0 = scmp.ge.s32.totalorder %s2252_s12, 1  ;;  %s2252_s12 = sphi %s2274_s12, %s13_s12  }
   0x2   : > { %p127_p1 = scmp.lt.s32.totalorder %s2252_s12, 3 }
   0x4   : > { %p128_p2 = pnand %p1703_p0, %p127_p1 }
   0x5   : > { %v2212_v0 = vld [vmem:[%s2709_s1 + $0x10] sm:$0xff] (!%p128_p2)   ;;  %s153_s16 = smul.u32 (!%p128_p2), 96, %s1700_s13  ;;  %v2290_v1 = vld [vmem:[%s2709_s1 + $0x40] sm:$0xff] (!%p128_p2)   ;;  %v2214_v2 = vld [vmem:[%s2709_s1 + $0x18] sm:$0xff] (!%p128_p2)   ;;  %vm280_vm0 = vcmask (!%p128_p2), 261120   ;;  %vm973_vm3 = vcmask (!%p128_p2), 1045504  }
   0x6   : > { %131 = sbr.rel (%p128_p2) target bundleno = 351 (0x15f), region = 32  ;;  %1960 = vmatprep.subr.bf16.mxu1 (!%p128_p2), %v2212_v0  ;;  %2024 = vmatprep.subr.bf16.mxu0 (!%p128_p2), %v2290_v1  ;;  %v2299_v3 = vld [vmem:[%s2709_s1 + $0x48] sm:$0xff] (!%p128_p2)   ;;  %v2218_v9 = vld [vmem:[%s2709_s1] sm:$0xff] (!%p128_p2)   ;;  %vm215_vm1 = vsmask.f32 (!%p128_p2), 7424  ;;  %v2338_v21 = vld [vmem:[%s2709_s1 + $0x50] sm:$0xff] (!%p128_p2)  }
   0x7   : > { %s154_s21 = sshra.s32 (!%p128_p2), %s153_s16, 3  ;;  %1961 = vmatpush3.bf16.msra.mxu1 (!%p128_p2), %v2212_v0  ;;  %2025 = vmatpush3.bf16.msra.mxu0 (!%p128_p2), %v2290_v1  ;;  %vm782_vm2 = vsmask.f32 (!%p128_p2), 6400  ;;  %v2227_v47 = vld [vmem:[%s2709_s1 + $0x8] sm:$0xff] (!%p128_p2)   ;;  %vm490_vm4 = vcmask (!%p128_p2), 1046528   ;;  %vm1426_vm5 = vcmask (!%p128_p2), 1044480  }
   0x8   : > { %s1705_s24 = sshll.u32 (!%p128_p2), %s154_s21, 2  ;;  %1962 = vmatprep.subr.bf16.mxu1 (!%p128_p2), %v2214_v2  ;;  %2026 = vmatprep.subr.bf16.mxu0 (!%p128_p2), %v2299_v3  ;;  %vm1260_vm6 = vsmask.f32 (!%p128_p2), 5376  ;;  %s146_s4 = smul.u32 (!%p128_p2), 12, %s1700_s13 }
   0x9   : > { %s2305_s27 = scalar_lea.vmem (!%p128_p2), %s2708_s0, %s1705_s24 }
   0xa   : > { %v158_v4 = vld [vmem:[%s2305_s27] sm:$0xf] (!%p128_p2)  ;;  %v159_v5 = vld [vmem:[%s2305_s27 + $0x4] sm:$0xf] (!%p128_p2)  ;;  %v160_v6 = vld [vmem:[%s2305_s27 + $0x8] sm:$0xf] (!%p128_p2) }
   0xb   : > { %v161_v7 = vld [vmem:[%s2305_s27 + $0xc] sm:$0xf] (!%p128_p2)  ;;  %v2312_v8 = vcombine.low (!%p128_p2), %v158_v4, %v159_v5  ;;  %v162_v10 = vld [vmem:[%s2305_s27 + $0x10] sm:$0xf] (!%p128_p2)  ;;  %v2318_v11 = vcombine.low (!%p128_p2), %v159_v5, %v160_v6  ;;  %1963 = vmatpush3.bf16.msra.mxu1 (!%p128_p2), %v2214_v2  ;;  %v163_v13 = vld [vmem:[%s2305_s27 + $0x14] sm:$0xf] (!%p128_p2)  ;;  %2027 = vmatpush3.bf16.msra.mxu0 (!%p128_p2), %v2299_v3 }
   0xc   : > { %v2320_v12 = vcombine.low (!%p128_p2), %v160_v6, %v161_v7  ;;  %v2323_v14 = vcombine.low (!%p128_p2), %v161_v7, %v162_v10  ;;  %1976 = vmatprep.subr.bf16.mxu1 (!%p128_p2), %v2218_v9  ;;  %v2328_v17 = vcombine.low (!%p128_p2), %v162_v10, %v163_v13  ;;  %v164_v19 = vld [vmem:[%s2305_s27 + $0x18] sm:$0xf] (!%p128_p2)  ;;  %v2333_v20 = vld [vmem:[%s2305_s27 + $0x1c] sm:$0xf] (!%p128_p2)  ;;  %2040 = vmatprep.subr.bf16.mxu0 (!%p128_p2), %v2338_v21  ;;  %v166_v33 = vld [vmem:[%s2305_s27 + $0x20] sm:$0xf] (!%p128_p2) }
   0xd   : > { %v217_v15 = vshrl.u32 %v2312_v8, 16  ;;  %v219_v16 = vshll.u32 %v2312_v8, 16  ;;  %v784_v18 = vshrl.u32 %v2318_v11, 16  ;;  %v787_v24 = vshll.u32 %v2318_v11, 16  ;;  %v2356_v38 = vld [vmem:[%s2305_s27 + $0x24] sm:$0xf] }
   0xe   : > { %v224_v22 = vshll.u32 %v2320_v12, 16  ;;  %v228_v23 = vshrl.u32 %v2320_v12, 16  ;;  %v792_v25 = vshrl.u32 %v2323_v14, 16  ;;  %v795_v28 = vshll.u32 %v2323_v14, 16  ;;  %v168_v52 = vld [vmem:[%s2305_s27 + $0x28] sm:$0xf] }
   0xf   : > { %v221_v26 = vrot.slane %v219_v16, 1  ;;  %v786_v27 = vrot.slane %v784_v18, 1  ;;  %v232_v29 = vshll.u32 %v2328_v17, 16  ;;  %v789_v31 = vrot.slane %v787_v24, 2  ;;  %v169_v56 = vld [vmem:[%s2305_s27 + $0x2c] sm:$0xf] }
  0x10   : > { %v226_v30 = vrot.slane %v224_v22, 1  ;;  %v794_v32 = vrot.slane %v792_v25, 1  ;;  %v797_v35 = vrot.slane %v795_v28, 2  ;;  %v2353_v37 = vcombine.low %v164_v19, %v2333_v20  ;;  %v2388_v61 = vld [vmem:[%s2305_s27 + $0x30] sm:$0xf]  ;;  %v2235_v6 = vld [vmem:[%s2709_s1 + $0x20] sm:$0xff]  }
  0x11   : > { %v222_v34 = vor.u32 %v221_v26, %v217_v15  ;;  %v234_v36 = vrot.slane %v232_v29, 1  ;;  %v790_v40 = vor.u32 %v789_v31, %v786_v27  ;;  %v2360_v41 = vcombine.low %v163_v13, %v164_v19  ;;  %v2226_v7 = vld [vmem:[%s2709_s1 + $0x58] sm:$0xff]   ;;  %v2229_v27 = vld [vmem:[%s2709_s1 + $0x60] sm:$0xff]   ;;  %p147_p3 = scmp.lt.s32.totalorder %s146_s4, 23 }
  0x12   : > { %v230_v39 = vor.u32 %v228_v23, %v226_v30  ;;  %v236_v42 = vshrl.u32 %v2328_v17, 16  ;;  %v798_v44 = vor.u32 %v797_v35, %v794_v32  ;;  %v240_v45 = vshll.u32 %v2353_v37, 16 }
  0x13   : > { %v227_v43 = vsel %vm215_vm1, %v222_v34, %v226_v30  ;;  %v2366_v46 = vcombine.low %v166_v33, %v2356_v38  ;;  %v801_v49 = vshrl.u32 %v2360_v41, 16  ;;  %v804_v50 = vshll.u32 %v2360_v41, 16  ;;  %s2713_s4 = smov (!%p147_p3, %s146_s4), 23 }
  0x14   : > { %1964 = vmatprep.mubr.msk.bf16.mxu1 %vm280_vm0, %v227_v43  ;;  %v235_v48 = vsel %vm215_vm1, %v230_v39, %v234_v36  ;;  %v238_v51 = vor.u32 %v236_v42, %v234_v36  ;;  %v799_v53 = vsel %vm782_vm2, %v790_v40, %v798_v44  ;;  %v242_v54 = vrot.slane %v240_v45, 1  ;;  %v2236_v40 = vld [vmem:[%s2709_s1 + $0x68] sm:$0xff]   ;;  %v2458_v43 = vld [vmem:[%s2305_s27 + $0x34] sm:$0xf]  ;;  %s1704_s7 = sshll.u32 %s2713_s4, 2 }
  0x15   : > { %1965 = vmatmul.mubr.msk.bf16.vlgmr.msra.gmra.mrb[0].mxu1 %vm280_vm0, %v235_v48  ;;  %v244_v55 = vshrl.u32 %v2353_v37, 16  ;;  %2028 = vmatprep.mubr.msk.bf16.mxu0 %vm280_vm0, %v799_v53  ;;  %v803_v57 = vrot.slane %v801_v49, 1  ;;  %v806_v58 = vrot.slane %v804_v50, 2  ;;  %v248_v59 = vshll.u32 %v2366_v46, 16  ;;  %v2238_v50 = vld [vmem:[%s2709_s1 + $0x28] sm:$0xff]   ;;  %s2697_s9 = scalar_lea.vmem %s2711_s3, %s1704_s7 }
  0x16   : > { %1977 = vmatpush3.bf16.msra.mxu1 %v2218_v9  ;;  %v974_v60 = vrot.slane %v2318_v11, 2  ;;  %v243_v62 = vsel %vm215_vm1, %v238_v51, %v242_v54  ;;  %v975_v0 = vrot.slane %v2323_v14, 2  ;;  %v2399_v5 = vcombine.low %v168_v52, %v169_v56 }
  0x17   : > { %v246_v63 = vor.u32 %v244_v55, %v242_v54  ;;  %1978 = vmatprep.subr.bf16.mxu1 %v2227_v47  ;;  %v2394_v2 = vor.u32 %v806_v58, %v803_v57  ;;  %1968 = vmatprep.mubr.msk.bf16.mxu1 %vm280_vm0, %v243_v62  ;;  %v250_v4 = vrot.slane %v248_v59, 1  ;;  %v252_v10 = vshrl.u32 %v2366_v46, 16 }
  0x18   : > { %v976_v9 = vsel %vm973_vm3, %v974_v60, %v975_v0  ;;  %v2411_v13 = vcombine.low %v2388_v61, %v2388_v61  ;;  %v256_v18 = vshll.u32 %v2399_v5, 16  ;;  %v260_v24 = vshrl.u32 %v2399_v5, 16 }
  0x19   : > { %v808_v15 = vsel %vm782_vm2, %v798_v44, %v2394_v2  ;;  %v251_v16 = vsel %vm215_vm1, %v246_v63, %v250_v4  ;;  %v254_v19 = vor.u32 %v252_v10, %v250_v4  ;;  %v2431_v28 = vcombine.low %v2333_v20, %v166_v33 }
  0x1a   : > { %1979 = vmatpush3.bf16.msra.mxu1 %v2227_v47  ;;  %2029 = vmatmul.mubr.msk.bf16.vlgmr.msra.gmra.mrb[0].mxu0 %vm280_vm0, %v808_v15  ;;  %v264_v25 = vshll.u32 %v2411_v13, 16  ;;  %v258_v26 = vrot.slane %v256_v18, 1  ;;  %v977_v32 = vrot.slane %v2360_v41, 2  ;;  %v2442_v33 = vcombine.low %v2356_v38, %v168_v52  ;;  %v2464_v47 = vld [vmem:[%s2709_s1 + $0x70] sm:$0xff]  }
  0x1b   : > { %1992 = vmatprep.subr.bf16.mxu1 %v2235_v6  ;;  %2041 = vmatpush3.bf16.msra.mxu0 %v2338_v21  ;;  %v979_v34 = vrot.slane %v2431_v28, 2  ;;  %v2446_v36 = vcombine.low %v169_v56, %v2388_v61  ;;  %v641_v48 = vrot.slane %v2318_v11, 1  ;;  %v642_v49 = vrot.slane %v2323_v14, 1  ;;  %v2495_v56 = vld [vmem:[%s2709_s1 + $0x30] sm:$0xff]  }
  0x1c   : > { %2044 = vmatprep.mubr.msk.bf16.mxu0 %vm280_vm0, %v976_v9  ;;  %2042 = vmatprep.subr.bf16.mxu0 %v2226_v7  ;;  %v259_v30 = vsel %vm215_vm1, %v254_v19, %v258_v26  ;;  %v262_v21 = vor.u32 %v260_v24, %v258_v26  ;;  %v266_v31 = vrot.slane %v264_v25, 1  ;;  %v978_v20 = vsel %vm973_vm3, %v975_v0, %v977_v32 }
  0x1d   : > { %1969 = vmatmul.mubr.msk.bf16.gmra.mrb[4].mxu1 %vm280_vm0, %v251_v16  ;;  %v980_v39 = vsel %vm973_vm3, %v977_v32, %v979_v34  ;;  %v981_v38 = vrot.slane %v2442_v33, 2  ;;  %v983_v44 = vrot.slane %v2446_v36, 2  ;;  %v2472_v51 = vsel %vm490_vm4, %v641_v48, %v642_v49 }
  0x1e   : > { %1972 = vmatprep.mubr.msk.bf16.mxu1 %vm280_vm0, %v259_v30  ;;  %v267_v35 = vsel %vm215_vm1, %v262_v21, %v266_v31  ;;  %v644_v52 = vrot.slane %v2360_v41, 1  ;;  %v2478_v54 = vcombine.low %v2458_v43, %v2458_v43  ;;  %v1427_v57 = vrot.slane %v2320_v12, 3 }
  0x1f   : > { %2043 = vmatpush3.bf16.msra.mxu0 %v2226_v7  ;;  %v982_v53 = vsel %vm973_vm3, %v979_v34, %v981_v38  ;;  %v984_v11 = vsel %vm973_vm3, %v981_v38, %v983_v44  ;;  %v1428_v58 = vrot.slane %v2328_v17, 3  ;;  %v1430_v62 = vrot.slane %v2353_v37, 3 }
  0x20   : > { %2056 = vmatprep.subr.bf16.mxu0 %v2229_v27  ;;  %v2487_v14 = vsel %vm490_vm4, %v642_v49, %v644_v52  ;;  %v985_v60 = vrot.slane %v2478_v54, 2  ;;  %v1119_v63 = vrot.slane %v2320_v12, 2  ;;  %v1120_v0 = vrot.slane %v2328_v17, 2 }
  0x21   : > { %v2505_v4 = vsel %vm1426_vm5, %v1427_v57, %v1428_v58  ;;  %v2509_v7 = vsel %vm1426_vm5, %v1428_v58, %v1430_v62  ;;  %v1434_v9 = vrot.slane %v2399_v5, 3  ;;  %v810_v16 = vshrl.u32 %v2431_v28, 16 }
  0x22   : > { %v813_v19 = vshll.u32 %v2431_v28, 16  ;;  %v986_v25 = vsel %vm973_vm3, %v983_v44, %v985_v60  ;;  %v822_v30 = vshll.u32 %v2442_v33, 16  ;;  %v1121_v21 = vsel %vm973_vm3, %v1119_v63, %v1120_v0 }
  0x23   : > { %v812_v31 = vrot.slane %v810_v16, 1  ;;  %v828_v34 = vshrl.u32 %v2446_v36, 16  ;;  %v492_v38 = vrot.slane %v2320_v12, 1  ;;  %v837_v49 = vshrl.u32 %v2478_v54, 16 }
  0x24   : > { %v815_v32 = vrot.slane %v813_v19, 2  ;;  %v1124_v57 = vrot.slane %v2366_v46, 2  ;;  %v650_v41 = vrot.slane %v2446_v36, 1 }
  0x25   : > { %1973 = vmatmul.mubr.msk.bf16.gmra.mrb[8].mxu1 %vm280_vm0, %v267_v35  ;;  %v491_v35 = vrot.slane %v2312_v8, 1  ;;  %v830_v48 = vrot.slane %v828_v34, 1  ;;  %v839_v60 = vrot.slane %v837_v49, 1  ;;  %v2244_v34 = vld [vmem:[%s2709_s1 + $0x80] sm:$0xff]   ;;  %v1264_v49 = vrot.slane %v236_v42, 2 }
  0x26   : > { %1980 = vmatprep.mubr.msk.bf16.mxu1 %vm280_vm0, %v2312_v8  ;;  %2045 = vmatmul.mubr.msk.bf16.vlgmr.msra.gmra.mrb[0].mxu0 %vm280_vm0, %v978_v20  ;;  %v816_v44 = vor.u32 %v815_v32, %v812_v31  ;;  %v840_v8 = vshll.u32 %v2478_v54, 16 }
  0x27   : > { %2057 = vmatpush3.bf16.msra.mxu0 %v2229_v27  ;;  %2048 = vmatprep.mubr.msk.bf16.mxu0 %vm280_vm0, %v980_v39  ;;  %v819_v27 = vshrl.u32 %v2442_v33, 16  ;;  %v824_v39 = vrot.slane %v822_v30, 2  ;;  %v493_v16 = vsel %vm490_vm4, %v491_v35, %v492_v38  ;;  %v2555_v30 = vcombine.low %v2388_v61, %v2458_v43 }
  0x28   : > { %2058 = vmatprep.subr.bf16.mxu0 %v2236_v40  ;;  %v2543_v58 = vsel %vm782_vm2, %v2394_v2, %v816_v44  ;;  %v496_v61 = vrot.slane %v2353_v37, 1  ;;  %v1126_v43 = vrot.slane %v2399_v5, 2 }
  0x29   : > { %v821_v20 = vrot.slane %v819_v27, 1  ;;  %v1128_v32 = vrot.slane %v2555_v30, 2 }
  0x2b   : > { %2059 = vmatpush3.bf16.msra.mxu0 %v2236_v40  ;;  %v831_v40 = vshll.u32 %v2446_v36, 16 }
  0x2c   : > { %2072 = vmatprep.subr.bf16.mxu0 %v2464_v47 }
  0x2d   : > { %1981 = vmatmul.mubr.msk.bf16.vlgmr.msra.gmra.mrb[0].mxu1 %vm280_vm0, %v2320_v12 }
  0x2e   : > { %1993 = vmatpush3.bf16.msra.mxu1 %v2235_v6  ;;  %1984 = vmatprep.mubr.msk.bf16.mxu1 %vm280_vm0, %v2328_v17  ;;  %v1432_v6 = vrot.slane %v2366_v46, 3 }
  0x2f   : > { %2049 = vmatmul.mubr.msk.bf16.gmra.mrb[4].mxu0 %vm280_vm0, %v982_v53  ;;  %1994 = vmatprep.subr.bf16.mxu1 %v2238_v50  ;;  %v825_v53 = vor.u32 %v824_v39, %v821_v20  ;;  %v2243_v39 = vld [vmem:[%s2709_s1 + $0x38] sm:$0xff]  }
  0x30   : > { %2052 = vmatprep.mubr.msk.bf16.mxu0 %vm280_vm0, %v984_v11  ;;  %v2514_v15 = vsel %vm1426_vm5, %v1430_v62, %v1432_v6  ;;  %v2522_v26 = vsel %vm1426_vm5, %v1432_v6, %v1434_v9  ;;  %v833_v11 = vrot.slane %v831_v40, 2  ;;  %v842_v6 = vrot.slane %v840_v8, 2 }
  0x31   : > { %v2546_v62 = vsel %vm782_vm2, %v816_v44, %v825_v53  ;;  %v1127_v40 = vsel %vm973_vm3, %v1124_v57, %v1126_v43  ;;  %v2586_v44 = vld [vmem:[%s2305_s27 + $0x38] ss:$0 sps:$4 sm:$0x77]  }
  0x32   : > { %1995 = vmatpush3.bf16.msra.mxu1 %v2238_v50  ;;  %v1122_v50 = vrot.slane %v2353_v37, 2  ;;  %v834_v63 = vor.u32 %v833_v11, %v830_v48  ;;  %v843_v27 = vor.u32 %v842_v6, %v839_v60  ;;  %v1129_v48 = vsel %vm973_vm3, %v1126_v43, %v1128_v32 }
  0x33   : > { %2008 = vmatprep.subr.bf16.mxu1 %v2495_v56  ;;  %v1130_v12 = vrot.slane %v2586_v44, 2  ;;  %v1268_v11 = vrot.slane %v244_v55, 2  ;;  %v1272_v60 = vrot.slane %v252_v10, 2  ;;  %v502_v6 = vrot.slane %v2411_v13, 1 }
  0x34   : > { %v1123_v19 = vsel %vm973_vm3, %v1120_v0, %v1122_v50  ;;  %v1125_v2 = vsel %vm973_vm3, %v1122_v50, %v1124_v57  ;;  %v494_v0 = vrot.slane %v2328_v17, 1  ;;  %v2566_v31 = vsel %vm782_vm2, %v834_v63, %v843_v27 }
  0x35   : > { %1985 = vmatmul.mubr.msk.bf16.gmra.mrb[4].mxu1 %vm280_vm0, %v2353_v37  ;;  %v1265_v50 = vrot.slane %v232_v29, 3  ;;  %v1131_v8 = vsel %vm973_vm3, %v1128_v32, %v1130_v12  ;;  %v1281_v55 = vshrl.u32 %v2555_v30, 16 }
  0x36   : > { %1988 = vmatprep.mubr.msk.bf16.mxu1 %vm280_vm0, %v2366_v46  ;;  %v495_v35 = vsel %vm490_vm4, %v492_v38, %v494_v0  ;;  %v497_v20 = vsel %vm490_vm4, %v494_v0, %v496_v61  ;;  %v1261_v38 = vrot.slane %v228_v23, 2  ;;  %v1290_v0 = vshrl.u32 %v2586_v44, 16 }
  0x37   : > { %2053 = vmatmul.mubr.msk.bf16.gmra.mrb[8].mxu0 %vm280_vm0, %v986_v25  ;;  %v2551_v25 = vsel %vm782_vm2, %v825_v53, %v834_v63  ;;  %v500_v53 = vrot.slane %v2399_v5, 1  ;;  %v1266_v42 = vor.u32 %v1265_v50, %v1264_v49  ;;  %v1273_v63 = vrot.slane %v248_v59, 3 }
  0x38   : > { %2060 = vmatprep.mubr.msk.bf16.mxu0 %vm280_vm0, %v1121_v21  ;;  %v2241_v21 = vld [vmem:[%s2709_s1 + $0x78] sm:$0xff]   ;;  %v1277_v59 = vrot.slane %v256_v18, 3  ;;  %v1283_v27 = vrot.slane %v1281_v55, 2 }
  0x3d   : > { %1989 = vmatmul.mubr.msk.bf16.gmra.mrb[8].mxu1 %vm280_vm0, %v2399_v5 }
  0x3e   : > { %1996 = vmatprep.mubr.msk.bf16.mxu1 %vm280_vm0, %v493_v16  ;;  %v1284_v16 = vshll.u32 %v2555_v30, 16 }
  0x3f   : > { %2061 = vmatmul.mubr.msk.bf16.vlgmr.msra.gmra.mrb[0].mxu0 %vm280_vm0, %v1123_v19  ;;  %v503_v19 = vsel %vm490_vm4, %v500_v53, %v502_v6 }
  0x40   : > { %2073 = vmatpush3.bf16.msra.mxu0 %v2464_v47  ;;  %2064 = vmatprep.mubr.msk.bf16.mxu0 %vm280_vm0, %v1125_v2  ;;  %v1262_v47 = vrot.slane %v224_v22, 3  ;;  %v498_v22 = vrot.slane %v2366_v46, 1  ;;  %v1276_v46 = vrot.slane %v260_v24, 2  ;;  %v1286_v2 = vrot.slane %v1284_v16, 3 }
  0x41   : > { %2074 = vmatprep.subr.bf16.mxu0 %v2241_v21  ;;  %v646_v24 = vrot.slane %v2431_v28, 1 }
  0x42   : > { %v1263_v23 = vor.u32 %v1262_v47, %v1261_v38  ;;  %v499_v17 = vsel %vm490_vm4, %v496_v61, %v498_v22  ;;  %v501_v29 = vsel %vm490_vm4, %v498_v22, %v500_v53  ;;  %v1278_v18 = vor.u32 %v1277_v59, %v1276_v46 }
  0x43   : > { %v1293_v61 = vshll.u32 %v2586_v44, 16  ;;  %v1287_v43 = vor.u32 %v1286_v2, %v1283_v27  ;;  %v647_v32 = vsel %vm490_vm4, %v644_v52, %v646_v24 }
  0x44   : > { %2075 = vmatpush3.bf16.msra.mxu0 %v2241_v21  ;;  %v1267_v57 = vsel %vm1260_vm6, %v1263_v23, %v1266_v42  ;;  %v2245_v21 = vld [vmem:[%s2709_s1 + $0x88] sm:$0xff]  }
  0x45   : > { %1997 = vmatmul.mubr.msk.bf16.vlgmr.msra.gmra.mrb[0].mxu1 %vm280_vm0, %v495_v35  ;;  %2088 = vmatprep.subr.bf16.mxu0 %v2244_v34  ;;  %v1292_v35 = vrot.slane %v1290_v0, 2  ;;  %v1288_v28 = vsel %vm1260_vm6, %v1278_v18, %v1287_v43 }
  0x46   : > { %2009 = vmatpush3.bf16.msra.mxu1 %v2495_v56  ;;  %2000 = vmatprep.mubr.msk.bf16.mxu1 %vm280_vm0, %v497_v20  ;;  %v1269_v56 = vrot.slane %v240_v45, 3  ;;  %v1274_v45 = vor.u32 %v1273_v63, %v1272_v60  ;;  %v1295_v20 = vrot.slane %v1293_v61, 3 }
  0x47   : > { %2065 = vmatmul.mubr.msk.bf16.gmra.mrb[4].mxu0 %vm280_vm0, %v1127_v40  ;;  %2010 = vmatprep.subr.bf16.mxu1 %v2243_v39 }
  0x48   : > { %2068 = vmatprep.mubr.msk.bf16.mxu0 %vm280_vm0, %v1129_v48  ;;  %v1270_v37 = vor.u32 %v1269_v56, %v1268_v11  ;;  %v1296_v52 = vor.u32 %v1295_v20, %v1292_v35 }
  0x4a   : > { %2011 = vmatpush3.bf16.msra.mxu1 %v2243_v39  ;;  %v1271_v10 = vsel %vm1260_vm6, %v1266_v42, %v1270_v37  ;;  %v1275_v13 = vsel %vm1260_vm6, %v1270_v37, %v1274_v45 }
  0x4b   : > { %2104 = vmatprep.subr.bf16.mxu1 %v2290_v1 }
  0x4d   : > { %2001 = vmatmul.mubr.msk.bf16.gmra.mrb[4].mxu1 %vm280_vm0, %v499_v17 }
  0x4e   : > { %2004 = vmatprep.mubr.msk.bf16.mxu1 %vm280_vm0, %v501_v29 }
  0x4f   : > { %2069 = vmatmul.mubr.msk.bf16.gmra.mrb[8].mxu0 %vm280_vm0, %v1131_v8 }
  0x50   : > { %2076 = vmatprep.mubr.msk.bf16.mxu0 %vm280_vm0, %v1267_v57 }
  0x55   : > { %2005 = vmatmul.mubr.msk.bf16.gmra.mrb[8].mxu1 %vm280_vm0, %v503_v19 }
  0x56   : > { %2012 = vmatprep.mubr.msk.bf16.mxu1 %vm280_vm0, %v2472_v51  ;;  %v1279_v51 = vsel %vm1260_vm6, %v1274_v45, %v1278_v18 }
  0x57   : > { %2077 = vmatmul.mubr.msk.bf16.vlgmr.msra.gmra.mrb[0].mxu0 %vm280_vm0, %v1271_v10 }
  0x58   : > { %2089 = vmatpush3.bf16.msra.mxu0 %v2244_v34  ;;  %2080 = vmatprep.mubr.msk.bf16.mxu0 %vm280_vm0, %v1275_v13  ;;  %v648_v34 = vrot.slane %v2442_v33, 1  ;;  %v652_v33 = vrot.slane %v2478_v54, 1 }
  0x59   : > { %2090 = vmatprep.subr.bf16.mxu0 %v2245_v21 }
  0x5a   : > { %v649_v39 = vsel %vm490_vm4, %v646_v24, %v648_v34  ;;  %v653_v36 = vsel %vm490_vm4, %v650_v41, %v652_v33 }
  0x5c   : > { %2091 = vmatpush3.bf16.msra.mxu0 %v2245_v21 }
  0x5d   : > { %2013 = vmatmul.mubr.msk.bf16.vlgmr.msra.gmra.mrb[0].mxu1 %vm280_vm0, %v2487_v14  ;;  %v651_v14 = vsel %vm490_vm4, %v648_v34, %v650_v41 }
  0x5e   : > { %2106 = vmatpush3.bf16.msra.mxu1 %v2290_v1  ;;  %2016 = vmatprep.mubr.msk.bf16.mxu1 %vm280_vm0, %v647_v32  ;;  %v1297_v1 = vsel %vm1260_vm6, %v1287_v43, %v1296_v52 }
  0x5f   : > { %2081 = vmatmul.mubr.msk.bf16.gmra.mrb[4].mxu0 %vm280_vm0, %v1279_v51  ;;  %2105 = vmatprep.subr.bf16.mxu1 %v2299_v3 }
  0x60   : > { %2084 = vmatprep.mubr.msk.bf16.mxu0 %vm280_vm0, %v1288_v28 }
  0x62   : > { %2107 = vmatpush3.bf16.msra.mxu1 %v2299_v3  ;;  %v1436_v3 = vrot.slane %v2555_v30, 3 }
  0x64   : > { %v1437_v54 = vsel %vm1426_vm5, %v1434_v9, %v1436_v3 }
  0x65   : > { %2017 = vmatmul.mubr.msk.bf16.gmra.mrb[4].mxu1 %vm280_vm0, %v649_v39 }
  0x66   : > { %2020 = vmatprep.mubr.msk.bf16.mxu1 %vm280_vm0, %v651_v14 }
  0x67   : > { %2085 = vmatmul.mubr.msk.bf16.gmra.mrb[8].mxu0 %vm280_vm0, %v1297_v1 }
  0x68   : > { %2092 = vmatprep.mubr.msk.bf16.mxu0 %vm280_vm0, %v2505_v4  ;;  %v1438_v4 = vrot.slane %v2586_v44, 3 }
  0x6d   : > { %2021 = vmatmul.mubr.msk.bf16.gmra.mrb[8].mxu1 %vm280_vm0, %v653_v36 }
  0x6e   : > { %2032 = vmatprep.mubr.msk.bf16.mxu1 %vm280_vm0, %v2543_v58 }
  0x6f   : > { %2093 = vmatmul.mubr.msk.bf16.vlgmr.msra.gmra.mrb[0].mxu0 %vm280_vm0, %v2509_v7  ;;  %v1439_v7 = vsel %vm1426_vm5, %v1436_v3, %v1438_v4 }
  0x70   : > { %2096 = vmatprep.mubr.msk.bf16.mxu0 %vm280_vm0, %v2514_v15 }
  0x75   : > { %2033 = vmatmul.mubr.msk.bf16.vlgmr.msra.gmra.mrb[4].mxu1 %vm280_vm0, %v2546_v62 }
  0x76   : > { %2036 = vmatprep.mubr.msk.bf16.mxu1 %vm280_vm0, %v2551_v25 }
  0x77   : > { %2097 = vmatmul.mubr.msk.bf16.gmra.mrb[4].mxu0 %vm280_vm0, %v2522_v26  ;;  %v1826_v26 = vld [vmem:[%s2710_s2] ss:$0 sm:$0xff] }
  0x78   : > { %2100 = vmatprep.mubr.msk.bf16.mxu0 %vm280_vm0, %v1437_v54 }
  0x7d   : > { %2037 = vmatmul.mubr.msk.bf16.gmra.mrb[8].mxu1 %vm280_vm0, %v2566_v31 }
  0x7f   : > { %2101 = vmatmul.mubr.msk.bf16.gmra.mrb[8].mxu0 %vm280_vm0, %v1439_v7 }
 0x130   : > { %v2014_v5 = vpop.f32.mrb[0].mxu1 }
 0x131   : > { %v718_v15 = vpop.f32.mrb[1].mxu1 }
 0x132   : > { %v2015_v9 = vpop.f32.mrb[2].mxu1 }
 0x133   : > { %v721_v58 = vpop.f32.mrb[3].mxu1 }
 0x142   : > { %v2094_v62 = vpop.f32.mrb[0].mxu0 }
 0x143   : > { %v2108_v25 = vadd.f32 %v2094_v62, %v2014_v5  ;;  %v1504_v30 = vpop.f32.mrb[1].mxu0 }
 0x144   : > { %v2109_v47 = vadd.f32 %v1504_v30, %v718_v15  ;;  %v2095_v40 = vpop.f32.mrb[2].mxu0 }
 0x145   : > { %v1572_v31 = vadd.f32 %v2108_v25, %v1826_v26  ;;  %v2110_v44 = vadd.f32 %v2095_v40, %v2015_v9  ;;  %v1507_v48 = vpop.f32.mrb[3].mxu0 }
 0x146   : > { %v1570_v38 = vadd.f32 %v2109_v47, %v1826_v26  ;;  %v2111_v49 = vadd.f32 %v1507_v48, %v721_v58 }
 0x147   : > { %v1573_v50 = vadd.f32 %v2110_v44, %v1826_v26  ;;  %v1584_v12 = vmax.f32 %v1572_v31, 0.0 }
 0x148   : > { %v1571_v22 = vadd.f32 %v2111_v49, %v1826_v26  ;;  %v2034_v53 = vpop.f32.mrb[4].mxu1  ;;  %v1582_v17 = vmax.f32 %v1570_v38, 0.0 }
 0x149   : > { %v1585_v23 = vmax.f32 %v1573_v50, 0.0  ;;  %v925_v42 = vpop.f32.mrb[5].mxu1 }
 0x14a   : > { %v1583_v29 = vmax.f32 %v1571_v22, 0.0  ;;  %v2098_v56 = vpop.f32.mrb[4].mxu0  ;;  %v2035_v11 = vpop.f32.mrb[6].mxu1 }
 0x14b   : > { %v1861_v8 = vpack.c.bf16 %v1585_v23, %v1584_v12  ;;  %v1520_v57 = vpop.f32.mrb[5].mxu0  ;;  %v2112_v60 = vadd.f32 %v2098_v56, %v2034_v53  ;;  %v928_v63 = vpop.f32.mrb[7].mxu1 }
 0x14c   : > { %v1856_v6 = vpack.c.bf16 %v1583_v29, %v1582_v17  ;;  %v2099_v37 = vpop.f32.mrb[6].mxu0  ;;  %v2113_v45 = vadd.f32 %v1520_v57, %v925_v42 }
 0x14d   : > { %1883 = vst [vmem:[%s2697_s9 + $0x8] sm:$0xff] %v1861_v8   ;;  %v1523_v55 = vpop.f32.mrb[7].mxu0  ;;  %v1576_v16 = vadd.f32 %v2112_v60, %v1826_v26  ;;  %v2114_v19 = vadd.f32 %v2099_v37, %v2035_v11 }
 0x14e   : > { %1857 = vst [vmem:[%s2697_s9] sm:$0xff] %v1856_v6   ;;  %v1574_v10 = vadd.f32 %v2113_v45, %v1826_v26  ;;  %v2115_v46 = vadd.f32 %v1523_v55, %v928_v63 }
 0x14f   : > { %v1577_v59 = vadd.f32 %v2114_v19, %v1826_v26  ;;  %v1588_v2 = vmax.f32 %v1576_v16, 0.0 }
 0x150   : > { %v1575_v13 = vadd.f32 %v2115_v46, %v1826_v26  ;;  %v2038_v27 = vpop.f32.mrb[8].mxu1  ;;  %v1586_v18 = vmax.f32 %v1574_v10, 0.0 }
 0x151   : > { %v1589_v21 = vmax.f32 %v1577_v59, 0.0  ;;  %v941_v24 = vpop.f32.mrb[9].mxu1 }
 0x152   : > { %v1587_v0 = vmax.f32 %v1575_v13, 0.0  ;;  %v2102_v61 = vpop.f32.mrb[8].mxu0  ;;  %v2039_v43 = vpop.f32.mrb[10].mxu1 }
 0x153   : > { %v1871_v32 = vpack.c.bf16 %v1589_v21, %v1588_v2  ;;  %v1536_v51 = vpop.f32.mrb[9].mxu0  ;;  %v2116_v35 = vadd.f32 %v2102_v61, %v2038_v27  ;;  %v944_v20 = vpop.f32.mrb[11].mxu1 }
 0x154   : > { %v1866_v28 = vpack.c.bf16 %v1587_v0, %v1586_v18  ;;  %v2103_v34 = vpop.f32.mrb[10].mxu0  ;;  %v2117_v41 = vadd.f32 %v1536_v51, %v941_v24 }
 0x155   : > { %1885 = vst [vmem:[%s2697_s9 + $0x18] sm:$0xff] %v1871_v32   ;;  %v1539_v52 = vpop.f32.mrb[11].mxu0  ;;  %v1580_v39 = vadd.f32 %v2116_v35, %v1826_v26  ;;  %v2118_v14 = vadd.f32 %v2103_v34, %v2039_v43 }
 0x156   : > { %1884 = vst [vmem:[%s2697_s9 + $0x10] sm:$0xff] %v1866_v28   ;;  %v1578_v1 = vadd.f32 %v2117_v41, %v1826_v26  ;;  %v2119_v33 = vadd.f32 %v1539_v52, %v944_v20 }
 0x157   : > { %v1581_v36 = vadd.f32 %v2118_v14, %v1826_v26  ;;  %v1592_v54 = vmax.f32 %v1580_v39, 0.0 }
 0x158   : > { %v1579_v3 = vadd.f32 %v2119_v33, %v1826_v26  ;;  %v1590_v7 = vmax.f32 %v1578_v1, 0.0 }
 0x159   : > { %v1593_v4 = vmax.f32 %v1581_v36, 0.0 }
 0x15a   : > { %v1591_v5 = vmax.f32 %v1579_v3, 0.0 }
 0x15b   : > { %v1881_v15 = vpack.c.bf16 %v1593_v4, %v1592_v54 }
 0x15c   : > { %v1876_v9 = vpack.c.bf16 %v1591_v5, %v1590_v7 }
 0x15d   : > { %1887 = vst [vmem:[%s2697_s9 + $0x28] sm:$0xff] %v1881_v15  }
 0x15e   : > { %1886 = vst [vmem:[%s2697_s9 + $0x20] sm:$0xff] %v1876_v9  }
 0x15f PF: > { %s13_s12 = sadd.s32 1, %s2252_s12  }
 0x160   : > { %p10_p4 = scmp.ge.s32.totalorder %s13_s12, 4  }
 0x162   :  { %12 = sbr.rel (!%p10_p4) target bundleno = 1 (0x1), region = 68 }

// kernel: stdcnet_forward.37
= control target key start
LH: loop header
LB: loop body
LE: loop exit
PB: predicated region body
PF: predicated region fallthrough
CT: control target
= control target key end

     0   :  { %s2139_s12 = smov 0   ;;  %s2552_s0 = inlined_call_operand.vmem [shape: bf16[214,16], index: 0, kind: input, shape index: {}]   ;;  %s2553_s1 = inlined_call_operand.vmem [shape: bf16[9,16,128], index: 1, kind: input, shape index: {}]   ;;  %s2554_s2 = inlined_call_operand.vmem [shape: f32[1,128], index: 2, kind: input, shape index: {}]   ;;  %s2555_s3 = inlined_call_operand.vmem [shape: bf16[192,128], index: 3, kind: output, shape index: {}]  }
   0x1 LB: > { %s1628_s13 = sadd.s32 4294967295, %s2117_s12   ;;  %p1631_p0 = scmp.ge.s32.totalorder %s2117_s12, 1  ;;  %s2117_s12 = sphi %s2139_s12, %s13_s12  }
   0x2   : > { %p127_p1 = scmp.lt.s32.totalorder %s2117_s12, 3 }
   0x4   : > { %p128_p2 = pnand %p1631_p0, %p127_p1 }
   0x5   : > { %v2086_v0 = vld [vmem:[%s2553_s1 + $0x8] sm:$0xff] (!%p128_p2)   ;;  %s153_s16 = smul.u32 (!%p128_p2), 96, %s1628_s13  ;;  %v2155_v1 = vld [vmem:[%s2553_s1 + $0x20] sm:$0xff] (!%p128_p2)   ;;  %vm211_vm0 = vsmask.f32 (!%p128_p2), 7424  ;;  %vm270_vm2 = vcmask (!%p128_p2), 130048  }
   0x6   : > { %131 = sbr.rel (%p128_p2) target bundleno = 351 (0x15f), region = 32  ;;  %1854 = vmatprep.subr.bf16.mxu1 (!%p128_p2), %v2086_v0  ;;  %v2160_v2 = vld [vmem:[%s2553_s1] sm:$0xff] (!%p128_p2)   ;;  %1910 = vmatprep.subr.bf16.mxu0 (!%p128_p2), %v2155_v1  ;;  %v2166_v3 = vld [vmem:[%s2553_s1 + $0x28] sm:$0xff] (!%p128_p2)   ;;  %vm748_vm1 = vsmask.f32 (!%p128_p2), 6400  ;;  %v2226_v42 = vld [vmem:[%s2553_s1 + $0x10] sm:$0xff] (!%p128_p2)  }
   0x7   : > { %s154_s19 = sshra.s32 (!%p128_p2), %s153_s16, 3  ;;  %1855 = vmatpush3.bf16.msra.mxu1 (!%p128_p2), %v2086_v0  ;;  %1911 = vmatpush3.bf16.msra.mxu0 (!%p128_p2), %v2155_v1  ;;  %vm931_vm3 = vcmask (!%p128_p2), 1045504   ;;  %vm472_vm4 = vcmask (!%p128_p2), 1046528   ;;  %vm1360_vm5 = vcmask (!%p128_p2), 1044480   ;;  %vm1202_vm6 = vsmask.f32 (!%p128_p2), 5376 }
   0x8   : > { %s1633_s22 = sshll.u32 (!%p128_p2), %s154_s19, 2  ;;  %1868 = vmatprep.subr.bf16.mxu1 (!%p128_p2), %v2160_v2  ;;  %1924 = vmatprep.subr.bf16.mxu0 (!%p128_p2), %v2166_v3  ;;  %s146_s11 = smul.u32 (!%p128_p2), 12, %s1628_s13 }
   0x9   : > { %s2172_s27 = scalar_lea.vmem (!%p128_p2), %s2552_s0, %s1633_s22 }
   0xa   : > { %v158_v4 = vld [vmem:[%s2172_s27] sm:$0xf] (!%p128_p2)  ;;  %v159_v5 = vld [vmem:[%s2172_s27 + $0x4] sm:$0xf] (!%p128_p2)  ;;  %v160_v6 = vld [vmem:[%s2172_s27 + $0x8] sm:$0xf] (!%p128_p2) }
   0xb   : > { %v161_v7 = vld [vmem:[%s2172_s27 + $0xc] sm:$0xf] (!%p128_p2)  ;;  %v2180_v8 = vcombine.low (!%p128_p2), %v158_v4, %v159_v5  ;;  %v162_v9 = vld [vmem:[%s2172_s27 + $0x10] sm:$0xf] (!%p128_p2)  ;;  %v163_v10 = vld [vmem:[%s2172_s27 + $0x14] sm:$0xf] (!%p128_p2)  ;;  %v2184_v11 = vcombine.low (!%p128_p2), %v159_v5, %v160_v6 }
   0xc   : > { %v2186_v12 = vcombine.low (!%p128_p2), %v160_v6, %v161_v7  ;;  %v2188_v13 = vcombine.low (!%p128_p2), %v162_v9, %v163_v10  ;;  %v2190_v14 = vcombine.low (!%p128_p2), %v161_v7, %v162_v9  ;;  %v164_v19 = vld [vmem:[%s2172_s27 + $0x18] sm:$0xf] (!%p128_p2)  ;;  %v2198_v20 = vld [vmem:[%s2172_s27 + $0x1c] sm:$0xf] (!%p128_p2)  ;;  %v2205_v25 = vld [vmem:[%s2172_s27 + $0x20] sm:$0xf] (!%p128_p2) }
   0xd   : > { %v213_v15 = vshrl.u32 %v2180_v8, 16  ;;  %v215_v16 = vshll.u32 %v2180_v8, 16  ;;  %v750_v17 = vshrl.u32 %v2184_v11, 16  ;;  %v753_v18 = vshll.u32 %v2184_v11, 16  ;;  %v2209_v30 = vld [vmem:[%s2172_s27 + $0x24] sm:$0xf] }
   0xe   : > { %v220_v21 = vshll.u32 %v2186_v12, 16  ;;  %v224_v22 = vshrl.u32 %v2186_v12, 16  ;;  %v758_v23 = vshrl.u32 %v2190_v14, 16  ;;  %v761_v24 = vshll.u32 %v2190_v14, 16  ;;  %v168_v47 = vld [vmem:[%s2172_s27 + $0x28] sm:$0xf] }
   0xf   : > { %v217_v26 = vrot.slane %v215_v16, 1  ;;  %v752_v27 = vrot.slane %v750_v17, 1  ;;  %v755_v28 = vrot.slane %v753_v18, 2  ;;  %v228_v29 = vshll.u32 %v2188_v13, 16  ;;  %v169_v48 = vld [vmem:[%s2172_s27 + $0x2c] sm:$0xf] }
  0x10   : > { %v222_v31 = vrot.slane %v220_v21, 1  ;;  %v760_v32 = vrot.slane %v758_v23, 1  ;;  %v763_v33 = vrot.slane %v761_v24, 2  ;;  %v2216_v37 = vcombine.low %v164_v19, %v2198_v20  ;;  %v2250_v56 = vld [vmem:[%s2172_s27 + $0x30] sm:$0xf]  ;;  %p147_p3 = scmp.lt.s32.totalorder %s146_s11, 23 }
  0x11   : > { %v218_v34 = vor.u32 %v217_v26, %v213_v15  ;;  %v756_v35 = vor.u32 %v755_v28, %v752_v27  ;;  %v230_v36 = vrot.slane %v228_v29, 1  ;;  %v2220_v40 = vcombine.low %v163_v10, %v164_v19  ;;  %v2099_v6 = vld [vmem:[%s2553_s1 + $0x30] sm:$0xff]  }
  0x12   : > { %v226_v38 = vor.u32 %v224_v22, %v222_v31  ;;  %v764_v39 = vor.u32 %v763_v33, %v760_v32  ;;  %v232_v41 = vshrl.u32 %v2188_v13, 16  ;;  %v236_v44 = vshll.u32 %v2216_v37, 16  ;;  %s2557_s11 = smov (!%p147_p3, %s146_s11), 23 }
  0x13   : > { %v223_v43 = vsel %vm211_vm0, %v218_v34, %v222_v31  ;;  %v2232_v45 = vcombine.low %v2205_v25, %v2209_v30  ;;  %v240_v46 = vshrl.u32 %v2216_v37, 16  ;;  %v767_v51 = vshrl.u32 %v2220_v40, 16  ;;  %v2312_v34 = vld [vmem:[%s2553_s1 + $0x38] sm:$0xff]   ;;  %s1632_s16 = sshll.u32 %s2557_s11, 2 }
  0x14   : > { %1856 = vmatprep.mubr.msk.bf16.mxu1 %vm270_vm2, %v223_v43  ;;  %v765_v49 = vsel %vm748_vm1, %v756_v35, %v764_v39  ;;  %v231_v50 = vsel %vm211_vm0, %v226_v38, %v230_v36  ;;  %v770_v52 = vshll.u32 %v2220_v40, 16  ;;  %v234_v53 = vor.u32 %v232_v41, %v230_v36  ;;  %v2320_v35 = vld [vmem:[%s2172_s27 + $0x34] sm:$0xf]  ;;  %s2541_s18 = scalar_lea.vmem %s2555_s3, %s1632_s16 }
  0x15   : > { %1912 = vmatprep.mubr.msk.bf16.mxu0 %vm270_vm2, %v765_v49  ;;  %1857 = vmatmul.mubr.msk.bf16.vlgmr.msra.gmra.mrb[0].mxu1 %vm270_vm2, %v231_v50  ;;  %v238_v54 = vrot.slane %v236_v44, 1  ;;  %v244_v55 = vshll.u32 %v2232_v45, 16  ;;  %v769_v57 = vrot.slane %v767_v51, 1  ;;  %v932_v59 = vrot.slane %v2184_v11, 2 }
  0x16   : > { %1869 = vmatpush3.bf16.msra.mxu1 %v2160_v2  ;;  %v772_v58 = vrot.slane %v770_v52, 2  ;;  %v933_v63 = vrot.slane %v2190_v14, 2  ;;  %v2264_v2 = vcombine.low %v168_v47, %v169_v48  ;;  %v248_v4 = vshrl.u32 %v2232_v45, 16 }
  0x17   : > { %v239_v60 = vsel %vm211_vm0, %v234_v53, %v238_v54  ;;  %v242_v61 = vor.u32 %v240_v46, %v238_v54  ;;  %v246_v62 = vrot.slane %v244_v55, 1  ;;  %1882 = vmatprep.subr.bf16.mxu1 %v2226_v42  ;;  %v2273_v7 = vcombine.low %v2250_v56, %v2250_v56 }
  0x18   : > { %v2261_v0 = vor.u32 %v772_v58, %v769_v57  ;;  %1860 = vmatprep.mubr.msk.bf16.mxu1 %vm270_vm2, %v239_v60  ;;  %v934_v5 = vsel %vm931_vm3, %v932_v59, %v933_v63  ;;  %v252_v16 = vshll.u32 %v2264_v2, 16  ;;  %v256_v17 = vshrl.u32 %v2264_v2, 16 }
  0x19   : > { %v247_v10 = vsel %vm211_vm0, %v242_v61, %v246_v62  ;;  %v250_v15 = vor.u32 %v248_v4, %v246_v62  ;;  %v260_v18 = vshll.u32 %v2273_v7, 16  ;;  %v2291_v23 = vcombine.low %v2198_v20, %v2205_v25 }
  0x1a   : > { %v774_v9 = vsel %vm748_vm1, %v764_v39, %v2261_v0  ;;  %v254_v19 = vrot.slane %v252_v16, 1  ;;  %v2302_v20 = vcombine.low %v2209_v30, %v168_v47  ;;  %v2306_v25 = vcombine.low %v169_v48, %v2250_v56  ;;  %v2330_v47 = vld [vmem:[%s2553_s1 + $0x18] sm:$0xff]  }
  0x1b   : > { %1913 = vmatmul.mubr.msk.bf16.vlgmr.msra.gmra.mrb[0].mxu0 %vm270_vm2, %v774_v9  ;;  %v262_v27 = vrot.slane %v260_v18, 1  ;;  %v937_v28 = vrot.slane %v2291_v23, 2  ;;  %v615_v38 = vrot.slane %v2184_v11, 1  ;;  %v616_v39 = vrot.slane %v2190_v14, 1 }
  0x1c   : > { %1925 = vmatpush3.bf16.msra.mxu0 %v2166_v3  ;;  %1926 = vmatprep.mubr.msk.bf16.mxu0 %vm270_vm2, %v934_v5  ;;  %v255_v24 = vsel %vm211_vm0, %v250_v15, %v254_v19  ;;  %v258_v26 = vor.u32 %v256_v17, %v254_v19  ;;  %v935_v3 = vrot.slane %v2220_v40, 2  ;;  %v939_v30 = vrot.slane %v2302_v20, 2 }
  0x1d   : > { %1861 = vmatmul.mubr.msk.bf16.gmra.mrb[4].mxu1 %vm270_vm2, %v247_v10  ;;  %1938 = vmatprep.subr.bf16.mxu0 %v2099_v6  ;;  %v941_v36 = vrot.slane %v2306_v25, 2  ;;  %v618_v43 = vrot.slane %v2220_v40, 1  ;;  %v2333_v48 = vsel %vm472_vm4, %v615_v38, %v616_v39  ;;  %v2338_v50 = vcombine.low %v2320_v35, %v2320_v35 }
  0x1e   : > { %1864 = vmatprep.mubr.msk.bf16.mxu1 %vm270_vm2, %v255_v24  ;;  %v263_v31 = vsel %vm211_vm0, %v258_v26, %v262_v27  ;;  %v936_v32 = vsel %vm931_vm3, %v933_v63, %v935_v3  ;;  %v938_v33 = vsel %vm931_vm3, %v935_v3, %v937_v28  ;;  %v940_v49 = vsel %vm931_vm3, %v937_v28, %v939_v30 }
  0x1f   : > { %v2343_v11 = vsel %vm472_vm4, %v616_v39, %v618_v43  ;;  %v942_v14 = vsel %vm931_vm3, %v939_v30, %v941_v36  ;;  %v1361_v51 = vrot.slane %v2186_v12, 3  ;;  %v1362_v52 = vrot.slane %v2188_v13, 3 }
  0x20   : > { %v943_v53 = vrot.slane %v2338_v50, 2  ;;  %v1069_v54 = vrot.slane %v2186_v12, 2  ;;  %v1364_v57 = vrot.slane %v2216_v37, 3  ;;  %v1366_v59 = vrot.slane %v2232_v45, 3 }
  0x21   : > { %v2361_v58 = vsel %vm1360_vm5, %v1361_v51, %v1362_v52  ;;  %v1368_v60 = vrot.slane %v2264_v2, 3  ;;  %v776_v5 = vshrl.u32 %v2291_v23, 16  ;;  %v785_v15 = vshrl.u32 %v2302_v20, 16 }
  0x22   : > { %v2366_v61 = vsel %vm1360_vm5, %v1362_v52, %v1364_v57  ;;  %v2369_v62 = vsel %vm1360_vm5, %v1364_v57, %v1366_v59  ;;  %v944_v9 = vsel %vm931_vm3, %v941_v36, %v943_v53  ;;  %v788_v18 = vshll.u32 %v2302_v20, 16 }
  0x23   : > { %v2374_v63 = vsel %vm1360_vm5, %v1366_v59, %v1368_v60  ;;  %v778_v19 = vrot.slane %v776_v5, 1  ;;  %v794_v26 = vshrl.u32 %v2306_v25, 16  ;;  %v797_v27 = vshll.u32 %v2306_v25, 16 }
  0x24   : > { %v473_v3 = vrot.slane %v2180_v8, 1  ;;  %v474_v28 = vrot.slane %v2186_v12, 1  ;;  %v803_v38 = vshrl.u32 %v2338_v50, 16  ;;  %v1072_v39 = vrot.slane %v2216_v37, 2 }
  0x25   : > { %1865 = vmatmul.mubr.msk.bf16.gmra.mrb[8].mxu1 %vm270_vm2, %v263_v31  ;;  %v787_v31 = vrot.slane %v785_v15, 1  ;;  %v796_v30 = vrot.slane %v794_v26, 1  ;;  %v799_v36 = vrot.slane %v797_v27, 2  ;;  %v2110_v15 = vld [vmem:[%s2553_s1 + $0x40] sm:$0xff]   ;;  %v1204_v27 = vrot.slane %v220_v21, 3 }
  0x26   : > { %1870 = vmatprep.mubr.msk.bf16.mxu1 %vm270_vm2, %v2180_v8  ;;  %v1074_v8 = vrot.slane %v2232_v45, 2  ;;  %v805_v53 = vrot.slane %v803_v38, 1  ;;  %v475_v59 = vsel %vm472_vm4, %v473_v3, %v474_v28  ;;  %v480_v21 = vrot.slane %v2232_v45, 1 }
  0x27   : > { %1927 = vmatmul.mubr.msk.bf16.vlgmr.msra.gmra.mrb[0].mxu0 %vm270_vm2, %v936_v32  ;;  %v790_v32 = vrot.slane %v788_v18, 2  ;;  %v800_v52 = vor.u32 %v799_v36, %v796_v30  ;;  %v476_v18 = vrot.slane %v2188_v13, 1  ;;  %v482_v30 = vrot.slane %v2264_v2, 1 }
  0x28   : > { %1939 = vmatpush3.bf16.msra.mxu0 %v2099_v6  ;;  %1930 = vmatprep.mubr.msk.bf16.mxu0 %vm270_vm2, %v938_v33  ;;  %v779_v6 = vshll.u32 %v2291_v23, 16  ;;  %v1210_v36 = vrot.slane %v240_v46, 2  ;;  %v624_v40 = vrot.slane %v2306_v25, 1 }
  0x29   : > { %1952 = vmatprep.subr.bf16.mxu0 %v2312_v34 }
  0x2a   : > { %v781_v24 = vrot.slane %v779_v6, 2 }
  0x2c   : > { %v782_v33 = vor.u32 %v781_v24, %v778_v19  ;;  %v477_v24 = vsel %vm472_vm4, %v474_v28, %v476_v18  ;;  %v1207_v28 = vrot.slane %v228_v29, 3  ;;  %v483_v29 = vsel %vm472_vm4, %v480_v21, %v482_v30 }
  0x2d   : > { %1871 = vmatmul.mubr.msk.bf16.vlgmr.msra.gmra.mrb[0].mxu1 %vm270_vm2, %v2186_v12 }
  0x2e   : > { %1883 = vmatpush3.bf16.msra.mxu1 %v2226_v42  ;;  %1874 = vmatprep.mubr.msk.bf16.mxu1 %vm270_vm2, %v2188_v13  ;;  %v1070_v42 = vrot.slane %v2188_v13, 2  ;;  %v2398_v51 = vsel %vm748_vm1, %v2261_v0, %v782_v33  ;;  %v1075_v0 = vsel %vm931_vm3, %v1072_v39, %v1074_v8 }
  0x2f   : > { %1931 = vmatmul.mubr.msk.bf16.gmra.mrb[4].mxu0 %vm270_vm2, %v940_v49  ;;  %1896 = vmatprep.subr.bf16.mxu1 %v2330_v47  ;;  %v791_v49 = vor.u32 %v790_v32, %v787_v31  ;;  %v2435_v31 = vld [vmem:[%s2172_s27 + $0x38] ss:$0 sps:$4 sm:$0x77]   ;;  %v1203_v32 = vrot.slane %v224_v22, 2 }
  0x30   : > { %1934 = vmatprep.mubr.msk.bf16.mxu0 %vm270_vm2, %v942_v14  ;;  %v1071_v10 = vsel %vm931_vm3, %v1069_v54, %v1070_v42  ;;  %v806_v14 = vshll.u32 %v2338_v50, 16  ;;  %v1073_v6 = vsel %vm931_vm3, %v1070_v42, %v1072_v39  ;;  %v1080_v12 = vrot.slane %v2435_v31, 2 }
  0x31   : > { %v2401_v54 = vsel %vm748_vm1, %v782_v33, %v791_v49  ;;  %v2405_v5 = vsel %vm748_vm1, %v791_v49, %v800_v52  ;;  %v1206_v33 = vrot.slane %v232_v41, 2  ;;  %v1205_v22 = vor.u32 %v1204_v27, %v1203_v32 }
  0x32   : > { %v808_v57 = vrot.slane %v806_v14, 2  ;;  %v1214_v49 = vrot.slane %v248_v4, 2  ;;  %v1215_v14 = vrot.slane %v244_v55, 3  ;;  %v1219_v55 = vrot.slane %v252_v16, 3 }
  0x33   : > { %v1208_v41 = vor.u32 %v1207_v28, %v1206_v33  ;;  %v1235_v16 = vshll.u32 %v2435_v31, 16 }
  0x35   : > { %1875 = vmatmul.mubr.msk.bf16.gmra.mrb[4].mxu1 %vm270_vm2, %v2216_v37  ;;  %v1209_v39 = vsel %vm1202_vm6, %v1205_v22, %v1208_v41 }
  0x36   : > { %1878 = vmatprep.mubr.msk.bf16.mxu1 %vm270_vm2, %v2232_v45  ;;  %v1218_v45 = vrot.slane %v256_v17, 2 }
  0x37   : > { %1935 = vmatmul.mubr.msk.bf16.gmra.mrb[8].mxu0 %vm270_vm2, %v944_v9  ;;  %v809_v9 = vor.u32 %v808_v57, %v805_v53 }
  0x38   : > { %1940 = vmatprep.mubr.msk.bf16.mxu0 %vm270_vm2, %v1071_v10  ;;  %v2410_v10 = vcombine.low %v2250_v56, %v2320_v35  ;;  %v478_v56 = vrot.slane %v2216_v37, 1  ;;  %v1076_v35 = vrot.slane %v2264_v2, 2  ;;  %v1220_v17 = vor.u32 %v1219_v55, %v1218_v45 }
  0x39   : > { %v2421_v42 = vsel %vm748_vm1, %v800_v52, %v809_v9  ;;  %v1232_v9 = vshrl.u32 %v2435_v31, 16 }
  0x3a   : > { %v1078_v19 = vrot.slane %v2410_v10, 2  ;;  %v479_v26 = vsel %vm472_vm4, %v476_v18, %v478_v56  ;;  %v1077_v3 = vsel %vm931_vm3, %v1074_v8, %v1076_v35  ;;  %v481_v13 = vsel %vm472_vm4, %v478_v56, %v480_v21 }
  0x3b   : > { %v484_v8 = vrot.slane %v2273_v7, 1  ;;  %v1223_v46 = vshrl.u32 %v2410_v10, 16  ;;  %v1226_v52 = vshll.u32 %v2410_v10, 16  ;;  %v1370_v25 = vrot.slane %v2410_v10, 3 }
  0x3c   : > { %v1081_v38 = vsel %vm931_vm3, %v1078_v19, %v1080_v12 }
  0x3d   : > { %1879 = vmatmul.mubr.msk.bf16.gmra.mrb[8].mxu1 %vm270_vm2, %v2264_v2  ;;  %v485_v53 = vsel %vm472_vm4, %v482_v30, %v484_v8  ;;  %v1225_v57 = vrot.slane %v1223_v46, 2 }
  0x3e   : > { %1884 = vmatprep.mubr.msk.bf16.mxu1 %vm270_vm2, %v475_v59  ;;  %v1228_v59 = vrot.slane %v1226_v52, 3 }
  0x3f   : > { %1941 = vmatmul.mubr.msk.bf16.vlgmr.msra.gmra.mrb[0].mxu0 %vm270_vm2, %v1073_v6  ;;  %v620_v6 = vrot.slane %v2291_v23, 1 }
  0x40   : > { %1953 = vmatpush3.bf16.msra.mxu0 %v2312_v34  ;;  %1944 = vmatprep.mubr.msk.bf16.mxu0 %vm270_vm2, %v1075_v0  ;;  %v1079_v34 = vsel %vm931_vm3, %v1076_v35, %v1078_v19  ;;  %v1229_v0 = vor.u32 %v1228_v59, %v1225_v57  ;;  %v1237_v35 = vrot.slane %v1235_v16, 3 }
  0x41   : > { %1966 = vmatprep.subr.bf16.mxu0 %v2110_v15  ;;  %v621_v18 = vsel %vm472_vm4, %v618_v43, %v620_v6 }
  0x42   : > { %v1230_v23 = vsel %vm1202_vm6, %v1220_v17, %v1229_v0 }
  0x45   : > { %1885 = vmatmul.mubr.msk.bf16.vlgmr.msra.gmra.mrb[0].mxu1 %vm270_vm2, %v477_v24 }
  0x46   : > { %1897 = vmatpush3.bf16.msra.mxu1 %v2330_v47  ;;  %1888 = vmatprep.mubr.msk.bf16.mxu1 %vm270_vm2, %v479_v26  ;;  %v1211_v47 = vrot.slane %v236_v44, 3  ;;  %v1216_v44 = vor.u32 %v1215_v14, %v1214_v49 }
  0x47   : > { %1945 = vmatmul.mubr.msk.bf16.gmra.mrb[4].mxu0 %vm270_vm2, %v1077_v3  ;;  %1980 = vmatprep.subr.bf16.mxu1 %v2155_v1 }
  0x48   : > { %1948 = vmatprep.mubr.msk.bf16.mxu0 %vm270_vm2, %v1079_v34  ;;  %v1212_v37 = vor.u32 %v1211_v47, %v1210_v36  ;;  %v1221_v56 = vsel %vm1202_vm6, %v1216_v44, %v1220_v17 }
  0x4a   : > { %v1213_v4 = vsel %vm1202_vm6, %v1208_v41, %v1212_v37  ;;  %v1217_v7 = vsel %vm1202_vm6, %v1212_v37, %v1216_v44 }
  0x4d   : > { %1889 = vmatmul.mubr.msk.bf16.gmra.mrb[4].mxu1 %vm270_vm2, %v481_v13 }
  0x4e   : > { %1892 = vmatprep.mubr.msk.bf16.mxu1 %vm270_vm2, %v483_v29 }
  0x4f   : > { %1949 = vmatmul.mubr.msk.bf16.gmra.mrb[8].mxu0 %vm270_vm2, %v1081_v38 }
  0x50   : > { %1954 = vmatprep.mubr.msk.bf16.mxu0 %vm270_vm2, %v1209_v39 }
  0x55   : > { %1893 = vmatmul.mubr.msk.bf16.gmra.mrb[8].mxu1 %vm270_vm2, %v485_v53 }
  0x56   : > { %1898 = vmatprep.mubr.msk.bf16.mxu1 %vm270_vm2, %v2333_v48  ;;  %v1234_v48 = vrot.slane %v1232_v9, 2 }
  0x57   : > { %1955 = vmatmul.mubr.msk.bf16.vlgmr.msra.gmra.mrb[0].mxu0 %vm270_vm2, %v1213_v4 }
  0x58   : > { %1967 = vmatpush3.bf16.msra.mxu0 %v2110_v15  ;;  %1958 = vmatprep.mubr.msk.bf16.mxu0 %vm270_vm2, %v1217_v7  ;;  %v622_v15 = vrot.slane %v2302_v20, 1  ;;  %v1238_v43 = vor.u32 %v1237_v35, %v1234_v48 }
  0x5a   : > { %v623_v19 = vsel %vm472_vm4, %v620_v6, %v622_v15  ;;  %v625_v24 = vsel %vm472_vm4, %v622_v15, %v624_v40 }
  0x5d   : > { %1899 = vmatmul.mubr.msk.bf16.vlgmr.msra.gmra.mrb[0].mxu1 %vm270_vm2, %v2343_v11  ;;  %v1239_v11 = vsel %vm1202_vm6, %v1229_v0, %v1238_v43 }
  0x5e   : > { %1981 = vmatpush3.bf16.msra.mxu1 %v2155_v1  ;;  %1902 = vmatprep.mubr.msk.bf16.mxu1 %vm270_vm2, %v621_v18  ;;  %v626_v1 = vrot.slane %v2338_v50, 1  ;;  %v1371_v50 = vsel %vm1360_vm5, %v1368_v60, %v1370_v25 }
  0x5f   : > { %1959 = vmatmul.mubr.msk.bf16.gmra.mrb[4].mxu0 %vm270_vm2, %v1221_v56 }
  0x60   : > { %1962 = vmatprep.mubr.msk.bf16.mxu0 %vm270_vm2, %v1230_v23  ;;  %v627_v20 = vsel %vm472_vm4, %v624_v40, %v626_v1 }
  0x65   : > { %1903 = vmatmul.mubr.msk.bf16.gmra.mrb[4].mxu1 %vm270_vm2, %v623_v19 }
  0x66   : > { %1906 = vmatprep.mubr.msk.bf16.mxu1 %vm270_vm2, %v625_v24 }
  0x67   : > { %1963 = vmatmul.mubr.msk.bf16.gmra.mrb[8].mxu0 %vm270_vm2, %v1239_v11 }
  0x68   : > { %1968 = vmatprep.mubr.msk.bf16.mxu0 %vm270_vm2, %v2361_v58  ;;  %v1372_v58 = vrot.slane %v2435_v31, 3 }
  0x6d   : > { %1907 = vmatmul.mubr.msk.bf16.gmra.mrb[8].mxu1 %vm270_vm2, %v627_v20 }
  0x6e   : > { %1916 = vmatprep.mubr.msk.bf16.mxu1 %vm270_vm2, %v2398_v51 }
  0x6f   : > { %1969 = vmatmul.mubr.msk.bf16.vlgmr.msra.gmra.mrb[0].mxu0 %vm270_vm2, %v2366_v61  ;;  %v1373_v61 = vsel %vm1360_vm5, %v1370_v25, %v1372_v58 }
  0x70   : > { %1972 = vmatprep.mubr.msk.bf16.mxu0 %vm270_vm2, %v2369_v62 }
  0x75   : > { %1917 = vmatmul.mubr.msk.bf16.vlgmr.msra.gmra.mrb[4].mxu1 %vm270_vm2, %v2401_v54 }
  0x76   : > { %1920 = vmatprep.mubr.msk.bf16.mxu1 %vm270_vm2, %v2405_v5 }
  0x77   : > { %1973 = vmatmul.mubr.msk.bf16.gmra.mrb[4].mxu0 %vm270_vm2, %v2374_v63  ;;  %v1729_v63 = vld [vmem:[%s2554_s2] ss:$0 sm:$0xff] }
  0x78   : > { %1976 = vmatprep.mubr.msk.bf16.mxu0 %vm270_vm2, %v1371_v50 }
  0x7d   : > { %1921 = vmatmul.mubr.msk.bf16.gmra.mrb[8].mxu1 %vm270_vm2, %v2421_v42 }
  0x7f   : > { %1977 = vmatmul.mubr.msk.bf16.gmra.mrb[8].mxu0 %vm270_vm2, %v1373_v61 }
 0x130   : > { %v1900_v2 = vpop.f32.mrb[0].mxu1 }
 0x131   : > { %v686_v62 = vpop.f32.mrb[1].mxu1 }
 0x132   : > { %v1901_v60 = vpop.f32.mrb[2].mxu1 }
 0x133   : > { %v689_v51 = vpop.f32.mrb[3].mxu1 }
 0x142   : > { %v1970_v54 = vpop.f32.mrb[0].mxu0 }
 0x143   : > { %v1982_v5 = vadd.f32 %v1970_v54, %v1900_v2  ;;  %v1432_v10 = vpop.f32.mrb[1].mxu0 }
 0x144   : > { %v1983_v26 = vadd.f32 %v1432_v10, %v686_v62  ;;  %v1971_v27 = vpop.f32.mrb[2].mxu0 }
 0x145   : > { %v1500_v42 = vadd.f32 %v1982_v5, %v1729_v63  ;;  %v1984_v3 = vadd.f32 %v1971_v27, %v1901_v60  ;;  %v1435_v31 = vpop.f32.mrb[3].mxu0 }
 0x146   : > { %v1498_v34 = vadd.f32 %v1983_v26, %v1729_v63  ;;  %v1985_v32 = vadd.f32 %v1435_v31, %v689_v51 }
 0x147   : > { %v1501_v33 = vadd.f32 %v1984_v3, %v1729_v63  ;;  %v1512_v30 = vmax.f32 %v1500_v42, 0.0 }
 0x148   : > { %v1499_v28 = vadd.f32 %v1985_v32, %v1729_v63  ;;  %v1918_v21 = vpop.f32.mrb[4].mxu1  ;;  %v1510_v41 = vmax.f32 %v1498_v34, 0.0 }
 0x149   : > { %v1513_v12 = vmax.f32 %v1501_v33, 0.0  ;;  %v885_v22 = vpop.f32.mrb[5].mxu1 }
 0x14a   : > { %v1511_v13 = vmax.f32 %v1499_v28, 0.0  ;;  %v1974_v29 = vpop.f32.mrb[4].mxu0  ;;  %v1919_v47 = vpop.f32.mrb[6].mxu1 }
 0x14b   : > { %v1764_v36 = vpack.c.bf16 %v1513_v12, %v1512_v30  ;;  %v1448_v38 = vpop.f32.mrb[5].mxu0  ;;  %v1986_v39 = vadd.f32 %v1974_v29, %v1918_v21  ;;  %v888_v49 = vpop.f32.mrb[7].mxu1 }
 0x14c   : > { %v1759_v14 = vpack.c.bf16 %v1511_v13, %v1510_v41  ;;  %v1975_v8 = vpop.f32.mrb[6].mxu0  ;;  %v1987_v37 = vadd.f32 %v1448_v38, %v885_v22 }
 0x14d   : > { %1786 = vst [vmem:[%s2541_s18 + $0x8] sm:$0xff] %v1764_v36   ;;  %v1451_v44 = vpop.f32.mrb[7].mxu0  ;;  %v1504_v46 = vadd.f32 %v1986_v39, %v1729_v63  ;;  %v1988_v52 = vadd.f32 %v1975_v8, %v1919_v47 }
 0x14e   : > { %1760 = vst [vmem:[%s2541_s18] sm:$0xff] %v1759_v14   ;;  %v1502_v53 = vadd.f32 %v1987_v37, %v1729_v63  ;;  %v1989_v4 = vadd.f32 %v1451_v44, %v888_v49 }
 0x14f   : > { %v1505_v45 = vadd.f32 %v1988_v52, %v1729_v63  ;;  %v1516_v57 = vmax.f32 %v1504_v46, 0.0 }
 0x150   : > { %v1503_v55 = vadd.f32 %v1989_v4, %v1729_v63  ;;  %v1922_v7 = vpop.f32.mrb[8].mxu1  ;;  %v1514_v17 = vmax.f32 %v1502_v53, 0.0 }
 0x151   : > { %v1517_v59 = vmax.f32 %v1505_v45, 0.0  ;;  %v901_v6 = vpop.f32.mrb[9].mxu1 }
 0x152   : > { %v1515_v9 = vmax.f32 %v1503_v55, 0.0  ;;  %v1978_v16 = vpop.f32.mrb[8].mxu0  ;;  %v1923_v0 = vpop.f32.mrb[10].mxu1 }
 0x153   : > { %v1774_v18 = vpack.c.bf16 %v1517_v59, %v1516_v57  ;;  %v1464_v56 = vpop.f32.mrb[9].mxu0  ;;  %v1990_v48 = vadd.f32 %v1978_v16, %v1922_v7  ;;  %v904_v35 = vpop.f32.mrb[11].mxu1 }
 0x154   : > { %v1769_v23 = vpack.c.bf16 %v1515_v9, %v1514_v17  ;;  %v1979_v15 = vpop.f32.mrb[10].mxu0  ;;  %v1991_v40 = vadd.f32 %v1464_v56, %v901_v6 }
 0x155   : > { %1788 = vst [vmem:[%s2541_s18 + $0x18] sm:$0xff] %v1774_v18   ;;  %v1467_v43 = vpop.f32.mrb[11].mxu0  ;;  %v1508_v19 = vadd.f32 %v1990_v48, %v1729_v63  ;;  %v1992_v24 = vadd.f32 %v1979_v15, %v1923_v0 }
 0x156   : > { %1787 = vst [vmem:[%s2541_s18 + $0x10] sm:$0xff] %v1769_v23   ;;  %v1506_v11 = vadd.f32 %v1991_v40, %v1729_v63  ;;  %v1993_v1 = vadd.f32 %v1467_v43, %v904_v35 }
 0x157   : > { %v1509_v20 = vadd.f32 %v1992_v24, %v1729_v63  ;;  %v1520_v50 = vmax.f32 %v1508_v19, 0.0 }
 0x158   : > { %v1507_v25 = vadd.f32 %v1993_v1, %v1729_v63  ;;  %v1518_v61 = vmax.f32 %v1506_v11, 0.0 }
 0x159   : > { %v1521_v58 = vmax.f32 %v1509_v20, 0.0 }
 0x15a   : > { %v1519_v2 = vmax.f32 %v1507_v25, 0.0 }
 0x15b   : > { %v1784_v62 = vpack.c.bf16 %v1521_v58, %v1520_v50 }
 0x15c   : > { %v1779_v60 = vpack.c.bf16 %v1519_v2, %v1518_v61 }
 0x15d   : > { %1790 = vst [vmem:[%s2541_s18 + $0x28] sm:$0xff] %v1784_v62  }
 0x15e   : > { %1789 = vst [vmem:[%s2541_s18 + $0x20] sm:$0xff] %v1779_v60  }
 0x15f PF: > { %s13_s12 = sadd.s32 1, %s2117_s12  }
 0x160   : > { %p10_p4 = scmp.ge.s32.totalorder %s13_s12, 4  }
 0x162   :  { %12 = sbr.rel (!%p10_p4) target bundleno = 1 (0x1), region = 68 }

// kernel: stdcnet_forward.39
= control target key start
LH: loop header
LB: loop body
LE: loop exit
PB: predicated region body
PF: predicated region fallthrough
CT: control target
= control target key end

     0   :  { %s540_s6 = smov 0   ;;  %s681_s0 = inlined_call_operand.vmem [shape: bf16[2,4,9,9,32], index: 0, kind: input, shape index: {}]   ;;  %s682_s1 = inlined_call_operand.vmem [shape: bf16[2,8,8,32], index: 1, kind: output, shape index: {}]  }
   0x1 LB: > { %s469_s7 = sadd.s32 4294967295, %s528_s6   ;;  %p473_p0 = scmp.ge.s32.totalorder %s528_s6, 1  ;;  %s528_s6 = sphi %s540_s6, %s11_s6  }
   0x2   : > { %p87_p1 = scmp.lt.s32.totalorder %s528_s6, 3 }
   0x4   : > { %p88_p2 = pnand %p473_p0, %p87_p1 }
   0x5   : > { %p107_p3 = scmp.lt.s32.totalorder (!%p88_p2), %s469_s7, 1  ;;  %vm193_vm0 = vcmask (!%p88_p2), 1046528   ;;  %vm405_vm1 = vcmask (!%p88_p2), 257024  }
   0x6   : > { %91 = sbr.rel (%p88_p2) target bundleno = 75 (0x4b), region = 24 }
   0xd   : > { %s684_s7 = smov (!%p107_p3, %s469_s7), 1 }
   0xe   : > { %s513_s8 = smul.u32 288, %s684_s7  ;;  %s512_s12 = sshll.u32 %s684_s7, 5 }
   0xf   : > { %s623_s15 = scalar_lea.vmem %s682_s1, %s512_s12 }
  0x10   : > { %s554_s11 = scalar_lea.vmem %s681_s0, %s513_s8 }
  0x11   : > { %v117_v0 = vld [vmem:[%s554_s11] ss:$8 sps:$4 sm:$0xff]   ;;  %v118_v1 = vld [vmem:[%s554_s11 + $0x4] sm:$0x1]  ;;  %v120_v2 = vld [vmem:[%s554_s11 + $0xc] sm:$0x1] }
  0x12   : > { %v135_v3 = vunpack.c.l.bf16 %v117_v0  ;;  %v559_v4 = vunpack.c.h.bf16 %v117_v0  ;;  %v562_v5 = vld [vmem:[%s554_s11 + $0x48] ss:$8 sps:$4 sm:$0xff]   ;;  %v169_v6 = vunpack.c.l.bf16 %v118_v1  ;;  %v170_v7 = vunpack.c.l.bf16 %v120_v2  ;;  %v487_v11 = vld [vmem:[%s554_s11 + $0x94] sm:$0x1]  ;;  %v502_v14 = vld [vmem:[%s554_s11 + $0xd8] ss:$8 sps:$4 sm:$0xff]  }
  0x13   : > { %v486_v8 = vld [vmem:[%s554_s11 + $0x90] ss:$8 sps:$4 sm:$0xff]   ;;  %v153_v9 = vunpack.c.l.bf16 %v562_v5  ;;  %v154_v10 = vunpack.c.h.bf16 %v562_v5  ;;  %v276_v22 = vunpack.c.l.bf16 %v502_v14  ;;  %v122_v23 = vld [vmem:[%s554_s11 + $0x14] sm:$0x1]  ;;  %v292_v26 = vunpack.c.l.bf16 %v487_v11  ;;  %v490_v28 = vld [vmem:[%s554_s11 + $0xa0] ss:$72 sps:$4 sm:$0xff]  }
  0x14   : > { %v251_v12 = vunpack.c.l.bf16 %v486_v8  ;;  %v252_v13 = vunpack.c.h.bf16 %v486_v8  ;;  %v194_v15 = vrot.slane %v135_v3, 1  ;;  %v195_v16 = vrot.slane %v169_v6, 1  ;;  %v571_v19 = vld [vmem:[%s554_s11 + $0x10] ss:$72 sps:$4 sm:$0xff]   ;;  %v489_v33 = vld [vmem:[%s554_s11 + $0x9c] sm:$0x1] }
  0x15   : > { %v197_v17 = vrot.slane %v559_v4, 1  ;;  %v198_v18 = vrot.slane %v170_v7, 1  ;;  %v161_v20 = vadd.f32 %v153_v9, %v135_v3  ;;  %v162_v21 = vadd.f32 %v154_v10, %v559_v4  ;;  %v587_v38 = vld [vmem:[%s554_s11 + $0x18] ss:$72 sps:$4 sm:$0xff]   ;;  %v124_v43 = vld [vmem:[%s554_s11 + $0x1c] sm:$0x1] }
  0x16   : > { %v196_v24 = vsel %vm193_vm0, %v194_v15, %v195_v16  ;;  %v316_v27 = vrot.slane %v251_v12, 1  ;;  %v277_v31 = vunpack.c.h.bf16 %v502_v14  ;;  %v137_v32 = vunpack.c.l.bf16 %v571_v19  ;;  %v492_v52 = vld [vmem:[%s554_s11 + $0xa8] ss:$72 sps:$4 sm:$0xff]   ;;  %v491_v57 = vld [vmem:[%s554_s11 + $0xa4] sm:$0x1] }
  0x17   : > { %v579_v25 = vsel %vm193_vm0, %v197_v17, %v198_v18  ;;  %v226_v29 = vadd.f32 %v196_v24, %v161_v20  ;;  %v317_v34 = vrot.slane %v292_v26, 1  ;;  %v319_v35 = vrot.slane %v252_v13, 1  ;;  %v597_v62 = vld [vmem:[%s554_s11 + $0x20] ss:$72 sps:$4 sm:$0xff]   ;;  %v126_v9 = vld [vmem:[%s554_s11 + $0x24] sm:$0x1] }
  0x18   : > { %v227_v30 = vadd.f32 %v579_v25, %v162_v21  ;;  %v155_v36 = vunpack.c.h.bf16 %v571_v19  ;;  %v171_v37 = vunpack.c.l.bf16 %v122_v23  ;;  %v200_v41 = vrot.slane %v137_v32, 1  ;;  %v494_v19 = vld [vmem:[%s554_s11 + $0xb0] ss:$72 sps:$4 sm:$0xff]  }
  0x19   : > { %v259_v39 = vadd.f32 %v251_v12, %v226_v29  ;;  %v253_v42 = vunpack.c.l.bf16 %v490_v28  ;;  %v318_v44 = vsel %vm193_vm0, %v316_v27, %v317_v34  ;;  %v293_v47 = vunpack.c.l.bf16 %v489_v33 }
  0x1a   : > { %v260_v40 = vadd.f32 %v252_v13, %v227_v30  ;;  %v163_v45 = vadd.f32 %v155_v36, %v137_v32  ;;  %v201_v46 = vrot.slane %v171_v37, 1  ;;  %v278_v50 = vunpack.c.h.bf16 %v490_v28  ;;  %v616_v28 = vld [vmem:[%s554_s11 + $0x28] ss:$72 sps:$4 sm:$0xff]   ;;  %v128_v37 = vld [vmem:[%s554_s11 + $0x2c] sm:$0x1] }
  0x1b   : > { %v284_v48 = vadd.f32 %v276_v22, %v259_v39  ;;  %v138_v51 = vunpack.c.l.bf16 %v587_v38  ;;  %v320_v54 = vrot.slane %v293_v47, 1  ;;  %v156_v55 = vunpack.c.h.bf16 %v587_v38 }
  0x1c   : > { %v285_v49 = vadd.f32 %v277_v31, %v260_v40  ;;  %v202_v53 = vsel %vm193_vm0, %v200_v41, %v201_v46  ;;  %v172_v56 = vunpack.c.l.bf16 %v124_v43  ;;  %v322_v60 = vrot.slane %v253_v42, 1 }
  0x1d   : > { %v348_v58 = vadd.f32 %v318_v44, %v284_v48  ;;  %v228_v59 = vadd.f32 %v202_v53, %v163_v45  ;;  %v203_v61 = vrot.slane %v138_v51, 1  ;;  %v321_v63 = vsel %vm193_vm0, %v319_v35, %v320_v54  ;;  %v496_v45 = vld [vmem:[%s554_s11 + $0xb8] ss:$72 sps:$4 sm:$0xff]  }
  0x1e   : > { %v164_v0 = vadd.f32 %v156_v55, %v138_v51  ;;  %v204_v1 = vrot.slane %v172_v56, 1  ;;  %v254_v2 = vunpack.c.l.bf16 %v492_v52  ;;  %v349_v7 = vadd.f32 %v321_v63, %v285_v49 }
  0x1f   : > { %v357_v3 = vadd.f32 %v348_v58, %v559_v4  ;;  %v261_v6 = vadd.f32 %v253_v42, %v228_v59  ;;  %v294_v8 = vunpack.c.l.bf16 %v491_v57  ;;  %v279_v12 = vunpack.c.h.bf16 %v492_v52  ;;  %v493_v4 = vld [vmem:[%s554_s11 + $0xac] sm:$0x1] }
  0x20   : > { %v205_v11 = vsel %vm193_vm0, %v203_v61, %v204_v1  ;;  %v139_v13 = vunpack.c.l.bf16 %v597_v62  ;;  %v157_v14 = vunpack.c.h.bf16 %v597_v62  ;;  %v358_v17 = vadd.f32 %v349_v7, %v137_v32  ;;  %v497_v7 = vld [vmem:[%s554_s11 + $0xbc] sm:$0x1] }
  0x21   : > { %v366_v15 = vadd.f32 %v357_v3, %v154_v10  ;;  %v286_v16 = vadd.f32 %v278_v50, %v261_v6  ;;  %v229_v18 = vadd.f32 %v205_v11, %v164_v0  ;;  %v323_v20 = vrot.slane %v294_v8, 1  ;;  %v495_v50 = vld [vmem:[%s554_s11 + $0xb4] sm:$0x1] }
  0x22   : > { %v325_v21 = vrot.slane %v254_v2, 1  ;;  %v173_v22 = vunpack.c.l.bf16 %v126_v9  ;;  %v206_v23 = vrot.slane %v139_v13, 1  ;;  %v367_v26 = vadd.f32 %v358_v17, %v155_v36 }
  0x23   : > { %v381_v24 = vadd.f32 %v366_v15, %v579_v25  ;;  %v262_v27 = vadd.f32 %v254_v2, %v229_v18  ;;  %v165_v5 = vadd.f32 %v157_v14, %v139_v13  ;;  %v324_v10 = vsel %vm193_vm0, %v322_v60, %v323_v20  ;;  %v130_v2 = vld [vmem:[%s554_s11 + $0x34] sm:$0x1] }
  0x24   : > { %v207_v29 = vrot.slane %v173_v22, 1  ;;  %v255_v30 = vunpack.c.l.bf16 %v494_v19  ;;  %v295_v31 = vunpack.c.l.bf16 %v493_v4  ;;  %v382_v33 = vadd.f32 %v367_v26, %v202_v53  ;;  %v649_v4 = vld [vmem:[%s554_s11 + $0x38] ss:$72 sps:$4 sm:$0xff]   ;;  %v132_v26 = vld [vmem:[%s554_s11 + $0x3c] sm:$0x1] }
  0x25   : > { %v389_v32 = vmul.f32 0.11111111, %v381_v24  ;;  %v287_v34 = vadd.f32 %v279_v12, %v262_v27  ;;  %v350_v35 = vadd.f32 %v324_v10, %v286_v16  ;;  %v280_v36 = vunpack.c.h.bf16 %v494_v19 }
  0x26   : > { %v208_v25 = vsel %vm193_vm0, %v206_v23, %v207_v29  ;;  %v326_v39 = vrot.slane %v295_v31, 1  ;;  %v140_v40 = vunpack.c.l.bf16 %v616_v28  ;;  %v390_v42 = vmul.f32 0.11111111, %v382_v33  ;;  %v500_v29 = vld [vmem:[%s554_s11 + $0xc8] ss:$72 sps:$4 sm:$0xff]  }
  0x27   : > { %v397_v41 = vpack.c.bf16 %v389_v32, %v389_v32  ;;  %v359_v43 = vadd.f32 %v350_v35, %v138_v51  ;;  %v230_v44 = vadd.f32 %v208_v25, %v165_v5  ;;  %v158_v47 = vunpack.c.h.bf16 %v616_v28  ;;  %v636_v51 = vld [vmem:[%s554_s11 + $0x30] ss:$72 sps:$4 sm:$0xff]  }
  0x28   : > { %v327_v46 = vsel %vm193_vm0, %v325_v21, %v326_v39  ;;  %v174_v48 = vunpack.c.l.bf16 %v128_v37  ;;  %v209_v49 = vrot.slane %v140_v40, 1  ;;  %v398_v52 = vpack.c.bf16 %v390_v42, %v390_v42  ;;  %v501_v39 = vld [vmem:[%s554_s11 + $0xcc] sm:$0x1] }
  0x29   : > { %406 = vst.msk [vmem:[%s623_s15] sm:$0xf] %vm405_vm1, %v397_v41  ;;  %v368_v53 = vadd.f32 %v359_v43, %v156_v55  ;;  %v263_v54 = vadd.f32 %v255_v30, %v230_v44  ;;  %v351_v56 = vadd.f32 %v327_v46, %v287_v34  ;;  %v328_v57 = vrot.slane %v255_v30, 1 }
  0x2a   : > { %v166_v58 = vadd.f32 %v158_v47, %v140_v40  ;;  %v210_v59 = vrot.slane %v174_v48, 1  ;;  %v256_v60 = vunpack.c.l.bf16 %v496_v45  ;;  %407 = vst.msk [vmem:[%s623_s15 + $0x4] sm:$0xf] %vm405_vm1, %v398_v52  ;;  %v281_v0 = vunpack.c.h.bf16 %v496_v45 }
  0x2b   : > { %v383_v61 = vadd.f32 %v368_v53, %v205_v11  ;;  %v360_v63 = vadd.f32 %v351_v56, %v139_v13  ;;  %v296_v1 = vunpack.c.l.bf16 %v495_v50  ;;  %v288_v38 = vadd.f32 %v280_v36, %v263_v54  ;;  %v498_v13 = vld [vmem:[%s554_s11 + $0xc0] ss:$72 sps:$4 sm:$0xff]   ;;  %v499_v36 = vld [vmem:[%s554_s11 + $0xc4] sm:$0x1] }
  0x2c   : > { %v211_v55 = vsel %vm193_vm0, %v209_v49, %v210_v59  ;;  %v141_v3 = vunpack.c.l.bf16 %v636_v51  ;;  %v159_v6 = vunpack.c.h.bf16 %v636_v51  ;;  %v331_v15 = vrot.slane %v256_v60, 1  ;;  %v133_v53 = vld [vmem:[%s554_s11 + $0x40] ss:$72 sps:$4 sm:$0xff]   ;;  %v134_v54 = vld [vmem:[%s554_s11 + $0x44] sm:$0x1] }
  0x2d   : > { %v391_v8 = vmul.f32 0.11111111, %v383_v61  ;;  %v369_v9 = vadd.f32 %v360_v63, %v157_v14  ;;  %v231_v12 = vadd.f32 %v211_v55, %v166_v58  ;;  %v329_v11 = vrot.slane %v296_v1, 1 }
  0x2e   : > { %v167_v16 = vadd.f32 %v159_v6, %v141_v3  ;;  %v175_v17 = vunpack.c.l.bf16 %v130_v2  ;;  %v212_v18 = vrot.slane %v141_v3, 1  ;;  %v257_v14 = vunpack.c.l.bf16 %v498_v13 }
  0x2f   : > { %v399_v19 = vpack.c.bf16 %v391_v8, %v391_v8  ;;  %v384_v20 = vadd.f32 %v369_v9, %v208_v25  ;;  %v264_v21 = vadd.f32 %v256_v60, %v231_v12  ;;  %v330_v22 = vsel %vm193_vm0, %v328_v57, %v329_v11 }
  0x30   : > { %v352_v23 = vadd.f32 %v330_v22, %v288_v38  ;;  %v213_v62 = vrot.slane %v175_v17, 1  ;;  %v297_v24 = vunpack.c.l.bf16 %v497_v7  ;;  %v282_v28 = vunpack.c.h.bf16 %v498_v13 }
  0x31   : > { %408 = vst.msk [vmem:[%s623_s15 + $0x8] sm:$0xf] %vm405_vm1, %v399_v19  ;;  %v392_v27 = vmul.f32 0.11111111, %v384_v20  ;;  %v289_v5 = vadd.f32 %v281_v0, %v264_v21  ;;  %v142_v10 = vunpack.c.l.bf16 %v649_v4  ;;  %v160_v33 = vunpack.c.h.bf16 %v649_v4 }
  0x32   : > { %v361_v30 = vadd.f32 %v352_v23, %v140_v40  ;;  %v214_v31 = vsel %vm193_vm0, %v212_v18, %v213_v62  ;;  %v332_v32 = vrot.slane %v297_v24, 1  ;;  %v176_v37 = vunpack.c.l.bf16 %v132_v26 }
  0x33   : > { %v400_v34 = vpack.c.bf16 %v392_v27, %v392_v27  ;;  %v232_v35 = vadd.f32 %v214_v31, %v167_v16  ;;  %v215_v25 = vrot.slane %v142_v10, 1  ;;  %v168_v43 = vadd.f32 %v160_v33, %v142_v10 }
  0x34   : > { %v370_v41 = vadd.f32 %v361_v30, %v158_v47  ;;  %v333_v42 = vsel %vm193_vm0, %v331_v15, %v332_v32  ;;  %v258_v44 = vunpack.c.l.bf16 %v500_v29  ;;  %v334_v45 = vrot.slane %v257_v14, 1 }
  0x35   : > { %409 = vst.msk [vmem:[%s623_s15 + $0xc] sm:$0xf] %vm405_vm1, %v400_v34  ;;  %v265_v40 = vadd.f32 %v257_v14, %v232_v35  ;;  %v353_v46 = vadd.f32 %v333_v42, %v289_v5  ;;  %v216_v48 = vrot.slane %v176_v37, 1  ;;  %v283_v50 = vunpack.c.h.bf16 %v500_v29 }
  0x36   : > { %v385_v49 = vadd.f32 %v370_v41, %v211_v55  ;;  %v298_v52 = vunpack.c.l.bf16 %v499_v36  ;;  %v299_v56 = vunpack.c.l.bf16 %v501_v39  ;;  %v337_v58 = vrot.slane %v258_v44, 1 }
  0x37   : > { %v290_v51 = vadd.f32 %v282_v28, %v265_v40  ;;  %v362_v57 = vadd.f32 %v353_v46, %v141_v3  ;;  %v217_v47 = vsel %vm193_vm0, %v215_v25, %v216_v48  ;;  %v356_v1 = vunpack.c.l.bf16 %v133_v53 }
  0x38   : > { %v393_v59 = vmul.f32 0.11111111, %v385_v49  ;;  %v233_v60 = vadd.f32 %v217_v47, %v168_v43  ;;  %v335_v61 = vrot.slane %v298_v52, 1  ;;  %v338_v63 = vrot.slane %v299_v56, 1 }
  0x39   : > { %v371_v0 = vadd.f32 %v362_v57, %v159_v6  ;;  %v374_v2 = vunpack.c.l.bf16 %v134_v54  ;;  %v377_v15 = vrot.slane %v356_v1, 1  ;;  %v365_v17 = vunpack.c.h.bf16 %v133_v53 }
  0x3a   : > { %v401_v38 = vpack.c.bf16 %v393_v59, %v393_v59  ;;  %v266_v55 = vadd.f32 %v258_v44, %v233_v60  ;;  %v336_v7 = vsel %vm193_vm0, %v334_v45, %v335_v61  ;;  %v339_v3 = vsel %vm193_vm0, %v337_v58, %v338_v63 }
  0x3b   : > { %v386_v8 = vadd.f32 %v371_v0, %v214_v31  ;;  %v354_v9 = vadd.f32 %v336_v7, %v290_v51  ;;  %v378_v16 = vrot.slane %v374_v2, 1 }
  0x3c   : > { %410 = vst.msk [vmem:[%s623_s15 + $0x10] sm:$0xf] %vm405_vm1, %v401_v38  ;;  %v291_v12 = vadd.f32 %v283_v50, %v266_v55 }
  0x3d   : > { %v394_v11 = vmul.f32 0.11111111, %v386_v8  ;;  %v363_v13 = vadd.f32 %v354_v9, %v142_v10  ;;  %v379_v21 = vsel %vm193_vm0, %v377_v15, %v378_v16 }
  0x3e   : > { %v355_v6 = vadd.f32 %v339_v3, %v291_v12 }
  0x3f   : > { %v402_v18 = vpack.c.bf16 %v394_v11, %v394_v11  ;;  %v372_v4 = vadd.f32 %v363_v13, %v160_v33 }
  0x40   : > { %v364_v19 = vadd.f32 %v356_v1, %v355_v6 }
  0x41   : > { %411 = vst.msk [vmem:[%s623_s15 + $0x14] sm:$0xf] %vm405_vm1, %v402_v18  ;;  %v387_v20 = vadd.f32 %v372_v4, %v217_v47 }
  0x42   : > { %v373_v22 = vadd.f32 %v365_v17, %v364_v19 }
  0x43   : > { %v395_v23 = vmul.f32 0.11111111, %v387_v20 }
  0x44   : > { %v388_v62 = vadd.f32 %v379_v21, %v373_v22 }
  0x45   : > { %v403_v14 = vpack.c.bf16 %v395_v23, %v395_v23 }
  0x46   : > { %v396_v24 = vmul.f32 0.11111111, %v388_v62 }
  0x47   : > { %412 = vst.msk [vmem:[%s623_s15 + $0x18] sm:$0xf] %vm405_vm1, %v403_v14 }
  0x48   : > { %v404_v26 = vpack.c.bf16 %v396_v24, %v396_v24 }
  0x4a   : > { %413 = vst.msk [vmem:[%s623_s15 + $0x1c] sm:$0xf] %vm405_vm1, %v404_v26 }
  0x4b PF: > { %s11_s6 = sadd.s32 1, %s528_s6  }
  0x4c   : > { %p8_p4 = scmp.ge.s32.totalorder %s11_s6, 4  }
  0x4e   :  { %10 = sbr.rel (!%p8_p4) target bundleno = 1 (0x1), region = 57 }

// kernel: stdcnet_forward.40
= control target key start
LH: loop header
LB: loop body
LE: loop exit
PB: predicated region body
PF: predicated region fallthrough
CT: control target
= control target key end

     0   :  { %vm110_vm0 = vcmask 523264   ;;  %s579_s1 = inlined_call_operand.vmem [shape: bf16[64,128], index: 1, kind: input, shape index: {}]   ;;  %s580_s0 = inlined_call_operand.vmem [shape: bf16[128,64], index: 0, kind: input, shape index: {}]   ;;  %s581_s2 = inlined_call_operand.vmem [shape: f32[1,128], index: 2, kind: input, shape index: {}]   ;;  %s582_s3 = inlined_call_operand.vmem [shape: bf16[128,128], index: 3, kind: output, shape index: {}]  }
   0x1   :  { %v476_v0 = vld [vmem:[%s579_s1] sm:$0xff]   ;;  %v477_v1 = vld [vmem:[%s579_s1 + $0x8] sm:$0xff]   ;;  %v478_v2 = vld [vmem:[%s579_s1 + $0x10] sm:$0xff]  }
   0x2   :  { %444 = vmatprep.subr.bf16.mxu0 %v476_v0  ;;  %468 = vmatprep.subr.bf16.mxu1 %v476_v0  ;;  %v480_v3 = vld [vmem:[%s580_s0] sm:$0xff]   ;;  %v479_v5 = vld [vmem:[%s579_s1 + $0x18] sm:$0xff]   ;;  %v482_v6 = vld [vmem:[%s580_s0 + $0x8] sm:$0xff]  }
   0x3   :  { %445 = vmatpush3.bf16.msra.mxu0 %v476_v0  ;;  %472 = vmatpush3.bf16.msra.mxu1 %v476_v0  ;;  %v481_v4 = vld [vmem:[%s580_s0 + $0x20] sm:$0xff]   ;;  %v483_v7 = vld [vmem:[%s580_s0 + $0x28] sm:$0xff]   ;;  %v484_v8 = vld [vmem:[%s580_s0 + $0x10] sm:$0xff]  }
   0x4   :  { %446 = vmatprep.subr.bf16.mxu0 %v477_v1  ;;  %469 = vmatprep.subr.bf16.mxu1 %v477_v1  ;;  %v485_v9 = vld [vmem:[%s580_s0 + $0x30] sm:$0xff]   ;;  %v486_v10 = vld [vmem:[%s580_s0 + $0x18] sm:$0xff]   ;;  %v332_v12 = vld [vmem:[%s581_s2] ss:$0 sm:$0xff] }
   0x5   :  { %452 = vmatprep.mubr.msk.bf16.mxu0 %vm110_vm0, %v480_v3  ;;  %460 = vmatprep.mubr.msk.bf16.mxu1 %vm110_vm0, %v481_v4  ;;  %v487_v11 = vld [vmem:[%s580_s0 + $0x38] sm:$0xff]  }
   0x7   :  { %447 = vmatpush3.bf16.msra.mxu0 %v477_v1  ;;  %473 = vmatpush3.bf16.msra.mxu1 %v477_v1 }
   0x8   :  { %448 = vmatprep.subr.bf16.mxu0 %v478_v2  ;;  %470 = vmatprep.subr.bf16.mxu1 %v478_v2 }
   0xb   :  { %449 = vmatpush3.bf16.msra.mxu0 %v478_v2  ;;  %474 = vmatpush3.bf16.msra.mxu1 %v478_v2 }
   0xc   :  { %450 = vmatprep.subr.bf16.mxu0 %v479_v5  ;;  %471 = vmatprep.subr.bf16.mxu1 %v479_v5 }
   0xf   :  { %451 = vmatpush3.bf16.msra.mxu0 %v479_v5  ;;  %475 = vmatpush3.bf16.msra.mxu1 %v479_v5 }
  0x12   :  { %453 = vmatmul.mubr.msk.bf16.vlgmr.msra.gmra.mrb[0].mxu0 %vm110_vm0, %v482_v6  ;;  %461 = vmatmul.mubr.msk.bf16.vlgmr.msra.gmra.mrb[0].mxu1 %vm110_vm0, %v483_v7 }
  0x13   :  { %456 = vmatprep.mubr.msk.bf16.mxu0 %vm110_vm0, %v484_v8  ;;  %464 = vmatprep.mubr.msk.bf16.mxu1 %vm110_vm0, %v485_v9 }
  0x1a   :  { %457 = vmatmul.mubr.msk.bf16.gmra.mrb[4].mxu0 %vm110_vm0, %v486_v10  ;;  %465 = vmatmul.mubr.msk.bf16.gmra.mrb[4].mxu1 %vm110_vm0, %v487_v11 }
  0xe5   :  { %v454_v13 = vpop.f32.mrb[0].mxu0  ;;  %v462_v14 = vpop.f32.mrb[0].mxu1 }
  0xe6   :  { %v178_v15 = vadd.f32 %v454_v13, %v332_v12  ;;  %v210_v16 = vadd.f32 %v462_v14, %v332_v12  ;;  %v169_v17 = vpop.f32.mrb[1].mxu0  ;;  %v201_v18 = vpop.f32.mrb[1].mxu1 }
  0xe7   :  { %v170_v19 = vadd.f32 %v332_v12, %v169_v17  ;;  %v202_v20 = vadd.f32 %v332_v12, %v201_v18  ;;  %v455_v21 = vpop.f32.mrb[2].mxu0  ;;  %v463_v22 = vpop.f32.mrb[2].mxu1 }
  0xe8   :  { %v181_v23 = vadd.f32 %v455_v21, %v332_v12  ;;  %v213_v24 = vadd.f32 %v463_v22, %v332_v12  ;;  %v172_v25 = vpop.f32.mrb[3].mxu0  ;;  %v204_v26 = vpop.f32.mrb[3].mxu1  ;;  %v234_v29 = vmax.f32 %v178_v15, 0.0  ;;  %v242_v30 = vmax.f32 %v210_v16, 0.0 }
  0xe9   :  { %v173_v27 = vadd.f32 %v332_v12, %v172_v25  ;;  %v205_v28 = vadd.f32 %v332_v12, %v204_v26  ;;  %v232_v33 = vmax.f32 %v170_v19, 0.0  ;;  %v240_v34 = vmax.f32 %v202_v20, 0.0 }
  0xea   :  { %v235_v31 = vmax.f32 %v181_v23, 0.0  ;;  %v243_v32 = vmax.f32 %v213_v24, 0.0 }
  0xeb   :  { %v233_v35 = vmax.f32 %v173_v27, 0.0  ;;  %v241_v36 = vmax.f32 %v205_v28, 0.0 }
  0xec   :  { %v393_v37 = vpack.c.bf16 %v235_v31, %v234_v29  ;;  %v413_v38 = vpack.c.bf16 %v243_v32, %v242_v30 }
  0xed   :  { %v388_v39 = vpack.c.bf16 %v233_v35, %v232_v33  ;;  %v408_v40 = vpack.c.bf16 %v241_v36, %v240_v34  ;;  %v458_v41 = vpop.f32.mrb[4].mxu0  ;;  %v466_v42 = vpop.f32.mrb[4].mxu1 }
  0xee   :  { %425 = vst [vmem:[%s582_s3 + $0x8] sm:$0xff] %v393_v37   ;;  %429 = vst [vmem:[%s582_s3 + $0x28] sm:$0xff] %v413_v38   ;;  %v194_v43 = vadd.f32 %v458_v41, %v332_v12  ;;  %v226_v44 = vadd.f32 %v466_v42, %v332_v12  ;;  %v185_v45 = vpop.f32.mrb[5].mxu0  ;;  %v217_v46 = vpop.f32.mrb[5].mxu1 }
  0xef   :  { %389 = vst [vmem:[%s582_s3] sm:$0xff] %v388_v39   ;;  %428 = vst [vmem:[%s582_s3 + $0x20] sm:$0xff] %v408_v40   ;;  %v186_v47 = vadd.f32 %v332_v12, %v185_v45  ;;  %v218_v48 = vadd.f32 %v332_v12, %v217_v46  ;;  %v459_v49 = vpop.f32.mrb[6].mxu0  ;;  %v467_v50 = vpop.f32.mrb[6].mxu1 }
  0xf0   :  { %v197_v51 = vadd.f32 %v459_v49, %v332_v12  ;;  %v229_v52 = vadd.f32 %v467_v50, %v332_v12  ;;  %v188_v53 = vpop.f32.mrb[7].mxu0  ;;  %v220_v54 = vpop.f32.mrb[7].mxu1  ;;  %v238_v57 = vmax.f32 %v194_v43, 0.0  ;;  %v246_v58 = vmax.f32 %v226_v44, 0.0 }
  0xf1   :  { %v189_v55 = vadd.f32 %v332_v12, %v188_v53  ;;  %v221_v56 = vadd.f32 %v332_v12, %v220_v54  ;;  %v236_v61 = vmax.f32 %v186_v47, 0.0  ;;  %v244_v62 = vmax.f32 %v218_v48, 0.0 }
  0xf2   :  { %v239_v59 = vmax.f32 %v197_v51, 0.0  ;;  %v247_v60 = vmax.f32 %v229_v52, 0.0 }
  0xf3   :  { %v237_v63 = vmax.f32 %v189_v55, 0.0  ;;  %v245_v0 = vmax.f32 %v221_v56, 0.0 }
  0xf4   :  { %v403_v1 = vpack.c.bf16 %v239_v59, %v238_v57  ;;  %v423_v2 = vpack.c.bf16 %v247_v60, %v246_v58 }
  0xf5   :  { %v398_v3 = vpack.c.bf16 %v237_v63, %v236_v61  ;;  %v418_v4 = vpack.c.bf16 %v245_v0, %v244_v62 }
  0xf6   :  { %427 = vst [vmem:[%s582_s3 + $0x18] sm:$0xff] %v403_v1   ;;  %431 = vst [vmem:[%s582_s3 + $0x38] sm:$0xff] %v423_v2  }
  0xf7   :  { %426 = vst [vmem:[%s582_s3 + $0x10] sm:$0xff] %v398_v3   ;;  %430 = vst [vmem:[%s582_s3 + $0x30] sm:$0xff] %v418_v4  }

// kernel: stdcnet_forward.45
= control target key start
LH: loop header
LB: loop body
LE: loop exit
PB: predicated region body
PF: predicated region fallthrough
CT: control target
= control target key end

     0   :  { %s539_s12 = smov 0   ;;  %s674_s0 = inlined_call_operand.vmem [shape: bf16[2,4,5,5,64], index: 0, kind: input, shape index: {}]   ;;  %s675_s1 = inlined_call_operand.vmem [shape: f32[9,1,1,64], index: 1, kind: input, shape index: {}]   ;;  %s676_s2 = inlined_call_operand.vmem [shape: f32[1,1,64], index: 2, kind: input, shape index: {}]   ;;  %s677_s3 = inlined_call_operand.vmem [shape: bf16[2,4,4,64], index: 3, kind: output, shape index: {}]  }
   0x1 LB: > { %s460_s13 = sadd.s32 4294967295, %s517_s12   ;;  %p464_p0 = scmp.ge.s32.totalorder %s517_s12, 1  ;;  %s517_s12 = sphi %s539_s12, %s13_s12  }
   0x2   : > { %p137_p1 = scmp.lt.s32.totalorder %s517_s12, 3 }
   0x4   : > { %p138_p2 = pnand %p464_p0, %p137_p1 }
   0x5   : > { %p161_p3 = scmp.lt.s32.totalorder (!%p138_p2), %s460_s13, 1  ;;  %v553_v0 = vld [vmem:[%s675_s1] ss:$0 sm:$0xff] (!%p138_p2)  ;;  %v563_v1 = vld [vmem:[%s675_s1 + $0x1] ss:$0 sm:$0xff] (!%p138_p2)  ;;  %vm400_vm0 = vcmask (!%p138_p2), 517120  }
   0x6   : > { %141 = sbr.rel (%p138_p2) target bundleno = 57 (0x39), region = 32  ;;  %v568_v2 = vld [vmem:[%s675_s1 + $0x2] ss:$0 sm:$0xff] (!%p138_p2)  ;;  %v573_v3 = vld [vmem:[%s675_s1 + $0x5] ss:$0 sm:$0xff] (!%p138_p2) }
   0x7   : > { %v584_v15 = vld [vmem:[%s675_s1 + $0x3] ss:$0 sm:$0xff] (!%p138_p2)  ;;  %v593_v21 = vld [vmem:[%s675_s1 + $0x4] ss:$0 sm:$0xff] (!%p138_p2)  ;;  %v598_v22 = vld [vmem:[%s675_s1 + $0x8] ss:$0 sm:$0xff] (!%p138_p2) }
   0x8   : > { %v609_v31 = vld [vmem:[%s675_s1 + $0x6] ss:$0 sm:$0xff] (!%p138_p2)  ;;  %v617_v38 = vld [vmem:[%s675_s1 + $0x7] ss:$0 sm:$0xff] (!%p138_p2) }
   0xd   : > { %s679_s13 = smov (!%p161_p3, %s460_s13), 1 }
   0xe   : > { %s502_s14 = smul.u32 80, %s679_s13  ;;  %s501_s11 = sshll.u32 %s679_s13, 3 }
   0xf   : > { %s657_s15 = scalar_lea.vmem %s677_s3, %s501_s11 }
  0x10   : > { %s558_s19 = scalar_lea.vmem %s674_s0, %s502_s14 }
  0x11   : > { %v171_v4 = vld [vmem:[%s558_s19] sm:$0x7]  ;;  %v172_v5 = vld [vmem:[%s558_s19 + $0x4] sm:$0x7]  ;;  %v469_v6 = vld [vmem:[%s558_s19 + $0x14] sm:$0x7] }
  0x12   : > { %v176_v7 = vunpack.c.l.bf16 %v171_v4  ;;  %v177_v8 = vunpack.c.l.bf16 %v172_v5  ;;  %v470_v9 = vld [vmem:[%s558_s19 + $0x18] sm:$0x7]  ;;  %v197_v10 = vunpack.c.l.bf16 %v469_v6  ;;  %v478_v11 = vld [vmem:[%s558_s19 + $0x28] sm:$0x7]  ;;  %v484_v12 = vld [vmem:[%s558_s19 + $0x3c] sm:$0x7] }
  0x13   : > { %v198_v13 = vunpack.c.l.bf16 %v470_v9  ;;  %v250_v14 = vunpack.c.l.bf16 %v478_v11  ;;  %v275_v16 = vunpack.c.l.bf16 %v484_v12  ;;  %v173_v23 = vld [vmem:[%s558_s19 + $0x8] sm:$0x7]  ;;  %v471_v26 = vld [vmem:[%s558_s19 + $0x1c] sm:$0x7]  ;;  %v479_v27 = vld [vmem:[%s558_s19 + $0x2c] sm:$0x7] }
  0x14   : > { %v187_v17 = vmul.f32 %v553_v0, %v176_v7  ;;  %v188_v18 = vmul.f32 %v553_v0, %v177_v8  ;;  %v209_v19 = vmul.f32 %v563_v1, %v197_v10  ;;  %v225_v20 = vmul.f32 %v568_v2, %v176_v7  ;;  %v485_v32 = vld [vmem:[%s558_s19 + $0x40] sm:$0x7]  ;;  %v174_v46 = vld [vmem:[%s558_s19 + $0xc] sm:$0x7]  ;;  %v480_v56 = vld [vmem:[%s558_s19 + $0x30] sm:$0x7] }
  0x15   : > { %v210_v24 = vmul.f32 %v563_v1, %v198_v13  ;;  %v303_v25 = vmul.f32 %v573_v3, %v250_v14  ;;  %v262_v30 = vmul.f32 %v584_v15, %v250_v14  ;;  %v287_v34 = vmul.f32 %v593_v21, %v275_v16  ;;  %v472_v51 = vld [vmem:[%s558_s19 + $0x20] sm:$0x7]  ;;  %v486_v61 = vld [vmem:[%s558_s19 + $0x44] sm:$0x7] }
  0x16   : > { %v213_v28 = vadd.f32 %v209_v19, %v187_v17  ;;  %v233_v29 = vrot.slane %v225_v20, 1  ;;  %v365_v35 = vmul.f32 %v598_v22, %v177_v8  ;;  %v178_v36 = vunpack.c.l.bf16 %v173_v23  ;;  %v481_v19 = vld [vmem:[%s558_s19 + $0x34] sm:$0x7]  ;;  %v487_v20 = vld [vmem:[%s558_s19 + $0x48] sm:$0x7] }
  0x17   : > { %v214_v33 = vadd.f32 %v210_v24, %v188_v18  ;;  %v199_v39 = vunpack.c.l.bf16 %v471_v26  ;;  %v226_v40 = vmul.f32 %v568_v2, %v177_v8  ;;  %v251_v41 = vunpack.c.l.bf16 %v479_v27 }
  0x18   : > { %v241_v37 = vadd.f32 %v233_v29, %v213_v28  ;;  %v311_v42 = vrot.slane %v303_v25, 1  ;;  %v332_v43 = vmul.f32 %v609_v31, %v177_v8  ;;  %v189_v44 = vmul.f32 %v553_v0, %v178_v36  ;;  %v498_v28 = vld [vmem:[%s676_s2] ss:$0 sm:$0xff] }
  0x19   : > { %v276_v45 = vunpack.c.l.bf16 %v485_v32  ;;  %v211_v48 = vmul.f32 %v563_v1, %v199_v39  ;;  %v234_v49 = vrot.slane %v226_v40, 1  ;;  %v263_v50 = vmul.f32 %v584_v15, %v251_v41 }
  0x1a   : > { %v266_v47 = vadd.f32 %v262_v30, %v241_v37  ;;  %v349_v52 = vmul.f32 %v617_v38, %v198_v13  ;;  %v373_v53 = vrot.slane %v365_v35, 1  ;;  %v304_v54 = vmul.f32 %v573_v3, %v251_v41 }
  0x1b   : > { %v333_v55 = vmul.f32 %v609_v31, %v178_v36  ;;  %v242_v58 = vadd.f32 %v234_v49, %v214_v33  ;;  %v288_v59 = vmul.f32 %v593_v21, %v276_v45  ;;  %v179_v60 = vunpack.c.l.bf16 %v174_v46  ;;  %v473_v46 = vld [vmem:[%s558_s19 + $0x24] sm:$0x7] }
  0x1c   : > { %v291_v57 = vadd.f32 %v287_v34, %v266_v47  ;;  %v215_v62 = vadd.f32 %v211_v48, %v189_v44  ;;  %v312_v63 = vrot.slane %v304_v54, 1  ;;  %v200_v4 = vunpack.c.l.bf16 %v472_v51 }
  0x1d   : > { %v227_v5 = vmul.f32 %v568_v2, %v178_v36  ;;  %v267_v7 = vadd.f32 %v263_v50, %v242_v58  ;;  %v190_v8 = vmul.f32 %v553_v0, %v179_v60  ;;  %v252_v9 = vunpack.c.l.bf16 %v480_v56 }
  0x1e   : > { %v319_v6 = vadd.f32 %v311_v42, %v291_v57  ;;  %v366_v10 = vmul.f32 %v598_v22, %v178_v36  ;;  %v212_v11 = vmul.f32 %v563_v1, %v200_v4  ;;  %v277_v13 = vunpack.c.l.bf16 %v486_v61 }
  0x1f   : > { %v235_v12 = vrot.slane %v227_v5, 1  ;;  %v292_v16 = vadd.f32 %v288_v59, %v267_v7  ;;  %v264_v17 = vmul.f32 %v584_v15, %v252_v9  ;;  %v305_v18 = vmul.f32 %v573_v3, %v252_v9 }
  0x20   : > { %v336_v14 = vadd.f32 %v332_v43, %v319_v6  ;;  %v350_v23 = vmul.f32 %v617_v38, %v199_v39  ;;  %v289_v24 = vmul.f32 %v593_v21, %v277_v13  ;;  %v216_v26 = vadd.f32 %v212_v11, %v190_v8  ;;  %v175_v39 = vld [vmem:[%s558_s19 + $0x10] sm:$0x7] }
  0x21   : > { %v243_v0 = vadd.f32 %v235_v12, %v215_v62  ;;  %v320_v1 = vadd.f32 %v312_v63, %v292_v16  ;;  %v313_v27 = vrot.slane %v305_v18, 1  ;;  %v228_v30 = vmul.f32 %v568_v2, %v179_v60 }
  0x22   : > { %v353_v25 = vadd.f32 %v349_v52, %v336_v14  ;;  %v253_v32 = vunpack.c.l.bf16 %v481_v19  ;;  %v278_v33 = vunpack.c.l.bf16 %v487_v20  ;;  %v374_v36 = vrot.slane %v366_v10, 1 }
  0x23   : > { %v268_v29 = vadd.f32 %v264_v17, %v243_v0  ;;  %v337_v35 = vadd.f32 %v333_v55, %v320_v1  ;;  %v367_v37 = vmul.f32 %v598_v22, %v179_v60  ;;  %v334_v41 = vmul.f32 %v609_v31, %v179_v60 }
  0x24   : > { %v381_v34 = vadd.f32 %v373_v53, %v353_v25  ;;  %v236_v42 = vrot.slane %v228_v30, 1  ;;  %v265_v43 = vmul.f32 %v584_v15, %v253_v32  ;;  %v351_v2 = vmul.f32 %v617_v38, %v200_v4 }
  0x25   : > { %v293_v40 = vadd.f32 %v289_v24, %v268_v29  ;;  %v354_v45 = vadd.f32 %v350_v23, %v337_v35  ;;  %v306_v47 = vmul.f32 %v573_v3, %v253_v32  ;;  %v290_v50 = vmul.f32 %v593_v21, %v278_v33 }
  0x26   : > { %v392_v44 = vadd.f32 %v498_v28, %v381_v34  ;;  %v244_v49 = vadd.f32 %v236_v42, %v216_v26  ;;  %v323_v51 = vunpack.c.l.bf16 %v175_v39  ;;  %v375_v53 = vrot.slane %v367_v37, 1 }
  0x27   : > { %v321_v48 = vadd.f32 %v313_v27, %v293_v40  ;;  %v382_v15 = vadd.f32 %v374_v36, %v354_v45  ;;  %v314_v56 = vrot.slane %v306_v47, 1  ;;  %v340_v57 = vunpack.c.l.bf16 %v473_v46 }
  0x28   : > { %v396_v52 = vpack.c.bf16 %v392_v44, %v392_v44  ;;  %v269_v55 = vadd.f32 %v265_v43, %v244_v49  ;;  %v335_v60 = vmul.f32 %v609_v31, %v323_v51  ;;  %v368_v21 = vmul.f32 %v598_v22, %v323_v51 }
  0x29   : > { %v338_v54 = vadd.f32 %v334_v41, %v321_v48  ;;  %v393_v3 = vadd.f32 %v498_v28, %v382_v15  ;;  %v352_v4 = vmul.f32 %v617_v38, %v340_v57 }
  0x2a   : > { %401 = vst.msk [vmem:[%s657_s15] sm:$0x3] %vm400_vm0, %v396_v52  ;;  %v294_v59 = vadd.f32 %v290_v50, %v269_v55  ;;  %v376_v7 = vrot.slane %v368_v21, 1 }
  0x2b   : > { %v355_v58 = vadd.f32 %v351_v2, %v338_v54  ;;  %v397_v61 = vpack.c.bf16 %v393_v3, %v393_v3 }
  0x2c   : > { %v322_v63 = vadd.f32 %v314_v56, %v294_v59 }
  0x2d   : > { %v383_v62 = vadd.f32 %v375_v53, %v355_v58  ;;  %402 = vst.msk [vmem:[%s657_s15 + $0x2] sm:$0x3] %vm400_vm0, %v397_v61 }
  0x2e   : > { %v339_v6 = vadd.f32 %v335_v60, %v322_v63 }
  0x2f   : > { %v394_v5 = vadd.f32 %v498_v28, %v383_v62 }
  0x30   : > { %v356_v9 = vadd.f32 %v352_v4, %v339_v6 }
  0x31   : > { %v398_v8 = vpack.c.bf16 %v394_v5, %v394_v5 }
  0x32   : > { %v384_v10 = vadd.f32 %v376_v7, %v356_v9 }
  0x33   : > { %403 = vst.msk [vmem:[%s657_s15 + $0x4] sm:$0x3] %vm400_vm0, %v398_v8 }
  0x34   : > { %v395_v11 = vadd.f32 %v498_v28, %v384_v10 }
  0x36   : > { %v399_v31 = vpack.c.bf16 %v395_v11, %v395_v11 }
  0x38   : > { %404 = vst.msk [vmem:[%s657_s15 + $0x6] sm:$0x3] %vm400_vm0, %v399_v31 }
  0x39 PF: > { %s13_s12 = sadd.s32 1, %s517_s12  }
  0x3a   : > { %p10_p4 = scmp.ge.s32.totalorder %s13_s12, 4  }
  0x3c   :  { %12 = sbr.rel (!%p10_p4) target bundleno = 1 (0x1), region = 73 }

// kernel: stdcnet_forward.46
= control target key start
LH: loop header
LB: loop body
LE: loop exit
PB: predicated region body
PF: predicated region fallthrough
CT: control target
= control target key end

     0   :  { %vm70_vm0 = vsmask.f32 7424  ;;  %vm131_vm1 = vcmask 523264   ;;  %vm571_vm2 = vsmask.f32 4352  ;;  %vm315_vm3 = vcmask 1046528   ;;  %s2168_s1 = inlined_call_operand.vmem [shape: bf16[9,64,128], index: 1, kind: input, shape index: {}]   ;;  %s2169_s0 = inlined_call_operand.vmem [shape: bf16[78,64], index: 0, kind: input, shape index: {}]   ;;  %s2170_s2 = inlined_call_operand.vmem [shape: f32[1,128], index: 2, kind: input, shape index: {}]   ;;  %s2171_s3 = inlined_call_operand.vmem [shape: bf16[64,128], index: 3, kind: output, shape index: {}]  }
   0x1   :  { %v1784_v0 = vld [vmem:[%s2168_s1 + $0x20] sm:$0xff]   ;;  %v1786_v2 = vld [vmem:[%s2168_s1 + $0x28] sm:$0xff]   ;;  %v1788_v4 = vld [vmem:[%s2168_s1 + $0x30] sm:$0xff]   ;;  %vm836_vm4 = vcmask 1045504   ;;  %vm443_vm5 = vcmask 1044480  }
   0x2   :  { %v1785_v1 = vld [vmem:[%s2168_s1 + $0x80] sm:$0xff]   ;;  %1568 = vmatprep.subr.bf16.mxu1 %v1784_v0  ;;  %v1787_v3 = vld [vmem:[%s2168_s1 + $0x88] sm:$0xff]   ;;  %v1789_v5 = vld [vmem:[%s2168_s1 + $0x90] sm:$0xff]   ;;  %vm964_vm6 = vsmask.f32 5376 }
   0x3   :  { %1632 = vmatprep.subr.bf16.mxu0 %v1785_v1  ;;  %1569 = vmatpush3.bf16.msra.mxu1 %v1784_v0  ;;  %v1790_v6 = vld [vmem:[%s2168_s1 + $0x38] sm:$0xff]   ;;  %v20_v8 = vld [vmem:[%s2169_s0] sm:$0xf]  ;;  %v1880_v9 = vld [vmem:[%s2169_s0 + $0x4] sm:$0xf] }
   0x4   :  { %1633 = vmatpush3.bf16.msra.mxu0 %v1785_v1  ;;  %1570 = vmatprep.subr.bf16.mxu1 %v1786_v2  ;;  %v1791_v7 = vld [vmem:[%s2168_s1 + $0x98] sm:$0xff]   ;;  %v1885_v10 = vld [vmem:[%s2169_s0 + $0x8] sm:$0xf]  ;;  %v1890_v11 = vld [vmem:[%s2169_s0 + $0xc] sm:$0xf]  ;;  %v1893_v12 = vcombine.low %v20_v8, %v1880_v9 }
   0x5   :  { %1634 = vmatprep.subr.bf16.mxu0 %v1787_v3  ;;  %v1898_v13 = vld [vmem:[%s2169_s0 + $0x10] sm:$0xf]  ;;  %v1903_v14 = vld [vmem:[%s2169_s0 + $0x14] sm:$0xf]  ;;  %v1907_v15 = vcombine.low %v1885_v10, %v1890_v11  ;;  %v1795_v22 = vld [vmem:[%s2168_s1] sm:$0xff]   ;;  %v1987_v8 = vcombine.low %v1880_v9, %v1885_v10 }
   0x6   :  { %v1911_v16 = vcombine.low %v1898_v13, %v1903_v14  ;;  %v72_v17 = vshrl.u32 %v1893_v12, 16  ;;  %v74_v18 = vshll.u32 %v1893_v12, 16  ;;  %v1796_v27 = vld [vmem:[%s2168_s1 + $0xa0] sm:$0xff]   ;;  %v1928_v38 = vld [vmem:[%s2169_s0 + $0x18] sm:$0xf]  ;;  %v1797_v43 = vld [vmem:[%s2168_s1 + $0x8] sm:$0xff]   ;;  %v2002_v9 = vcombine.low %v1890_v11, %v1898_v13 }
   0x7   :  { %1571 = vmatpush3.bf16.msra.mxu1 %v1786_v2  ;;  %v79_v19 = vshll.u32 %v1907_v15, 16  ;;  %v83_v20 = vshrl.u32 %v1907_v15, 16  ;;  %v1933_v39 = vld [vmem:[%s2169_s0 + $0x1c] sm:$0xf]  ;;  %v1938_v40 = vld [vmem:[%s2169_s0 + $0x20] sm:$0xf] }
   0x8   :  { %1635 = vmatpush3.bf16.msra.mxu0 %v1787_v3  ;;  %1572 = vmatprep.subr.bf16.mxu1 %v1788_v4  ;;  %v87_v21 = vshll.u32 %v1911_v16, 16  ;;  %v91_v23 = vshrl.u32 %v1911_v16, 16  ;;  %v76_v24 = vrot.slane %v74_v18, 1  ;;  %v572_v25 = vrot.slane %v72_v17, 3  ;;  %v1798_v48 = vld [vmem:[%s2168_s1 + $0xa8] sm:$0xff]   ;;  %v1801_v54 = vld [vmem:[%s2168_s1 + $0x10] sm:$0xff]  }
   0x9   :  { %1636 = vmatprep.subr.bf16.mxu0 %v1789_v5  ;;  %v573_v26 = vrot.slane %v74_v18, 4  ;;  %v81_v28 = vrot.slane %v79_v19, 1  ;;  %v575_v29 = vrot.slane %v83_v20, 3  ;;  %v576_v30 = vrot.slane %v79_v19, 4  ;;  %v1802_v56 = vld [vmem:[%s2168_s1 + $0xb0] sm:$0xff]   ;;  %v1808_v18 = vld [vmem:[%s2168_s1 + $0xc0] sm:$0xff]  }
   0xa   :  { %v89_v31 = vrot.slane %v87_v21, 1  ;;  %v77_v32 = vor.u32 %v76_v24, %v72_v17  ;;  %v579_v34 = vrot.slane %v91_v23, 3  ;;  %v580_v35 = vrot.slane %v87_v21, 4  ;;  %v1806_v17 = vld [vmem:[%s2168_s1 + $0x40] sm:$0xff]   ;;  %v1809_v10 = vld [vmem:[%s2168_s1 + $0x48] sm:$0xff]   ;;  %v1812_v11 = vld [vmem:[%s2168_s1 + $0x50] sm:$0xff]  }
   0xb   :  { %1573 = vmatpush3.bf16.msra.mxu1 %v1788_v4  ;;  %v574_v33 = vor.u32 %v573_v26, %v572_v25  ;;  %v85_v36 = vor.u32 %v83_v20, %v81_v28  ;;  %v577_v37 = vor.u32 %v576_v30, %v575_v29  ;;  %v1946_v44 = vcombine.low %v1928_v38, %v1933_v39  ;;  %v1810_v19 = vld [vmem:[%s2168_s1 + $0xc8] sm:$0xff]   ;;  %v1814_v13 = vld [vmem:[%s2168_s1 + $0xd0] sm:$0xff]   ;;  %v1815_v25 = vld [vmem:[%s2168_s1 + $0x58] sm:$0xff]  }
   0xc   :  { %1637 = vmatpush3.bf16.msra.mxu0 %v1789_v5  ;;  %1574 = vmatprep.subr.bf16.mxu1 %v1790_v6  ;;  %v82_v41 = vsel %vm70_vm0, %v77_v32, %v81_v28  ;;  %v581_v42 = vor.u32 %v580_v35, %v579_v34  ;;  %v1950_v45 = vcombine.low %v1938_v40, %v1938_v40  ;;  %v1803_v5 = vld [vmem:[%s2168_s1 + $0x18] sm:$0xff]   ;;  %v317_v21 = vrot.slane %v1907_v15, 1  ;;  %v1817_v30 = vld [vmem:[%s2168_s1 + $0x60] sm:$0xff]  }
   0xd   :  { %1638 = vmatprep.subr.bf16.mxu0 %v1791_v7  ;;  %1576 = vmatprep.mubr.msk.bf16.mxu1 %vm131_vm1, %v82_v41  ;;  %v578_v46 = vsel %vm571_vm2, %v574_v33, %v577_v37  ;;  %v90_v47 = vsel %vm70_vm0, %v85_v36, %v89_v31  ;;  %v93_v49 = vor.u32 %v91_v23, %v89_v31  ;;  %v95_v51 = vshll.u32 %v1946_v44, 16  ;;  %v1816_v26 = vld [vmem:[%s2168_s1 + $0xd8] sm:$0xff]   ;;  %v1818_v32 = vld [vmem:[%s2168_s1 + $0xe0] sm:$0xff]   ;;  %v1819_v41 = vld [vmem:[%s2168_s1 + $0x68] sm:$0xff]  }
   0xe   :  { %1640 = vmatprep.mubr.msk.bf16.mxu0 %vm131_vm1, %v578_v46  ;;  %v582_v50 = vsel %vm571_vm2, %v577_v37, %v581_v42  ;;  %v99_v52 = vshrl.u32 %v1946_v44, 16  ;;  %v103_v53 = vshll.u32 %v1950_v45, 16  ;;  %v587_v55 = vshrl.u32 %v1950_v45, 16 }
   0xf   :  { %1575 = vmatpush3.bf16.msra.mxu1 %v1790_v6  ;;  %v97_v57 = vrot.slane %v95_v51, 1  ;;  %v584_v59 = vrot.slane %v95_v51, 4  ;;  %v2014_v20 = vcombine.low %v1903_v14, %v1928_v38  ;;  %v316_v14 = vrot.slane %v1893_v12, 1 }
  0x10   :  { %1639 = vmatpush3.bf16.msra.mxu0 %v1791_v7  ;;  %1584 = vmatprep.subr.bf16.mxu1 %v1795_v22  ;;  %v583_v58 = vrot.slane %v99_v52, 3  ;;  %v105_v60 = vrot.slane %v103_v53, 1  ;;  %v589_v61 = vrot.slane %v587_v55, 3  ;;  %v590_v62 = vrot.slane %v103_v53, 4  ;;  %v1804_v7 = vld [vmem:[%s2168_s1 + $0xb8] sm:$0xff]   ;;  %v1821_v53 = vld [vmem:[%s2168_s1 + $0x70] sm:$0xff]  }
  0x11   :  { %1648 = vmatprep.subr.bf16.mxu0 %v1796_v27  ;;  %v98_v63 = vsel %vm70_vm0, %v93_v49, %v97_v57  ;;  %v101_v1 = vor.u32 %v99_v52, %v97_v57  ;;  %v837_v23 = vrot.slane %v1987_v8, 2  ;;  %v838_v24 = vrot.slane %v2002_v9, 2  ;;  %v1823_v57 = vld [vmem:[%s2168_s1 + $0xf0] sm:$0xff]  }
  0x12   :  { %1577 = vmatmul.mubr.msk.bf16.vlgmr.msra.gmra.mrb[0].mxu1 %vm131_vm1, %v90_v47  ;;  %v585_v0 = vor.u32 %v584_v59, %v583_v58  ;;  %v591_v2 = vor.u32 %v590_v62, %v589_v61  ;;  %v319_v28 = vrot.slane %v1911_v16, 1  ;;  %v840_v31 = vrot.slane %v2014_v20, 2 }
  0x13   :  { %1641 = vmatmul.mubr.msk.bf16.vlgmr.msra.gmra.mrb[0].mxu0 %vm131_vm1, %v582_v50  ;;  %1585 = vmatpush3.bf16.msra.mxu1 %v1795_v22  ;;  %v106_v4 = vsel %vm70_vm0, %v101_v1, %v105_v60  ;;  %v2032_v22 = vcombine.low %v1933_v39, %v1938_v40  ;;  %v839_v29 = vsel %vm836_vm4, %v837_v23, %v838_v24  ;;  %v321_v34 = vrot.slane %v1946_v44, 1  ;;  %v1827_v23 = vld [vmem:[%s2168_s1 + $0x108] sm:$0xff]  }
  0x14   :  { %1649 = vmatpush3.bf16.msra.mxu0 %v1796_v27  ;;  %1586 = vmatprep.subr.bf16.mxu1 %v1797_v43  ;;  %v586_v3 = vsel %vm571_vm2, %v581_v42, %v585_v0  ;;  %v592_v6 = vsel %vm571_vm2, %v585_v0, %v591_v2  ;;  %v318_v27 = vsel %vm315_vm3, %v316_v14, %v317_v21  ;;  %v965_v36 = vshrl.u32 %v1987_v8, 16  ;;  %v2072_v42 = vld [vmem:[%s2169_s0 + $0x24] ss:$0 sps:$4 sm:$0x77]   ;;  %v1824_v2 = vld [vmem:[%s2168_s1 + $0x78] sm:$0xff]  }
  0x15   :  { %1650 = vmatprep.subr.bf16.mxu0 %v1798_v48  ;;  %1580 = vmatprep.mubr.msk.bf16.mxu1 %vm131_vm1, %v98_v63  ;;  %v320_v33 = vsel %vm315_vm3, %v317_v21, %v319_v28  ;;  %v842_v35 = vrot.slane %v2032_v22, 2  ;;  %v968_v37 = vshll.u32 %v1987_v8, 16  ;;  %v972_v38 = vshrl.u32 %v2002_v9, 16 }
  0x16   :  { %1644 = vmatprep.mubr.msk.bf16.mxu0 %vm131_vm1, %v586_v3  ;;  %v975_v39 = vshll.u32 %v2002_v9, 16  ;;  %v841_v40 = vsel %vm836_vm4, %v838_v24, %v840_v31  ;;  %v322_v46 = vsel %vm315_vm3, %v319_v28, %v321_v34  ;;  %v967_v49 = vrot.slane %v965_v36, 2 }
  0x17   :  { %1587 = vmatpush3.bf16.msra.mxu1 %v1797_v43  ;;  %v1820_v43 = vld [vmem:[%s2168_s1 + $0xe8] sm:$0xff]   ;;  %v843_v47 = vsel %vm836_vm4, %v840_v31, %v842_v35  ;;  %v970_v50 = vrot.slane %v968_v37, 3  ;;  %v974_v51 = vrot.slane %v972_v38, 2  ;;  %v980_v55 = vshrl.u32 %v2014_v20, 16 }
  0x18   :  { %1651 = vmatpush3.bf16.msra.mxu0 %v1798_v48  ;;  %1588 = vmatprep.subr.bf16.mxu1 %v1801_v54  ;;  %v323_v48 = vrot.slane %v1950_v45, 1  ;;  %v977_v52 = vrot.slane %v975_v39, 3  ;;  %v444_v59 = vrot.slane %v1893_v12, 3  ;;  %v445_v60 = vrot.slane %v1907_v15, 3 }
  0x19   :  { %1652 = vmatprep.subr.bf16.mxu0 %v1802_v56  ;;  %v971_v61 = vor.u32 %v970_v50, %v967_v49  ;;  %v988_v63 = vshrl.u32 %v2032_v22, 16  ;;  %v991_v0 = vshll.u32 %v2032_v22, 16  ;;  %v982_v3 = vrot.slane %v980_v55, 2  ;;  %v1456_v55 = vld [vmem:[%s2170_s2] ss:$0 sm:$0xff] }
  0x1a   :  { %1581 = vmatmul.mubr.msk.bf16.gmra.mrb[4].mxu1 %vm131_vm1, %v106_v4  ;;  %v324_v58 = vsel %vm315_vm3, %v321_v34, %v323_v48  ;;  %v978_v62 = vor.u32 %v977_v52, %v974_v51  ;;  %v446_v4 = vsel %vm443_vm5, %v444_v59, %v445_v60  ;;  %v1124_v31 = vrot.slane %v2002_v9, 3 }
  0x1b   :  { %1645 = vmatmul.mubr.msk.bf16.gmra.mrb[4].mxu0 %vm131_vm1, %v592_v6  ;;  %1589 = vmatpush3.bf16.msra.mxu1 %v1801_v54  ;;  %v844_v54 = vrot.slane %v2072_v42, 2  ;;  %v447_v6 = vrot.slane %v1911_v16, 3 }
  0x1c   :  { %1653 = vmatpush3.bf16.msra.mxu0 %v1802_v56  ;;  %1590 = vmatprep.subr.bf16.mxu1 %v1803_v5  ;;  %v983_v56 = vshll.u32 %v2014_v20, 16 }
  0x1d   :  { %1654 = vmatprep.subr.bf16.mxu0 %v1804_v7  ;;  %1592 = vmatprep.mubr.msk.bf16.mxu1 %vm131_vm1, %v1893_v12  ;;  %v845_v1 = vsel %vm836_vm4, %v842_v35, %v844_v54  ;;  %v1829_v35 = vld [vmem:[%s2168_s1 + $0x118] sm:$0xff]  }
  0x1e   :  { %1656 = vmatprep.mubr.msk.bf16.mxu0 %vm131_vm1, %v1987_v8  ;;  %v985_v12 = vrot.slane %v983_v56, 3 }
  0x1f   :  { %1591 = vmatpush3.bf16.msra.mxu1 %v1803_v5  ;;  %v979_v5 = vsel %vm964_vm6, %v971_v61, %v978_v62 }
  0x20   :  { %1655 = vmatpush3.bf16.msra.mxu0 %v1804_v7  ;;  %1600 = vmatprep.subr.bf16.mxu1 %v1806_v17  ;;  %v990_v7 = vrot.slane %v988_v63, 2 }
  0x21   :  { %1664 = vmatprep.subr.bf16.mxu0 %v1808_v18 }
  0x22   :  { %1593 = vmatmul.mubr.msk.bf16.vlgmr.msra.gmra.mrb[0].mxu1 %vm131_vm1, %v1907_v15  ;;  %v1825_v15 = vld [vmem:[%s2168_s1 + $0xf8] sm:$0xff]  }
  0x23   :  { %1657 = vmatmul.mubr.msk.bf16.vlgmr.msra.gmra.mrb[0].mxu0 %vm131_vm1, %v2002_v9  ;;  %1601 = vmatpush3.bf16.msra.mxu1 %v1806_v17  ;;  %v993_v17 = vrot.slane %v991_v0, 3 }
  0x24   :  { %1665 = vmatpush3.bf16.msra.mxu0 %v1808_v18  ;;  %1602 = vmatprep.subr.bf16.mxu1 %v1809_v10  ;;  %v986_v18 = vor.u32 %v985_v12, %v982_v3 }
  0x25   :  { %1666 = vmatprep.subr.bf16.mxu0 %v1810_v19  ;;  %1596 = vmatprep.mubr.msk.bf16.mxu1 %vm131_vm1, %v1911_v16  ;;  %v449_v16 = vrot.slane %v1946_v44, 3  ;;  %v994_v14 = vor.u32 %v993_v17, %v990_v7 }
  0x26   :  { %1660 = vmatprep.mubr.msk.bf16.mxu0 %vm131_vm1, %v2014_v20  ;;  %v987_v21 = vsel %vm964_vm6, %v978_v62, %v986_v18 }
  0x27   :  { %1603 = vmatpush3.bf16.msra.mxu1 %v1809_v10  ;;  %v1826_v10 = vld [vmem:[%s2168_s1 + $0x100] sm:$0xff]  }
  0x28   :  { %1667 = vmatpush3.bf16.msra.mxu0 %v1810_v19  ;;  %1604 = vmatprep.subr.bf16.mxu1 %v1812_v11  ;;  %v997_v19 = vshrl.u32 %v2072_v42, 16 }
  0x29   :  { %1668 = vmatprep.subr.bf16.mxu0 %v1814_v13 }
  0x2a   :  { %1597 = vmatmul.mubr.msk.bf16.gmra.mrb[4].mxu1 %vm131_vm1, %v1946_v44  ;;  %v999_v24 = vrot.slane %v997_v19, 2  ;;  %v995_v44 = vsel %vm964_vm6, %v986_v18, %v994_v14 }
  0x2b   :  { %1661 = vmatmul.mubr.msk.bf16.gmra.mrb[4].mxu0 %vm131_vm1, %v2032_v22  ;;  %1605 = vmatpush3.bf16.msra.mxu1 %v1812_v11  ;;  %v1000_v11 = vshll.u32 %v2072_v42, 16 }
  0x2c   :  { %1669 = vmatpush3.bf16.msra.mxu0 %v1814_v13  ;;  %1606 = vmatprep.subr.bf16.mxu1 %v1815_v25  ;;  %v448_v13 = vsel %vm443_vm5, %v445_v60, %v447_v6 }
  0x2d   :  { %1670 = vmatprep.subr.bf16.mxu0 %v1816_v26  ;;  %1608 = vmatprep.mubr.msk.bf16.mxu1 %vm131_vm1, %v318_v27  ;;  %v451_v27 = vrot.slane %v1950_v45, 3  ;;  %v1126_v45 = vrot.slane %v2014_v20, 3  ;;  %v1130_v20 = vrot.slane %v2072_v42, 3 }
  0x2e   :  { %1672 = vmatprep.mubr.msk.bf16.mxu0 %vm131_vm1, %v839_v29  ;;  %v1828_v29 = vld [vmem:[%s2168_s1 + $0x110] sm:$0xff]  }
  0x2f   :  { %1607 = vmatpush3.bf16.msra.mxu1 %v1815_v25  ;;  %v1002_v25 = vrot.slane %v1000_v11, 3  ;;  %v1127_v36 = vsel %vm443_vm5, %v1124_v31, %v1126_v45 }
  0x30   :  { %1671 = vmatpush3.bf16.msra.mxu0 %v1816_v26  ;;  %1616 = vmatprep.subr.bf16.mxu1 %v1817_v30  ;;  %v450_v26 = vsel %vm443_vm5, %v447_v6, %v449_v16 }
  0x31   :  { %1680 = vmatprep.subr.bf16.mxu0 %v1818_v32  ;;  %v1003_v28 = vor.u32 %v1002_v25, %v999_v24 }
  0x32   :  { %1609 = vmatmul.mubr.msk.bf16.vlgmr.msra.gmra.mrb[0].mxu1 %vm131_vm1, %v320_v33  ;;  %v1128_v33 = vrot.slane %v2032_v22, 3 }
  0x33   :  { %1673 = vmatmul.mubr.msk.bf16.vlgmr.msra.gmra.mrb[0].mxu0 %vm131_vm1, %v841_v40  ;;  %1617 = vmatpush3.bf16.msra.mxu1 %v1817_v30  ;;  %v1123_v30 = vrot.slane %v1987_v8, 3  ;;  %v1004_v34 = vsel %vm964_vm6, %v994_v14, %v1003_v28 }
  0x34   :  { %1681 = vmatpush3.bf16.msra.mxu0 %v1818_v32  ;;  %1618 = vmatprep.subr.bf16.mxu1 %v1819_v41  ;;  %v452_v32 = vsel %vm443_vm5, %v449_v16, %v451_v27  ;;  %v1129_v9 = vsel %vm443_vm5, %v1126_v45, %v1128_v33  ;;  %v1131_v22 = vsel %vm443_vm5, %v1128_v33, %v1130_v20 }
  0x35   :  { %1682 = vmatprep.subr.bf16.mxu0 %v1820_v43  ;;  %1612 = vmatprep.mubr.msk.bf16.mxu1 %vm131_vm1, %v322_v46  ;;  %v1125_v8 = vsel %vm443_vm5, %v1123_v30, %v1124_v31 }
  0x36   :  { %1676 = vmatprep.mubr.msk.bf16.mxu0 %vm131_vm1, %v843_v47 }
  0x37   :  { %1619 = vmatpush3.bf16.msra.mxu1 %v1819_v41 }
  0x38   :  { %1683 = vmatpush3.bf16.msra.mxu0 %v1820_v43  ;;  %1620 = vmatprep.subr.bf16.mxu1 %v1821_v53 }
  0x39   :  { %1684 = vmatprep.subr.bf16.mxu0 %v1823_v57 }
  0x3a   :  { %1613 = vmatmul.mubr.msk.bf16.gmra.mrb[4].mxu1 %vm131_vm1, %v324_v58 }
  0x3b   :  { %1677 = vmatmul.mubr.msk.bf16.gmra.mrb[4].mxu0 %vm131_vm1, %v845_v1  ;;  %1621 = vmatpush3.bf16.msra.mxu1 %v1821_v53 }
  0x3c   :  { %1685 = vmatpush3.bf16.msra.mxu0 %v1823_v57  ;;  %1622 = vmatprep.subr.bf16.mxu1 %v1824_v2 }
  0x3d   :  { %1686 = vmatprep.subr.bf16.mxu0 %v1825_v15  ;;  %1624 = vmatprep.mubr.msk.bf16.mxu1 %vm131_vm1, %v446_v4 }
  0x3e   :  { %1688 = vmatprep.mubr.msk.bf16.mxu0 %vm131_vm1, %v979_v5 }
  0x3f   :  { %1623 = vmatpush3.bf16.msra.mxu1 %v1824_v2 }
  0x40   :  { %1687 = vmatpush3.bf16.msra.mxu0 %v1825_v15  ;;  %1712 = vmatprep.subr.bf16.mxu1 %v1826_v10 }
  0x41   :  { %1696 = vmatprep.subr.bf16.mxu0 %v1826_v10 }
  0x42   :  { %1625 = vmatmul.mubr.msk.bf16.vlgmr.msra.gmra.mrb[0].mxu1 %vm131_vm1, %v448_v13 }
  0x43   :  { %1689 = vmatmul.mubr.msk.bf16.vlgmr.msra.gmra.mrb[0].mxu0 %vm131_vm1, %v987_v21  ;;  %1716 = vmatpush3.bf16.msra.mxu1 %v1826_v10 }
  0x44   :  { %1697 = vmatpush3.bf16.msra.mxu0 %v1826_v10  ;;  %1713 = vmatprep.subr.bf16.mxu1 %v1827_v23 }
  0x45   :  { %1698 = vmatprep.subr.bf16.mxu0 %v1827_v23  ;;  %1628 = vmatprep.mubr.msk.bf16.mxu1 %vm131_vm1, %v450_v26 }
  0x46   :  { %1692 = vmatprep.mubr.msk.bf16.mxu0 %vm131_vm1, %v995_v44 }
  0x47   :  { %1717 = vmatpush3.bf16.msra.mxu1 %v1827_v23 }
  0x48   :  { %1699 = vmatpush3.bf16.msra.mxu0 %v1827_v23  ;;  %1714 = vmatprep.subr.bf16.mxu1 %v1828_v29 }
  0x49   :  { %1700 = vmatprep.subr.bf16.mxu0 %v1828_v29 }
  0x4a   :  { %1629 = vmatmul.mubr.msk.bf16.gmra.mrb[4].mxu1 %vm131_vm1, %v452_v32 }
  0x4b   :  { %1693 = vmatmul.mubr.msk.bf16.gmra.mrb[4].mxu0 %vm131_vm1, %v1004_v34  ;;  %1718 = vmatpush3.bf16.msra.mxu1 %v1828_v29 }
  0x4c   :  { %1701 = vmatpush3.bf16.msra.mxu0 %v1828_v29  ;;  %1715 = vmatprep.subr.bf16.mxu1 %v1829_v35 }
  0x4d   :  { %1702 = vmatprep.subr.bf16.mxu0 %v1829_v35  ;;  %1704 = vmatprep.mubr.msk.bf16.mxu0 %vm131_vm1, %v1125_v8 }
  0x4e   :  { %1708 = vmatprep.mubr.msk.bf16.mxu1 %vm131_vm1, %v1129_v9 }
  0x4f   :  { %1719 = vmatpush3.bf16.msra.mxu1 %v1829_v35 }
  0x50   :  { %1703 = vmatpush3.bf16.msra.mxu0 %v1829_v35 }
  0x52   :  { %1709 = vmatmul.mubr.msk.bf16.vlgmr.msra.gmra.mrb[8].mxu1 %vm131_vm1, %v1131_v22 }
  0x53   :  { %1705 = vmatmul.mubr.msk.bf16.vlgmr.msra.gmra.mrb[0].mxu0 %vm131_vm1, %v1127_v36 }
 0x115   :  { %v1626_v37 = vpop.f32.mrb[0].mxu1 }
 0x116   :  { %v523_v38 = vpop.f32.mrb[1].mxu1 }
 0x117   :  { %v1627_v39 = vpop.f32.mrb[2].mxu1 }
 0x118   :  { %v526_v40 = vpop.f32.mrb[3].mxu1 }
 0x11d   :  { %v1630_v41 = vpop.f32.mrb[4].mxu1 }
 0x11e   :  { %v1694_v42 = vpop.f32.mrb[4].mxu0  ;;  %v539_v43 = vpop.f32.mrb[5].mxu1 }
 0x11f   :  { %v1724_v46 = vadd.f32 %v1694_v42, %v1630_v41  ;;  %v1091_v47 = vpop.f32.mrb[5].mxu0  ;;  %v1631_v48 = vpop.f32.mrb[6].mxu1 }
 0x120   :  { %v1726_v49 = vadd.f32 %v1091_v47, %v539_v43  ;;  %v1695_v50 = vpop.f32.mrb[6].mxu0  ;;  %v542_v51 = vpop.f32.mrb[7].mxu1 }
 0x121   :  { %v1728_v52 = vadd.f32 %v1695_v50, %v1631_v48  ;;  %v1094_v53 = vpop.f32.mrb[7].mxu0 }
 0x122   :  { %v1730_v54 = vadd.f32 %v1094_v53, %v542_v51 }
 0x125   :  { %v1710_v56 = vpop.f32.mrb[8].mxu1 }
 0x126   :  { %v1706_v57 = vpop.f32.mrb[0].mxu0  ;;  %v1725_v58 = vadd.f32 %v1724_v46, %v1710_v56  ;;  %v1218_v59 = vpop.f32.mrb[9].mxu1 }
 0x127   :  { %v1720_v60 = vadd.f32 %v1706_v57, %v1626_v37  ;;  %v1202_v61 = vpop.f32.mrb[1].mxu0  ;;  %v1727_v62 = vadd.f32 %v1726_v49, %v1218_v59  ;;  %v1711_v63 = vpop.f32.mrb[10].mxu1 }
 0x128   :  { %v1254_v0 = vadd.f32 %v1725_v58, %v1456_v55  ;;  %v1721_v1 = vadd.f32 %v1202_v61, %v523_v38  ;;  %v1707_v2 = vpop.f32.mrb[2].mxu0  ;;  %v1729_v3 = vadd.f32 %v1728_v52, %v1711_v63  ;;  %v1221_v12 = vpop.f32.mrb[11].mxu1 }
 0x129   :  { %v1250_v15 = vadd.f32 %v1720_v60, %v1456_v55  ;;  %v1252_v4 = vadd.f32 %v1727_v62, %v1456_v55  ;;  %v1722_v5 = vadd.f32 %v1707_v2, %v1627_v39  ;;  %v1205_v6 = vpop.f32.mrb[3].mxu0  ;;  %v1731_v7 = vadd.f32 %v1730_v54, %v1221_v12 }
 0x12a   :  { %v1248_v17 = vadd.f32 %v1721_v1, %v1456_v55  ;;  %v1255_v18 = vadd.f32 %v1729_v3, %v1456_v55  ;;  %v1723_v10 = vadd.f32 %v1205_v6, %v526_v40  ;;  %v1262_v16 = vmax.f32 %v1254_v0, 0.0 }
 0x12b   :  { %v1251_v19 = vadd.f32 %v1722_v5, %v1456_v55  ;;  %v1253_v11 = vadd.f32 %v1731_v7, %v1456_v55  ;;  %v1258_v21 = vmax.f32 %v1250_v15, 0.0  ;;  %v1260_v23 = vmax.f32 %v1252_v4, 0.0 }
 0x12c   :  { %v1263_v13 = vmax.f32 %v1255_v18, 0.0  ;;  %v1249_v14 = vadd.f32 %v1723_v10, %v1456_v55  ;;  %v1256_v26 = vmax.f32 %v1248_v17, 0.0 }
 0x12d   :  { %v1259_v24 = vmax.f32 %v1251_v19, 0.0  ;;  %v1261_v25 = vmax.f32 %v1253_v11, 0.0 }
 0x12e   :  { %v1491_v44 = vpack.c.bf16 %v1263_v13, %v1262_v16  ;;  %v1257_v27 = vmax.f32 %v1249_v14, 0.0 }
 0x12f   :  { %v1481_v28 = vpack.c.bf16 %v1259_v24, %v1258_v21  ;;  %v1486_v29 = vpack.c.bf16 %v1261_v25, %v1260_v23 }
 0x130   :  { %1495 = vst [vmem:[%s2171_s3 + $0x18] sm:$0xff] %v1491_v44   ;;  %v1476_v30 = vpack.c.bf16 %v1257_v27, %v1256_v26 }
 0x131   :  { %1493 = vst [vmem:[%s2171_s3 + $0x8] sm:$0xff] %v1481_v28   ;;  %1494 = vst [vmem:[%s2171_s3 + $0x10] sm:$0xff] %v1486_v29  }
 0x132   :  { %1477 = vst [vmem:[%s2171_s3] sm:$0xff] %v1476_v30  }

// kernel: stdcnet_forward.47
= control target key start
LH: loop header
LB: loop body
LE: loop exit
PB: predicated region body
PF: predicated region fallthrough
CT: control target
= control target key end

     0   :  { %vm62_vm0 = vsmask.f32 7424  ;;  %vm503_vm1 = vsmask.f32 4352  ;;  %vm111_vm2 = vcmask 261120   ;;  %vm736_vm3 = vcmask 1045504   ;;  %s1851_s1 = inlined_call_operand.vmem [shape: bf16[9,32,128], index: 1, kind: input, shape index: {}]   ;;  %s1852_s0 = inlined_call_operand.vmem [shape: bf16[78,32], index: 0, kind: input, shape index: {}]   ;;  %s1853_s2 = inlined_call_operand.vmem [shape: f32[1,128], index: 2, kind: input, shape index: {}]   ;;  %s1854_s3 = inlined_call_operand.vmem [shape: bf16[64,128], index: 3, kind: output, shape index: {}]  }
   0x1   :  { %v1532_v0 = vld [vmem:[%s1851_s1 + $0x10] sm:$0xff]   ;;  %v1586_v1 = vld [vmem:[%s1851_s1 + $0x40] sm:$0xff]   ;;  %v1534_v2 = vld [vmem:[%s1851_s1 + $0x18] sm:$0xff]   ;;  %vm279_vm4 = vcmask 1046528   ;;  %vm848_vm5 = vsmask.f32 5376 }
   0x2   :  { %1356 = vmatprep.subr.bf16.mxu1 %v1532_v0  ;;  %1404 = vmatprep.subr.bf16.mxu0 %v1586_v1  ;;  %v1595_v3 = vld [vmem:[%s1851_s1 + $0x48] sm:$0xff]   ;;  %v20_v4 = vld [vmem:[%s1852_s0] sm:$0xf]  ;;  %v21_v5 = vld [vmem:[%s1852_s0 + $0x4] sm:$0xf]  ;;  %vm391_vm6 = vcmask 1044480  }
   0x3   :  { %1357 = vmatpush3.bf16.msra.mxu1 %v1532_v0  ;;  %1405 = vmatpush3.bf16.msra.mxu0 %v1586_v1  ;;  %v22_v6 = vld [vmem:[%s1852_s0 + $0x8] sm:$0xf]  ;;  %v1611_v7 = vld [vmem:[%s1852_s0 + $0xc] sm:$0xf]  ;;  %v1613_v8 = vcombine.low %v20_v4, %v21_v5  ;;  %v1618_v9 = vld [vmem:[%s1852_s0 + $0x10] sm:$0xf] }
   0x4   :  { %1358 = vmatprep.subr.bf16.mxu1 %v1534_v2  ;;  %1406 = vmatprep.subr.bf16.mxu0 %v1595_v3  ;;  %v1623_v10 = vld [vmem:[%s1852_s0 + $0x14] sm:$0xf]  ;;  %v1626_v11 = vcombine.low %v22_v6, %v1611_v7  ;;  %v1539_v13 = vld [vmem:[%s1851_s1] sm:$0xff]   ;;  %v26_v32 = vld [vmem:[%s1852_s0 + $0x18] sm:$0xf]  ;;  %v1659_v39 = vcombine.low %v21_v5, %v22_v6  ;;  %v1700_v58 = vcombine.low %v1611_v7, %v1618_v9 }
   0x5   :  { %v1630_v12 = vcombine.low %v1618_v9, %v1623_v10  ;;  %v64_v14 = vshrl.u32 %v1613_v8, 16  ;;  %v66_v15 = vshll.u32 %v1613_v8, 16  ;;  %v1540_v20 = vld [vmem:[%s1851_s1 + $0x50] sm:$0xff]   ;;  %v27_v33 = vld [vmem:[%s1852_s0 + $0x1c] sm:$0xf]  ;;  %v1544_v44 = vld [vmem:[%s1851_s1 + $0x8] sm:$0xff]   ;;  %v1705_v59 = vcombine.low %v1623_v10, %v26_v32 }
   0x6   :  { %v71_v16 = vshll.u32 %v1626_v11, 16  ;;  %v75_v17 = vshrl.u32 %v1626_v11, 16  ;;  %v1541_v36 = vld [vmem:[%s1851_s1 + $0x58] sm:$0xff]   ;;  %v1654_v37 = vcombine.low %v26_v32, %v27_v33  ;;  %v28_v38 = vld [vmem:[%s1852_s0 + $0x20] sm:$0xf]  ;;  %v1551_v60 = vld [vmem:[%s1851_s1 + $0x68] sm:$0xff]  }
   0x7   :  { %1359 = vmatpush3.bf16.msra.mxu1 %v1534_v2  ;;  %1407 = vmatpush3.bf16.msra.mxu0 %v1595_v3  ;;  %v79_v18 = vshll.u32 %v1630_v12, 16  ;;  %v83_v19 = vshrl.u32 %v1630_v12, 16  ;;  %v68_v21 = vrot.slane %v66_v15, 1  ;;  %v504_v22 = vrot.slane %v64_v14, 3  ;;  %v1548_v53 = vld [vmem:[%s1851_s1 + $0x20] sm:$0xff]   ;;  %v1552_v61 = vld [vmem:[%s1851_s1 + $0x28] sm:$0xff]  }
   0x8   :  { %1368 = vmatprep.subr.bf16.mxu1 %v1539_v13  ;;  %v505_v23 = vrot.slane %v66_v15, 4  ;;  %v73_v24 = vrot.slane %v71_v16, 1  ;;  %v507_v25 = vrot.slane %v75_v17, 3  ;;  %v508_v26 = vrot.slane %v71_v16, 4  ;;  %1416 = vmatprep.subr.bf16.mxu0 %v1540_v20  ;;  %v1547_v56 = vld [vmem:[%s1851_s1 + $0x60] sm:$0xff]   ;;  %v1553_v0 = vld [vmem:[%s1851_s1 + $0x70] sm:$0xff]  }
   0x9   :  { %v81_v27 = vrot.slane %v79_v18, 1  ;;  %v69_v28 = vor.u32 %v68_v21, %v64_v14  ;;  %v511_v30 = vrot.slane %v83_v19, 3  ;;  %v512_v31 = vrot.slane %v79_v18, 4  ;;  %v1554_v6 = vld [vmem:[%s1851_s1 + $0x30] sm:$0xff]  }
   0xa   :  { %v506_v29 = vor.u32 %v505_v23, %v504_v22  ;;  %v77_v34 = vor.u32 %v75_v17, %v73_v24  ;;  %v509_v35 = vor.u32 %v508_v26, %v507_v25  ;;  %v1664_v43 = vcombine.low %v28_v38, %v28_v38  ;;  %v1556_v23 = vld [vmem:[%s1851_s1 + $0x78] sm:$0xff]  }
   0xb   :  { %v74_v40 = vsel %vm62_vm0, %v69_v28, %v73_v24  ;;  %v1662_v41 = vor.u32 %v512_v31, %v511_v30  ;;  %v85_v42 = vor.u32 %v83_v19, %v81_v27  ;;  %v87_v47 = vshll.u32 %v1654_v37, 16  ;;  %v1751_v19 = vld [vmem:[%s1852_s0 + $0x24] ss:$0 sps:$4 sm:$0x77]   ;;  %v1557_v31 = vld [vmem:[%s1851_s1 + $0x38] sm:$0xff]  }
   0xc   :  { %1360 = vmatprep.mubr.msk.bf16.mxu1 %vm111_vm2, %v74_v40  ;;  %v510_v45 = vsel %vm503_vm1, %v506_v29, %v509_v35  ;;  %v82_v46 = vsel %vm62_vm0, %v77_v34, %v81_v27  ;;  %v91_v48 = vshrl.u32 %v1654_v37, 16  ;;  %v95_v50 = vshll.u32 %v1664_v43, 16 }
   0xd   :  { %1408 = vmatprep.mubr.msk.bf16.mxu0 %vm111_vm2, %v510_v45  ;;  %1361 = vmatmul.mubr.msk.bf16.vlgmr.msra.gmra.mrb[0].mxu1 %vm111_vm2, %v82_v46  ;;  %v514_v49 = vsel %vm503_vm1, %v509_v35, %v1662_v41  ;;  %v89_v51 = vrot.slane %v87_v47, 1  ;;  %v737_v62 = vrot.slane %v1659_v39, 2  ;;  %v738_v63 = vrot.slane %v1700_v58, 2 }
   0xe   :  { %1409 = vmatmul.mubr.msk.bf16.vlgmr.msra.gmra.mrb[0].mxu0 %vm111_vm2, %v514_v49  ;;  %1369 = vmatpush3.bf16.msra.mxu1 %v1539_v13  ;;  %v97_v52 = vrot.slane %v95_v50, 1  ;;  %v1724_v2 = vcombine.low %v27_v33, %v28_v38  ;;  %v280_v4 = vrot.slane %v1613_v8, 1  ;;  %v281_v5 = vrot.slane %v1626_v11, 1 }
   0xf   :  { %1417 = vmatpush3.bf16.msra.mxu0 %v1540_v20  ;;  %1370 = vmatprep.subr.bf16.mxu1 %v1544_v44  ;;  %v90_v54 = vsel %vm62_vm0, %v85_v42, %v89_v51  ;;  %v93_v55 = vor.u32 %v91_v48, %v89_v51  ;;  %v739_v7 = vsel %vm736_vm3, %v737_v62, %v738_v63  ;;  %v740_v9 = vrot.slane %v1705_v59, 2 }
  0x10   :  { %1418 = vmatprep.subr.bf16.mxu0 %v1541_v36  ;;  %1420 = vmatprep.mubr.msk.bf16.mxu0 %vm111_vm2, %v1659_v39  ;;  %v282_v10 = vsel %vm279_vm4, %v280_v4, %v281_v5  ;;  %v742_v13 = vrot.slane %v1724_v2, 2  ;;  %v849_v14 = vshrl.u32 %v1659_v39, 16  ;;  %v852_v15 = vshll.u32 %v1659_v39, 16 }
  0x11   :  { %1364 = vmatprep.mubr.msk.bf16.mxu1 %vm111_vm2, %v90_v54  ;;  %v98_v57 = vsel %vm62_vm0, %v93_v55, %v97_v52  ;;  %v856_v16 = vshrl.u32 %v1700_v58, 16  ;;  %v859_v17 = vshll.u32 %v1700_v58, 16  ;;  %v283_v18 = vrot.slane %v1630_v12, 1 }
  0x12   :  { %1371 = vmatpush3.bf16.msra.mxu1 %v1544_v44  ;;  %v741_v20 = vsel %vm736_vm3, %v738_v63, %v740_v9  ;;  %v743_v21 = vsel %vm736_vm3, %v740_v9, %v742_v13  ;;  %v285_v22 = vrot.slane %v1654_v37, 1  ;;  %v851_v24 = vrot.slane %v849_v14, 2 }
  0x13   :  { %1419 = vmatpush3.bf16.msra.mxu0 %v1541_v36  ;;  %1380 = vmatprep.subr.bf16.mxu1 %v1548_v53  ;;  %v854_v25 = vrot.slane %v852_v15, 3  ;;  %v858_v26 = vrot.slane %v856_v16, 2  ;;  %v861_v27 = vrot.slane %v859_v17, 3  ;;  %v284_v28 = vsel %vm279_vm4, %v281_v5, %v283_v18  ;;  %v1558_v36 = vld [vmem:[%s1851_s1 + $0x80] sm:$0xff]  }
  0x14   :  { %1428 = vmatprep.subr.bf16.mxu0 %v1547_v56  ;;  %v744_v29 = vrot.slane %v1751_v19, 2  ;;  %v286_v30 = vsel %vm279_vm4, %v283_v18, %v285_v22  ;;  %v864_v32 = vshrl.u32 %v1705_v59, 16  ;;  %v867_v33 = vshll.u32 %v1705_v59, 16 }
  0x15   :  { %1365 = vmatmul.mubr.msk.bf16.gmra.mrb[4].mxu1 %vm111_vm2, %v98_v57  ;;  %v855_v34 = vor.u32 %v854_v25, %v851_v24  ;;  %v862_v35 = vor.u32 %v861_v27, %v858_v26  ;;  %v872_v38 = vshrl.u32 %v1724_v2, 16  ;;  %v875_v40 = vshll.u32 %v1724_v2, 16  ;;  %v1262_v27 = vld [vmem:[%s1853_s2] ss:$0 sm:$0xff] }
  0x16   :  { %1372 = vmatprep.mubr.msk.bf16.mxu1 %vm111_vm2, %v1613_v8  ;;  %v745_v42 = vsel %vm736_vm3, %v742_v13, %v744_v29  ;;  %v287_v44 = vrot.slane %v1664_v43, 1  ;;  %v866_v45 = vrot.slane %v864_v32, 2  ;;  %v869_v46 = vrot.slane %v867_v33, 3 }
  0x17   :  { %v392_v49 = vrot.slane %v1613_v8, 3  ;;  %v393_v51 = vrot.slane %v1626_v11, 3  ;;  %v863_v52 = vsel %vm848_vm5, %v855_v34, %v862_v35  ;;  %v877_v54 = vrot.slane %v875_v40, 3 }
  0x18   :  { %v288_v55 = vsel %vm279_vm4, %v285_v22, %v287_v44  ;;  %v881_v8 = vshrl.u32 %v1751_v19, 16  ;;  %v397_v4 = vrot.slane %v1654_v37, 3  ;;  %v516_v13 = vrot.slane %v87_v47, 4 }
  0x19   :  { %v394_v57 = vsel %vm391_vm6, %v392_v49, %v393_v51  ;;  %v991_v14 = vrot.slane %v1659_v39, 3  ;;  %v992_v15 = vrot.slane %v1700_v58, 3  ;;  %v399_v16 = vrot.slane %v1664_v43, 3 }
  0x1a   :  { %1421 = vmatmul.mubr.msk.bf16.vlgmr.msra.gmra.mrb[0].mxu0 %vm111_vm2, %v1700_v58  ;;  %v883_v63 = vrot.slane %v881_v8, 2  ;;  %v996_v18 = vrot.slane %v1724_v2, 3 }
  0x1b   :  { %1429 = vmatpush3.bf16.msra.mxu0 %v1547_v56  ;;  %1424 = vmatprep.mubr.msk.bf16.mxu0 %vm111_vm2, %v1705_v59  ;;  %v870_v56 = vor.u32 %v869_v46, %v866_v45  ;;  %v993_v47 = vsel %vm391_vm6, %v991_v14, %v992_v15  ;;  %v400_v39 = vsel %vm391_vm6, %v397_v4, %v399_v16 }
  0x1c   :  { %1430 = vmatprep.subr.bf16.mxu0 %v1551_v60 }
  0x1d   :  { %1373 = vmatmul.mubr.msk.bf16.vlgmr.msra.gmra.mrb[0].mxu1 %vm111_vm2, %v1626_v11  ;;  %v884_v11 = vshll.u32 %v1751_v19, 16  ;;  %v871_v62 = vsel %vm848_vm5, %v862_v35, %v870_v56 }
  0x1e   :  { %1381 = vmatpush3.bf16.msra.mxu1 %v1548_v53  ;;  %1376 = vmatprep.mubr.msk.bf16.mxu1 %vm111_vm2, %v1630_v12  ;;  %v874_v53 = vrot.slane %v872_v38, 2 }
  0x1f   :  { %1431 = vmatpush3.bf16.msra.mxu0 %v1551_v60  ;;  %1382 = vmatprep.subr.bf16.mxu1 %v1552_v61 }
  0x20   :  { %1440 = vmatprep.subr.bf16.mxu0 %v1553_v0  ;;  %v878_v60 = vor.u32 %v877_v54, %v874_v53 }
  0x22   :  { %1425 = vmatmul.mubr.msk.bf16.gmra.mrb[4].mxu0 %vm111_vm2, %v1724_v2  ;;  %1383 = vmatpush3.bf16.msra.mxu1 %v1552_v61  ;;  %v395_v61 = vrot.slane %v1630_v12, 3  ;;  %v879_v5 = vsel %vm848_vm5, %v870_v56, %v878_v60 }
  0x23   :  { %1432 = vmatprep.mubr.msk.bf16.mxu0 %vm111_vm2, %v739_v7  ;;  %1392 = vmatprep.subr.bf16.mxu1 %v1554_v6 }
  0x24   :  { %v396_v7 = vsel %vm391_vm6, %v393_v51, %v395_v61  ;;  %v398_v9 = vsel %vm391_vm6, %v395_v61, %v397_v4 }
  0x25   :  { %1377 = vmatmul.mubr.msk.bf16.gmra.mrb[4].mxu1 %vm111_vm2, %v1654_v37 }
  0x26   :  { %1384 = vmatprep.mubr.msk.bf16.mxu1 %vm111_vm2, %v282_v10  ;;  %v515_v10 = vrot.slane %v91_v48, 3  ;;  %v994_v48 = vrot.slane %v1705_v59, 3 }
  0x28   :  { %v517_v37 = vor.u32 %v516_v13, %v515_v10  ;;  %v997_v22 = vsel %vm391_vm6, %v994_v48, %v996_v18 }
  0x2a   :  { %1433 = vmatmul.mubr.msk.bf16.vlgmr.msra.gmra.mrb[0].mxu0 %vm111_vm2, %v741_v20  ;;  %v518_v58 = vsel %vm503_vm1, %v1662_v41, %v517_v37  ;;  %v522_v20 = vrot.slane %v95_v50, 4  ;;  %v998_v41 = vrot.slane %v1751_v19, 3 }
  0x2b   :  { %1441 = vmatpush3.bf16.msra.mxu0 %v1553_v0  ;;  %1436 = vmatprep.mubr.msk.bf16.mxu0 %vm111_vm2, %v743_v21  ;;  %v886_v0 = vrot.slane %v884_v11, 3 }
  0x2c   :  { %1442 = vmatprep.subr.bf16.mxu0 %v1556_v23 }
  0x2d   :  { %1385 = vmatmul.mubr.msk.bf16.vlgmr.msra.gmra.mrb[0].mxu1 %vm111_vm2, %v284_v28  ;;  %v887_v12 = vor.u32 %v886_v0, %v883_v63 }
  0x2e   :  { %1393 = vmatpush3.bf16.msra.mxu1 %v1554_v6  ;;  %1388 = vmatprep.mubr.msk.bf16.mxu1 %vm111_vm2, %v286_v30  ;;  %v1559_v6 = vld [vmem:[%s1851_s1 + $0x88] sm:$0xff]  }
  0x2f   :  { %1443 = vmatpush3.bf16.msra.mxu0 %v1556_v23  ;;  %1394 = vmatprep.subr.bf16.mxu1 %v1557_v31  ;;  %v888_v17 = vsel %vm848_vm5, %v878_v60, %v887_v12  ;;  %v999_v23 = vsel %vm391_vm6, %v996_v18, %v998_v41 }
  0x30   :  { %1452 = vmatprep.subr.bf16.mxu0 %v1558_v36 }
  0x32   :  { %1437 = vmatmul.mubr.msk.bf16.gmra.mrb[4].mxu0 %vm111_vm2, %v745_v42  ;;  %1395 = vmatpush3.bf16.msra.mxu1 %v1557_v31 }
  0x33   :  { %1444 = vmatprep.mubr.msk.bf16.mxu0 %vm111_vm2, %v863_v52  ;;  %1464 = vmatprep.subr.bf16.mxu1 %v1586_v1 }
  0x35   :  { %1389 = vmatmul.mubr.msk.bf16.gmra.mrb[4].mxu1 %vm111_vm2, %v288_v55 }
  0x36   :  { %1396 = vmatprep.mubr.msk.bf16.mxu1 %vm111_vm2, %v394_v57 }
  0x3a   :  { %1445 = vmatmul.mubr.msk.bf16.vlgmr.msra.gmra.mrb[0].mxu0 %vm111_vm2, %v871_v62 }
  0x3b   :  { %1453 = vmatpush3.bf16.msra.mxu0 %v1558_v36  ;;  %1448 = vmatprep.mubr.msk.bf16.mxu0 %vm111_vm2, %v879_v5 }
  0x3c   :  { %1454 = vmatprep.subr.bf16.mxu0 %v1559_v6 }
  0x3d   :  { %1397 = vmatmul.mubr.msk.bf16.vlgmr.msra.gmra.mrb[0].mxu1 %vm111_vm2, %v396_v7 }
  0x3e   :  { %1466 = vmatpush3.bf16.msra.mxu1 %v1586_v1  ;;  %1400 = vmatprep.mubr.msk.bf16.mxu1 %vm111_vm2, %v398_v9  ;;  %v519_v1 = vshrl.u32 %v1664_v43, 16 }
  0x3f   :  { %1455 = vmatpush3.bf16.msra.mxu0 %v1559_v6  ;;  %1465 = vmatprep.subr.bf16.mxu1 %v1595_v3 }
  0x40   :  { %v521_v21 = vrot.slane %v519_v1, 3 }
  0x42   :  { %1449 = vmatmul.mubr.msk.bf16.gmra.mrb[4].mxu0 %vm111_vm2, %v888_v17  ;;  %1467 = vmatpush3.bf16.msra.mxu1 %v1595_v3  ;;  %v995_v3 = vsel %vm391_vm6, %v992_v15, %v994_v48  ;;  %v523_v59 = vor.u32 %v522_v20, %v521_v21 }
  0x43   :  { %1456 = vmatprep.mubr.msk.bf16.mxu0 %vm111_vm2, %v993_v47 }
  0x44   :  { %v524_v2 = vsel %vm503_vm1, %v517_v37, %v523_v59 }
  0x45   :  { %1401 = vmatmul.mubr.msk.bf16.gmra.mrb[4].mxu1 %vm111_vm2, %v400_v39 }
  0x46   :  { %1412 = vmatprep.mubr.msk.bf16.mxu1 %vm111_vm2, %v518_v58 }
  0x4a   :  { %1457 = vmatmul.mubr.msk.bf16.vlgmr.msra.gmra.mrb[0].mxu0 %vm111_vm2, %v995_v3 }
  0x4b   :  { %1460 = vmatprep.mubr.msk.bf16.mxu0 %vm111_vm2, %v997_v22 }
  0x51   :  { %1413 = vmatmul.mubr.msk.bf16.vlgmr.msra.gmra.mrb[4].mxu1 %vm111_vm2, %v524_v2 }
  0x52   :  { %1461 = vmatmul.mubr.msk.bf16.gmra.mrb[4].mxu0 %vm111_vm2, %v999_v23 }
 0x110   :  { %v1398_v43 = vpop.f32.mrb[0].mxu1 }
 0x111   :  { %v459_v50 = vpop.f32.mrb[1].mxu1 }
 0x112   :  { %v1399_v24 = vpop.f32.mrb[2].mxu1 }
 0x113   :  { %v462_v25 = vpop.f32.mrb[3].mxu1 }
 0x11d   :  { %v1458_v26 = vpop.f32.mrb[0].mxu0 }
 0x11e   :  { %v1468_v28 = vadd.f32 %v1458_v26, %v1398_v43  ;;  %v1058_v29 = vpop.f32.mrb[1].mxu0 }
 0x11f   :  { %v1469_v19 = vadd.f32 %v1058_v29, %v459_v50  ;;  %v1459_v30 = vpop.f32.mrb[2].mxu0 }
 0x120   :  { %v1106_v31 = vadd.f32 %v1468_v28, %v1262_v27  ;;  %v1470_v32 = vadd.f32 %v1459_v30, %v1399_v24  ;;  %v1061_v33 = vpop.f32.mrb[3].mxu0 }
 0x121   :  { %v1104_v34 = vadd.f32 %v1469_v19, %v1262_v27  ;;  %v1471_v35 = vadd.f32 %v1061_v33, %v462_v25 }
 0x122   :  { %v1107_v36 = vadd.f32 %v1470_v32, %v1262_v27  ;;  %v1114_v40 = vmax.f32 %v1106_v31, 0.0 }
 0x123   :  { %v1105_v38 = vadd.f32 %v1471_v35, %v1262_v27  ;;  %v1112_v45 = vmax.f32 %v1104_v34, 0.0 }
 0x124   :  { %v1115_v42 = vmax.f32 %v1107_v36, 0.0  ;;  %v1414_v44 = vpop.f32.mrb[4].mxu1 }
 0x125   :  { %v1113_v46 = vmax.f32 %v1105_v38, 0.0  ;;  %v1462_v49 = vpop.f32.mrb[4].mxu0  ;;  %v599_v51 = vpop.f32.mrb[5].mxu1 }
 0x126   :  { %v1287_v52 = vpack.c.bf16 %v1115_v42, %v1114_v40  ;;  %v1472_v53 = vadd.f32 %v1462_v49, %v1414_v44  ;;  %v1074_v54 = vpop.f32.mrb[5].mxu0  ;;  %v1415_v55 = vpop.f32.mrb[6].mxu1 }
 0x127   :  { %v1282_v56 = vpack.c.bf16 %v1113_v46, %v1112_v45  ;;  %v1473_v57 = vadd.f32 %v1074_v54, %v599_v51  ;;  %v1463_v8 = vpop.f32.mrb[6].mxu0  ;;  %v602_v11 = vpop.f32.mrb[7].mxu1 }
 0x128   :  { %1299 = vst [vmem:[%s1854_s3 + $0x8] sm:$0xff] %v1287_v52   ;;  %v1110_v60 = vadd.f32 %v1472_v53, %v1262_v27  ;;  %v1474_v61 = vadd.f32 %v1463_v8, %v1415_v55  ;;  %v1077_v62 = vpop.f32.mrb[7].mxu0 }
 0x129   :  { %1283 = vst [vmem:[%s1854_s3] sm:$0xff] %v1282_v56   ;;  %v1108_v63 = vadd.f32 %v1473_v57, %v1262_v27  ;;  %v1475_v0 = vadd.f32 %v1077_v62, %v602_v11 }
 0x12a   :  { %v1111_v4 = vadd.f32 %v1474_v61, %v1262_v27  ;;  %v1118_v6 = vmax.f32 %v1110_v60, 0.0 }
 0x12b   :  { %v1109_v5 = vadd.f32 %v1475_v0, %v1262_v27  ;;  %v1116_v12 = vmax.f32 %v1108_v63, 0.0 }
 0x12c   :  { %v1119_v7 = vmax.f32 %v1111_v4, 0.0 }
 0x12d   :  { %v1117_v9 = vmax.f32 %v1109_v5, 0.0 }
 0x12e   :  { %v1297_v10 = vpack.c.bf16 %v1119_v7, %v1118_v6 }
 0x12f   :  { %v1292_v13 = vpack.c.bf16 %v1117_v9, %v1116_v12 }
 0x130   :  { %1301 = vst [vmem:[%s1854_s3 + $0x18] sm:$0xff] %v1297_v10  }
 0x131   :  { %1300 = vst [vmem:[%s1854_s3 + $0x10] sm:$0xff] %v1292_v13  }

// kernel: stdcnet_forward.48
= control target key start
LH: loop header
LB: loop body
LE: loop exit
PB: predicated region body
PF: predicated region fallthrough
CT: control target
= control target key end

     0   :  { %vm58_vm0 = vsmask.f32 7424  ;;  %vm469_vm1 = vsmask.f32 4352  ;;  %vm101_vm2 = vcmask 130048   ;;  %vm686_vm3 = vcmask 1045504   ;;  %s1675_s1 = inlined_call_operand.vmem [shape: bf16[9,16,128], index: 1, kind: input, shape index: {}]   ;;  %s1676_s0 = inlined_call_operand.vmem [shape: bf16[78,16], index: 0, kind: input, shape index: {}]   ;;  %s1677_s2 = inlined_call_operand.vmem [shape: f32[1,128], index: 2, kind: input, shape index: {}]   ;;  %s1678_s3 = inlined_call_operand.vmem [shape: bf16[64,128], index: 3, kind: output, shape index: {}]  }
   0x1   :  { %v1406_v0 = vld [vmem:[%s1675_s1 + $0x8] sm:$0xff]   ;;  %v1451_v1 = vld [vmem:[%s1675_s1 + $0x20] sm:$0xff]   ;;  %v24_v12 = vld [vmem:[%s1676_s0 + $0x10] sm:$0xf]  ;;  %vm261_vm4 = vcmask 1046528   ;;  %vm365_vm6 = vcmask 1044480  }
   0x2   :  { %1250 = vmatprep.subr.bf16.mxu1 %v1406_v0  ;;  %v20_v2 = vld [vmem:[%s1676_s0] sm:$0xf]  ;;  %v21_v3 = vld [vmem:[%s1676_s0 + $0x4] sm:$0xf]  ;;  %v22_v4 = vld [vmem:[%s1676_s0 + $0x8] sm:$0xf]  ;;  %1290 = vmatprep.subr.bf16.mxu0 %v1451_v1 }
   0x3   :  { %1251 = vmatpush3.bf16.msra.mxu1 %v1406_v0  ;;  %v1466_v5 = vld [vmem:[%s1676_s0 + $0xc] sm:$0xf]  ;;  %v1468_v6 = vcombine.low %v20_v2, %v21_v3  ;;  %1291 = vmatpush3.bf16.msra.mxu0 %v1451_v1  ;;  %v1410_v8 = vld [vmem:[%s1675_s1] sm:$0xff]   ;;  %v25_v15 = vld [vmem:[%s1676_s0 + $0x14] sm:$0xf]  ;;  %v1519_v46 = vcombine.low %v21_v3, %v22_v4 }
   0x4   :  { %v1472_v7 = vcombine.low %v22_v4, %v1466_v5  ;;  %v1411_v11 = vld [vmem:[%s1675_s1 + $0x28] sm:$0xff]   ;;  %1260 = vmatprep.subr.bf16.mxu1 %v1410_v8  ;;  %v26_v16 = vld [vmem:[%s1676_s0 + $0x18] sm:$0xf]  ;;  %v1493_v20 = vcombine.low %v24_v12, %v25_v15  ;;  %v27_v21 = vld [vmem:[%s1676_s0 + $0x1c] sm:$0xf]  ;;  %v1544_v54 = vcombine.low %v1466_v5, %v24_v12 }
   0x5   :  { %v60_v9 = vshrl.u32 %v1468_v6, 16  ;;  %v62_v10 = vshll.u32 %v1468_v6, 16  ;;  %1300 = vmatprep.subr.bf16.mxu0 %v1411_v11  ;;  %v1498_v25 = vcombine.low %v26_v16, %v27_v21  ;;  %v28_v26 = vld [vmem:[%s1676_s0 + $0x20] sm:$0xf]  ;;  %v1416_v47 = vld [vmem:[%s1675_s1 + $0x30] sm:$0xff]   ;;  %v1546_v55 = vcombine.low %v25_v15, %v26_v16  ;;  %v1421_v56 = vld [vmem:[%s1675_s1 + $0x38] sm:$0xff]  }
   0x6   :  { %v67_v13 = vshll.u32 %v1472_v7, 16  ;;  %v71_v14 = vshrl.u32 %v1472_v7, 16  ;;  %v75_v29 = vshll.u32 %v1493_v20, 16  ;;  %v79_v30 = vshrl.u32 %v1493_v20, 16  ;;  %v1418_v48 = vld [vmem:[%s1675_s1 + $0x10] sm:$0xff]   ;;  %v1422_v57 = vld [vmem:[%s1675_s1 + $0x18] sm:$0xff]  }
   0x7   :  { %v64_v17 = vrot.slane %v62_v10, 1  ;;  %v470_v18 = vrot.slane %v60_v9, 3  ;;  %v471_v19 = vrot.slane %v62_v10, 4  ;;  %v83_v33 = vshll.u32 %v1498_v25, 16 }
   0x8   :  { %v69_v22 = vrot.slane %v67_v13, 1  ;;  %v473_v23 = vrot.slane %v71_v14, 3  ;;  %v474_v24 = vrot.slane %v67_v13, 4  ;;  %v1506_v34 = vcombine.low %v28_v26, %v28_v26 }
   0x9   :  { %v65_v27 = vor.u32 %v64_v17, %v60_v9  ;;  %v472_v28 = vor.u32 %v471_v19, %v470_v18  ;;  %v77_v36 = vrot.slane %v75_v29, 1  ;;  %v477_v37 = vrot.slane %v79_v30, 3  ;;  %v1424_v19 = vld [vmem:[%s1675_s1 + $0x40] sm:$0xff]  }
   0xa   :  { %v73_v31 = vor.u32 %v71_v14, %v69_v22  ;;  %v475_v32 = vor.u32 %v474_v24, %v473_v23  ;;  %v478_v38 = vrot.slane %v75_v29, 4  ;;  %v85_v40 = vrot.slane %v83_v33, 1  ;;  %v1589_v14 = vld [vmem:[%s1676_s0 + $0x24] ss:$0 sps:$4 sm:$0x77]  }
   0xb   :  { %v70_v35 = vsel %vm58_vm0, %v65_v27, %v69_v22  ;;  %v87_v41 = vshrl.u32 %v1498_v25, 16  ;;  %v91_v42 = vshll.u32 %v1506_v34, 16  ;;  %v81_v45 = vor.u32 %v79_v30, %v77_v36 }
   0xc   :  { %1252 = vmatprep.mubr.msk.bf16.mxu1 %vm101_vm2, %v70_v35  ;;  %v476_v39 = vsel %vm469_vm1, %v472_v28, %v475_v32  ;;  %v78_v43 = vsel %vm58_vm0, %v73_v31, %v77_v36  ;;  %v1517_v44 = vor.u32 %v478_v38, %v477_v37  ;;  %v687_v58 = vrot.slane %v1519_v46, 2 }
   0xd   :  { %1292 = vmatprep.mubr.msk.bf16.mxu0 %vm101_vm2, %v476_v39  ;;  %1253 = vmatmul.mubr.msk.bf16.vlgmr.msra.gmra.mrb[0].mxu1 %vm101_vm2, %v78_v43  ;;  %v86_v50 = vsel %vm58_vm0, %v81_v45, %v85_v40  ;;  %v89_v51 = vor.u32 %v87_v41, %v85_v40  ;;  %v93_v52 = vrot.slane %v91_v42, 1  ;;  %v688_v59 = vrot.slane %v1544_v54, 2 }
   0xe   :  { %1261 = vmatpush3.bf16.msra.mxu1 %v1410_v8  ;;  %v480_v49 = vsel %vm469_vm1, %v475_v32, %v1517_v44  ;;  %1256 = vmatprep.mubr.msk.bf16.mxu1 %vm101_vm2, %v86_v50  ;;  %v1564_v60 = vcombine.low %v27_v21, %v28_v26  ;;  %v262_v61 = vrot.slane %v1468_v6, 1  ;;  %v263_v62 = vrot.slane %v1472_v7, 1 }
   0xf   :  { %1293 = vmatmul.mubr.msk.bf16.vlgmr.msra.gmra.mrb[0].mxu0 %vm101_vm2, %v480_v49  ;;  %1270 = vmatprep.subr.bf16.mxu1 %v1418_v48  ;;  %v94_v53 = vsel %vm58_vm0, %v89_v51, %v93_v52  ;;  %v689_v63 = vsel %vm686_vm3, %v687_v58, %v688_v59  ;;  %v690_v2 = vrot.slane %v1546_v55, 2  ;;  %v791_v4 = vshrl.u32 %v1519_v46, 16 }
  0x10   :  { %1301 = vmatpush3.bf16.msra.mxu0 %v1411_v11  ;;  %1302 = vmatprep.mubr.msk.bf16.mxu0 %vm101_vm2, %v1519_v46  ;;  %v264_v0 = vsel %vm261_vm4, %v262_v61, %v263_v62  ;;  %v692_v3 = vrot.slane %v1564_v60, 2  ;;  %v794_v5 = vshll.u32 %v1519_v46, 16  ;;  %v798_v8 = vshrl.u32 %v1544_v54, 16 }
  0x11   :  { %1310 = vmatprep.subr.bf16.mxu0 %v1416_v47  ;;  %v801_v9 = vshll.u32 %v1544_v54, 16  ;;  %v265_v10 = vrot.slane %v1493_v20, 1  ;;  %v267_v11 = vrot.slane %v1498_v25, 1  ;;  %v691_v12 = vsel %vm686_vm3, %v688_v59, %v690_v2 }
  0x12   :  { %v693_v13 = vsel %vm686_vm3, %v690_v2, %v692_v3  ;;  %v793_v15 = vrot.slane %v791_v4, 2  ;;  %v796_v16 = vrot.slane %v794_v5, 3  ;;  %v800_v17 = vrot.slane %v798_v8, 2 }
  0x13   :  { %v803_v18 = vrot.slane %v801_v9, 3  ;;  %v266_v21 = vsel %vm261_vm4, %v263_v62, %v265_v10  ;;  %v268_v22 = vsel %vm261_vm4, %v265_v10, %v267_v11  ;;  %v694_v23 = vrot.slane %v1589_v14, 2 }
  0x14   :  { %v806_v24 = vshrl.u32 %v1546_v55, 16  ;;  %v809_v26 = vshll.u32 %v1546_v55, 16  ;;  %v797_v27 = vor.u32 %v796_v16, %v793_v15  ;;  %v814_v29 = vshrl.u32 %v1564_v60, 16  ;;  %v1165_v16 = vld [vmem:[%s1677_s2] ss:$0 sm:$0xff] }
  0x15   :  { %1257 = vmatmul.mubr.msk.bf16.gmra.mrb[4].mxu1 %vm101_vm2, %v94_v53  ;;  %v804_v28 = vor.u32 %v803_v18, %v800_v17  ;;  %v817_v30 = vshll.u32 %v1564_v60, 16  ;;  %v269_v31 = vrot.slane %v1506_v34, 1  ;;  %vm790_vm5 = vsmask.f32 5376 }
  0x16   :  { %1262 = vmatprep.mubr.msk.bf16.mxu1 %vm101_vm2, %v1468_v6  ;;  %v366_v32 = vrot.slane %v1468_v6, 3  ;;  %v367_v35 = vrot.slane %v1472_v7, 3  ;;  %v695_v36 = vsel %vm686_vm3, %v692_v3, %v694_v23  ;;  %v808_v37 = vrot.slane %v806_v24, 2 }
  0x17   :  { %v811_v38 = vrot.slane %v809_v26, 3  ;;  %v805_v39 = vsel %vm790_vm5, %v797_v27, %v804_v28  ;;  %v816_v40 = vrot.slane %v814_v29, 2  ;;  %v819_v43 = vrot.slane %v817_v30, 3 }
  0x18   :  { %v270_v45 = vsel %vm261_vm4, %v267_v11, %v269_v31  ;;  %v369_v50 = vrot.slane %v1493_v20, 3  ;;  %v371_v51 = vrot.slane %v1498_v25, 3  ;;  %v481_v61 = vrot.slane %v87_v41, 3 }
  0x19   :  { %v812_v6 = vor.u32 %v811_v38, %v808_v37  ;;  %v820_v49 = vor.u32 %v819_v43, %v816_v40  ;;  %v373_v2 = vrot.slane %v1506_v34, 3  ;;  %v485_v4 = vshrl.u32 %v1506_v34, 16 }
  0x1a   :  { %v370_v58 = vsel %vm365_vm6, %v367_v35, %v369_v50  ;;  %v372_v59 = vsel %vm365_vm6, %v369_v50, %v371_v51  ;;  %v488_v5 = vrot.slane %v91_v42, 4 }
  0x1b   :  { %1303 = vmatmul.mubr.msk.bf16.vlgmr.msra.gmra.mrb[0].mxu0 %vm101_vm2, %v1544_v54  ;;  %v813_v52 = vsel %vm790_vm5, %v804_v28, %v812_v6  ;;  %v374_v3 = vsel %vm365_vm6, %v371_v51, %v373_v2  ;;  %v487_v8 = vrot.slane %v485_v4, 3 }
  0x1c   :  { %1311 = vmatpush3.bf16.msra.mxu0 %v1416_v47  ;;  %1306 = vmatprep.mubr.msk.bf16.mxu0 %vm101_vm2, %v1546_v55  ;;  %v368_v47 = vsel %vm365_vm6, %v366_v32, %v367_v35 }
  0x1d   :  { %1263 = vmatmul.mubr.msk.bf16.vlgmr.msra.gmra.mrb[0].mxu1 %vm101_vm2, %v1472_v7  ;;  %1320 = vmatprep.subr.bf16.mxu0 %v1421_v56  ;;  %v823_v7 = vshrl.u32 %v1589_v14, 16  ;;  %v489_v11 = vor.u32 %v488_v5, %v487_v8 }
  0x1e   :  { %1271 = vmatpush3.bf16.msra.mxu1 %v1418_v48  ;;  %1266 = vmatprep.mubr.msk.bf16.mxu1 %vm101_vm2, %v1493_v20  ;;  %v826_v48 = vshll.u32 %v1589_v14, 16  ;;  %v482_v20 = vrot.slane %v83_v33, 4 }
  0x1f   :  { %1280 = vmatprep.subr.bf16.mxu1 %v1422_v57  ;;  %v825_v53 = vrot.slane %v823_v7, 2 }
  0x20   :  { %v483_v41 = vor.u32 %v482_v20, %v481_v61 }
  0x23   :  { %1307 = vmatmul.mubr.msk.bf16.gmra.mrb[4].mxu0 %vm101_vm2, %v1564_v60 }
  0x24   :  { %1312 = vmatprep.mubr.msk.bf16.mxu0 %vm101_vm2, %v689_v63  ;;  %v925_v63 = vrot.slane %v1519_v46, 3  ;;  %v484_v46 = vsel %vm469_vm1, %v1517_v44, %v483_v41  ;;  %v932_v44 = vrot.slane %v1589_v14, 3 }
  0x25   :  { %1267 = vmatmul.mubr.msk.bf16.gmra.mrb[4].mxu1 %vm101_vm2, %v1498_v25 }
  0x26   :  { %1272 = vmatprep.mubr.msk.bf16.mxu1 %vm101_vm2, %v264_v0  ;;  %v926_v0 = vrot.slane %v1544_v54, 3  ;;  %v930_v54 = vrot.slane %v1564_v60, 3 }
  0x28   :  { %v927_v33 = vsel %vm365_vm6, %v925_v63, %v926_v0  ;;  %v933_v60 = vsel %vm365_vm6, %v930_v54, %v932_v44 }
  0x2b   :  { %1313 = vmatmul.mubr.msk.bf16.vlgmr.msra.gmra.mrb[0].mxu0 %vm101_vm2, %v691_v12 }
  0x2c   :  { %1321 = vmatpush3.bf16.msra.mxu0 %v1421_v56  ;;  %1316 = vmatprep.mubr.msk.bf16.mxu0 %vm101_vm2, %v693_v13  ;;  %v828_v56 = vrot.slane %v826_v48, 3 }
  0x2d   :  { %1273 = vmatmul.mubr.msk.bf16.vlgmr.msra.gmra.mrb[0].mxu1 %vm101_vm2, %v266_v21  ;;  %1330 = vmatprep.subr.bf16.mxu0 %v1424_v19 }
  0x2e   :  { %1281 = vmatpush3.bf16.msra.mxu1 %v1422_v57  ;;  %1276 = vmatprep.mubr.msk.bf16.mxu1 %vm101_vm2, %v268_v22  ;;  %v821_v57 = vsel %vm790_vm5, %v812_v6, %v820_v49  ;;  %v829_v62 = vor.u32 %v828_v56, %v825_v53 }
  0x2f   :  { %1340 = vmatprep.subr.bf16.mxu1 %v1451_v1 }
  0x30   :  { %v830_v25 = vsel %vm790_vm5, %v820_v49, %v829_v62 }
  0x33   :  { %1317 = vmatmul.mubr.msk.bf16.gmra.mrb[4].mxu0 %vm101_vm2, %v695_v36 }
  0x34   :  { %1322 = vmatprep.mubr.msk.bf16.mxu0 %vm101_vm2, %v805_v39 }
  0x35   :  { %1277 = vmatmul.mubr.msk.bf16.gmra.mrb[4].mxu1 %vm101_vm2, %v270_v45 }
  0x36   :  { %1282 = vmatprep.mubr.msk.bf16.mxu1 %vm101_vm2, %v368_v47 }
  0x3b   :  { %1323 = vmatmul.mubr.msk.bf16.vlgmr.msra.gmra.mrb[0].mxu0 %vm101_vm2, %v813_v52 }
  0x3c   :  { %1331 = vmatpush3.bf16.msra.mxu0 %v1424_v19  ;;  %1326 = vmatprep.mubr.msk.bf16.mxu0 %vm101_vm2, %v821_v57 }
  0x3d   :  { %1283 = vmatmul.mubr.msk.bf16.vlgmr.msra.gmra.mrb[0].mxu1 %vm101_vm2, %v370_v58 }
  0x3e   :  { %1341 = vmatpush3.bf16.msra.mxu1 %v1451_v1  ;;  %1286 = vmatprep.mubr.msk.bf16.mxu1 %vm101_vm2, %v372_v59  ;;  %v928_v1 = vrot.slane %v1546_v55, 3  ;;  %v490_v55 = vsel %vm469_vm1, %v483_v41, %v489_v11 }
  0x40   :  { %v929_v9 = vsel %vm365_vm6, %v926_v0, %v928_v1  ;;  %v931_v10 = vsel %vm365_vm6, %v928_v1, %v930_v54 }
  0x43   :  { %1327 = vmatmul.mubr.msk.bf16.gmra.mrb[4].mxu0 %vm101_vm2, %v830_v25 }
  0x44   :  { %1332 = vmatprep.mubr.msk.bf16.mxu0 %vm101_vm2, %v927_v33 }
  0x45   :  { %1287 = vmatmul.mubr.msk.bf16.gmra.mrb[4].mxu1 %vm101_vm2, %v374_v3 }
  0x46   :  { %1296 = vmatprep.mubr.msk.bf16.mxu1 %vm101_vm2, %v484_v46 }
  0x4b   :  { %1333 = vmatmul.mubr.msk.bf16.vlgmr.msra.gmra.mrb[0].mxu0 %vm101_vm2, %v929_v9 }
  0x4c   :  { %1336 = vmatprep.mubr.msk.bf16.mxu0 %vm101_vm2, %v931_v10 }
  0x51   :  { %1297 = vmatmul.mubr.msk.bf16.vlgmr.msra.gmra.mrb[4].mxu1 %vm101_vm2, %v490_v55 }
  0x53   :  { %1337 = vmatmul.mubr.msk.bf16.gmra.mrb[4].mxu0 %vm101_vm2, %v933_v60 }
 0x110   :  { %v1284_v34 = vpop.f32.mrb[0].mxu1 }
 0x111   :  { %v427_v42 = vpop.f32.mrb[1].mxu1 }
 0x112   :  { %v1285_v12 = vpop.f32.mrb[2].mxu1 }
 0x113   :  { %v430_v13 = vpop.f32.mrb[3].mxu1 }
 0x11e   :  { %v1334_v15 = vpop.f32.mrb[0].mxu0 }
 0x11f   :  { %v1342_v17 = vadd.f32 %v1334_v15, %v1284_v34  ;;  %v986_v18 = vpop.f32.mrb[1].mxu0 }
 0x120   :  { %v1343_v14 = vadd.f32 %v986_v18, %v427_v42  ;;  %v1335_v19 = vpop.f32.mrb[2].mxu0 }
 0x121   :  { %v1034_v21 = vadd.f32 %v1342_v17, %v1165_v16  ;;  %v1344_v22 = vadd.f32 %v1335_v19, %v1285_v12  ;;  %v989_v23 = vpop.f32.mrb[3].mxu0 }
 0x122   :  { %v1032_v24 = vadd.f32 %v1343_v14, %v1165_v16  ;;  %v1345_v26 = vadd.f32 %v989_v23, %v430_v13 }
 0x123   :  { %v1035_v27 = vadd.f32 %v1344_v22, %v1165_v16  ;;  %v1042_v30 = vmax.f32 %v1034_v21, 0.0 }
 0x124   :  { %v1033_v28 = vadd.f32 %v1345_v26, %v1165_v16  ;;  %v1298_v29 = vpop.f32.mrb[4].mxu1  ;;  %v1040_v35 = vmax.f32 %v1032_v24, 0.0 }
 0x125   :  { %v1043_v31 = vmax.f32 %v1035_v27, 0.0  ;;  %v559_v32 = vpop.f32.mrb[5].mxu1 }
 0x126   :  { %v1041_v36 = vmax.f32 %v1033_v28, 0.0  ;;  %v1338_v37 = vpop.f32.mrb[4].mxu0  ;;  %v1299_v38 = vpop.f32.mrb[6].mxu1 }
 0x127   :  { %v1190_v39 = vpack.c.bf16 %v1043_v31, %v1042_v30  ;;  %v1346_v40 = vadd.f32 %v1338_v37, %v1298_v29  ;;  %v1002_v43 = vpop.f32.mrb[5].mxu0  ;;  %v562_v45 = vpop.f32.mrb[7].mxu1 }
 0x128   :  { %v1185_v47 = vpack.c.bf16 %v1041_v36, %v1040_v35  ;;  %v1347_v6 = vadd.f32 %v1002_v43, %v559_v32  ;;  %v1339_v7 = vpop.f32.mrb[6].mxu0 }
 0x129   :  { %1202 = vst [vmem:[%s1678_s3 + $0x8] sm:$0xff] %v1190_v39   ;;  %v1038_v48 = vadd.f32 %v1346_v40, %v1165_v16  ;;  %v1348_v49 = vadd.f32 %v1339_v7, %v1299_v38  ;;  %v1005_v50 = vpop.f32.mrb[7].mxu0 }
 0x12a   :  { %1186 = vst [vmem:[%s1678_s3] sm:$0xff] %v1185_v47   ;;  %v1036_v51 = vadd.f32 %v1347_v6, %v1165_v16  ;;  %v1349_v52 = vadd.f32 %v1005_v50, %v562_v45 }
 0x12b   :  { %v1039_v53 = vadd.f32 %v1348_v49, %v1165_v16  ;;  %v1046_v57 = vmax.f32 %v1038_v48, 0.0 }
 0x12c   :  { %v1037_v56 = vadd.f32 %v1349_v52, %v1165_v16  ;;  %v1044_v59 = vmax.f32 %v1036_v51, 0.0 }
 0x12d   :  { %v1047_v58 = vmax.f32 %v1039_v53, 0.0 }
 0x12e   :  { %v1045_v61 = vmax.f32 %v1037_v56, 0.0 }
 0x12f   :  { %v1200_v20 = vpack.c.bf16 %v1047_v58, %v1046_v57 }
 0x130   :  { %v1195_v62 = vpack.c.bf16 %v1045_v61, %v1044_v59 }
 0x131   :  { %1204 = vst [vmem:[%s1678_s3 + $0x18] sm:$0xff] %v1200_v20  }
 0x132   :  { %1203 = vst [vmem:[%s1678_s3 + $0x10] sm:$0xff] %v1195_v62  }

// kernel: stdcnet_forward.49
= control target key start
LH: loop header
LB: loop body
LE: loop exit
PB: predicated region body
PF: predicated region fallthrough
CT: control target
= control target key end

     0   :  { %s334_s6 = smov 0   ;;  %s380_s0 = inlined_call_operand.vmem [shape: bf16[2,4,5,5,64], index: 0, kind: input, shape index: {}]   ;;  %s381_s1 = inlined_call_operand.vmem [shape: bf16[2,4,4,64], index: 1, kind: output, shape index: {}]  }
   0x1 LB: > { %s283_s7 = sadd.s32 4294967295, %s322_s6   ;;  %p287_p0 = scmp.ge.s32.totalorder %s322_s6, 1  ;;  %s322_s6 = sphi %s334_s6, %s11_s6  }
   0x2   : > { %p87_p1 = scmp.lt.s32.totalorder %s322_s6, 3 }
   0x4   : > { %p88_p2 = pnand %p287_p0, %p87_p1 }
   0x5   : > { %p107_p3 = scmp.lt.s32.totalorder (!%p88_p2), %s283_s7, 1  ;;  %vm223_vm0 = vcmask (!%p88_p2), 517120  }
   0x6   : > { %91 = sbr.rel (%p88_p2) target bundleno = 47 (0x2f), region = 24 }
   0xd   : > { %s383_s7 = smov (!%p107_p3, %s283_s7), 1 }
   0xe   : > { %s307_s8 = smul.u32 80, %s383_s7  ;;  %s306_s12 = sshll.u32 %s383_s7, 3 }
   0xf   : > { %s116_s15 = scalar_lea.vmem %s381_s1, %s306_s12 }
  0x10   : > { %s348_s11 = scalar_lea.vmem %s380_s0, %s307_s8 }
  0x11   : > { %v117_v0 = vld [vmem:[%s348_s11] sm:$0x7]  ;;  %v118_v1 = vld [vmem:[%s348_s11 + $0x4] sm:$0x7]  ;;  %v291_v2 = vld [vmem:[%s348_s11 + $0x14] sm:$0x7] }
  0x12   : > { %v122_v3 = vunpack.c.l.bf16 %v117_v0  ;;  %v353_v4 = vunpack.c.l.bf16 %v118_v1  ;;  %v292_v5 = vld [vmem:[%s348_s11 + $0x18] sm:$0x7]  ;;  %v132_v6 = vunpack.c.l.bf16 %v291_v2  ;;  %v296_v7 = vld [vmem:[%s348_s11 + $0x28] sm:$0x7]  ;;  %v297_v8 = vld [vmem:[%s348_s11 + $0x2c] sm:$0x7] }
  0x13   : > { %v133_v9 = vunpack.c.l.bf16 %v292_v5  ;;  %v300_v10 = vld [vmem:[%s348_s11 + $0x3c] sm:$0x7]  ;;  %v119_v11 = vld [vmem:[%s348_s11 + $0x8] sm:$0x7]  ;;  %v161_v16 = vunpack.c.l.bf16 %v296_v7  ;;  %v298_v17 = vld [vmem:[%s348_s11 + $0x30] sm:$0x7]  ;;  %v162_v20 = vunpack.c.l.bf16 %v297_v8 }
  0x14   : > { %v293_v12 = vld [vmem:[%s348_s11 + $0x1c] sm:$0x7]  ;;  %v136_v13 = vadd.f32 %v132_v6, %v122_v3  ;;  %v144_v14 = vrot.slane %v122_v3, 1  ;;  %v145_v15 = vrot.slane %v353_v4, 1  ;;  %v301_v18 = vld [vmem:[%s348_s11 + $0x40] sm:$0x7]  ;;  %v124_v21 = vunpack.c.l.bf16 %v119_v11 }
  0x15   : > { %v137_v19 = vadd.f32 %v133_v9, %v353_v4  ;;  %v134_v22 = vunpack.c.l.bf16 %v293_v12  ;;  %v120_v23 = vld [vmem:[%s348_s11 + $0xc] sm:$0x7]  ;;  %v294_v24 = vld [vmem:[%s348_s11 + $0x20] sm:$0x7]  ;;  %v174_v26 = vunpack.c.l.bf16 %v300_v10  ;;  %v163_v27 = vunpack.c.l.bf16 %v298_v17  ;;  %v302_v29 = vld [vmem:[%s348_s11 + $0x44] sm:$0x7] }
  0x16   : > { %v152_v25 = vadd.f32 %v144_v14, %v136_v13  ;;  %v175_v28 = vunpack.c.l.bf16 %v301_v18  ;;  %v146_v32 = vrot.slane %v124_v21, 1  ;;  %v125_v33 = vunpack.c.l.bf16 %v120_v23  ;;  %v299_v34 = vld [vmem:[%s348_s11 + $0x34] sm:$0x7]  ;;  %v303_v43 = vld [vmem:[%s348_s11 + $0x48] sm:$0x7] }
  0x17   : > { %v153_v30 = vadd.f32 %v145_v15, %v137_v19  ;;  %v138_v31 = vadd.f32 %v134_v22, %v124_v21  ;;  %v186_v36 = vrot.slane %v161_v16, 1  ;;  %v187_v37 = vrot.slane %v162_v20, 1  ;;  %v121_v55 = vld [vmem:[%s348_s11 + $0x10] sm:$0x7]  ;;  %v295_v61 = vld [vmem:[%s348_s11 + $0x24] sm:$0x7] }
  0x18   : > { %v165_v35 = vadd.f32 %v161_v16, %v152_v25  ;;  %v135_v38 = vunpack.c.l.bf16 %v294_v24  ;;  %v147_v41 = vrot.slane %v125_v33, 1  ;;  %v176_v42 = vunpack.c.l.bf16 %v302_v29 }
  0x19   : > { %v166_v39 = vadd.f32 %v162_v20, %v153_v30  ;;  %v154_v40 = vadd.f32 %v146_v32, %v138_v31  ;;  %v164_v46 = vunpack.c.l.bf16 %v299_v34  ;;  %v188_v49 = vrot.slane %v163_v27, 1 }
  0x1a   : > { %v178_v44 = vadd.f32 %v174_v26, %v165_v35  ;;  %v139_v45 = vadd.f32 %v135_v38, %v125_v33  ;;  %v177_v52 = vunpack.c.l.bf16 %v303_v43  ;;  %v198_v0 = vunpack.c.l.bf16 %v121_v55 }
  0x1b   : > { %v167_v47 = vadd.f32 %v163_v27, %v154_v40  ;;  %v179_v48 = vadd.f32 %v175_v28, %v166_v39  ;;  %v189_v58 = vrot.slane %v164_v46, 1  ;;  %v203_v6 = vunpack.c.l.bf16 %v295_v61 }
  0x1c   : > { %v194_v50 = vadd.f32 %v186_v36, %v178_v44  ;;  %v155_v51 = vadd.f32 %v147_v41, %v139_v45  ;;  %v209_v12 = vrot.slane %v198_v0, 1 }
  0x1d   : > { %v195_v53 = vadd.f32 %v187_v37, %v179_v48  ;;  %v180_v54 = vadd.f32 %v176_v42, %v167_v47 }
  0x1e   : > { %v199_v56 = vadd.f32 %v194_v50, %v353_v4  ;;  %v168_v57 = vadd.f32 %v164_v46, %v155_v51 }
  0x1f   : > { %v200_v59 = vadd.f32 %v195_v53, %v124_v21  ;;  %v196_v60 = vadd.f32 %v188_v49, %v180_v54 }
  0x20   : > { %v204_v62 = vadd.f32 %v199_v56, %v133_v9  ;;  %v181_v63 = vadd.f32 %v177_v52, %v168_v57 }
  0x21   : > { %v205_v1 = vadd.f32 %v200_v59, %v134_v22  ;;  %v201_v2 = vadd.f32 %v196_v60, %v125_v33 }
  0x22   : > { %v211_v3 = vadd.f32 %v204_v62, %v145_v15  ;;  %v197_v5 = vadd.f32 %v189_v58, %v181_v63 }
  0x23   : > { %v212_v7 = vadd.f32 %v205_v1, %v146_v32  ;;  %v206_v8 = vadd.f32 %v201_v2, %v135_v38 }
  0x24   : > { %v215_v10 = vmul.f32 0.11111111, %v211_v3  ;;  %v202_v11 = vadd.f32 %v198_v0, %v197_v5 }
  0x25   : > { %v216_v4 = vmul.f32 0.11111111, %v212_v7  ;;  %v213_v9 = vadd.f32 %v206_v8, %v147_v41 }
  0x26   : > { %v219_v13 = vpack.c.bf16 %v215_v10, %v215_v10  ;;  %v207_v14 = vadd.f32 %v203_v6, %v202_v11 }
  0x27   : > { %v220_v16 = vpack.c.bf16 %v216_v4, %v216_v4  ;;  %v217_v17 = vmul.f32 0.11111111, %v213_v9 }
  0x28   : > { %224 = vst.msk [vmem:[%s116_s15] sm:$0x3] %vm223_vm0, %v219_v13  ;;  %v214_v15 = vadd.f32 %v209_v12, %v207_v14 }
  0x29   : > { %225 = vst.msk [vmem:[%s116_s15 + $0x2] sm:$0x3] %vm223_vm0, %v220_v16  ;;  %v221_v18 = vpack.c.bf16 %v217_v17, %v217_v17 }
  0x2a   : > { %v218_v19 = vmul.f32 0.11111111, %v214_v15 }
  0x2b   : > { %226 = vst.msk [vmem:[%s116_s15 + $0x4] sm:$0x3] %vm223_vm0, %v221_v18 }
  0x2c   : > { %v222_v20 = vpack.c.bf16 %v218_v19, %v218_v19 }
  0x2e   : > { %227 = vst.msk [vmem:[%s116_s15 + $0x6] sm:$0x3] %vm223_vm0, %v222_v20 }
  0x2f PF: > { %s11_s6 = sadd.s32 1, %s322_s6  }
  0x30   : > { %p8_p4 = scmp.ge.s32.totalorder %s11_s6, 4  }
  0x32   :  { %10 = sbr.rel (!%p8_p4) target bundleno = 1 (0x1), region = 57 }

// kernel: stdcnet_forward.50
= control target key start
LH: loop header
LB: loop body
LE: loop exit
PB: predicated region body
PF: predicated region fallthrough
CT: control target
= control target key end

     0   :  { %s618_s1 = inlined_call_operand.vmem [shape: bf16[128,128], index: 1, kind: input, shape index: {}]   ;;  %s619_s0 = inlined_call_operand.vmem [shape: bf16[128,128], index: 0, kind: input, shape index: {}]   ;;  %s620_s2 = inlined_call_operand.vmem [shape: f32[1,128], index: 2, kind: input, shape index: {}]   ;;  %s621_s3 = inlined_call_operand.vmem [shape: bf16[128,128], index: 3, kind: output, shape index: {}]  }
   0x1   :  { %v507_v0 = vld [vmem:[%s618_s1] sm:$0xff]   ;;  %v508_v1 = vld [vmem:[%s618_s1 + $0x8] sm:$0xff]   ;;  %v509_v2 = vld [vmem:[%s618_s1 + $0x10] sm:$0xff]  }
   0x2   :  { %459 = vmatprep.subr.bf16.mxu0 %v507_v0  ;;  %491 = vmatprep.subr.bf16.mxu1 %v507_v0  ;;  %v510_v3 = vld [vmem:[%s618_s1 + $0x18] sm:$0xff]   ;;  %v515_v4 = vld [vmem:[%s619_s0] sm:$0xff]   ;;  %v512_v7 = vld [vmem:[%s618_s1 + $0x28] sm:$0xff]  }
   0x3   :  { %460 = vmatpush3.bf16.msra.mxu0 %v507_v0  ;;  %499 = vmatpush3.bf16.msra.mxu1 %v507_v0  ;;  %v516_v5 = vld [vmem:[%s619_s0 + $0x20] sm:$0xff]   ;;  %v513_v8 = vld [vmem:[%s618_s1 + $0x30] sm:$0xff]   ;;  %v514_v9 = vld [vmem:[%s618_s1 + $0x38] sm:$0xff]  }
   0x4   :  { %461 = vmatprep.subr.bf16.mxu0 %v508_v1  ;;  %492 = vmatprep.subr.bf16.mxu1 %v508_v1  ;;  %v511_v6 = vld [vmem:[%s618_s1 + $0x20] sm:$0xff]   ;;  %v517_v10 = vld [vmem:[%s619_s0 + $0x8] sm:$0xff]   ;;  %v519_v12 = vld [vmem:[%s619_s0 + $0x10] sm:$0xff]  }
   0x5   :  { %475 = vmatprep.mubr.bf16.mxu0 %v515_v4  ;;  %483 = vmatprep.mubr.bf16.mxu1 %v516_v5  ;;  %v518_v11 = vld [vmem:[%s619_s0 + $0x28] sm:$0xff]   ;;  %v520_v13 = vld [vmem:[%s619_s0 + $0x30] sm:$0xff]   ;;  %v521_v14 = vld [vmem:[%s619_s0 + $0x18] sm:$0xff]  }
   0x6   :  { %v522_v15 = vld [vmem:[%s619_s0 + $0x38] sm:$0xff]   ;;  %v347_v16 = vld [vmem:[%s620_s2] ss:$0 sm:$0xff] }
   0x7   :  { %462 = vmatpush3.bf16.msra.mxu0 %v508_v1  ;;  %500 = vmatpush3.bf16.msra.mxu1 %v508_v1 }
   0x8   :  { %463 = vmatprep.subr.bf16.mxu0 %v509_v2  ;;  %493 = vmatprep.subr.bf16.mxu1 %v509_v2 }
   0xb   :  { %464 = vmatpush3.bf16.msra.mxu0 %v509_v2  ;;  %501 = vmatpush3.bf16.msra.mxu1 %v509_v2 }
   0xc   :  { %465 = vmatprep.subr.bf16.mxu0 %v510_v3  ;;  %494 = vmatprep.subr.bf16.mxu1 %v510_v3 }
   0xf   :  { %466 = vmatpush3.bf16.msra.mxu0 %v510_v3  ;;  %502 = vmatpush3.bf16.msra.mxu1 %v510_v3 }
  0x10   :  { %467 = vmatprep.subr.bf16.mxu0 %v511_v6  ;;  %495 = vmatprep.subr.bf16.mxu1 %v511_v6 }
  0x13   :  { %468 = vmatpush3.bf16.msra.mxu0 %v511_v6  ;;  %503 = vmatpush3.bf16.msra.mxu1 %v511_v6 }
  0x14   :  { %469 = vmatprep.subr.bf16.mxu0 %v512_v7  ;;  %496 = vmatprep.subr.bf16.mxu1 %v512_v7 }
  0x17   :  { %470 = vmatpush3.bf16.msra.mxu0 %v512_v7  ;;  %504 = vmatpush3.bf16.msra.mxu1 %v512_v7 }
  0x18   :  { %471 = vmatprep.subr.bf16.mxu0 %v513_v8  ;;  %497 = vmatprep.subr.bf16.mxu1 %v513_v8 }
  0x1b   :  { %472 = vmatpush3.bf16.msra.mxu0 %v513_v8  ;;  %505 = vmatpush3.bf16.msra.mxu1 %v513_v8 }
  0x1c   :  { %473 = vmatprep.subr.bf16.mxu0 %v514_v9  ;;  %498 = vmatprep.subr.bf16.mxu1 %v514_v9 }
  0x1f   :  { %474 = vmatpush3.bf16.msra.mxu0 %v514_v9  ;;  %506 = vmatpush3.bf16.msra.mxu1 %v514_v9 }
  0x22   :  { %476 = vmatmul.mubr.bf16.vlgmr.msra.gmra.mrb[0].mxu0 %v517_v10  ;;  %484 = vmatmul.mubr.bf16.vlgmr.msra.gmra.mrb[0].mxu1 %v518_v11 }
  0x23   :  { %479 = vmatprep.mubr.bf16.mxu0 %v519_v12  ;;  %487 = vmatprep.mubr.bf16.mxu1 %v520_v13 }
  0x2a   :  { %480 = vmatmul.mubr.bf16.gmra.mrb[4].mxu0 %v521_v14  ;;  %488 = vmatmul.mubr.bf16.gmra.mrb[4].mxu1 %v522_v15 }
  0xf5   :  { %v477_v17 = vpop.f32.mrb[0].mxu0  ;;  %v485_v18 = vpop.f32.mrb[0].mxu1 }
  0xf6   :  { %v193_v19 = vadd.f32 %v477_v17, %v347_v16  ;;  %v225_v20 = vadd.f32 %v485_v18, %v347_v16  ;;  %v184_v21 = vpop.f32.mrb[1].mxu0  ;;  %v216_v22 = vpop.f32.mrb[1].mxu1 }
  0xf7   :  { %v185_v23 = vadd.f32 %v347_v16, %v184_v21  ;;  %v217_v24 = vadd.f32 %v347_v16, %v216_v22  ;;  %v478_v25 = vpop.f32.mrb[2].mxu0  ;;  %v486_v26 = vpop.f32.mrb[2].mxu1 }
  0xf8   :  { %v196_v27 = vadd.f32 %v478_v25, %v347_v16  ;;  %v228_v28 = vadd.f32 %v486_v26, %v347_v16  ;;  %v187_v29 = vpop.f32.mrb[3].mxu0  ;;  %v219_v30 = vpop.f32.mrb[3].mxu1  ;;  %v249_v33 = vmax.f32 %v193_v19, 0.0  ;;  %v257_v34 = vmax.f32 %v225_v20, 0.0 }
  0xf9   :  { %v188_v31 = vadd.f32 %v347_v16, %v187_v29  ;;  %v220_v32 = vadd.f32 %v347_v16, %v219_v30  ;;  %v247_v37 = vmax.f32 %v185_v23, 0.0  ;;  %v255_v38 = vmax.f32 %v217_v24, 0.0 }
  0xfa   :  { %v250_v35 = vmax.f32 %v196_v27, 0.0  ;;  %v258_v36 = vmax.f32 %v228_v28, 0.0 }
  0xfb   :  { %v248_v39 = vmax.f32 %v188_v31, 0.0  ;;  %v256_v40 = vmax.f32 %v220_v32, 0.0 }
  0xfc   :  { %v404_v41 = vpack.c.bf16 %v250_v35, %v249_v33  ;;  %v424_v42 = vpack.c.bf16 %v258_v36, %v257_v34 }
  0xfd   :  { %v399_v43 = vpack.c.bf16 %v248_v39, %v247_v37  ;;  %v419_v44 = vpack.c.bf16 %v256_v40, %v255_v38  ;;  %v481_v45 = vpop.f32.mrb[4].mxu0  ;;  %v489_v46 = vpop.f32.mrb[4].mxu1 }
  0xfe   :  { %436 = vst [vmem:[%s621_s3 + $0x8] sm:$0xff] %v404_v41   ;;  %440 = vst [vmem:[%s621_s3 + $0x28] sm:$0xff] %v424_v42   ;;  %v209_v47 = vadd.f32 %v481_v45, %v347_v16  ;;  %v241_v48 = vadd.f32 %v489_v46, %v347_v16  ;;  %v200_v49 = vpop.f32.mrb[5].mxu0  ;;  %v232_v50 = vpop.f32.mrb[5].mxu1 }
  0xff   :  { %400 = vst [vmem:[%s621_s3] sm:$0xff] %v399_v43   ;;  %439 = vst [vmem:[%s621_s3 + $0x20] sm:$0xff] %v419_v44   ;;  %v201_v51 = vadd.f32 %v347_v16, %v200_v49  ;;  %v233_v52 = vadd.f32 %v347_v16, %v232_v50  ;;  %v482_v53 = vpop.f32.mrb[6].mxu0  ;;  %v490_v54 = vpop.f32.mrb[6].mxu1 }
 0x100   :  { %v212_v55 = vadd.f32 %v482_v53, %v347_v16  ;;  %v244_v56 = vadd.f32 %v490_v54, %v347_v16  ;;  %v203_v57 = vpop.f32.mrb[7].mxu0  ;;  %v235_v58 = vpop.f32.mrb[7].mxu1  ;;  %v253_v61 = vmax.f32 %v209_v47, 0.0  ;;  %v261_v62 = vmax.f32 %v241_v48, 0.0 }
 0x101   :  { %v204_v59 = vadd.f32 %v347_v16, %v203_v57  ;;  %v236_v60 = vadd.f32 %v347_v16, %v235_v58  ;;  %v251_v1 = vmax.f32 %v201_v51, 0.0  ;;  %v259_v2 = vmax.f32 %v233_v52, 0.0 }
 0x102   :  { %v254_v63 = vmax.f32 %v212_v55, 0.0  ;;  %v262_v0 = vmax.f32 %v244_v56, 0.0 }
 0x103   :  { %v252_v3 = vmax.f32 %v204_v59, 0.0  ;;  %v260_v4 = vmax.f32 %v236_v60, 0.0 }
 0x104   :  { %v414_v5 = vpack.c.bf16 %v254_v63, %v253_v61  ;;  %v434_v6 = vpack.c.bf16 %v262_v0, %v261_v62 }
 0x105   :  { %v409_v7 = vpack.c.bf16 %v252_v3, %v251_v1  ;;  %v429_v8 = vpack.c.bf16 %v260_v4, %v259_v2 }
 0x106   :  { %438 = vst [vmem:[%s621_s3 + $0x18] sm:$0xff] %v414_v5   ;;  %442 = vst [vmem:[%s621_s3 + $0x38] sm:$0xff] %v434_v6  }
 0x107   :  { %437 = vst [vmem:[%s621_s3 + $0x10] sm:$0xff] %v409_v7   ;;  %441 = vst [vmem:[%s621_s3 + $0x30] sm:$0xff] %v429_v8  }

// kernel: stdcnet_forward.55
= control target key start
LH: loop header
LB: loop body
LE: loop exit
PB: predicated region body
PF: predicated region fallthrough
CT: control target
= control target key end

     0   :  { %s464_s12 = smov 0   ;;  %s527_s0 = inlined_call_operand.vmem [shape: bf16[2,4,3,3,128], index: 0, kind: input, shape index: {}]   ;;  %s528_s1 = inlined_call_operand.vmem [shape: f32[9,1,1,128], index: 1, kind: input, shape index: {}]   ;;  %s529_s2 = inlined_call_operand.vmem [shape: f32[1,1,128], index: 2, kind: input, shape index: {}]   ;;  %s530_s3 = inlined_call_operand.vmem [shape: bf16[2,2,2,128], index: 3, kind: output, shape index: {}]  }
   0x1 LB: > { %s387_s13 = sadd.s32 4294967295, %s442_s12   ;;  %p391_p0 = scmp.ge.s32.totalorder %s442_s12, 1  ;;  %s442_s12 = sphi %s464_s12, %s13_s12  }
   0x2   : > { %p137_p1 = scmp.lt.s32.totalorder %s442_s12, 3 }
   0x4   : > { %p138_p2 = pnand %p391_p0, %p137_p1 }
   0x5   : > { %p160_p3 = scmp.lt.s32.totalorder (!%p138_p2), %s387_s13, 1  ;;  %v394_v0 = vld [vmem:[%s528_s1] ss:$0 sm:$0xff] (!%p138_p2)  ;;  %v399_v1 = vld [vmem:[%s528_s1 + $0x1] ss:$0 sm:$0xff] (!%p138_p2) }
   0x6   : > { %141 = sbr.rel (%p138_p2) target bundleno = 44 (0x2c), region = 32  ;;  %v401_v2 = vld [vmem:[%s528_s1 + $0x2] ss:$0 sm:$0xff] (!%p138_p2)  ;;  %v407_v14 = vld [vmem:[%s528_s1 + $0x3] ss:$0 sm:$0xff] (!%p138_p2) }
   0x7   : > { %v413_v16 = vld [vmem:[%s528_s1 + $0x5] ss:$0 sm:$0xff] (!%p138_p2)  ;;  %v411_v22 = vld [vmem:[%s528_s1 + $0x4] ss:$0 sm:$0xff] (!%p138_p2)  ;;  %v417_v36 = vld [vmem:[%s528_s1 + $0x6] ss:$0 sm:$0xff] (!%p138_p2) }
   0x8   : > { %v421_v37 = vld [vmem:[%s528_s1 + $0x8] ss:$0 sm:$0xff] (!%p138_p2)  ;;  %v419_v44 = vld [vmem:[%s528_s1 + $0x7] ss:$0 sm:$0xff] (!%p138_p2) }
   0xd   : > { %s532_s13 = smov (!%p160_p3, %s387_s13), 1 }
   0xe   : > { %s427_s14 = smul.u32 24, %s532_s13  ;;  %s393_s11 = sshll.u32 %s532_s13, 1 }
   0xf   : > { %s168_s16 = scalar_lea.vmem %s530_s3, %s393_s11 }
  0x10   : > { %s478_s17 = scalar_lea.vmem %s527_s0, %s427_s14 }
  0x11   : > { %v169_v3 = vld [vmem:[%s478_s17] sm:$0x3]  ;;  %v170_v4 = vld [vmem:[%s478_s17 + $0x2] sm:$0x3]  ;;  %v395_v5 = vld [vmem:[%s478_s17 + $0x6] sm:$0x3] }
  0x12   : > { %v172_v6 = vunpack.c.l.bf16 %v169_v3  ;;  %v173_v7 = vunpack.c.l.bf16 %v170_v4  ;;  %v396_v8 = vld [vmem:[%s478_s17 + $0x8] sm:$0x3]  ;;  %v187_v9 = vunpack.c.l.bf16 %v395_v5  ;;  %v404_v10 = vld [vmem:[%s478_s17 + $0xc] sm:$0x3]  ;;  %v408_v11 = vld [vmem:[%s478_s17 + $0x12] sm:$0x3] }
  0x13   : > { %v188_v12 = vunpack.c.l.bf16 %v396_v8  ;;  %v224_v13 = vunpack.c.l.bf16 %v404_v10  ;;  %v241_v15 = vunpack.c.l.bf16 %v408_v11  ;;  %v405_v23 = vld [vmem:[%s478_s17 + $0xe] sm:$0x3]  ;;  %v409_v24 = vld [vmem:[%s478_s17 + $0x14] sm:$0x3]  ;;  %v171_v33 = vld [vmem:[%s478_s17 + $0x4] sm:$0x3] }
  0x14   : > { %v181_v17 = vmul.f32 %v394_v0, %v172_v6  ;;  %v182_v18 = vmul.f32 %v394_v0, %v173_v7  ;;  %v197_v19 = vmul.f32 %v399_v1, %v187_v9  ;;  %v209_v20 = vmul.f32 %v401_v2, %v172_v6  ;;  %v397_v41 = vld [vmem:[%s478_s17 + $0xa] sm:$0x3]  ;;  %v424_v0 = vld [vmem:[%s529_s2] ss:$0 sm:$0xff] }
  0x15   : > { %v198_v21 = vmul.f32 %v399_v1, %v188_v12  ;;  %v234_v27 = vmul.f32 %v407_v14, %v224_v13  ;;  %v263_v28 = vmul.f32 %v413_v16, %v224_v13  ;;  %v210_v30 = vmul.f32 %v401_v2, %v173_v7 }
  0x16   : > { %v199_v25 = vadd.f32 %v197_v19, %v181_v17  ;;  %v402_v26 = vrot.slane %v209_v20, 9  ;;  %v251_v32 = vmul.f32 %v411_v22, %v241_v15  ;;  %v225_v34 = vunpack.c.l.bf16 %v405_v23 }
  0x17   : > { %v200_v29 = vadd.f32 %v198_v21, %v182_v18  ;;  %v242_v35 = vunpack.c.l.bf16 %v409_v24  ;;  %v403_v38 = vrot.slane %v210_v30, 9  ;;  %v414_v40 = vrot.slane %v263_v28, 9 }
  0x18   : > { %v219_v31 = vadd.f32 %v402_v26, %v199_v25  ;;  %v235_v42 = vmul.f32 %v407_v14, %v225_v34  ;;  %v264_v43 = vmul.f32 %v413_v16, %v225_v34  ;;  %v275_v47 = vunpack.c.l.bf16 %v171_v33 }
  0x19   : > { %v220_v45 = vadd.f32 %v403_v38, %v200_v29  ;;  %v252_v46 = vmul.f32 %v411_v22, %v242_v35  ;;  %v284_v49 = vmul.f32 %v417_v36, %v173_v7  ;;  %v309_v50 = vmul.f32 %v421_v37, %v173_v7 }
  0x1a   : > { %v236_v39 = vadd.f32 %v234_v27, %v219_v31  ;;  %v415_v52 = vrot.slane %v264_v43, 9  ;;  %v288_v53 = vunpack.c.l.bf16 %v397_v41  ;;  %v297_v55 = vmul.f32 %v419_v44, %v188_v12 }
  0x1b   : > { %v237_v51 = vadd.f32 %v235_v42, %v220_v45  ;;  %v285_v57 = vmul.f32 %v417_v36, %v275_v47  ;;  %v310_v58 = vmul.f32 %v421_v37, %v275_v47  ;;  %v422_v60 = vrot.slane %v309_v50, 9 }
  0x1c   : > { %v253_v48 = vadd.f32 %v251_v32, %v236_v39  ;;  %v298_v62 = vmul.f32 %v419_v44, %v288_v53 }
  0x1d   : > { %v254_v56 = vadd.f32 %v252_v46, %v237_v51  ;;  %v423_v2 = vrot.slane %v310_v58, 9 }
  0x1e   : > { %v273_v54 = vadd.f32 %v414_v40, %v253_v48 }
  0x1f   : > { %v274_v61 = vadd.f32 %v415_v52, %v254_v56 }
  0x20   : > { %v286_v59 = vadd.f32 %v284_v49, %v273_v54 }
  0x21   : > { %v287_v1 = vadd.f32 %v285_v57, %v274_v61 }
  0x22   : > { %v299_v63 = vadd.f32 %v297_v55, %v286_v59 }
  0x23   : > { %v300_v4 = vadd.f32 %v298_v62, %v287_v1 }
  0x24   : > { %v319_v3 = vadd.f32 %v422_v60, %v299_v63 }
  0x25   : > { %v320_v6 = vadd.f32 %v423_v2, %v300_v4 }
  0x26   : > { %v328_v5 = vadd.f32 %v424_v0, %v319_v3 }
  0x27   : > { %v329_v8 = vadd.f32 %v424_v0, %v320_v6 }
  0x28   : > { %v330_v7 = vpack.c.bf16 %v328_v5, %v328_v5 }
  0x29   : > { %v331_v9 = vpack.c.bf16 %v329_v8, %v329_v8 }
  0x2a   : > { %332 = vst [vmem:[%s168_s16] sm:$0x1] %v330_v7 }
  0x2b   : > { %333 = vst [vmem:[%s168_s16 + $0x1] sm:$0x1] %v331_v9 }
  0x2c PF: > { %s13_s12 = sadd.s32 1, %s442_s12  }
  0x2d   : > { %p10_p4 = scmp.ge.s32.totalorder %s13_s12, 4  }
  0x2f   :  { %12 = sbr.rel (!%p10_p4) target bundleno = 1 (0x1), region = 73 }

// kernel: stdcnet_forward.56
= control target key start
LH: loop header
LB: loop body
LE: loop exit
PB: predicated region body
PF: predicated region fallthrough
CT: control target
= control target key end

     0   :  { %vm72_vm0 = vsmask.f32 7424  ;;  %vm560_vm1 = vsmask.f32 5376  ;;  %vm694_vm2 = vcmask 1044480   ;;  %vm434_vm3 = vcmask 1045504   ;;  %s2191_s1 = inlined_call_operand.vmem [shape: bf16[9,128,128], index: 1, kind: input, shape index: {}]   ;;  %s2192_s0 = inlined_call_operand.vmem [shape: bf16[42,128], index: 0, kind: input, shape index: {}]   ;;  %s2193_s2 = inlined_call_operand.vmem [shape: f32[1,128], index: 2, kind: input, shape index: {}]   ;;  %s2194_s3 = inlined_call_operand.vmem [shape: bf16[32,128], index: 3, kind: output, shape index: {}]  }
   0x1   :  { %v1762_v0 = vld [vmem:[%s2191_s1 + $0x40] sm:$0xff]   ;;  %v1764_v2 = vld [vmem:[%s2191_s1 + $0x48] sm:$0xff]   ;;  %v1766_v4 = vld [vmem:[%s2191_s1 + $0x50] sm:$0xff]   ;;  %vm308_vm4 = vcmask 1046528  }
   0x2   :  { %v1763_v1 = vld [vmem:[%s2191_s1 + $0x100] sm:$0xff]   ;;  %1550 = vmatprep.subr.bf16.mxu1 %v1762_v0  ;;  %v1765_v3 = vld [vmem:[%s2191_s1 + $0x108] sm:$0xff]   ;;  %v1767_v5 = vld [vmem:[%s2191_s1 + $0x110] sm:$0xff]  }
   0x3   :  { %1630 = vmatprep.subr.bf16.mxu0 %v1763_v1  ;;  %1551 = vmatpush3.bf16.msra.mxu1 %v1762_v0  ;;  %v1768_v6 = vld [vmem:[%s2191_s1 + $0x58] sm:$0xff]   ;;  %v1770_v8 = vld [vmem:[%s2191_s1 + $0x60] sm:$0xff]   ;;  %v1772_v10 = vld [vmem:[%s2191_s1 + $0x68] sm:$0xff]  }
   0x4   :  { %1631 = vmatpush3.bf16.msra.mxu0 %v1763_v1  ;;  %1552 = vmatprep.subr.bf16.mxu1 %v1764_v2  ;;  %v1769_v7 = vld [vmem:[%s2191_s1 + $0x118] sm:$0xff]   ;;  %v1771_v9 = vld [vmem:[%s2191_s1 + $0x120] sm:$0xff]   ;;  %v1773_v11 = vld [vmem:[%s2191_s1 + $0x128] sm:$0xff]  }
   0x5   :  { %1632 = vmatprep.subr.bf16.mxu0 %v1765_v3  ;;  %v20_v12 = vld [vmem:[%s2192_s0] sm:$0xf]  ;;  %v1902_v13 = vld [vmem:[%s2192_s0 + $0x4] sm:$0xf]  ;;  %v1907_v14 = vld [vmem:[%s2192_s0 + $0x8] sm:$0xf] }
   0x6   :  { %v23_v15 = vld [vmem:[%s2192_s0 + $0xc] sm:$0xf]  ;;  %v1913_v16 = vcombine.low %v20_v12, %v1902_v13  ;;  %v1774_v18 = vld [vmem:[%s2191_s1 + $0x70] sm:$0xff]   ;;  %v1776_v37 = vld [vmem:[%s2191_s1 + $0x78] sm:$0xff]   ;;  %v1965_v57 = vcombine.low %v1902_v13, %v1907_v14 }
   0x7   :  { %1553 = vmatpush3.bf16.msra.mxu1 %v1764_v2  ;;  %v1916_v17 = vcombine.low %v1907_v14, %v23_v15  ;;  %v24_v21 = vld [vmem:[%s2192_s0 + $0x10] sm:$0xf]  ;;  %v1777_v40 = vld [vmem:[%s2191_s1 + $0x138] sm:$0xff]   ;;  %v1780_v46 = vld [vmem:[%s2191_s1] sm:$0xff]  }
   0x8   :  { %1633 = vmatpush3.bf16.msra.mxu0 %v1765_v3  ;;  %1554 = vmatprep.subr.bf16.mxu1 %v1766_v4  ;;  %v74_v19 = vshrl.u32 %v1913_v16, 16  ;;  %v76_v20 = vshll.u32 %v1913_v16, 16  ;;  %v1928_v24 = vcombine.low %v24_v21, %v24_v21  ;;  %v1930_v25 = vcombine.low %v23_v15, %v24_v21  ;;  %v1775_v26 = vld [vmem:[%s2191_s1 + $0x130] sm:$0xff]   ;;  %v1781_v48 = vld [vmem:[%s2191_s1 + $0x140] sm:$0xff]   ;;  %v1783_v53 = vld [vmem:[%s2191_s1 + $0x8] sm:$0xff]  }
   0x9   :  { %1634 = vmatprep.subr.bf16.mxu0 %v1767_v5  ;;  %v81_v22 = vshll.u32 %v1916_v17, 16  ;;  %v85_v23 = vshrl.u32 %v1916_v17, 16  ;;  %v695_v50 = vrot.slane %v1913_v16, 3  ;;  %v696_v51 = vrot.slane %v1916_v17, 3  ;;  %v1784_v55 = vld [vmem:[%s2191_s1 + $0x148] sm:$0xff]   ;;  %v1785_v59 = vld [vmem:[%s2191_s1 + $0x10] sm:$0xff]  }
   0xa   :  { %v78_v27 = vrot.slane %v76_v20, 1  ;;  %v561_v28 = vrot.slane %v74_v19, 2  ;;  %v562_v29 = vrot.slane %v76_v20, 3  ;;  %v89_v33 = vshll.u32 %v1928_v24, 16  ;;  %v1786_v1 = vld [vmem:[%s2191_s1 + $0x150] sm:$0xff]   ;;  %v1792_v12 = vld [vmem:[%s2191_s1 + $0x168] sm:$0xff]  }
   0xb   :  { %1555 = vmatpush3.bf16.msra.mxu1 %v1766_v4  ;;  %v83_v30 = vrot.slane %v81_v22, 1  ;;  %v564_v31 = vrot.slane %v85_v23, 2  ;;  %v565_v32 = vrot.slane %v81_v22, 3  ;;  %v568_v36 = vshrl.u32 %v1928_v24, 16  ;;  %v1793_v13 = vld [vmem:[%s2191_s1 + $0x30] sm:$0xff]   ;;  %v1795_v15 = vld [vmem:[%s2191_s1 + $0x38] sm:$0xff]  }
   0xc   :  { %1635 = vmatpush3.bf16.msra.mxu0 %v1767_v5  ;;  %1556 = vmatprep.subr.bf16.mxu1 %v1768_v6  ;;  %v79_v34 = vor.u32 %v78_v27, %v74_v19  ;;  %v563_v35 = vor.u32 %v562_v29, %v561_v28  ;;  %v571_v39 = vrot.slane %v89_v33, 3  ;;  %v91_v45 = vrot.slane %v89_v33, 1  ;;  %v1787_v5 = vld [vmem:[%s2191_s1 + $0x18] sm:$0xff]   ;;  %v1794_v14 = vld [vmem:[%s2191_s1 + $0x170] sm:$0xff]   ;;  %v1797_v19 = vld [vmem:[%s2191_s1 + $0x80] sm:$0xff]  }
   0xd   :  { %1636 = vmatprep.subr.bf16.mxu0 %v1769_v7  ;;  %v566_v38 = vor.u32 %v565_v32, %v564_v31  ;;  %v570_v42 = vrot.slane %v568_v36, 2  ;;  %v87_v44 = vor.u32 %v85_v23, %v83_v30  ;;  %v435_v54 = vrot.slane %v1913_v16, 2  ;;  %v1798_v21 = vld [vmem:[%s2191_s1 + $0x180] sm:$0xff]   ;;  %v1799_v27 = vld [vmem:[%s2191_s1 + $0x88] sm:$0xff]   ;;  %v1802_v32 = vld [vmem:[%s2191_s1 + $0x190] sm:$0xff]  }
   0xe   :  { %v84_v41 = vsel %vm72_vm0, %v79_v34, %v83_v30  ;;  %v436_v56 = vrot.slane %v1916_v17, 2  ;;  %v438_v58 = vrot.slane %v1928_v24, 2  ;;  %v697_v60 = vsel %vm694_vm2, %v695_v50, %v696_v51  ;;  %v1800_v28 = vld [vmem:[%s2191_s1 + $0x188] sm:$0xff]   ;;  %v1801_v30 = vld [vmem:[%s2191_s1 + $0x90] sm:$0xff]  }
   0xf   :  { %1557 = vmatpush3.bf16.msra.mxu1 %v1768_v6  ;;  %1566 = vmatprep.mubr.bf16.mxu1 %v84_v41  ;;  %v567_v43 = vsel %vm560_vm1, %v563_v35, %v566_v38  ;;  %v572_v47 = vor.u32 %v571_v39, %v570_v42  ;;  %v92_v49 = vsel %vm72_vm0, %v87_v44, %v91_v45  ;;  %v946_v63 = vshrl.u32 %v1965_v57, 16  ;;  %v1832_v31 = vld [vmem:[%s2192_s0 + $0x14] ss:$0 sps:$4 sm:$0x11]   ;;  %v1804_v39 = vld [vmem:[%s2191_s1 + $0x198] sm:$0xff]   ;;  %v1805_v42 = vld [vmem:[%s2191_s1 + $0xa0] sm:$0xff]  }
  0x10   :  { %1637 = vmatpush3.bf16.msra.mxu0 %v1769_v7  ;;  %1558 = vmatprep.subr.bf16.mxu1 %v1770_v8  ;;  %v1975_v61 = vsel %vm434_vm3, %v435_v54, %v436_v56  ;;  %v1978_v62 = vsel %vm434_vm3, %v436_v56, %v438_v58  ;;  %v948_v0 = vshll.u32 %v1965_v57, 16  ;;  %v953_v2 = vshll.u32 %v1930_v25, 16  ;;  %v1788_v7 = vld [vmem:[%s2191_s1 + $0x158] sm:$0xff]   ;;  %v1807_v44 = vld [vmem:[%s2191_s1 + $0xa8] sm:$0xff]  }
  0x11   :  { %1638 = vmatprep.subr.bf16.mxu0 %v1771_v9  ;;  %1646 = vmatprep.mubr.bf16.mxu0 %v567_v43  ;;  %v573_v52 = vsel %vm560_vm1, %v566_v38, %v572_v47  ;;  %v698_v20 = vrot.slane %v1928_v24, 3  ;;  %v309_v22 = vrot.slane %v1913_v16, 1  ;;  %v310_v23 = vrot.slane %v1916_v17, 1  ;;  %v1806_v43 = vld [vmem:[%s2191_s1 + $0x1a0] sm:$0xff]   ;;  %v1808_v45 = vld [vmem:[%s2191_s1 + $0x1a8] sm:$0xff]   ;;  %v1810_v47 = vld [vmem:[%s2191_s1 + $0x1b0] sm:$0xff]  }
  0x12   :  { %v950_v3 = vrot.slane %v948_v0, 1  ;;  %v1987_v4 = vrot.slane %v953_v2, 1  ;;  %v957_v29 = vshrl.u32 %v1930_v25, 16  ;;  %v1086_v33 = vrot.slane %v1930_v25, 1  ;;  %v1818_v54 = vld [vmem:[%s2191_s1 + $0x1c8] sm:$0xff]   ;;  %v1821_v56 = vld [vmem:[%s2191_s1 + $0xd8] sm:$0xff]  }
  0x13   :  { %1559 = vmatpush3.bf16.msra.mxu1 %v1770_v8  ;;  %v961_v35 = vshll.u32 %v1832_v31, 16  ;;  %v1088_v36 = vrot.slane %v1832_v31, 1  ;;  %v312_v50 = vrot.slane %v1928_v24, 1  ;;  %v1817_v24 = vld [vmem:[%s2191_s1 + $0xc8] sm:$0xff]   ;;  %v1822_v58 = vld [vmem:[%s2191_s1 + $0x1d8] sm:$0xff]   ;;  %v1827_v0 = vld [vmem:[%s2191_s1 + $0xf0] sm:$0xff]  }
  0x14   :  { %1639 = vmatpush3.bf16.msra.mxu0 %v1771_v9  ;;  %1560 = vmatprep.subr.bf16.mxu1 %v1772_v10  ;;  %v951_v6 = vor.u32 %v950_v3, %v946_v63  ;;  %v1789_v9 = vld [vmem:[%s2191_s1 + $0x20] sm:$0xff]   ;;  %v959_v34 = vor.u32 %v957_v29, %v1987_v4  ;;  %v1826_v63 = vld [vmem:[%s2191_s1 + $0x1e8] sm:$0xff]   ;;  %v1829_v2 = vld [vmem:[%s2191_s1 + $0xf8] sm:$0xff]  }
  0x15   :  { %1640 = vmatprep.subr.bf16.mxu0 %v1773_v11  ;;  %v963_v38 = vrot.slane %v961_v35, 1  ;;  %v1830_v3 = vld [vmem:[%s2191_s1 + $0x1f8] sm:$0xff]  }
  0x16   :  { %v1997_v8 = vsel %vm72_vm0, %v951_v6, %v1987_v4  ;;  %v1831_v4 = vld [vmem:[%s2191_s1 + $0x200] sm:$0xff]   ;;  %v1833_v6 = vld [vmem:[%s2191_s1 + $0x208] sm:$0xff]  }
  0x17   :  { %1561 = vmatpush3.bf16.msra.mxu1 %v1772_v10  ;;  %v1790_v10 = vld [vmem:[%s2191_s1 + $0x160] sm:$0xff]   ;;  %v2070_v41 = vsel %vm72_vm0, %v959_v34, %v963_v38 }
  0x18   :  { %1641 = vmatpush3.bf16.msra.mxu0 %v1773_v11  ;;  %1562 = vmatprep.subr.bf16.mxu1 %v1774_v18  ;;  %v1791_v11 = vld [vmem:[%s2191_s1 + $0x28] sm:$0xff]  }
  0x19   :  { %1642 = vmatprep.subr.bf16.mxu0 %v1775_v26 }
  0x1b   :  { %1563 = vmatpush3.bf16.msra.mxu1 %v1774_v18  ;;  %v1796_v18 = vld [vmem:[%s2191_s1 + $0x178] sm:$0xff]  }
  0x1c   :  { %1643 = vmatpush3.bf16.msra.mxu0 %v1775_v26  ;;  %1564 = vmatprep.subr.bf16.mxu1 %v1776_v37  ;;  %v699_v26 = vsel %vm694_vm2, %v696_v51, %v698_v20  ;;  %v1813_v51 = vld [vmem:[%s2191_s1 + $0xc0] sm:$0xff]  }
  0x1d   :  { %1644 = vmatprep.subr.bf16.mxu0 %v1777_v40 }
  0x1f   :  { %1565 = vmatpush3.bf16.msra.mxu1 %v1776_v37  ;;  %v1803_v37 = vld [vmem:[%s2191_s1 + $0x98] sm:$0xff]  }
  0x20   :  { %1645 = vmatpush3.bf16.msra.mxu0 %v1777_v40  ;;  %1570 = vmatprep.subr.bf16.mxu1 %v1780_v46  ;;  %v2067_v40 = vsel %vm308_vm4, %v1086_v33, %v1088_v36 }
  0x21   :  { %1650 = vmatprep.subr.bf16.mxu0 %v1781_v48 }
  0x22   :  { %1567 = vmatmul.mubr.bf16.vlgmr.msra.gmra.mrb[0].mxu1 %v92_v49  ;;  %v1812_v49 = vld [vmem:[%s2191_s1 + $0x1b8] sm:$0xff]  }
  0x23   :  { %1571 = vmatpush3.bf16.msra.mxu1 %v1780_v46  ;;  %1647 = vmatmul.mubr.bf16.vlgmr.msra.gmra.mrb[0].mxu0 %v573_v52  ;;  %v1809_v46 = vld [vmem:[%s2191_s1 + $0xb0] sm:$0xff]   ;;  %v1815_v52 = vld [vmem:[%s2191_s1 + $0x1c0] sm:$0xff]  }
  0x24   :  { %1651 = vmatpush3.bf16.msra.mxu0 %v1781_v48  ;;  %1572 = vmatprep.subr.bf16.mxu1 %v1783_v53  ;;  %v1811_v48 = vld [vmem:[%s2191_s1 + $0xb8] sm:$0xff]  }
  0x25   :  { %1652 = vmatprep.subr.bf16.mxu0 %v1784_v55  ;;  %1586 = vmatprep.mubr.bf16.mxu1 %v1913_v16  ;;  %v311_v16 = vsel %vm308_vm4, %v309_v22, %v310_v23 }
  0x26   :  { %1666 = vmatprep.mubr.bf16.mxu0 %v697_v60  ;;  %v1824_v60 = vld [vmem:[%s2191_s1 + $0x1e0] sm:$0xff]  }
  0x27   :  { %1573 = vmatpush3.bf16.msra.mxu1 %v1783_v53  ;;  %v313_v53 = vsel %vm308_vm4, %v310_v23, %v312_v50 }
  0x28   :  { %1653 = vmatpush3.bf16.msra.mxu0 %v1784_v55  ;;  %1574 = vmatprep.subr.bf16.mxu1 %v1785_v59  ;;  %v1820_v55 = vld [vmem:[%s2191_s1 + $0x1d0] sm:$0xff]  }
  0x29   :  { %1654 = vmatprep.subr.bf16.mxu0 %v1786_v1 }
  0x2b   :  { %1575 = vmatpush3.bf16.msra.mxu1 %v1785_v59  ;;  %v1823_v59 = vld [vmem:[%s2191_s1 + $0xe0] sm:$0xff]  }
  0x2c   :  { %1655 = vmatpush3.bf16.msra.mxu0 %v1786_v1  ;;  %1576 = vmatprep.subr.bf16.mxu1 %v1787_v5  ;;  %v1828_v1 = vld [vmem:[%s2191_s1 + $0x1f0] sm:$0xff]  }
  0x2d   :  { %1656 = vmatprep.subr.bf16.mxu0 %v1788_v7 }
  0x2f   :  { %1577 = vmatpush3.bf16.msra.mxu1 %v1787_v5  ;;  %v1085_v5 = vrot.slane %v1965_v57, 1 }
  0x30   :  { %1657 = vmatpush3.bf16.msra.mxu0 %v1788_v7  ;;  %1578 = vmatprep.subr.bf16.mxu1 %v1789_v9 }
  0x31   :  { %1658 = vmatprep.subr.bf16.mxu0 %v1790_v10  ;;  %v1087_v7 = vsel %vm308_vm4, %v1085_v5, %v1086_v33 }
  0x33   :  { %1579 = vmatpush3.bf16.msra.mxu1 %v1789_v9  ;;  %v1838_v9 = vld [vmem:[%s2191_s1 + $0x230] sm:$0xff]  }
  0x34   :  { %1659 = vmatpush3.bf16.msra.mxu0 %v1790_v10  ;;  %1580 = vmatprep.subr.bf16.mxu1 %v1791_v11  ;;  %v1839_v10 = vld [vmem:[%s2191_s1 + $0x238] sm:$0xff]  }
  0x35   :  { %1660 = vmatprep.subr.bf16.mxu0 %v1792_v12 }
  0x37   :  { %1581 = vmatpush3.bf16.msra.mxu1 %v1791_v11 }
  0x38   :  { %1661 = vmatpush3.bf16.msra.mxu0 %v1792_v12  ;;  %1582 = vmatprep.subr.bf16.mxu1 %v1793_v13 }
  0x39   :  { %1662 = vmatprep.subr.bf16.mxu0 %v1794_v14 }
  0x3b   :  { %1583 = vmatpush3.bf16.msra.mxu1 %v1793_v13 }
  0x3c   :  { %1663 = vmatpush3.bf16.msra.mxu0 %v1794_v14  ;;  %1584 = vmatprep.subr.bf16.mxu1 %v1795_v15 }
  0x3d   :  { %1664 = vmatprep.subr.bf16.mxu0 %v1796_v18 }
  0x3f   :  { %1585 = vmatpush3.bf16.msra.mxu1 %v1795_v15 }
  0x40   :  { %1665 = vmatpush3.bf16.msra.mxu0 %v1796_v18  ;;  %1590 = vmatprep.subr.bf16.mxu1 %v1797_v19  ;;  %v1440_v18 = vld [vmem:[%s2193_s2] ss:$0 sm:$0xff] }
  0x41   :  { %1670 = vmatprep.subr.bf16.mxu0 %v1798_v21 }
  0x42   :  { %1587 = vmatmul.mubr.bf16.vlgmr.msra.gmra.mrb[0].mxu1 %v1916_v17  ;;  %v1819_v17 = vld [vmem:[%s2191_s1 + $0xd0] sm:$0xff]  }
  0x43   :  { %1591 = vmatpush3.bf16.msra.mxu1 %v1797_v19  ;;  %1667 = vmatmul.mubr.bf16.vlgmr.msra.gmra.mrb[0].mxu0 %v699_v26 }
  0x44   :  { %1671 = vmatpush3.bf16.msra.mxu0 %v1798_v21  ;;  %1592 = vmatprep.subr.bf16.mxu1 %v1799_v27 }
  0x45   :  { %1672 = vmatprep.subr.bf16.mxu0 %v1800_v28  ;;  %1606 = vmatprep.mubr.bf16.mxu1 %v311_v16 }
  0x46   :  { %1686 = vmatprep.mubr.bf16.mxu0 %v1965_v57  ;;  %v1834_v57 = vld [vmem:[%s2191_s1 + $0x210] sm:$0xff]  }
  0x47   :  { %1593 = vmatpush3.bf16.msra.mxu1 %v1799_v27 }
  0x48   :  { %1673 = vmatpush3.bf16.msra.mxu0 %v1800_v28  ;;  %1594 = vmatprep.subr.bf16.mxu1 %v1801_v30 }
  0x49   :  { %1674 = vmatprep.subr.bf16.mxu0 %v1802_v32 }
  0x4b   :  { %1595 = vmatpush3.bf16.msra.mxu1 %v1801_v30 }
  0x4c   :  { %1675 = vmatpush3.bf16.msra.mxu0 %v1802_v32  ;;  %1596 = vmatprep.subr.bf16.mxu1 %v1803_v37 }
  0x4d   :  { %1676 = vmatprep.subr.bf16.mxu0 %v1804_v39 }
  0x4f   :  { %1597 = vmatpush3.bf16.msra.mxu1 %v1803_v37 }
  0x50   :  { %1677 = vmatpush3.bf16.msra.mxu0 %v1804_v39  ;;  %1598 = vmatprep.subr.bf16.mxu1 %v1805_v42 }
  0x51   :  { %1678 = vmatprep.subr.bf16.mxu0 %v1806_v43 }
  0x53   :  { %1599 = vmatpush3.bf16.msra.mxu1 %v1805_v42 }
  0x54   :  { %1679 = vmatpush3.bf16.msra.mxu0 %v1806_v43  ;;  %1600 = vmatprep.subr.bf16.mxu1 %v1807_v44 }
  0x55   :  { %1680 = vmatprep.subr.bf16.mxu0 %v1808_v45 }
  0x57   :  { %1601 = vmatpush3.bf16.msra.mxu1 %v1807_v44 }
  0x58   :  { %1681 = vmatpush3.bf16.msra.mxu0 %v1808_v45  ;;  %1602 = vmatprep.subr.bf16.mxu1 %v1809_v46 }
  0x59   :  { %1682 = vmatprep.subr.bf16.mxu0 %v1810_v47 }
  0x5b   :  { %1603 = vmatpush3.bf16.msra.mxu1 %v1809_v46 }
  0x5c   :  { %1683 = vmatpush3.bf16.msra.mxu0 %v1810_v47  ;;  %1604 = vmatprep.subr.bf16.mxu1 %v1811_v48 }
  0x5d   :  { %1684 = vmatprep.subr.bf16.mxu0 %v1812_v49 }
  0x5f   :  { %1605 = vmatpush3.bf16.msra.mxu1 %v1811_v48 }
  0x60   :  { %1685 = vmatpush3.bf16.msra.mxu0 %v1812_v49  ;;  %1610 = vmatprep.subr.bf16.mxu1 %v1813_v51 }
  0x61   :  { %1690 = vmatprep.subr.bf16.mxu0 %v1815_v52 }
  0x62   :  { %1607 = vmatmul.mubr.bf16.vlgmr.msra.gmra.mrb[0].mxu1 %v313_v53 }
  0x63   :  { %1611 = vmatpush3.bf16.msra.mxu1 %v1813_v51  ;;  %1687 = vmatmul.mubr.bf16.vlgmr.msra.gmra.mrb[0].mxu0 %v1930_v25  ;;  %v1836_v25 = vld [vmem:[%s2191_s1 + $0x220] sm:$0xff]  }
  0x64   :  { %1691 = vmatpush3.bf16.msra.mxu0 %v1815_v52  ;;  %1612 = vmatprep.subr.bf16.mxu1 %v1817_v24 }
  0x65   :  { %1692 = vmatprep.subr.bf16.mxu0 %v1818_v54  ;;  %1626 = vmatprep.mubr.bf16.mxu1 %v1975_v61  ;;  %v1825_v61 = vld [vmem:[%s2191_s1 + $0xe8] sm:$0xff]  }
  0x66   :  { %1706 = vmatprep.mubr.bf16.mxu0 %v1997_v8  ;;  %v1835_v8 = vld [vmem:[%s2191_s1 + $0x218] sm:$0xff]  }
  0x67   :  { %1613 = vmatpush3.bf16.msra.mxu1 %v1817_v24 }
  0x68   :  { %1693 = vmatpush3.bf16.msra.mxu0 %v1818_v54  ;;  %1614 = vmatprep.subr.bf16.mxu1 %v1819_v17 }
  0x69   :  { %1694 = vmatprep.subr.bf16.mxu0 %v1820_v55 }
  0x6b   :  { %1615 = vmatpush3.bf16.msra.mxu1 %v1819_v17 }
  0x6c   :  { %1695 = vmatpush3.bf16.msra.mxu0 %v1820_v55  ;;  %1616 = vmatprep.subr.bf16.mxu1 %v1821_v56 }
  0x6d   :  { %1696 = vmatprep.subr.bf16.mxu0 %v1822_v58 }
  0x6f   :  { %1617 = vmatpush3.bf16.msra.mxu1 %v1821_v56 }
  0x70   :  { %1697 = vmatpush3.bf16.msra.mxu0 %v1822_v58  ;;  %1618 = vmatprep.subr.bf16.mxu1 %v1823_v59 }
  0x71   :  { %1698 = vmatprep.subr.bf16.mxu0 %v1824_v60 }
  0x73   :  { %1619 = vmatpush3.bf16.msra.mxu1 %v1823_v59 }
  0x74   :  { %1699 = vmatpush3.bf16.msra.mxu0 %v1824_v60  ;;  %1620 = vmatprep.subr.bf16.mxu1 %v1825_v61 }
  0x75   :  { %1700 = vmatprep.subr.bf16.mxu0 %v1826_v63 }
  0x77   :  { %1621 = vmatpush3.bf16.msra.mxu1 %v1825_v61 }
  0x78   :  { %1701 = vmatpush3.bf16.msra.mxu0 %v1826_v63  ;;  %1622 = vmatprep.subr.bf16.mxu1 %v1827_v0 }
  0x79   :  { %1702 = vmatprep.subr.bf16.mxu0 %v1828_v1 }
  0x7b   :  { %1623 = vmatpush3.bf16.msra.mxu1 %v1827_v0 }
  0x7c   :  { %1703 = vmatpush3.bf16.msra.mxu0 %v1828_v1  ;;  %1624 = vmatprep.subr.bf16.mxu1 %v1829_v2 }
  0x7d   :  { %1704 = vmatprep.subr.bf16.mxu0 %v1830_v3 }
  0x7f   :  { %1625 = vmatpush3.bf16.msra.mxu1 %v1829_v2 }
  0x80   :  { %1705 = vmatpush3.bf16.msra.mxu0 %v1830_v3 }
  0x81   :  { %1710 = vmatprep.subr.bf16.mxu0 %v1831_v4 }
  0x82   :  { %1627 = vmatmul.mubr.bf16.vlgmr.msra.gmra.mrb[0].mxu1 %v1978_v62  ;;  %v1837_v62 = vld [vmem:[%s2191_s1 + $0x228] sm:$0xff]  }
  0x83   :  { %1707 = vmatmul.mubr.bf16.vlgmr.msra.gmra.mrb[0].mxu0 %v2070_v41 }
  0x84   :  { %1711 = vmatpush3.bf16.msra.mxu0 %v1831_v4  ;;  %1726 = vmatprep.mubr.bf16.mxu0 %v1087_v7 }
  0x85   :  { %1712 = vmatprep.subr.bf16.mxu0 %v1833_v6 }
  0x88   :  { %1713 = vmatpush3.bf16.msra.mxu0 %v1833_v6 }
  0x89   :  { %1714 = vmatprep.subr.bf16.mxu0 %v1834_v57 }
  0x8c   :  { %1715 = vmatpush3.bf16.msra.mxu0 %v1834_v57 }
  0x8d   :  { %1716 = vmatprep.subr.bf16.mxu0 %v1835_v8 }
  0x90   :  { %1717 = vmatpush3.bf16.msra.mxu0 %v1835_v8 }
  0x91   :  { %1718 = vmatprep.subr.bf16.mxu0 %v1836_v25 }
  0x94   :  { %1719 = vmatpush3.bf16.msra.mxu0 %v1836_v25 }
  0x95   :  { %1720 = vmatprep.subr.bf16.mxu0 %v1837_v62 }
  0x98   :  { %1721 = vmatpush3.bf16.msra.mxu0 %v1837_v62 }
  0x99   :  { %1722 = vmatprep.subr.bf16.mxu0 %v1838_v9 }
  0x9c   :  { %1723 = vmatpush3.bf16.msra.mxu0 %v1838_v9 }
  0x9d   :  { %1724 = vmatprep.subr.bf16.mxu0 %v1839_v10 }
  0xa0   :  { %1725 = vmatpush3.bf16.msra.mxu0 %v1839_v10 }
  0xa3   :  { %1727 = vmatmul.mubr.bf16.vlgmr.msra.gmra.mrb[0].mxu0 %v2067_v40 }
 0x155   :  { %v1628_v11 = vpop.f32.mrb[0].mxu1 }
 0x156   :  { %v524_v12 = vpop.f32.mrb[1].mxu1 }
 0x157   :  { %v1629_v13 = vpop.f32.mrb[2].mxu1 }
 0x158   :  { %v527_v14 = vpop.f32.mrb[3].mxu1 }
 0x176   :  { %v1728_v15 = vpop.f32.mrb[0].mxu0 }
 0x177   :  { %v1730_v19 = vadd.f32 %v1728_v15, %v1628_v11  ;;  %v1174_v20 = vpop.f32.mrb[1].mxu0 }
 0x178   :  { %v1731_v21 = vadd.f32 %v1174_v20, %v524_v12  ;;  %v1729_v22 = vpop.f32.mrb[2].mxu0 }
 0x179   :  { %v1202_v23 = vadd.f32 %v1730_v19, %v1440_v18  ;;  %v1732_v26 = vadd.f32 %v1729_v22, %v1629_v13  ;;  %v1177_v27 = vpop.f32.mrb[3].mxu0 }
 0x17a   :  { %v1200_v28 = vadd.f32 %v1731_v21, %v1440_v18  ;;  %v1733_v16 = vadd.f32 %v1177_v27, %v527_v14 }
 0x17b   :  { %v1203_v29 = vadd.f32 %v1732_v26, %v1440_v18  ;;  %v1206_v31 = vmax.f32 %v1202_v23, 0.0 }
 0x17c   :  { %v1201_v30 = vadd.f32 %v1733_v16, %v1440_v18  ;;  %v1204_v33 = vmax.f32 %v1200_v28, 0.0 }
 0x17d   :  { %v1207_v32 = vmax.f32 %v1203_v29, 0.0 }
 0x17e   :  { %v1205_v34 = vmax.f32 %v1201_v30, 0.0 }
 0x17f   :  { %v1457_v35 = vpack.c.bf16 %v1207_v32, %v1206_v31 }
 0x180   :  { %v1452_v36 = vpack.c.bf16 %v1205_v34, %v1204_v33 }
 0x181   :  { %1459 = vst [vmem:[%s2194_s3 + $0x8] sm:$0xff] %v1457_v35  }
 0x182   :  { %1453 = vst [vmem:[%s2194_s3] sm:$0xff] %v1452_v36  }

// kernel: stdcnet_forward.57
= control target key start
LH: loop header
LB: loop body
LE: loop exit
PB: predicated region body
PF: predicated region fallthrough
CT: control target
= control target key end

     0   :  { %vm56_vm0 = vsmask.f32 7424  ;;  %vm439_vm1 = vsmask.f32 5376  ;;  %vm101_vm2 = vcmask 523264   ;;  %vm545_vm3 = vcmask 1044480   ;;  %s1598_s1 = inlined_call_operand.vmem [shape: bf16[9,64,128], index: 1, kind: input, shape index: {}]   ;;  %s1599_s0 = inlined_call_operand.vmem [shape: bf16[42,64], index: 0, kind: input, shape index: {}]   ;;  %s1600_s2 = inlined_call_operand.vmem [shape: f32[1,128], index: 2, kind: input, shape index: {}]   ;;  %s1601_s3 = inlined_call_operand.vmem [shape: bf16[32,128], index: 3, kind: output, shape index: {}]  }
   0x1   :  { %v1317_v0 = vld [vmem:[%s1598_s1 + $0x20] sm:$0xff]   ;;  %v1319_v2 = vld [vmem:[%s1598_s1 + $0x28] sm:$0xff]   ;;  %v1321_v4 = vld [vmem:[%s1598_s1 + $0x30] sm:$0xff]   ;;  %vm243_vm4 = vcmask 1046528   ;;  %vm341_vm5 = vcmask 1045504  }
   0x2   :  { %v1318_v1 = vld [vmem:[%s1598_s1 + $0x80] sm:$0xff]   ;;  %1177 = vmatprep.subr.bf16.mxu1 %v1317_v0  ;;  %v1320_v3 = vld [vmem:[%s1598_s1 + $0x88] sm:$0xff]   ;;  %v1322_v5 = vld [vmem:[%s1598_s1 + $0x90] sm:$0xff]  }
   0x3   :  { %1225 = vmatprep.subr.bf16.mxu0 %v1318_v1  ;;  %1178 = vmatpush3.bf16.msra.mxu1 %v1317_v0  ;;  %v1323_v6 = vld [vmem:[%s1598_s1 + $0x38] sm:$0xff]   ;;  %v20_v8 = vld [vmem:[%s1599_s0] sm:$0xf]  ;;  %v1409_v9 = vld [vmem:[%s1599_s0 + $0x4] sm:$0xf] }
   0x4   :  { %1226 = vmatpush3.bf16.msra.mxu0 %v1318_v1  ;;  %1179 = vmatprep.subr.bf16.mxu1 %v1319_v2  ;;  %v1324_v7 = vld [vmem:[%s1598_s1 + $0x98] sm:$0xff]   ;;  %v1414_v10 = vld [vmem:[%s1599_s0 + $0x8] sm:$0xf]  ;;  %v1419_v11 = vld [vmem:[%s1599_s0 + $0xc] sm:$0xf]  ;;  %v1422_v12 = vcombine.low %v20_v8, %v1409_v9 }
   0x5   :  { %1227 = vmatprep.subr.bf16.mxu0 %v1320_v3  ;;  %v1426_v13 = vcombine.low %v1414_v10, %v1419_v11  ;;  %v1327_v16 = vld [vmem:[%s1598_s1] sm:$0xff]   ;;  %v1436_v17 = vld [vmem:[%s1599_s0 + $0x10] sm:$0xf]  ;;  %v1330_v38 = vld [vmem:[%s1598_s1 + $0x8] sm:$0xff]   ;;  %v1499_v59 = vcombine.low %v1409_v9, %v1414_v10 }
   0x6   :  { %v58_v14 = vshrl.u32 %v1422_v12, 16  ;;  %v60_v15 = vshll.u32 %v1422_v12, 16  ;;  %v1442_v20 = vcombine.low %v1436_v17, %v1436_v17  ;;  %v1328_v24 = vld [vmem:[%s1598_s1 + $0xa0] sm:$0xff]   ;;  %v546_v41 = vrot.slane %v1422_v12, 3  ;;  %v1331_v44 = vld [vmem:[%s1598_s1 + $0xa8] sm:$0xff]   ;;  %v1332_v46 = vld [vmem:[%s1598_s1 + $0x10] sm:$0xff]  }
   0x7   :  { %1180 = vmatpush3.bf16.msra.mxu1 %v1319_v2  ;;  %v65_v18 = vshll.u32 %v1426_v13, 16  ;;  %v69_v19 = vshrl.u32 %v1426_v13, 16  ;;  %v547_v43 = vrot.slane %v1426_v13, 3  ;;  %v1333_v48 = vld [vmem:[%s1598_s1 + $0xb0] sm:$0xff]   ;;  %v1334_v49 = vld [vmem:[%s1598_s1 + $0x18] sm:$0xff]   ;;  %v1336_v51 = vld [vmem:[%s1598_s1 + $0x40] sm:$0xff]   ;;  %v1520_v1 = vcombine.low %v1419_v11, %v1436_v17 }
   0x8   :  { %1228 = vmatpush3.bf16.msra.mxu0 %v1320_v3  ;;  %1181 = vmatprep.subr.bf16.mxu1 %v1321_v4  ;;  %v62_v21 = vrot.slane %v60_v15, 1  ;;  %v440_v22 = vrot.slane %v58_v14, 2  ;;  %v441_v23 = vrot.slane %v60_v15, 3  ;;  %v73_v28 = vshll.u32 %v1442_v20, 16  ;;  %v1335_v50 = vld [vmem:[%s1598_s1 + $0xb8] sm:$0xff]   ;;  %v1337_v55 = vld [vmem:[%s1598_s1 + $0xc0] sm:$0xff]  }
   0x9   :  { %1229 = vmatprep.subr.bf16.mxu0 %v1322_v5  ;;  %v67_v25 = vrot.slane %v65_v18, 1  ;;  %v443_v26 = vrot.slane %v69_v19, 2  ;;  %v444_v27 = vrot.slane %v65_v18, 3  ;;  %v447_v31 = vshrl.u32 %v1442_v20, 16  ;;  %v1338_v56 = vld [vmem:[%s1598_s1 + $0x48] sm:$0xff]   ;;  %v1340_v61 = vld [vmem:[%s1598_s1 + $0x50] sm:$0xff]  }
   0xa   :  { %v63_v29 = vor.u32 %v62_v21, %v58_v14  ;;  %v442_v30 = vor.u32 %v441_v23, %v440_v22  ;;  %v75_v34 = vrot.slane %v73_v28, 1  ;;  %v450_v35 = vrot.slane %v73_v28, 3  ;;  %v1339_v60 = vld [vmem:[%s1598_s1 + $0xc8] sm:$0xff]   ;;  %v1341_v62 = vld [vmem:[%s1598_s1 + $0xd0] sm:$0xff]   ;;  %v1342_v0 = vld [vmem:[%s1598_s1 + $0x58] sm:$0xff]  }
   0xb   :  { %1182 = vmatpush3.bf16.msra.mxu1 %v1321_v4  ;;  %v71_v32 = vor.u32 %v69_v19, %v67_v25  ;;  %v445_v33 = vor.u32 %v444_v27, %v443_v26  ;;  %v449_v37 = vrot.slane %v447_v31, 2  ;;  %v548_v47 = vsel %vm545_vm3, %v546_v41, %v547_v43  ;;  %v1343_v2 = vld [vmem:[%s1598_s1 + $0xd8] sm:$0xff]   ;;  %v1346_v10 = vld [vmem:[%s1598_s1 + $0xe0] sm:$0xff]   ;;  %v1350_v18 = vld [vmem:[%s1598_s1 + $0x70] sm:$0xff]  }
   0xc   :  { %1230 = vmatpush3.bf16.msra.mxu0 %v1322_v5  ;;  %1183 = vmatprep.subr.bf16.mxu1 %v1323_v6  ;;  %v68_v36 = vsel %vm56_vm0, %v63_v29, %v67_v25  ;;  %v244_v52 = vrot.slane %v1422_v12, 1  ;;  %v245_v53 = vrot.slane %v1426_v13, 1  ;;  %v549_v54 = vrot.slane %v1442_v20, 3  ;;  %v1355_v19 = vld [vmem:[%s1599_s0 + $0x14] ss:$0 sps:$4 sm:$0x11]  }
   0xd   :  { %1231 = vmatprep.subr.bf16.mxu0 %v1324_v7  ;;  %1185 = vmatprep.mubr.msk.bf16.mxu1 %vm101_vm2, %v68_v36  ;;  %v446_v39 = vsel %vm439_vm1, %v442_v30, %v445_v33  ;;  %v76_v40 = vsel %vm56_vm0, %v71_v32, %v75_v34  ;;  %v451_v42 = vor.u32 %v450_v35, %v449_v37  ;;  %v742_v63 = vshll.u32 %v1499_v59, 16  ;;  %v1351_v21 = vld [vmem:[%s1598_s1 + $0xf0] sm:$0xff]   ;;  %v1352_v22 = vld [vmem:[%s1598_s1 + $0x78] sm:$0xff]   ;;  %v1354_v30 = vld [vmem:[%s1598_s1 + $0x100] sm:$0xff]  }
   0xe   :  { %1233 = vmatprep.mubr.msk.bf16.mxu0 %vm101_vm2, %v446_v39  ;;  %v246_v57 = vsel %vm243_vm4, %v244_v52, %v245_v53  ;;  %v550_v58 = vsel %vm545_vm3, %v547_v43, %v549_v54  ;;  %v247_v3 = vrot.slane %v1442_v20, 1  ;;  %v740_v4 = vshrl.u32 %v1499_v59, 16  ;;  %v1353_v25 = vld [vmem:[%s1598_s1 + $0xf8] sm:$0xff]   ;;  %v1357_v35 = vld [vmem:[%s1598_s1 + $0x110] sm:$0xff]  }
   0xf   :  { %1184 = vmatpush3.bf16.msra.mxu1 %v1323_v6  ;;  %v452_v45 = vsel %vm439_vm1, %v445_v33, %v451_v42  ;;  %v744_v5 = vrot.slane %v742_v63, 1  ;;  %v746_v6 = vshll.u32 %v1520_v1, 16  ;;  %v342_v8 = vrot.slane %v1422_v12, 2  ;;  %v1356_v33 = vld [vmem:[%s1598_s1 + $0x108] sm:$0xff]   ;;  %v1358_v36 = vld [vmem:[%s1598_s1 + $0x118] sm:$0xff]  }
  0x10   :  { %1232 = vmatpush3.bf16.msra.mxu0 %v1324_v7  ;;  %1189 = vmatprep.subr.bf16.mxu1 %v1327_v16  ;;  %v1344_v7 = vld [vmem:[%s1598_s1 + $0x60] sm:$0xff]   ;;  %v343_v9 = vrot.slane %v1426_v13, 2  ;;  %v248_v11 = vsel %vm243_vm4, %v245_v53, %v247_v3  ;;  %v750_v23 = vshrl.u32 %v1520_v1, 16  ;;  %v345_v26 = vrot.slane %v1442_v20, 2 }
  0x11   :  { %1237 = vmatprep.subr.bf16.mxu0 %v1328_v24  ;;  %v745_v14 = vor.u32 %v744_v5, %v740_v4  ;;  %v748_v15 = vrot.slane %v746_v6, 1  ;;  %v850_v31 = vrot.slane %v1499_v59, 1  ;;  %v851_v32 = vrot.slane %v1520_v1, 1 }
  0x12   :  { %1186 = vmatmul.mubr.msk.bf16.vlgmr.msra.gmra.mrb[0].mxu1 %vm101_vm2, %v76_v40  ;;  %v346_v29 = vsel %vm341_vm5, %v343_v9, %v345_v26  ;;  %v853_v37 = vrot.slane %v1355_v19, 1 }
  0x13   :  { %1190 = vmatpush3.bf16.msra.mxu1 %v1327_v16  ;;  %1197 = vmatprep.mubr.msk.bf16.mxu1 %vm101_vm2, %v1422_v12  ;;  %v1348_v16 = vld [vmem:[%s1598_s1 + $0x68] sm:$0xff]   ;;  %v344_v12 = vsel %vm341_vm5, %v342_v8, %v343_v9  ;;  %v749_v17 = vsel %vm56_vm0, %v745_v14, %v748_v15  ;;  %v752_v27 = vor.u32 %v750_v23, %v748_v15 }
  0x14   :  { %1191 = vmatprep.subr.bf16.mxu1 %v1330_v38  ;;  %1234 = vmatmul.mubr.msk.bf16.vlgmr.msra.gmra.mrb[0].mxu0 %vm101_vm2, %v452_v45  ;;  %v852_v34 = vsel %vm243_vm4, %v850_v31, %v851_v32 }
  0x15   :  { %1238 = vmatpush3.bf16.msra.mxu0 %v1328_v24  ;;  %1245 = vmatprep.mubr.msk.bf16.mxu0 %vm101_vm2, %v548_v47  ;;  %v754_v24 = vshll.u32 %v1355_v19, 16 }
  0x16   :  { %1239 = vmatprep.subr.bf16.mxu0 %v1331_v44 }
  0x17   :  { %1192 = vmatpush3.bf16.msra.mxu1 %v1330_v38  ;;  %v756_v28 = vrot.slane %v754_v24, 1  ;;  %v854_v38 = vsel %vm243_vm4, %v851_v32, %v853_v37 }
  0x18   :  { %1193 = vmatprep.subr.bf16.mxu1 %v1332_v46 }
  0x19   :  { %1240 = vmatpush3.bf16.msra.mxu0 %v1331_v44  ;;  %v757_v20 = vsel %vm56_vm0, %v752_v27, %v756_v28  ;;  %v1103_v44 = vld [vmem:[%s1600_s2] ss:$0 sm:$0xff] }
  0x1a   :  { %1241 = vmatprep.subr.bf16.mxu0 %v1333_v48 }
  0x1b   :  { %1194 = vmatpush3.bf16.msra.mxu1 %v1332_v46 }
  0x1c   :  { %1195 = vmatprep.subr.bf16.mxu1 %v1334_v49 }
  0x1d   :  { %1242 = vmatpush3.bf16.msra.mxu0 %v1333_v48 }
  0x1e   :  { %1243 = vmatprep.subr.bf16.mxu0 %v1335_v50 }
  0x1f   :  { %1196 = vmatpush3.bf16.msra.mxu1 %v1334_v49 }
  0x20   :  { %1201 = vmatprep.subr.bf16.mxu1 %v1336_v51 }
  0x21   :  { %1244 = vmatpush3.bf16.msra.mxu0 %v1335_v50 }
  0x22   :  { %1198 = vmatmul.mubr.msk.bf16.vlgmr.msra.gmra.mrb[0].mxu1 %vm101_vm2, %v1426_v13  ;;  %1249 = vmatprep.subr.bf16.mxu0 %v1337_v55  ;;  %v1349_v13 = vld [vmem:[%s1598_s1 + $0xe8] sm:$0xff]  }
  0x23   :  { %1202 = vmatpush3.bf16.msra.mxu1 %v1336_v51  ;;  %1209 = vmatprep.mubr.msk.bf16.mxu1 %vm101_vm2, %v246_v57 }
  0x24   :  { %1203 = vmatprep.subr.bf16.mxu1 %v1338_v56  ;;  %1246 = vmatmul.mubr.msk.bf16.vlgmr.msra.gmra.mrb[0].mxu0 %vm101_vm2, %v550_v58 }
  0x25   :  { %1250 = vmatpush3.bf16.msra.mxu0 %v1337_v55  ;;  %1257 = vmatprep.mubr.msk.bf16.mxu0 %vm101_vm2, %v1499_v59 }
  0x26   :  { %1251 = vmatprep.subr.bf16.mxu0 %v1339_v60 }
  0x27   :  { %1204 = vmatpush3.bf16.msra.mxu1 %v1338_v56 }
  0x28   :  { %1205 = vmatprep.subr.bf16.mxu1 %v1340_v61 }
  0x29   :  { %1252 = vmatpush3.bf16.msra.mxu0 %v1339_v60 }
  0x2a   :  { %1253 = vmatprep.subr.bf16.mxu0 %v1341_v62 }
  0x2b   :  { %1206 = vmatpush3.bf16.msra.mxu1 %v1340_v61 }
  0x2c   :  { %1207 = vmatprep.subr.bf16.mxu1 %v1342_v0 }
  0x2d   :  { %1254 = vmatpush3.bf16.msra.mxu0 %v1341_v62 }
  0x2e   :  { %1255 = vmatprep.subr.bf16.mxu0 %v1343_v2 }
  0x2f   :  { %1208 = vmatpush3.bf16.msra.mxu1 %v1342_v0 }
  0x30   :  { %1213 = vmatprep.subr.bf16.mxu1 %v1344_v7 }
  0x31   :  { %1256 = vmatpush3.bf16.msra.mxu0 %v1343_v2 }
  0x32   :  { %1210 = vmatmul.mubr.msk.bf16.vlgmr.msra.gmra.mrb[0].mxu1 %vm101_vm2, %v248_v11  ;;  %1261 = vmatprep.subr.bf16.mxu0 %v1346_v10 }
  0x33   :  { %1214 = vmatpush3.bf16.msra.mxu1 %v1344_v7  ;;  %1221 = vmatprep.mubr.msk.bf16.mxu1 %vm101_vm2, %v344_v12 }
  0x34   :  { %1215 = vmatprep.subr.bf16.mxu1 %v1348_v16  ;;  %1258 = vmatmul.mubr.msk.bf16.vlgmr.msra.gmra.mrb[0].mxu0 %vm101_vm2, %v1520_v1 }
  0x35   :  { %1262 = vmatpush3.bf16.msra.mxu0 %v1346_v10  ;;  %1269 = vmatprep.mubr.msk.bf16.mxu0 %vm101_vm2, %v749_v17 }
  0x36   :  { %1263 = vmatprep.subr.bf16.mxu0 %v1349_v13 }
  0x37   :  { %1216 = vmatpush3.bf16.msra.mxu1 %v1348_v16 }
  0x38   :  { %1217 = vmatprep.subr.bf16.mxu1 %v1350_v18 }
  0x39   :  { %1264 = vmatpush3.bf16.msra.mxu0 %v1349_v13 }
  0x3a   :  { %1265 = vmatprep.subr.bf16.mxu0 %v1351_v21 }
  0x3b   :  { %1218 = vmatpush3.bf16.msra.mxu1 %v1350_v18 }
  0x3c   :  { %1219 = vmatprep.subr.bf16.mxu1 %v1352_v22 }
  0x3d   :  { %1266 = vmatpush3.bf16.msra.mxu0 %v1351_v21 }
  0x3e   :  { %1267 = vmatprep.subr.bf16.mxu0 %v1353_v25 }
  0x3f   :  { %1220 = vmatpush3.bf16.msra.mxu1 %v1352_v22 }
  0x41   :  { %1268 = vmatpush3.bf16.msra.mxu0 %v1353_v25 }
  0x42   :  { %1222 = vmatmul.mubr.msk.bf16.vlgmr.msra.gmra.mrb[0].mxu1 %vm101_vm2, %v346_v29  ;;  %1273 = vmatprep.subr.bf16.mxu0 %v1354_v30 }
  0x44   :  { %1270 = vmatmul.mubr.msk.bf16.vlgmr.msra.gmra.mrb[0].mxu0 %vm101_vm2, %v757_v20 }
  0x45   :  { %1274 = vmatpush3.bf16.msra.mxu0 %v1354_v30  ;;  %1281 = vmatprep.mubr.msk.bf16.mxu0 %vm101_vm2, %v852_v34 }
  0x46   :  { %1275 = vmatprep.subr.bf16.mxu0 %v1356_v33 }
  0x49   :  { %1276 = vmatpush3.bf16.msra.mxu0 %v1356_v33 }
  0x4a   :  { %1277 = vmatprep.subr.bf16.mxu0 %v1357_v35 }
  0x4d   :  { %1278 = vmatpush3.bf16.msra.mxu0 %v1357_v35 }
  0x4e   :  { %1279 = vmatprep.subr.bf16.mxu0 %v1358_v36 }
  0x51   :  { %1280 = vmatpush3.bf16.msra.mxu0 %v1358_v36 }
  0x54   :  { %1282 = vmatmul.mubr.msk.bf16.vlgmr.msra.gmra.mrb[0].mxu0 %vm101_vm2, %v854_v38 }
 0x115   :  { %v1223_v39 = vpop.f32.mrb[0].mxu1 }
 0x116   :  { %v411_v40 = vpop.f32.mrb[1].mxu1 }
 0x117   :  { %v1224_v41 = vpop.f32.mrb[2].mxu1 }
 0x118   :  { %v414_v42 = vpop.f32.mrb[3].mxu1 }
 0x127   :  { %v1283_v43 = vpop.f32.mrb[0].mxu0 }
 0x128   :  { %v1285_v45 = vadd.f32 %v1283_v43, %v1223_v39  ;;  %v919_v46 = vpop.f32.mrb[1].mxu0 }
 0x129   :  { %v1286_v47 = vadd.f32 %v919_v46, %v411_v40  ;;  %v1284_v48 = vpop.f32.mrb[2].mxu0 }
 0x12a   :  { %v947_v49 = vadd.f32 %v1285_v45, %v1103_v44  ;;  %v1287_v50 = vadd.f32 %v1284_v48, %v1224_v41  ;;  %v922_v51 = vpop.f32.mrb[3].mxu0 }
 0x12b   :  { %v945_v52 = vadd.f32 %v1286_v47, %v1103_v44  ;;  %v1288_v53 = vadd.f32 %v922_v51, %v414_v42 }
 0x12c   :  { %v948_v54 = vadd.f32 %v1287_v50, %v1103_v44  ;;  %v951_v56 = vmax.f32 %v947_v49, 0.0 }
 0x12d   :  { %v946_v55 = vadd.f32 %v1288_v53, %v1103_v44  ;;  %v949_v58 = vmax.f32 %v945_v52, 0.0 }
 0x12e   :  { %v952_v57 = vmax.f32 %v948_v54, 0.0 }
 0x12f   :  { %v950_v59 = vmax.f32 %v946_v55, 0.0 }
 0x130   :  { %v1120_v60 = vpack.c.bf16 %v952_v57, %v951_v56 }
 0x131   :  { %v1115_v61 = vpack.c.bf16 %v950_v59, %v949_v58 }
 0x132   :  { %1122 = vst [vmem:[%s1601_s3 + $0x8] sm:$0xff] %v1120_v60  }
 0x133   :  { %1116 = vst [vmem:[%s1601_s3] sm:$0xff] %v1115_v61  }

// kernel: stdcnet_forward.59
= control target key start
LH: loop header
LB: loop body
LE: loop exit
PB: predicated region body
PF: predicated region fallthrough
CT: control target
= control target key end

     0   :  { %s280_s6 = smov 0   ;;  %s301_s0 = inlined_call_operand.vmem [shape: bf16[2,4,3,3,128], index: 0, kind: input, shape index: {}]   ;;  %s302_s1 = inlined_call_operand.vmem [shape: bf16[2,2,2,128], index: 1, kind: output, shape index: {}]  }
   0x1 LB: > { %s233_s7 = sadd.s32 4294967295, %s268_s6   ;;  %p237_p0 = scmp.ge.s32.totalorder %s268_s6, 1  ;;  %s268_s6 = sphi %s280_s6, %s11_s6  }
   0x2   : > { %p87_p1 = scmp.lt.s32.totalorder %s268_s6, 3 }
   0x4   : > { %p88_p2 = pnand %p237_p0, %p87_p1 }
   0x5   : > { %p106_p3 = scmp.lt.s32.totalorder (!%p88_p2), %s233_s7, 1 }
   0x6   : > { %91 = sbr.rel (%p88_p2) target bundleno = 43 (0x2b), region = 24 }
   0xd   : > { %s304_s7 = smov (!%p106_p3, %s233_s7), 1 }
   0xe   : > { %s253_s8 = smul.u32 24, %s304_s7  ;;  %s239_s12 = sshll.u32 %s304_s7, 1 }
   0xf   : > { %s114_s15 = scalar_lea.vmem %s302_s1, %s239_s12 }
  0x10   : > { %s110_s11 = scalar_lea.vmem %s301_s0, %s253_s8 }
  0x11   : > { %v115_v0 = vld [vmem:[%s110_s11] sm:$0x3]  ;;  %v116_v1 = vld [vmem:[%s110_s11 + $0x2] sm:$0x3]  ;;  %v240_v2 = vld [vmem:[%s110_s11 + $0x6] sm:$0x3] }
  0x12   : > { %v118_v3 = vunpack.c.l.bf16 %v115_v0  ;;  %v119_v4 = vunpack.c.l.bf16 %v116_v1  ;;  %v241_v5 = vld [vmem:[%s110_s11 + $0x8] sm:$0x3]  ;;  %v124_v6 = vunpack.c.l.bf16 %v240_v2  ;;  %v244_v7 = vld [vmem:[%s110_s11 + $0xc] sm:$0x3]  ;;  %v245_v9 = vld [vmem:[%s110_s11 + $0xe] sm:$0x3] }
  0x13   : > { %v125_v8 = vunpack.c.l.bf16 %v241_v5  ;;  %v246_v10 = vld [vmem:[%s110_s11 + $0x12] sm:$0x3]  ;;  %v141_v14 = vunpack.c.l.bf16 %v244_v7  ;;  %v247_v16 = vld [vmem:[%s110_s11 + $0x14] sm:$0x3]  ;;  %v142_v19 = vunpack.c.l.bf16 %v245_v9  ;;  %v117_v25 = vld [vmem:[%s110_s11 + $0x4] sm:$0x3] }
  0x14   : > { %v126_v11 = vadd.f32 %v124_v6, %v118_v3  ;;  %v243_v12 = vrot.slane %v118_v3, 9  ;;  %v132_v13 = vrot.slane %v119_v4, 5  ;;  %v148_v20 = vunpack.c.l.bf16 %v246_v10  ;;  %v242_v29 = vld [vmem:[%s110_s11 + $0xa] sm:$0x3] }
  0x15   : > { %v127_v15 = vadd.f32 %v125_v8, %v119_v4  ;;  %v248_v23 = vrot.slane %v141_v14, 9  ;;  %v149_v24 = vunpack.c.l.bf16 %v247_v16  ;;  %v249_v28 = vrot.slane %v142_v19, 9 }
  0x16   : > { %v133_v17 = vrot.slane %v132_v13, 4  ;;  %v136_v18 = vadd.f32 %v243_v12, %v126_v11  ;;  %v162_v32 = vunpack.c.l.bf16 %v117_v25  ;;  %v165_v35 = vunpack.c.l.bf16 %v242_v29 }
  0x18   : > { %v137_v21 = vadd.f32 %v133_v17, %v127_v15  ;;  %v143_v22 = vadd.f32 %v141_v14, %v136_v18  ;;  %v250_v38 = vrot.slane %v162_v32, 9 }
  0x1a   : > { %v144_v26 = vadd.f32 %v142_v19, %v137_v21  ;;  %v150_v27 = vadd.f32 %v148_v20, %v143_v22 }
  0x1c   : > { %v160_v30 = vadd.f32 %v248_v23, %v150_v27  ;;  %v151_v31 = vadd.f32 %v149_v24, %v144_v26 }
  0x1e   : > { %v163_v33 = vadd.f32 %v160_v30, %v119_v4  ;;  %v161_v34 = vadd.f32 %v249_v28, %v151_v31 }
  0x20   : > { %v166_v36 = vadd.f32 %v163_v33, %v125_v8  ;;  %v164_v37 = vadd.f32 %v162_v32, %v161_v34 }
  0x22   : > { %v172_v39 = vadd.f32 %v166_v36, %v133_v17  ;;  %v167_v40 = vadd.f32 %v165_v35, %v164_v37 }
  0x24   : > { %v174_v41 = vmul.f32 0.11111111, %v172_v39  ;;  %v173_v42 = vadd.f32 %v250_v38, %v167_v40 }
  0x26   : > { %v176_v43 = vpack.c.bf16 %v174_v41, %v174_v41  ;;  %v175_v44 = vmul.f32 0.11111111, %v173_v42 }
  0x28   : > { %178 = vst [vmem:[%s114_s15] sm:$0x1] %v176_v43  ;;  %v177_v45 = vpack.c.bf16 %v175_v44, %v175_v44 }
  0x2a   : > { %179 = vst [vmem:[%s114_s15 + $0x1] sm:$0x1] %v177_v45 }
  0x2b PF: > { %s11_s6 = sadd.s32 1, %s268_s6  }
  0x2c   : > { %p8_p4 = scmp.ge.s32.totalorder %s11_s6, 4  }
  0x2e   :  { %10 = sbr.rel (!%p8_p4) target bundleno = 1 (0x1), region = 57 }

// kernel: stdcnet_forward.58
= control target key start
LH: loop header
LB: loop body
LE: loop exit
PB: predicated region body
PF: predicated region fallthrough
CT: control target
= control target key end

     0   :  { %vm48_vm0 = vsmask.f32 7424  ;;  %vm371_vm1 = vsmask.f32 5376  ;;  %vm81_vm2 = vcmask 261120   ;;  %vm461_vm3 = vcmask 1044480   ;;  %s1266_s1 = inlined_call_operand.vmem [shape: bf16[9,32,128], index: 1, kind: input, shape index: {}]   ;;  %s1267_s0 = inlined_call_operand.vmem [shape: bf16[42,32], index: 0, kind: input, shape index: {}]   ;;  %s1268_s2 = inlined_call_operand.vmem [shape: f32[1,128], index: 2, kind: input, shape index: {}]   ;;  %s1269_s3 = inlined_call_operand.vmem [shape: bf16[32,128], index: 3, kind: output, shape index: {}]  }
   0x1   :  { %v1069_v0 = vld [vmem:[%s1266_s1 + $0x10] sm:$0xff]   ;;  %v1070_v1 = vld [vmem:[%s1266_s1 + $0x40] sm:$0xff]   ;;  %v1071_v2 = vld [vmem:[%s1266_s1 + $0x18] sm:$0xff]   ;;  %vm207_vm4 = vcmask 1046528   ;;  %vm289_vm5 = vcmask 1045504  }
   0x2   :  { %965 = vmatprep.subr.bf16.mxu1 %v1069_v0  ;;  %997 = vmatprep.subr.bf16.mxu0 %v1070_v1  ;;  %v1072_v3 = vld [vmem:[%s1266_s1 + $0x48] sm:$0xff]   ;;  %v20_v4 = vld [vmem:[%s1267_s0] sm:$0xf]  ;;  %v1131_v5 = vld [vmem:[%s1267_s0 + $0x4] sm:$0xf] }
   0x3   :  { %966 = vmatpush3.bf16.msra.mxu1 %v1069_v0  ;;  %998 = vmatpush3.bf16.msra.mxu0 %v1070_v1  ;;  %v1136_v6 = vld [vmem:[%s1267_s0 + $0x8] sm:$0xf]  ;;  %v1141_v7 = vld [vmem:[%s1267_s0 + $0xc] sm:$0xf]  ;;  %v1144_v8 = vcombine.low %v20_v4, %v1131_v5  ;;  %v1149_v9 = vld [vmem:[%s1267_s0 + $0x10] sm:$0xf] }
   0x4   :  { %967 = vmatprep.subr.bf16.mxu1 %v1071_v2  ;;  %999 = vmatprep.subr.bf16.mxu0 %v1072_v3  ;;  %v1153_v10 = vcombine.low %v1136_v6, %v1141_v7  ;;  %v1157_v11 = vcombine.low %v1149_v9, %v1149_v9  ;;  %v1076_v12 = vld [vmem:[%s1266_s1 + $0x50] sm:$0xff]   ;;  %v1077_v15 = vld [vmem:[%s1266_s1] sm:$0xff]   ;;  %v1078_v33 = vld [vmem:[%s1266_s1 + $0x58] sm:$0xff]   ;;  %v886_v51 = vcombine.low %v1131_v5, %v1136_v6 }
   0x5   :  { %v50_v13 = vshrl.u32 %v1144_v8, 16  ;;  %v52_v14 = vshll.u32 %v1144_v8, 16  ;;  %v462_v34 = vrot.slane %v1144_v8, 3  ;;  %v1079_v38 = vld [vmem:[%s1266_s1 + $0x8] sm:$0xff]   ;;  %v1081_v43 = vld [vmem:[%s1266_s1 + $0x20] sm:$0xff]   ;;  %v208_v46 = vrot.slane %v1144_v8, 1 }
   0x6   :  { %v57_v16 = vshll.u32 %v1153_v10, 16  ;;  %v61_v17 = vshrl.u32 %v1153_v10, 16  ;;  %v65_v18 = vshll.u32 %v1157_v11, 16  ;;  %v379_v19 = vshrl.u32 %v1157_v11, 16  ;;  %v1080_v44 = vld [vmem:[%s1266_s1 + $0x60] sm:$0xff]   ;;  %v1083_v49 = vld [vmem:[%s1266_s1 + $0x28] sm:$0xff]  }
   0x7   :  { %968 = vmatpush3.bf16.msra.mxu1 %v1071_v2  ;;  %1000 = vmatpush3.bf16.msra.mxu0 %v1072_v3  ;;  %v54_v20 = vrot.slane %v52_v14, 1  ;;  %v372_v21 = vrot.slane %v50_v13, 2  ;;  %v373_v22 = vrot.slane %v52_v14, 3  ;;  %v463_v35 = vrot.slane %v1153_v10, 3  ;;  %v1082_v50 = vld [vmem:[%s1266_s1 + $0x68] sm:$0xff]   ;;  %v1087_v54 = vld [vmem:[%s1266_s1 + $0x30] sm:$0xff]  }
   0x8   :  { %1005 = vmatprep.subr.bf16.mxu0 %v1076_v12  ;;  %973 = vmatprep.subr.bf16.mxu1 %v1077_v15  ;;  %v59_v23 = vrot.slane %v57_v16, 1  ;;  %v375_v24 = vrot.slane %v61_v17, 2  ;;  %v376_v25 = vrot.slane %v57_v16, 3  ;;  %v67_v26 = vrot.slane %v65_v18, 1  ;;  %v1086_v56 = vld [vmem:[%s1266_s1 + $0x70] sm:$0xff]   ;;  %v1089_v2 = vld [vmem:[%s1266_s1 + $0x38] sm:$0xff]  }
   0x9   :  { %v55_v27 = vor.u32 %v54_v20, %v50_v13  ;;  %v374_v28 = vor.u32 %v373_v22, %v372_v21  ;;  %v381_v29 = vrot.slane %v379_v19, 2  ;;  %v382_v30 = vrot.slane %v65_v18, 3  ;;  %v1090_v3 = vld [vmem:[%s1267_s0 + $0x14] ss:$0 sps:$4 sm:$0x11]   ;;  %v1088_v4 = vld [vmem:[%s1266_s1 + $0x78] sm:$0xff]  }
   0xa   :  { %v63_v31 = vor.u32 %v61_v17, %v59_v23  ;;  %v377_v32 = vor.u32 %v376_v25, %v375_v24  ;;  %v464_v42 = vsel %vm461_vm3, %v462_v34, %v463_v35  ;;  %v465_v45 = vrot.slane %v1157_v11, 3  ;;  %v1092_v18 = vld [vmem:[%s1266_s1 + $0x88] sm:$0xff]  }
   0xb   :  { %v60_v36 = vsel %vm48_vm0, %v55_v27, %v59_v23  ;;  %v383_v37 = vor.u32 %v382_v30, %v381_v29  ;;  %v209_v47 = vrot.slane %v1153_v10, 1  ;;  %v626_v53 = vshll.u32 %v886_v51, 16 }
   0xc   :  { %969 = vmatprep.mubr.msk.bf16.mxu1 %vm81_vm2, %v60_v36  ;;  %v378_v39 = vsel %vm371_vm1, %v374_v28, %v377_v32  ;;  %v68_v40 = vsel %vm48_vm0, %v63_v31, %v67_v26  ;;  %v466_v48 = vsel %vm461_vm3, %v463_v35, %v465_v45  ;;  %v887_v55 = vcombine.low %v1141_v7, %v1149_v9  ;;  %v1091_v9 = vld [vmem:[%s1266_s1 + $0x80] sm:$0xff]  }
   0xd   :  { %1001 = vmatprep.mubr.msk.bf16.mxu0 %vm81_vm2, %v378_v39  ;;  %970 = vmatmul.mubr.msk.bf16.vlgmr.msra.gmra.mrb[0].mxu1 %vm81_vm2, %v68_v40  ;;  %v384_v41 = vsel %vm371_vm1, %v377_v32, %v383_v37  ;;  %v210_v52 = vsel %vm207_vm4, %v208_v46, %v209_v47  ;;  %v211_v57 = vrot.slane %v1157_v11, 1  ;;  %v624_v58 = vshrl.u32 %v886_v51, 16  ;;  %v909_v26 = vld [vmem:[%s1268_s2] ss:$0 sm:$0xff] }
   0xe   :  { %1002 = vmatmul.mubr.msk.bf16.vlgmr.msra.gmra.mrb[0].mxu0 %vm81_vm2, %v384_v41  ;;  %974 = vmatpush3.bf16.msra.mxu1 %v1077_v15  ;;  %v628_v59 = vrot.slane %v626_v53, 1  ;;  %v630_v60 = vshll.u32 %v887_v55, 16  ;;  %v290_v61 = vrot.slane %v1144_v8, 2  ;;  %v291_v62 = vrot.slane %v1153_v10, 2 }
   0xf   :  { %1006 = vmatpush3.bf16.msra.mxu0 %v1076_v12  ;;  %975 = vmatprep.subr.bf16.mxu1 %v1079_v38  ;;  %v212_v63 = vsel %vm207_vm4, %v209_v47, %v211_v57  ;;  %v634_v7 = vshrl.u32 %v887_v55, 16  ;;  %v718_v14 = vrot.slane %v886_v51, 1  ;;  %v719_v15 = vrot.slane %v887_v55, 1 }
  0x10   :  { %1007 = vmatprep.subr.bf16.mxu0 %v1078_v33  ;;  %977 = vmatprep.mubr.msk.bf16.mxu1 %vm81_vm2, %v1144_v8  ;;  %v629_v0 = vor.u32 %v628_v59, %v624_v58  ;;  %v632_v1 = vrot.slane %v630_v60, 1  ;;  %v292_v5 = vsel %vm289_vm5, %v290_v61, %v291_v62  ;;  %v638_v8 = vshll.u32 %v1090_v3, 16 }
  0x11   :  { %1009 = vmatprep.mubr.msk.bf16.mxu0 %vm81_vm2, %v464_v42  ;;  %v720_v19 = vsel %vm207_vm4, %v718_v14, %v719_v15 }
  0x12   :  { %976 = vmatpush3.bf16.msra.mxu1 %v1079_v38  ;;  %v633_v6 = vsel %vm48_vm0, %v629_v0, %v632_v1  ;;  %v636_v12 = vor.u32 %v634_v7, %v632_v1  ;;  %v640_v13 = vrot.slane %v638_v8, 1 }
  0x13   :  { %1008 = vmatpush3.bf16.msra.mxu0 %v1078_v33  ;;  %981 = vmatprep.subr.bf16.mxu1 %v1081_v43 }
  0x14   :  { %1013 = vmatprep.subr.bf16.mxu0 %v1080_v44  ;;  %v641_v17 = vsel %vm48_vm0, %v636_v12, %v640_v13 }
  0x19   :  { %978 = vmatmul.mubr.msk.bf16.vlgmr.msra.gmra.mrb[0].mxu1 %vm81_vm2, %v1153_v10  ;;  %v293_v10 = vrot.slane %v1157_v11, 2  ;;  %v721_v11 = vrot.slane %v1090_v3, 1 }
  0x1a   :  { %1010 = vmatmul.mubr.msk.bf16.vlgmr.msra.gmra.mrb[0].mxu0 %vm81_vm2, %v466_v48  ;;  %982 = vmatpush3.bf16.msra.mxu1 %v1081_v43 }
  0x1b   :  { %1014 = vmatpush3.bf16.msra.mxu0 %v1080_v44  ;;  %983 = vmatprep.subr.bf16.mxu1 %v1083_v49  ;;  %v294_v16 = vsel %vm289_vm5, %v291_v62, %v293_v10  ;;  %v722_v20 = vsel %vm207_vm4, %v719_v15, %v721_v11 }
  0x1c   :  { %1015 = vmatprep.subr.bf16.mxu0 %v1082_v50  ;;  %985 = vmatprep.mubr.msk.bf16.mxu1 %vm81_vm2, %v210_v52 }
  0x1d   :  { %1017 = vmatprep.mubr.msk.bf16.mxu0 %vm81_vm2, %v886_v51 }
  0x1e   :  { %984 = vmatpush3.bf16.msra.mxu1 %v1083_v49 }
  0x1f   :  { %1016 = vmatpush3.bf16.msra.mxu0 %v1082_v50  ;;  %989 = vmatprep.subr.bf16.mxu1 %v1087_v54 }
  0x20   :  { %1021 = vmatprep.subr.bf16.mxu0 %v1086_v56 }
  0x25   :  { %986 = vmatmul.mubr.msk.bf16.vlgmr.msra.gmra.mrb[0].mxu1 %vm81_vm2, %v212_v63 }
  0x26   :  { %1018 = vmatmul.mubr.msk.bf16.vlgmr.msra.gmra.mrb[0].mxu0 %vm81_vm2, %v887_v55  ;;  %990 = vmatpush3.bf16.msra.mxu1 %v1087_v54 }
  0x27   :  { %1022 = vmatpush3.bf16.msra.mxu0 %v1086_v56  ;;  %991 = vmatprep.subr.bf16.mxu1 %v1089_v2 }
  0x28   :  { %1023 = vmatprep.subr.bf16.mxu0 %v1088_v4  ;;  %993 = vmatprep.mubr.msk.bf16.mxu1 %vm81_vm2, %v292_v5 }
  0x29   :  { %1025 = vmatprep.mubr.msk.bf16.mxu0 %vm81_vm2, %v633_v6 }
  0x2a   :  { %992 = vmatpush3.bf16.msra.mxu1 %v1089_v2 }
  0x2b   :  { %1024 = vmatpush3.bf16.msra.mxu0 %v1088_v4 }
  0x2c   :  { %1029 = vmatprep.subr.bf16.mxu0 %v1091_v9 }
  0x31   :  { %994 = vmatmul.mubr.msk.bf16.vlgmr.msra.gmra.mrb[0].mxu1 %vm81_vm2, %v294_v16 }
  0x32   :  { %1026 = vmatmul.mubr.msk.bf16.vlgmr.msra.gmra.mrb[0].mxu0 %vm81_vm2, %v641_v17 }
  0x33   :  { %1030 = vmatpush3.bf16.msra.mxu0 %v1091_v9  ;;  %1033 = vmatprep.mubr.msk.bf16.mxu0 %vm81_vm2, %v720_v19 }
  0x34   :  { %1031 = vmatprep.subr.bf16.mxu0 %v1092_v18 }
  0x37   :  { %1032 = vmatpush3.bf16.msra.mxu0 %v1092_v18 }
  0x3e   :  { %1034 = vmatmul.mubr.msk.bf16.vlgmr.msra.gmra.mrb[0].mxu0 %vm81_vm2, %v722_v20 }
 0x104   :  { %v995_v21 = vpop.f32.mrb[0].mxu1 }
 0x105   :  { %v347_v22 = vpop.f32.mrb[1].mxu1 }
 0x106   :  { %v996_v23 = vpop.f32.mrb[2].mxu1 }
 0x107   :  { %v350_v24 = vpop.f32.mrb[3].mxu1 }
 0x111   :  { %v1035_v25 = vpop.f32.mrb[0].mxu0 }
 0x112   :  { %v1037_v27 = vadd.f32 %v1035_v25, %v995_v21  ;;  %v775_v28 = vpop.f32.mrb[1].mxu0 }
 0x113   :  { %v1038_v29 = vadd.f32 %v775_v28, %v347_v22  ;;  %v1036_v30 = vpop.f32.mrb[2].mxu0 }
 0x114   :  { %v803_v31 = vadd.f32 %v1037_v27, %v909_v26  ;;  %v1039_v32 = vadd.f32 %v1036_v30, %v996_v23  ;;  %v778_v33 = vpop.f32.mrb[3].mxu0 }
 0x115   :  { %v801_v34 = vadd.f32 %v1038_v29, %v909_v26  ;;  %v1040_v35 = vadd.f32 %v778_v33, %v350_v24 }
 0x116   :  { %v804_v36 = vadd.f32 %v1039_v32, %v909_v26  ;;  %v807_v38 = vmax.f32 %v803_v31, 0.0 }
 0x117   :  { %v802_v37 = vadd.f32 %v1040_v35, %v909_v26  ;;  %v805_v40 = vmax.f32 %v801_v34, 0.0 }
 0x118   :  { %v808_v39 = vmax.f32 %v804_v36, 0.0 }
 0x119   :  { %v806_v41 = vmax.f32 %v802_v37, 0.0 }
 0x11a   :  { %v926_v42 = vpack.c.bf16 %v808_v39, %v807_v38 }
 0x11b   :  { %v921_v43 = vpack.c.bf16 %v806_v41, %v805_v40 }
 0x11c   :  { %928 = vst [vmem:[%s1269_s3 + $0x8] sm:$0xff] %v926_v42  }
 0x11d   :  { %922 = vst [vmem:[%s1269_s3] sm:$0xff] %v921_v43  }

// kernel: stdcnet_forward.60
= control target key start
LH: loop header
LB: loop body
LE: loop exit
PB: predicated region body
PF: predicated region fallthrough
CT: control target
= control target key end

     0   :  { %s836_s1 = inlined_call_operand.vmem [shape: bf16[256,128], index: 1, kind: input, shape index: {}]   ;;  %s837_s0 = inlined_call_operand.vmem [shape: bf16[128,256], index: 0, kind: input, shape index: {}]   ;;  %s838_s2 = inlined_call_operand.vmem [shape: f32[1,128], index: 2, kind: input, shape index: {}]   ;;  %s839_s3 = inlined_call_operand.vmem [shape: bf16[128,128], index: 3, kind: output, shape index: {}]  }
   0x1   :  { %v635_v0 = vld [vmem:[%s836_s1 + $0x40] sm:$0xff]   ;;  %v637_v2 = vld [vmem:[%s836_s1 + $0x48] sm:$0xff]   ;;  %v639_v4 = vld [vmem:[%s836_s1 + $0x50] sm:$0xff]  }
   0x2   :  { %v636_v1 = vld [vmem:[%s836_s1] sm:$0xff]   ;;  %555 = vmatprep.subr.bf16.mxu0 %v635_v0  ;;  %619 = vmatprep.subr.bf16.mxu1 %v635_v0  ;;  %v638_v3 = vld [vmem:[%s836_s1 + $0x8] sm:$0xff]   ;;  %v640_v5 = vld [vmem:[%s836_s1 + $0x10] sm:$0xff]  }
   0x3   :  { %556 = vmatpush3.bf16.msra.mxu0 %v636_v1  ;;  %627 = vmatpush3.bf16.msra.mxu1 %v636_v1  ;;  %v641_v6 = vld [vmem:[%s836_s1 + $0x58] sm:$0xff]   ;;  %v643_v8 = vld [vmem:[%s836_s1 + $0x60] sm:$0xff]   ;;  %v645_v10 = vld [vmem:[%s836_s1 + $0x68] sm:$0xff]  }
   0x4   :  { %557 = vmatprep.subr.bf16.mxu0 %v637_v2  ;;  %620 = vmatprep.subr.bf16.mxu1 %v637_v2  ;;  %v642_v7 = vld [vmem:[%s836_s1 + $0x18] sm:$0xff]   ;;  %v644_v9 = vld [vmem:[%s836_s1 + $0x20] sm:$0xff]   ;;  %v646_v13 = vld [vmem:[%s836_s1 + $0x28] sm:$0xff]  }
   0x5   :  { %v653_v11 = vld [vmem:[%s837_s0 + $0x4] ss:$8 sps:$4 sm:$0xff]   ;;  %v647_v14 = vld [vmem:[%s836_s1 + $0x70] sm:$0xff]   ;;  %v649_v16 = vld [vmem:[%s836_s1 + $0x78] sm:$0xff]  }
   0x6   :  { %v656_v12 = vld [vmem:[%s837_s0 + $0x44] ss:$8 sps:$4 sm:$0xff]   ;;  %278 = vmatprep.mubr.bf16.mxu0 %v653_v11  ;;  %v648_v15 = vld [vmem:[%s836_s1 + $0x30] sm:$0xff]   ;;  %v650_v17 = vld [vmem:[%s836_s1 + $0x38] sm:$0xff]  }
   0x7   :  { %558 = vmatpush3.bf16.msra.mxu0 %v638_v3  ;;  %628 = vmatpush3.bf16.msra.mxu1 %v638_v3  ;;  %v651_v18 = vld [vmem:[%s837_s0] ss:$8 sps:$4 sm:$0xff]   ;;  %v657_v20 = vld [vmem:[%s837_s0 + $0x14] ss:$8 sps:$4 sm:$0xff]   ;;  %v661_v22 = vld [vmem:[%s837_s0 + $0x10] ss:$8 sps:$4 sm:$0xff]  }
   0x8   :  { %559 = vmatprep.subr.bf16.mxu0 %v639_v4  ;;  %621 = vmatprep.subr.bf16.mxu1 %v639_v4  ;;  %v654_v19 = vld [vmem:[%s837_s0 + $0x40] ss:$8 sps:$4 sm:$0xff]   ;;  %v659_v21 = vld [vmem:[%s837_s0 + $0x54] ss:$8 sps:$4 sm:$0xff]   ;;  %v662_v23 = vld [vmem:[%s837_s0 + $0x50] ss:$8 sps:$4 sm:$0xff]  }
   0x9   :  { %310 = vmatprep.mubr.bf16.mxu1 %v656_v12  ;;  %v663_v24 = vld [vmem:[%s837_s0 + $0x24] ss:$8 sps:$4 sm:$0xff]   ;;  %v667_v26 = vld [vmem:[%s837_s0 + $0x20] ss:$8 sps:$4 sm:$0xff]   ;;  %v669_v28 = vld [vmem:[%s837_s0 + $0x34] ss:$8 sps:$4 sm:$0xff]  }
   0xa   :  { %v665_v25 = vld [vmem:[%s837_s0 + $0x64] ss:$8 sps:$4 sm:$0xff]   ;;  %v668_v27 = vld [vmem:[%s837_s0 + $0x60] ss:$8 sps:$4 sm:$0xff]   ;;  %v671_v29 = vld [vmem:[%s837_s0 + $0x74] ss:$8 sps:$4 sm:$0xff]  }
   0xb   :  { %560 = vmatpush3.bf16.msra.mxu0 %v640_v5  ;;  %629 = vmatpush3.bf16.msra.mxu1 %v640_v5  ;;  %v673_v30 = vld [vmem:[%s837_s0 + $0x30] ss:$8 sps:$4 sm:$0xff]   ;;  %v794_v34 = vld [vmem:[%s838_s2] ss:$0 sm:$0xff] }
   0xc   :  { %561 = vmatprep.subr.bf16.mxu0 %v641_v6  ;;  %622 = vmatprep.subr.bf16.mxu1 %v641_v6  ;;  %v674_v31 = vld [vmem:[%s837_s0 + $0x70] ss:$8 sps:$4 sm:$0xff]  }
   0xf   :  { %562 = vmatpush3.bf16.msra.mxu0 %v642_v7  ;;  %630 = vmatpush3.bf16.msra.mxu1 %v642_v7 }
  0x10   :  { %563 = vmatprep.subr.bf16.mxu0 %v643_v8  ;;  %623 = vmatprep.subr.bf16.mxu1 %v643_v8 }
  0x13   :  { %564 = vmatpush3.bf16.msra.mxu0 %v644_v9  ;;  %631 = vmatpush3.bf16.msra.mxu1 %v644_v9 }
  0x14   :  { %565 = vmatprep.subr.bf16.mxu0 %v645_v10  ;;  %624 = vmatprep.subr.bf16.mxu1 %v645_v10 }
  0x17   :  { %566 = vmatpush3.bf16.msra.mxu0 %v646_v13  ;;  %632 = vmatpush3.bf16.msra.mxu1 %v646_v13 }
  0x18   :  { %567 = vmatprep.subr.bf16.mxu0 %v647_v14  ;;  %625 = vmatprep.subr.bf16.mxu1 %v647_v14 }
  0x1b   :  { %568 = vmatpush3.bf16.msra.mxu0 %v648_v15  ;;  %633 = vmatpush3.bf16.msra.mxu1 %v648_v15 }
  0x1c   :  { %569 = vmatprep.subr.bf16.mxu0 %v649_v16  ;;  %626 = vmatprep.subr.bf16.mxu1 %v649_v16 }
  0x1f   :  { %570 = vmatpush3.bf16.msra.mxu0 %v650_v17  ;;  %634 = vmatpush3.bf16.msra.mxu1 %v650_v17 }
  0x22   :  { %279 = vmatmul.mubr.bf16.vlgmr.msra.gmra.mrb[0].mxu0 %v651_v18  ;;  %311 = vmatmul.mubr.bf16.vlgmr.msra.gmra.mrb[0].mxu1 %v654_v19 }
  0x23   :  { %286 = vmatprep.mubr.bf16.mxu0 %v657_v20  ;;  %318 = vmatprep.mubr.bf16.mxu1 %v659_v21 }
  0x2a   :  { %287 = vmatmul.mubr.bf16.gmra.mrb[4].mxu0 %v661_v22  ;;  %319 = vmatmul.mubr.bf16.gmra.mrb[4].mxu1 %v662_v23 }
  0x2b   :  { %294 = vmatprep.mubr.bf16.mxu0 %v663_v24  ;;  %326 = vmatprep.mubr.bf16.mxu1 %v665_v25 }
  0x32   :  { %295 = vmatmul.mubr.bf16.gmra.mrb[8].mxu0 %v667_v26  ;;  %327 = vmatmul.mubr.bf16.gmra.mrb[8].mxu1 %v668_v27 }
  0x33   :  { %302 = vmatprep.mubr.bf16.mxu0 %v669_v28  ;;  %334 = vmatprep.mubr.bf16.mxu1 %v671_v29 }
  0x3a   :  { %303 = vmatmul.mubr.bf16.gmra.mrb[12].mxu0 %v673_v30  ;;  %335 = vmatmul.mubr.bf16.gmra.mrb[12].mxu1 %v674_v31 }
  0xf5   :  { %v571_v32 = vpop.f32.mrb[0].mxu0  ;;  %v595_v33 = vpop.f32.mrb[0].mxu1 }
  0xf6   :  { %v572_v35 = vpop.f32.mrb[1].mxu0  ;;  %v596_v36 = vpop.f32.mrb[1].mxu1 }
  0xf7   :  { %v573_v37 = vadd.f32 %v572_v35, %v571_v32  ;;  %v597_v38 = vadd.f32 %v596_v36, %v595_v33  ;;  %v574_v39 = vpop.f32.mrb[2].mxu0  ;;  %v598_v40 = vpop.f32.mrb[2].mxu1 }
  0xf8   :  { %v575_v41 = vpop.f32.mrb[3].mxu0  ;;  %v599_v42 = vpop.f32.mrb[3].mxu1 }
  0xf9   :  { %v281_v43 = vadd.f32 %v573_v37, %v794_v34  ;;  %v313_v44 = vadd.f32 %v597_v38, %v794_v34  ;;  %v576_v45 = vadd.f32 %v575_v41, %v574_v39  ;;  %v600_v46 = vadd.f32 %v599_v42, %v598_v40 }
  0xfb   :  { %v284_v47 = vadd.f32 %v576_v45, %v794_v34  ;;  %v316_v48 = vadd.f32 %v600_v46, %v794_v34  ;;  %v343_v49 = vmax.f32 %v281_v43, 0.0  ;;  %v351_v50 = vmax.f32 %v313_v44, 0.0 }
  0xfd   :  { %v344_v51 = vmax.f32 %v284_v47, 0.0  ;;  %v352_v52 = vmax.f32 %v316_v48, 0.0  ;;  %v577_v53 = vpop.f32.mrb[4].mxu0  ;;  %v601_v54 = vpop.f32.mrb[4].mxu1 }
  0xfe   :  { %v578_v55 = vpop.f32.mrb[5].mxu0  ;;  %v602_v56 = vpop.f32.mrb[5].mxu1 }
  0xff   :  { %v511_v57 = vpack.c.bf16 %v344_v51, %v343_v49  ;;  %v531_v58 = vpack.c.bf16 %v352_v52, %v351_v50  ;;  %v579_v59 = vadd.f32 %v578_v55, %v577_v53  ;;  %v603_v60 = vadd.f32 %v602_v56, %v601_v54  ;;  %v580_v61 = vpop.f32.mrb[6].mxu0  ;;  %v604_v62 = vpop.f32.mrb[6].mxu1 }
 0x100   :  { %v581_v63 = vpop.f32.mrb[7].mxu0  ;;  %v605_v0 = vpop.f32.mrb[7].mxu1 }
 0x101   :  { %512 = vst [vmem:[%s839_s3] sm:$0xff] %v511_v57   ;;  %551 = vst [vmem:[%s839_s3 + $0x20] sm:$0xff] %v531_v58   ;;  %v289_v1 = vadd.f32 %v579_v59, %v794_v34  ;;  %v321_v2 = vadd.f32 %v603_v60, %v794_v34  ;;  %v582_v3 = vadd.f32 %v581_v63, %v580_v61 }
 0x102   :  { %v606_v4 = vadd.f32 %v605_v0, %v604_v62 }
 0x103   :  { %v292_v5 = vadd.f32 %v582_v3, %v794_v34  ;;  %v345_v7 = vmax.f32 %v289_v1, 0.0  ;;  %v353_v8 = vmax.f32 %v321_v2, 0.0 }
 0x104   :  { %v324_v6 = vadd.f32 %v606_v4, %v794_v34 }
 0x105   :  { %v346_v9 = vmax.f32 %v292_v5, 0.0  ;;  %v583_v11 = vpop.f32.mrb[8].mxu0  ;;  %v607_v12 = vpop.f32.mrb[8].mxu1 }
 0x106   :  { %v354_v10 = vmax.f32 %v324_v6, 0.0  ;;  %v584_v13 = vpop.f32.mrb[9].mxu0  ;;  %v608_v14 = vpop.f32.mrb[9].mxu1 }
 0x107   :  { %v516_v15 = vpack.c.bf16 %v346_v9, %v345_v7  ;;  %v585_v17 = vadd.f32 %v584_v13, %v583_v11  ;;  %v609_v18 = vadd.f32 %v608_v14, %v607_v12  ;;  %v586_v19 = vpop.f32.mrb[10].mxu0  ;;  %v610_v20 = vpop.f32.mrb[10].mxu1 }
 0x108   :  { %v536_v16 = vpack.c.bf16 %v354_v10, %v353_v8  ;;  %v587_v21 = vpop.f32.mrb[11].mxu0  ;;  %v611_v22 = vpop.f32.mrb[11].mxu1 }
 0x109   :  { %548 = vst [vmem:[%s839_s3 + $0x8] sm:$0xff] %v516_v15   ;;  %v297_v23 = vadd.f32 %v585_v17, %v794_v34  ;;  %v329_v24 = vadd.f32 %v609_v18, %v794_v34  ;;  %v588_v25 = vadd.f32 %v587_v21, %v586_v19  ;;  %v612_v26 = vadd.f32 %v611_v22, %v610_v20 }
 0x10a   :  { %552 = vst [vmem:[%s839_s3 + $0x28] sm:$0xff] %v536_v16  }
 0x10b   :  { %v300_v27 = vadd.f32 %v588_v25, %v794_v34  ;;  %v332_v28 = vadd.f32 %v612_v26, %v794_v34  ;;  %v347_v29 = vmax.f32 %v297_v23, 0.0  ;;  %v355_v30 = vmax.f32 %v329_v24, 0.0 }
 0x10d   :  { %v348_v31 = vmax.f32 %v300_v27, 0.0  ;;  %v356_v32 = vmax.f32 %v332_v28, 0.0  ;;  %v589_v33 = vpop.f32.mrb[12].mxu0  ;;  %v613_v35 = vpop.f32.mrb[12].mxu1 }
 0x10e   :  { %v590_v36 = vpop.f32.mrb[13].mxu0  ;;  %v614_v37 = vpop.f32.mrb[13].mxu1 }
 0x10f   :  { %v521_v38 = vpack.c.bf16 %v348_v31, %v347_v29  ;;  %v541_v39 = vpack.c.bf16 %v356_v32, %v355_v30  ;;  %v591_v40 = vadd.f32 %v590_v36, %v589_v33  ;;  %v615_v41 = vadd.f32 %v614_v37, %v613_v35  ;;  %v592_v42 = vpop.f32.mrb[14].mxu0  ;;  %v616_v43 = vpop.f32.mrb[14].mxu1 }
 0x110   :  { %v593_v44 = vpop.f32.mrb[15].mxu0  ;;  %v617_v45 = vpop.f32.mrb[15].mxu1 }
 0x111   :  { %549 = vst [vmem:[%s839_s3 + $0x10] sm:$0xff] %v521_v38   ;;  %553 = vst [vmem:[%s839_s3 + $0x30] sm:$0xff] %v541_v39   ;;  %v305_v46 = vadd.f32 %v591_v40, %v794_v34  ;;  %v337_v47 = vadd.f32 %v615_v41, %v794_v34  ;;  %v594_v48 = vadd.f32 %v593_v44, %v592_v42 }
 0x112   :  { %v618_v49 = vadd.f32 %v617_v45, %v616_v43 }
 0x113   :  { %v308_v50 = vadd.f32 %v594_v48, %v794_v34  ;;  %v349_v52 = vmax.f32 %v305_v46, 0.0  ;;  %v357_v53 = vmax.f32 %v337_v47, 0.0 }
 0x114   :  { %v340_v51 = vadd.f32 %v618_v49, %v794_v34 }
 0x115   :  { %v350_v54 = vmax.f32 %v308_v50, 0.0 }
 0x116   :  { %v358_v55 = vmax.f32 %v340_v51, 0.0 }
 0x117   :  { %v526_v56 = vpack.c.bf16 %v350_v54, %v349_v52 }
 0x118   :  { %v546_v57 = vpack.c.bf16 %v358_v55, %v357_v53 }
 0x119   :  { %550 = vst [vmem:[%s839_s3 + $0x18] sm:$0xff] %v526_v56  }
 0x11a   :  { %554 = vst [vmem:[%s839_s3 + $0x38] sm:$0xff] %v546_v57  }

</bundles_post_ra>
